<compile_context>
chip_gen: v7x
topology: tpu7x:2x2x1
jax: 0.10.0
libtpu: 0.0.40
codegen_flags: <defaults>
</compile_context>

<pallas_src>
import functools
import math
from typing import NamedTuple

import jax
import jax.numpy as jnp
from jax import lax
from jax.experimental import pallas as pl
from jax.experimental.pallas import tpu as pltpu


# ----------------------------------------------------------------------------
# GELU (f32). Exact erf matches torch.nn.GELU(); tanh approx is the fallback if
# erf does not lower on the current Mosaic build (~1e-3 max abs difference).
# ----------------------------------------------------------------------------
def _gelu_f32(x, exact):
    if exact:
        return 0.5 * x * (1.0 + lax.erf(x * (1.0 / math.sqrt(2.0))))
    c = math.sqrt(2.0 / math.pi)
    return 0.5 * x * (1.0 + jnp.tanh(c * (x + 0.044715 * x * x * x)))


_ERF_OK = None


def _erf_lowers():
    """Probe whether lax.erf lowers inside a Pallas TPU kernel on this build."""
    global _ERF_OK
    if _ERF_OK is None:
        def k(x_ref, o_ref):
            o_ref[...] = lax.erf(x_ref[...])
        try:
            out = pl.pallas_call(
                k, out_shape=jax.ShapeDtypeStruct((8, 128), jnp.float32)
            )(jnp.zeros((8, 128), jnp.float32))
            jax.block_until_ready(out)
            _ERF_OK = True
        except Exception:
            _ERF_OK = False
    return _ERF_OK


# ----------------------------------------------------------------------------
# Fused stride-1 conv kernel: tap accumulation + bias + optional GELU.
# ----------------------------------------------------------------------------
def _conv_kernel(x_ref, w_ref, b_ref, o_ref, *, k, th, wo, cout,
                 apply_gelu, exact_gelu):
    """One (batch, output-row-tile) grid point of a valid stride-1 k x k conv.

    x_ref: (1, Hp, Wp, Cin)  bf16 - full padded input of this batch element,
                                    resident in VMEM across all row tiles.
    w_ref: (k*k, Cin, Cout)  bf16 - tap-major packed weights.
    b_ref: (1, Cout)         f32
    o_ref: (1, th, wo, Cout)      - output row tile (pipelined over the grid).
    """
    r0 = pl.program_id(1) * th
    # Hoisted out of the row loop (avoid re-broadcasting per iteration).
    bias = jnp.broadcast_to(b_ref[...], (wo, cout))

    def row_body(r, carry):
        acc = bias                                            # f32 accumulator
        for dy in range(k):                                   # taps unrolled
            for dx in range(k):
                xs = x_ref[0, r0 + r + dy, pl.ds(dx, wo), :]  # (wo, Cin) bf16
                acc = acc + jnp.dot(xs, w_ref[dy * k + dx],
                                    preferred_element_type=jnp.float32)
        if apply_gelu:
            acc = _gelu_f32(acc, exact_gelu)
        o_ref[0, r] = acc.astype(o_ref.dtype)
        return carry

    lax.fori_loop(0, th, row_body, 0)


def _pick_row_tile(ho, wo):
    # Aim for a few thousand output pixels per grid step (amortizes ~0.35us
    # per-step overhead) while keeping the output block small; must divide ho
    # exactly so there are no partial blocks / out-of-bounds tap reads.
    th = min(ho, max(1, 4096 // max(wo, 1)))
    while ho % th:
        th -= 1
    return th


def _fused_conv_s1(x, w_packed, bias, *, k, apply_gelu, exact_gelu, out_dtype):
    """x: (B, Hp, Wp, Cin) bf16, already padded. Valid stride-1 conv."""
    b, hp, wp, cin = x.shape
    taps, cin2, cout = w_packed.shape
    assert taps == k * k and cin2 == cin
    ho, wo = hp - k + 1, wp - k + 1
    th = _pick_row_tile(ho, wo)
    kernel = functools.partial(
        _conv_kernel, k=k, th=th, wo=wo, cout=cout,
        apply_gelu=apply_gelu, exact_gelu=exact_gelu)
    # TODO(synk): for very large images the resident per-batch input block
    # should be row-tiled with a halo (manual DMA) instead of held whole in
    # VMEM; fine for the channel widths / sizes this module targets.
    return pl.pallas_call(
        kernel,
        out_shape=jax.ShapeDtypeStruct((b, ho, wo, cout), out_dtype),
        grid=(b, ho // th),
        in_specs=[
            # Input block index depends only on the batch axis -> fetched once
            # per batch element and reused for every output-row tile.
            pl.BlockSpec((1, hp, wp, cin), lambda bi, ti: (bi, 0, 0, 0)),
            pl.BlockSpec((taps, cin, cout), lambda bi, ti: (0, 0, 0)),
            pl.BlockSpec((1, cout), lambda bi, ti: (0, 0)),
        ],
        out_specs=pl.BlockSpec((1, th, wo, cout), lambda bi, ti: (bi, ti, 0, 0)),
        compiler_params=pltpu.CompilerParams(
            dimension_semantics=("parallel", "parallel"),
            vmem_limit_bytes=48 * 1024 * 1024),
    )(x, w_packed, bias)


# ----------------------------------------------------------------------------
# Glue (plain JAX data movement between kernels).
# ----------------------------------------------------------------------------
def _space_to_depth2(x):
    """(B, 2A, 2C, ch) -> (B, A, C, 4*ch), channel order (row-par, col-par, ch)."""
    b, h, w, c = x.shape
    x = x.reshape(b, h // 2, 2, w // 2, 2, c)
    x = jnp.transpose(x, (0, 1, 3, 2, 4, 5))
    return x.reshape(b, h // 2, w // 2, 4 * c)


def pixel_shuffle_nhwc(x, r=2):
    """torch.nn.PixelShuffle(r) semantics, NHWC layout."""
    b, h, w, c = x.shape
    co = c // (r * r)
    x = x.reshape(b, h, w, co, r, r)
    x = jnp.transpose(x, (0, 1, 4, 2, 5, 3))
    return x.reshape(b, h * r, w * r, co)


def reflect_pad_nhwc(x, p):
    return jnp.pad(x, ((0, 0), (p, p), (p, p), (0, 0)), mode="reflect")


class LayerCfg(NamedTuple):
    k_orig: int
    k_eff: int
    stride: int
    pad: int
    cout: int


def conv_layer(x, wts, cfg, *, apply_gelu, exact_gelu, out_dtype=jnp.bfloat16):
    """x: (B, H, W, Cin) NHWC bf16."""
    if cfg.pad:
        # TODO(synk): zero/reflect padding and space-to-depth are XLA glue (one
        # extra HBM pass each); folding them into the kernel's index math would
        # shave the remaining ~10-20% of inter-layer HBM traffic.
        x = jnp.pad(x, ((0, 0), (cfg.pad, cfg.pad), (cfg.pad, cfg.pad), (0, 0)))
    b, hp, wp, cin = x.shape
    if cfg.stride == 2:
        ho = (hp - cfg.k_orig) // 2 + 1
        wo = (wp - cfg.k_orig) // 2 + 1
        hp2 = 2 * (ho + cfg.k_eff - 1)
        wp2 = 2 * (wo + cfg.k_eff - 1)
        x = jnp.pad(x, ((0, 0), (0, max(0, hp2 - hp)),
                        (0, max(0, wp2 - wp)), (0, 0)))
        # stride-2 k x k conv == stride-1 k_eff x k_eff conv on the 2x2 phases.
        x = _space_to_depth2(x)
    return _fused_conv_s1(x, wts["w"], wts["b"], k=cfg.k_eff,
                          apply_gelu=apply_gelu, exact_gelu=exact_gelu,
                          out_dtype=out_dtype)


# ----------------------------------------------------------------------------
# Parameters: deterministic torch-default init + one-time kernel packing.
# ----------------------------------------------------------------------------
def _layer_table(in_nc, m, out_nc):
    # name: (cout, cin, k, stride, pad)
    return {
        "convdown_1": (2 * m, in_nc, 7, 2, 0),    # reflect-pad 3 applied outside
        "conv_en1_1": (2 * m, 2 * m, 3, 1, 1),
        "convdown_2": (4 * m, 2 * m, 3, 2, 1),
        "conv_en2_1": (4 * m, 4 * m, 3, 1, 1),
        "convdown_3": (8 * m, 4 * m, 3, 2, 1),
        "conv_en3_1": (8 * m, 8 * m, 3, 1, 1),
        "convdown_4": (16 * m, 8 * m, 3, 2, 1),
        "blockup_4":  (8 * m, 4 * m, 3, 1, 1),    # UpBlock(4m, 8m) conv (post-shuffle)
        "conv_de3_1": (8 * m, 8 * m, 3, 1, 1),
        "blockup_3":  (4 * m, 2 * m, 3, 1, 1),    # UpBlock(2m, 4m)
        "conv_de2_1": (4 * m, 4 * m, 3, 1, 1),
        "blockup_2":  (2 * m, m, 3, 1, 1),        # UpBlock(m, 2m)
        "conv_de1_1": (2 * m, 2 * m, 3, 1, 1),
        "blockup_1":  (m // 2, m // 2, 3, 1, 1),  # UpBlock(m//2, m//2)
        "lastconv":   (out_nc, m // 2, 7, 1, 0),  # reflect-pad 3 applied outside
    }


def _pack_conv(w, bias, stride):
    """Torch-layout (Cout, Cin, k, k) weight -> tap-major (T, Cin_eff, Cout) bf16.

    Stride-2 convs become an equivalent stride-1 conv over the space-to-depth
    input: k_eff = ceil(k/2), Cin_eff = 4*Cin (missing taps are zero-filled).
    """
    cout, cin, k, _ = w.shape
    if stride == 1:
        wp = jnp.transpose(w, (2, 3, 1, 0)).reshape(k * k, cin, cout)
        k_eff = k
    else:
        kq = (k + 1) // 2
        wp = jnp.zeros((kq, kq, 2, 2, cin, cout), jnp.float32)
        for qy in range(kq):
            for qx in range(kq):
                for ry in range(2):
                    for rx in range(2):
                        dy, dx = 2 * qy + ry, 2 * qx + rx
                        if dy < k and dx < k:
                            wp = wp.at[qy, qx, ry, rx].set(w[:, :, dy, dx].T)
        wp = wp.reshape(kq * kq, 4 * cin, cout)
        k_eff = kq
    return wp.astype(jnp.bfloat16), bias.reshape(1, cout).astype(jnp.float32), k_eff


def init_params(key, in_nc, mid_nc, out_nc):
    """Returns (weights, cfgs): weights = arrays only (jit-traced); cfgs = static ints."""
    table = _layer_table(in_nc, mid_nc, out_nc)
    weights, cfgs = {}, {}
    keys = jax.random.split(key, len(table))
    for kk, (name, (cout, cin, ks, stride, pad)) in zip(keys, table.items()):
        kw, kb = jax.random.split(kk)
        fan_in = cin * ks * ks
        bound = 1.0 / math.sqrt(fan_in)
        w = jax.random.uniform(kw, (cout, cin, ks, ks), jnp.float32, -bound, bound)
        b = jax.random.uniform(kb, (cout,), jnp.float32, -bound, bound)
        w_packed, b_packed, k_eff = _pack_conv(w, b, stride)
        weights[name] = {"w": w_packed, "b": b_packed}
        cfgs[name] = LayerCfg(k_orig=ks, k_eff=k_eff, stride=stride,
                              pad=pad, cout=cout)
    # NOTE: conv_de2_1_1x1 / conv_de1_1_1x1 / pixelshuffle2x are declared in
    # __init__ but never used by forward(), so they are not materialized.
    return weights, cfgs


# ----------------------------------------------------------------------------
# Forward pass (mirrors SimpleAEUnet.forward, sequential chain).
# ----------------------------------------------------------------------------
def simple_ae_unet_forward(x_nchw, weights, *, cfgs, exact_gelu=True):
    def conv(name, x, **kw):
        return conv_layer(x, weights[name], cfgs[name], exact_gelu=exact_gelu, **kw)

    x = jnp.transpose(x_nchw, (0, 2, 3, 1)).astype(jnp.bfloat16)  # NCHW -> NHWC bf16
    mid = reflect_pad_nhwc(x, 3)
    mid = conv("convdown_1", mid, apply_gelu=True)
    mid = conv("conv_en1_1", mid, apply_gelu=True)
    mid = conv("convdown_2", mid, apply_gelu=True)
    mid = conv("conv_en2_1", mid, apply_gelu=True)
    mid = conv("convdown_3", mid, apply_gelu=True)
    mid = conv("conv_en3_1", mid, apply_gelu=True)
    mid = conv("convdown_4", mid, apply_gelu=True)
    # TODO(synk): blocks.UpBlock(c_in, c_out, up_type='shuffle') is external to
    # the given source; the forward channel arithmetic forces PixelShuffle(2)
    # followed by Conv2d(c_in, c_out, 3, padding=1), implemented that way here.
    mid = pixel_shuffle_nhwc(mid, 2)
    mid = conv("blockup_4", mid, apply_gelu=True)
    mid = conv("conv_de3_1", mid, apply_gelu=True)
    mid = pixel_shuffle_nhwc(mid, 2)
    mid = conv("blockup_3", mid, apply_gelu=True)
    mid = conv("conv_de2_1", mid, apply_gelu=True)
    mid = pixel_shuffle_nhwc(mid, 2)
    mid = conv("blockup_2", mid, apply_gelu=True)
    mid = conv("conv_de1_1", mid, apply_gelu=True)
    mid = pixel_shuffle_nhwc(mid, 2)
    mid = conv("blockup_1", mid, apply_gelu=True)
    mid = reflect_pad_nhwc(mid, 3)
    out = conv("lastconv", mid, apply_gelu=False, out_dtype=jnp.float32)
    return jnp.transpose(out, (0, 3, 1, 2))                      # NHWC -> NCHW


if __name__ == "__main__":
    in_nc, mid_nc, out_nc = 3, 4, 3
    B, H, W = 2, 16, 16

    key = jax.random.PRNGKey(0)
    k_x, k_p = jax.random.split(key)
    x_nchw = jax.random.normal(k_x, (B, in_nc, H, W), dtype=jnp.float32)
    weights, cfgs = init_params(k_p, in_nc, mid_nc, out_nc)

    exact = _erf_lowers()
    fwd = jax.jit(functools.partial(simple_ae_unet_forward, cfgs=cfgs,
                                    exact_gelu=exact))
    out = jax.block_until_ready(fwd(x_nchw, weights))

    assert out.shape == (B, out_nc, H, W), out.shape
    assert bool(jnp.all(jnp.isfinite(out)))
    print("KERNEL_OK")
</pallas_src>

<mosaic_0001>
module attributes {stable_mosaic.version = 11 : i64} {
  func.func @k(%arg0: memref<8x128xf32, #tpu.memory_space<vmem>>, %arg1: memref<8x128xf32, #tpu.memory_space<vmem>>) attributes {dimension_semantics = [], scalar_prefetch = 0 : i64, scratch_operands = 0 : i64, tpu.core_type = #tpu.core_type<tc>} {
    %c0 = arith.constant 0 : index
    %c0_0 = arith.constant 0 : index
    %0 = vector.load %arg0[%c0, %c0_0] : memref<8x128xf32, #tpu.memory_space<vmem>>, vector<8x128xf32>
    %1 = math.erf %0 : vector<8x128xf32>
    %c0_1 = arith.constant 0 : index
    %c0_2 = arith.constant 0 : index
    %2 = vector.load %arg1[%c0_1, %c0_2] : memref<8x128xf32, #tpu.memory_space<vmem>>, vector<8x128xf32>
    tpu.vector_store %arg1[%c0_1, %c0_2], %1 {strides = array<i32>} : memref<8x128xf32, #tpu.memory_space<vmem>>, vector<8x128xf32>,
    return
  }
}

module attributes {stable_mosaic.version = 11 : i64} {
  func.func @_conv_kernel(%arg0: i32, %arg1: i32, %arg2: memref<1x11x11x12xbf16, #tpu.memory_space<vmem>>, %arg3: memref<16x12x8xbf16, #tpu.memory_space<vmem>>, %arg4: memref<1x8xf32, #tpu.memory_space<vmem>>, %arg5: memref<1x8x8x8xbf16, #tpu.memory_space<vmem>>) attributes {dimension_semantics = [#tpu.dimension_semantics<parallel>, #tpu.dimension_semantics<parallel>], iteration_bounds = array<i64: 2, 1>, scalar_prefetch = 0 : i64, scratch_operands = 0 : i64, tpu.core_type = #tpu.core_type<tc>, window_params = [{transform_indices = @transform_0, window_bounds = array<i64: 1, 11, 11, 12>}, {pipeline_mode = #tpu.pipeline_mode<synchronous>, transform_indices = @transform_1, window_bounds = array<i64: 16, 12, 8>}, {pipeline_mode = #tpu.pipeline_mode<synchronous>, transform_indices = @transform_2, window_bounds = array<i64: 1, 8>}, {transform_indices = @transform_3, window_bounds = array<i64: 1, 8, 8, 8>}]} {
    %c8_i32 = arith.constant 8 : i32
    %0 = arith.muli %arg1, %c8_i32 : i32
    %c0 = arith.constant 0 : index
    %c0_0 = arith.constant 0 : index
    %1 = vector.load %arg4[%c0, %c0_0] : memref<1x8xf32, #tpu.memory_space<vmem>>, vector<1x8xf32>
    %2 = vector.shape_cast %1 : vector<1x8xf32> to vector<1x8xf32>
    %3 = vector.broadcast %2 : vector<1x8xf32> to vector<8x8xf32>
    %c0_i32 = arith.constant 0 : i32
    %c8_i32_1 = arith.constant 8 : i32
    %4 = arith.addi %c0_i32, %c8_i32_1 : i32
    %c1_i32 = arith.constant 1 : i32
    scf.for %arg6 = %c0_i32 to %4 step %c1_i32  : i32 {
      %5 = arith.addi %0, %arg6 : i32
      %c0_i32_3 = arith.constant 0 : i32
      %6 = arith.addi %5, %c0_i32_3 : i32
      %c0_4 = arith.constant 0 : index
      %7 = arith.index_cast %6 : i32 to index
      %c0_5 = arith.constant 0 : index
      %c0_6 = arith.constant 0 : index
      %8 = vector.load %arg2[%c0_4, %7, %c0_5, %c0_6] : memref<1x11x11x12xbf16, #tpu.memory_space<vmem>>, vector<1x1x8x12xbf16>
      %9 = vector.shape_cast %8 : vector<1x1x8x12xbf16> to vector<8x12xbf16>
      %c0_7 = arith.constant 0 : index
      %c0_8 = arith.constant 0 : index
      %c0_9 = arith.constant 0 : index
      %10 = vector.load %arg3[%c0_7, %c0_8, %c0_9] : memref<16x12x8xbf16, #tpu.memory_space<vmem>>, vector<1x12x8xbf16>
      %11 = vector.shape_cast %10 : vector<1x12x8xbf16> to vector<12x8xbf16>
      %cst = arith.constant dense<0.000000e+00> : vector<8x8xf32>
      %12 = tpu.matmul %9, %11, %cst {dimension_numbers = #tpu.dot_dimension_numbers<[1], [0], [0], [1], [0, 0, 1, 1], [], []>} : vector<8x12xbf16>, vector<12x8xbf16>, vector<8x8xf32> -> vector<8x8xf32>
      %13 = arith.addf %3, %12 : vector<8x8xf32>
      %14 = arith.addi %0, %arg6 : i32
      %c0_i32_10 = arith.constant 0 : i32
      %15 = arith.addi %14, %c0_i32_10 : i32
      %c0_11 = arith.constant 0 : index
      %16 = arith.index_cast %15 : i32 to index
      %c1 = arith.constant 1 : index
      %c0_12 = arith.constant 0 : index
      %17 = vector.load %arg2[%c0_11, %16, %c1, %c0_12] : memref<1x11x11x12xbf16, #tpu.memory_space<vmem>>, vector<1x1x8x12xbf16>
      %18 = vector.shape_cast %17 : vector<1x1x8x12xbf16> to vector<8x12xbf16>
      %c1_13 = arith.constant 1 : index
      %c0_14 = arith.constant 0 : index
      %c0_15 = arith.constant 0 : index
      %19 = vector.load %arg3[%c1_13, %c0_14, %c0_15] : memref<16x12x8xbf16, #tpu.memory_space<vmem>>, vector<1x12x8xbf16>
      %20 = vector.shape_cast %19 : vector<1x12x8xbf16> to vector<12x8xbf16>
      %cst_16 = arith.constant dense<0.000000e+00> : vector<8x8xf32>
      %21 = tpu.matmul %18, %20, %cst_16 {dimension_numbers = #tpu.dot_dimension_numbers<[1], [0], [0], [1], [0, 0, 1, 1], [], []>} : vector<8x12xbf16>, vector<12x8xbf16>, vector<8x8xf32> -> vector<8x8xf32>
      %22 = arith.addf %13, %21 : vector<8x8xf32>
      %23 = arith.addi %0, %arg6 : i32
      %c0_i32_17 = arith.constant 0 : i32
      %24 = arith.addi %23, %c0_i32_17 : i32
      %c0_18 = arith.constant 0 : index
      %25 = arith.index_cast %24 : i32 to index
      %c2 = arith.constant 2 : index
      %c0_19 = arith.constant 0 : index
      %26 = vector.load %arg2[%c0_18, %25, %c2, %c0_19] : memref<1x11x11x12xbf16, #tpu.memory_space<vmem>>, vector<1x1x8x12xbf16>
      %27 = vector.shape_cast %26 : vector<1x1x8x12xbf16> to vector<8x12xbf16>
      %c2_20 = arith.constant 2 : index
      %c0_21 = arith.constant 0 : index
      %c0_22 = arith.constant 0 : index
      %28 = vector.load %arg3[%c2_20, %c0_21, %c0_22] : memref<16x12x8xbf16, #tpu.memory_space<vmem>>, vector<1x12x8xbf16>
      %29 = vector.shape_cast %28 : vector<1x12x8xbf16> to vector<12x8xbf16>
      %cst_23 = arith.constant dense<0.000000e+00> : vector<8x8xf32>
      %30 = tpu.matmul %27, %29, %cst_23 {dimension_numbers = #tpu.dot_dimension_numbers<[1], [0], [0], [1], [0, 0, 1, 1], [], []>} : vector<8x12xbf16>, vector<12x8xbf16>, vector<8x8xf32> -> vector<8x8xf32>
      %31 = arith.addf %22, %30 : vector<8x8xf32>
      %32 = arith.addi %0, %arg6 : i32
      %c0_i32_24 = arith.constant 0 : i32
      %33 = arith.addi %32, %c0_i32_24 : i32
      %c0_25 = arith.constant 0 : index
      %34 = arith.index_cast %33 : i32 to index
      %c3 = arith.constant 3 : index
      %c0_26 = arith.constant 0 : index
      %35 = vector.load %arg2[%c0_25, %34, %c3, %c0_26] : memref<1x11x11x12xbf16, #tpu.memory_space<vmem>>, vector<1x1x8x12xbf16>
      %36 = vector.shape_cast %35 : vector<1x1x8x12xbf16> to vector<8x12xbf16>
      %c3_27 = arith.constant 3 : index
      %c0_28 = arith.constant 0 : index
      %c0_29 = arith.constant 0 : index
      %37 = vector.load %arg3[%c3_27, %c0_28, %c0_29] : memref<16x12x8xbf16, #tpu.memory_space<vmem>>, vector<1x12x8xbf16>
      %38 = vector.shape_cast %37 : vector<1x12x8xbf16> to vector<12x8xbf16>
      %cst_30 = arith.constant dense<0.000000e+00> : vector<8x8xf32>
      %39 = tpu.matmul %36, %38, %cst_30 {dimension_numbers = #tpu.dot_dimension_numbers<[1], [0], [0], [1], [0, 0, 1, 1], [], []>} : vector<8x12xbf16>, vector<12x8xbf16>, vector<8x8xf32> -> vector<8x8xf32>
      %40 = arith.addf %31, %39 : vector<8x8xf32>
      %41 = arith.addi %0, %arg6 : i32
      %c1_i32_31 = arith.constant 1 : i32
      %42 = arith.addi %41, %c1_i32_31 : i32
      %c0_32 = arith.constant 0 : index
      %43 = arith.index_cast %42 : i32 to index
      %c0_33 = arith.constant 0 : index
      %c0_34 = arith.constant 0 : index
      %44 = vector.load %arg2[%c0_32, %43, %c0_33, %c0_34] : memref<1x11x11x12xbf16, #tpu.memory_space<vmem>>, vector<1x1x8x12xbf16>
      %45 = vector.shape_cast %44 : vector<1x1x8x12xbf16> to vector<8x12xbf16>
      %c4 = arith.constant 4 : index
      %c0_35 = arith.constant 0 : index
      %c0_36 = arith.constant 0 : index
      %46 = vector.load %arg3[%c4, %c0_35, %c0_36] : memref<16x12x8xbf16, #tpu.memory_space<vmem>>, vector<1x12x8xbf16>
      %47 = vector.shape_cast %46 : vector<1x12x8xbf16> to vector<12x8xbf16>
      %cst_37 = arith.constant dense<0.000000e+00> : vector<8x8xf32>
      %48 = tpu.matmul %45, %47, %cst_37 {dimension_numbers = #tpu.dot_dimension_numbers<[1], [0], [0], [1], [0, 0, 1, 1], [], []>} : vector<8x12xbf16>, vector<12x8xbf16>, vector<8x8xf32> -> vector<8x8xf32>
      %49 = arith.addf %40, %48 : vector<8x8xf32>
      %50 = arith.addi %0, %arg6 : i32
      %c1_i32_38 = arith.constant 1 : i32
      %51 = arith.addi %50, %c1_i32_38 : i32
      %c0_39 = arith.constant 0 : index
      %52 = arith.index_cast %51 : i32 to index
      %c1_40 = arith.constant 1 : index
      %c0_41 = arith.constant 0 : index
      %53 = vector.load %arg2[%c0_39, %52, %c1_40, %c0_41] : memref<1x11x11x12xbf16, #tpu.memory_space<vmem>>, vector<1x1x8x12xbf16>
      %54 = vector.shape_cast %53 : vector<1x1x8x12xbf16> to vector<8x12xbf16>
      %c5 = arith.constant 5 : index
      %c0_42 = arith.constant 0 : index
      %c0_43 = arith.constant 0 : index
      %55 = vector.load %arg3[%c5, %c0_42, %c0_43] : memref<16x12x8xbf16, #tpu.memory_space<vmem>>, vector<1x12x8xbf16>
      %56 = vector.shape_cast %55 : vector<1x12x8xbf16> to vector<12x8xbf16>
      %cst_44 = arith.constant dense<0.000000e+00> : vector<8x8xf32>
      %57 = tpu.matmul %54, %56, %cst_44 {dimension_numbers = #tpu.dot_dimension_numbers<[1], [0], [0], [1], [0, 0, 1, 1], [], []>} : vector<8x12xbf16>, vector<12x8xbf16>, vector<8x8xf32> -> vector<8x8xf32>
      %58 = arith.addf %49, %57 : vector<8x8xf32>
      %59 = arith.addi %0, %arg6 : i32
      %c1_i32_45 = arith.constant 1 : i32
      %60 = arith.addi %59, %c1_i32_45 : i32
      %c0_46 = arith.constant 0 : index
      %61 = arith.index_cast %60 : i32 to index
      %c2_47 = arith.constant 2 : index
      %c0_48 = arith.constant 0 : index
      %62 = vector.load %arg2[%c0_46, %61, %c2_47, %c0_48] : memref<1x11x11x12xbf16, #tpu.memory_space<vmem>>, vector<1x1x8x12xbf16>
      %63 = vector.shape_cast %62 : vector<1x1x8x12xbf16> to vector<8x12xbf16>
      %c6 = arith.constant 6 : index
      %c0_49 = arith.constant 0 : index
      %c0_50 = arith.constant 0 : index
      %64 = vector.load %arg3[%c6, %c0_49, %c0_50] : memref<16x12x8xbf16, #tpu.memory_space<vmem>>, vector<1x12x8xbf16>
      %65 = vector.shape_cast %64 : vector<1x12x8xbf16> to vector<12x8xbf16>
      %cst_51 = arith.constant dense<0.000000e+00> : vector<8x8xf32>
      %66 = tpu.matmul %63, %65, %cst_51 {dimension_numbers = #tpu.dot_dimension_numbers<[1], [0], [0], [1], [0, 0, 1, 1], [], []>} : vector<8x12xbf16>, vector<12x8xbf16>, vector<8x8xf32> -> vector<8x8xf32>
      %67 = arith.addf %58, %66 : vector<8x8xf32>
      %68 = arith.addi %0, %arg6 : i32
      %c1_i32_52 = arith.constant 1 : i32
      %69 = arith.addi %68, %c1_i32_52 : i32
      %c0_53 = arith.constant 0 : index
      %70 = arith.index_cast %69 : i32 to index
      %c3_54 = arith.constant 3 : index
      %c0_55 = arith.constant 0 : index
      %71 = vector.load %arg2[%c0_53, %70, %c3_54, %c0_55] : memref<1x11x11x12xbf16, #tpu.memory_space<vmem>>, vector<1x1x8x12xbf16>
      %72 = vector.shape_cast %71 : vector<1x1x8x12xbf16> to vector<8x12xbf16>
      %c7 = arith.constant 7 : index
      %c0_56 = arith.constant 0 : index
      %c0_57 = arith.constant 0 : index
      %73 = vector.load %arg3[%c7, %c0_56, %c0_57] : memref<16x12x8xbf16, #tpu.memory_space<vmem>>, vector<1x12x8xbf16>
      %74 = vector.shape_cast %73 : vector<1x12x8xbf16> to vector<12x8xbf16>
      %cst_58 = arith.constant dense<0.000000e+00> : vector<8x8xf32>
      %75 = tpu.matmul %72, %74, %cst_58 {dimension_numbers = #tpu.dot_dimension_numbers<[1], [0], [0], [1], [0, 0, 1, 1], [], []>} : vector<8x12xbf16>, vector<12x8xbf16>, vector<8x8xf32> -> vector<8x8xf32>
      %76 = arith.addf %67, %75 : vector<8x8xf32>
      %77 = arith.addi %0, %arg6 : i32
      %c2_i32 = arith.constant 2 : i32
      %78 = arith.addi %77, %c2_i32 : i32
      %c0_59 = arith.constant 0 : index
      %79 = arith.index_cast %78 : i32 to index
      %c0_60 = arith.constant 0 : index
      %c0_61 = arith.constant 0 : index
      %80 = vector.load %arg2[%c0_59, %79, %c0_60, %c0_61] : memref<1x11x11x12xbf16, #tpu.memory_space<vmem>>, vector<1x1x8x12xbf16>
      %81 = vector.shape_cast %80 : vector<1x1x8x12xbf16> to vector<8x12xbf16>
      %c8 = arith.constant 8 : index
      %c0_62 = arith.constant 0 : index
      %c0_63 = arith.constant 0 : index
      %82 = vector.load %arg3[%c8, %c0_62, %c0_63] : memref<16x12x8xbf16, #tpu.memory_space<vmem>>, vector<1x12x8xbf16>
      %83 = vector.shape_cast %82 : vector<1x12x8xbf16> to vector<12x8xbf16>
      %cst_64 = arith.constant dense<0.000000e+00> : vector<8x8xf32>
      %84 = tpu.matmul %81, %83, %cst_64 {dimension_numbers = #tpu.dot_dimension_numbers<[1], [0], [0], [1], [0, 0, 1, 1], [], []>} : vector<8x12xbf16>, vector<12x8xbf16>, vector<8x8xf32> -> vector<8x8xf32>
      %85 = arith.addf %76, %84 : vector<8x8xf32>
      %86 = arith.addi %0, %arg6 : i32
      %c2_i32_65 = arith.constant 2 : i32
      %87 = arith.addi %86, %c2_i32_65 : i32
      %c0_66 = arith.constant 0 : index
      %88 = arith.index_cast %87 : i32 to index
      %c1_67 = arith.constant 1 : index
      %c0_68 = arith.constant 0 : index
      %89 = vector.load %arg2[%c0_66, %88, %c1_67, %c0_68] : memref<1x11x11x12xbf16, #tpu.memory_space<vmem>>, vector<1x1x8x12xbf16>
      %90 = vector.shape_cast %89 : vector<1x1x8x12xbf16> to vector<8x12xbf16>
      %c9 = arith.constant 9 : index
      %c0_69 = arith.constant 0 : index
      %c0_70 = arith.constant 0 : index
      %91 = vector.load %arg3[%c9, %c0_69, %c0_70] : memref<16x12x8xbf16, #tpu.memory_space<vmem>>, vector<1x12x8xbf16>
      %92 = vector.shape_cast %91 : vector<1x12x8xbf16> to vector<12x8xbf16>
      %cst_71 = arith.constant dense<0.000000e+00> : vector<8x8xf32>
      %93 = tpu.matmul %90, %92, %cst_71 {dimension_numbers = #tpu.dot_dimension_numbers<[1], [0], [0], [1], [0, 0, 1, 1], [], []>} : vector<8x12xbf16>, vector<12x8xbf16>, vector<8x8xf32> -> vector<8x8xf32>
      %94 = arith.addf %85, %93 : vector<8x8xf32>
      %95 = arith.addi %0, %arg6 : i32
      %c2_i32_72 = arith.constant 2 : i32
      %96 = arith.addi %95, %c2_i32_72 : i32
      %c0_73 = arith.constant 0 : index
      %97 = arith.index_cast %96 : i32 to index
      %c2_74 = arith.constant 2 : index
      %c0_75 = arith.constant 0 : index
      %98 = vector.load %arg2[%c0_73, %97, %c2_74, %c0_75] : memref<1x11x11x12xbf16, #tpu.memory_space<vmem>>, vector<1x1x8x12xbf16>
      %99 = vector.shape_cast %98 : vector<1x1x8x12xbf16> to vector<8x12xbf16>
      %c10 = arith.constant 10 : index
      %c0_76 = arith.constant 0 : index
      %c0_77 = arith.constant 0 : index
      %100 = vector.load %arg3[%c10, %c0_76, %c0_77] : memref<16x12x8xbf16, #tpu.memory_space<vmem>>, vector<1x12x8xbf16>
      %101 = vector.shape_cast %100 : vector<1x12x8xbf16> to vector<12x8xbf16>
      %cst_78 = arith.constant dense<0.000000e+00> : vector<8x8xf32>
      %102 = tpu.matmul %99, %101, %cst_78 {dimension_numbers = #tpu.dot_dimension_numbers<[1], [0], [0], [1], [0, 0, 1, 1], [], []>} : vector<8x12xbf16>, vector<12x8xbf16>, vector<8x8xf32> -> vector<8x8xf32>
      %103 = arith.addf %94, %102 : vector<8x8xf32>
      %104 = arith.addi %0, %arg6 : i32
      %c2_i32_79 = arith.constant 2 : i32
      %105 = arith.addi %104, %c2_i32_79 : i32
      %c0_80 = arith.constant 0 : index
      %106 = arith.index_cast %105 : i32 to index
      %c3_81 = arith.constant 3 : index
      %c0_82 = arith.constant 0 : index
      %107 = vector.load %arg2[%c0_80, %106, %c3_81, %c0_82] : memref<1x11x11x12xbf16, #tpu.memory_space<vmem>>, vector<1x1x8x12xbf16>
      %108 = vector.shape_cast %107 : vector<1x1x8x12xbf16> to vector<8x12xbf16>
      %c11 = arith.constant 11 : index
      %c0_83 = arith.constant 0 : index
      %c0_84 = arith.constant 0 : index
      %109 = vector.load %arg3[%c11, %c0_83, %c0_84] : memref<16x12x8xbf16, #tpu.memory_space<vmem>>, vector<1x12x8xbf16>
      %110 = vector.shape_cast %109 : vector<1x12x8xbf16> to vector<12x8xbf16>
      %cst_85 = arith.constant dense<0.000000e+00> : vector<8x8xf32>
      %111 = tpu.matmul %108, %110, %cst_85 {dimension_numbers = #tpu.dot_dimension_numbers<[1], [0], [0], [1], [0, 0, 1, 1], [], []>} : vector<8x12xbf16>, vector<12x8xbf16>, vector<8x8xf32> -> vector<8x8xf32>
      %112 = arith.addf %103, %111 : vector<8x8xf32>
      %113 = arith.addi %0, %arg6 : i32
      %c3_i32 = arith.constant 3 : i32
      %114 = arith.addi %113, %c3_i32 : i32
      %c0_86 = arith.constant 0 : index
      %115 = arith.index_cast %114 : i32 to index
      %c0_87 = arith.constant 0 : index
      %c0_88 = arith.constant 0 : index
      %116 = vector.load %arg2[%c0_86, %115, %c0_87, %c0_88] : memref<1x11x11x12xbf16, #tpu.memory_space<vmem>>, vector<1x1x8x12xbf16>
      %117 = vector.shape_cast %116 : vector<1x1x8x12xbf16> to vector<8x12xbf16>
      %c12 = arith.constant 12 : index
      %c0_89 = arith.constant 0 : index
      %c0_90 = arith.constant 0 : index
      %118 = vector.load %arg3[%c12, %c0_89, %c0_90] : memref<16x12x8xbf16, #tpu.memory_space<vmem>>, vector<1x12x8xbf16>
      %119 = vector.shape_cast %118 : vector<1x12x8xbf16> to vector<12x8xbf16>
      %cst_91 = arith.constant dense<0.000000e+00> : vector<8x8xf32>
      %120 = tpu.matmul %117, %119, %cst_91 {dimension_numbers = #tpu.dot_dimension_numbers<[1], [0], [0], [1], [0, 0, 1, 1], [], []>} : vector<8x12xbf16>, vector<12x8xbf16>, vector<8x8xf32> -> vector<8x8xf32>
      %121 = arith.addf %112, %120 : vector<8x8xf32>
      %122 = arith.addi %0, %arg6 : i32
      %c3_i32_92 = arith.constant 3 : i32
      %123 = arith.addi %122, %c3_i32_92 : i32
      %c0_93 = arith.constant 0 : index
      %124 = arith.index_cast %123 : i32 to index
      %c1_94 = arith.constant 1 : index
      %c0_95 = arith.constant 0 : index
      %125 = vector.load %arg2[%c0_93, %124, %c1_94, %c0_95] : memref<1x11x11x12xbf16, #tpu.memory_space<vmem>>, vector<1x1x8x12xbf16>
      %126 = vector.shape_cast %125 : vector<1x1x8x12xbf16> to vector<8x12xbf16>
      %c13 = arith.constant 13 : index
      %c0_96 = arith.constant 0 : index
      %c0_97 = arith.constant 0 : index
      %127 = vector.load %arg3[%c13, %c0_96, %c0_97] : memref<16x12x8xbf16, #tpu.memory_space<vmem>>, vector<1x12x8xbf16>
      %128 = vector.shape_cast %127 : vector<1x12x8xbf16> to vector<12x8xbf16>
      %cst_98 = arith.constant dense<0.000000e+00> : vector<8x8xf32>
      %129 = tpu.matmul %126, %128, %cst_98 {dimension_numbers = #tpu.dot_dimension_numbers<[1], [0], [0], [1], [0, 0, 1, 1], [], []>} : vector<8x12xbf16>, vector<12x8xbf16>, vector<8x8xf32> -> vector<8x8xf32>
      %130 = arith.addf %121, %129 : vector<8x8xf32>
      %131 = arith.addi %0, %arg6 : i32
      %c3_i32_99 = arith.constant 3 : i32
      %132 = arith.addi %131, %c3_i32_99 : i32
      %c0_100 = arith.constant 0 : index
      %133 = arith.index_cast %132 : i32 to index
      %c2_101 = arith.constant 2 : index
      %c0_102 = arith.constant 0 : index
      %134 = vector.load %arg2[%c0_100, %133, %c2_101, %c0_102] : memref<1x11x11x12xbf16, #tpu.memory_space<vmem>>, vector<1x1x8x12xbf16>
      %135 = vector.shape_cast %134 : vector<1x1x8x12xbf16> to vector<8x12xbf16>
      %c14 = arith.constant 14 : index
      %c0_103 = arith.constant 0 : index
      %c0_104 = arith.constant 0 : index
      %136 = vector.load %arg3[%c14, %c0_103, %c0_104] : memref<16x12x8xbf16, #tpu.memory_space<vmem>>, vector<1x12x8xbf16>
      %137 = vector.shape_cast %136 : vector<1x12x8xbf16> to vector<12x8xbf16>
      %cst_105 = arith.constant dense<0.000000e+00> : vector<8x8xf32>
      %138 = tpu.matmul %135, %137, %cst_105 {dimension_numbers = #tpu.dot_dimension_numbers<[1], [0], [0], [1], [0, 0, 1, 1], [], []>} : vector<8x12xbf16>, vector<12x8xbf16>, vector<8x8xf32> -> vector<8x8xf32>
      %139 = arith.addf %130, %138 : vector<8x8xf32>
      %140 = arith.addi %0, %arg6 : i32
      %c3_i32_106 = arith.constant 3 : i32
      %141 = arith.addi %140, %c3_i32_106 : i32
      %c0_107 = arith.constant 0 : index
      %142 = arith.index_cast %141 : i32 to index
      %c3_108 = arith.constant 3 : index
      %c0_109 = arith.constant 0 : index
      %143 = vector.load %arg2[%c0_107, %142, %c3_108, %c0_109] : memref<1x11x11x12xbf16, #tpu.memory_space<vmem>>, vector<1x1x8x12xbf16>
      %144 = vector.shape_cast %143 : vector<1x1x8x12xbf16> to vector<8x12xbf16>
      %c15 = arith.constant 15 : index
      %c0_110 = arith.constant 0 : index
      %c0_111 = arith.constant 0 : index
      %145 = vector.load %arg3[%c15, %c0_110, %c0_111] : memref<16x12x8xbf16, #tpu.memory_space<vmem>>, vector<1x12x8xbf16>
      %146 = vector.shape_cast %145 : vector<1x12x8xbf16> to vector<12x8xbf16>
      %cst_112 = arith.constant dense<0.000000e+00> : vector<8x8xf32>
      %147 = tpu.matmul %144, %146, %cst_112 {dimension_numbers = #tpu.dot_dimension_numbers<[1], [0], [0], [1], [0, 0, 1, 1], [], []>} : vector<8x12xbf16>, vector<12x8xbf16>, vector<8x8xf32> -> vector<8x8xf32>
      %148 = arith.addf %139, %147 : vector<8x8xf32>
      %cst_113 = arith.constant 5.000000e-01 : f32
      %149 = vector.broadcast %cst_113 : f32 to vector<8x8xf32>
      %150 = arith.mulf %149, %148 : vector<8x8xf32>
      %cst_114 = arith.constant 4.471500e-02 : f32
      %151 = vector.broadcast %cst_114 : f32 to vector<8x8xf32>
      %152 = arith.mulf %151, %148 : vector<8x8xf32>
      %153 = arith.mulf %152, %148 : vector<8x8xf32>
      %154 = arith.mulf %153, %148 : vector<8x8xf32>
      %155 = arith.addf %148, %154 : vector<8x8xf32>
      %cst_115 = arith.constant 0.797884583 : f32
      %156 = vector.broadcast %cst_115 : f32 to vector<8x8xf32>
      %157 = arith.mulf %156, %155 : vector<8x8xf32>
      %158 = math.tanh %157 : vector<8x8xf32>
      %cst_116 = arith.constant 1.000000e+00 : f32
      %159 = vector.broadcast %cst_116 : f32 to vector<8x8xf32>
      %160 = arith.addf %159, %158 : vector<8x8xf32>
      %161 = arith.mulf %150, %160 : vector<8x8xf32>
      %162 = arith.truncf %161 : vector<8x8xf32> to vector<8x8xbf16>
      %c0_117 = arith.constant 0 : index
      %163 = arith.index_cast %arg6 : i32 to index
      %c0_118 = arith.constant 0 : index
      %c0_119 = arith.constant 0 : index
      %164 = vector.load %arg5[%c0_117, %163, %c0_118, %c0_119] : memref<1x8x8x8xbf16, #tpu.memory_space<vmem>>, vector<1x1x8x8xbf16>
      %165 = vector.shape_cast %164 : vector<1x1x8x8xbf16> to vector<8x8xbf16>
      %166 = vector.shape_cast %162 : vector<8x8xbf16> to vector<1x1x8x8xbf16>
      tpu.vector_store %arg5[%c0_117, %163, %c0_118, %c0_119], %166 {strides = array<i32>} : memref<1x8x8x8xbf16, #tpu.memory_space<vmem>>, vector<1x1x8x8xbf16>,
    }
    %c8_i32_2 = arith.constant 8 : i32
    return
  }
  func.func @transform_0(%arg0: i32, %arg1: i32) -> (i32, i32, i32, i32) {
    %c0_i32 = arith.constant 0 : i32
    %c0_i32_0 = arith.constant 0 : i32
    %c0_i32_1 = arith.constant 0 : i32
    %c0_i32_2 = arith.constant 0 : i32
    return %arg0, %c0_i32, %c0_i32_0, %c0_i32_1 : i32, i32, i32, i32
  }
  func.func @transform_1(%arg0: i32, %arg1: i32) -> (i32, i32, i32) {
    %c0_i32 = arith.constant 0 : i32
    %c0_i32_0 = arith.constant 0 : i32
    %c0_i32_1 = arith.constant 0 : i32
    %c0_i32_2 = arith.constant 0 : i32
    return %c0_i32, %c0_i32_0, %c0_i32_1 : i32, i32, i32
  }
  func.func @transform_2(%arg0: i32, %arg1: i32) -> (i32, i32) {
    %c0_i32 = arith.constant 0 : i32
    %c0_i32_0 = arith.constant 0 : i32
    %c0_i32_1 = arith.constant 0 : i32
    return %c0_i32, %c0_i32_0 : i32, i32
  }
  func.func @transform_3(%arg0: i32, %arg1: i32) -> (i32, i32, i32, i32) {
    %c0_i32 = arith.constant 0 : i32
    %c0_i32_0 = arith.constant 0 : i32
    %c0_i32_1 = arith.constant 0 : i32
    return %arg0, %arg1, %c0_i32, %c0_i32_0 : i32, i32, i32, i32
  }
}

module attributes {stable_mosaic.version = 11 : i64} {
  func.func @_conv_kernel(%arg0: i32, %arg1: i32, %arg2: memref<1x10x10x8xbf16, #tpu.memory_space<vmem>>, %arg3: memref<9x8x8xbf16, #tpu.memory_space<vmem>>, %arg4: memref<1x8xf32, #tpu.memory_space<vmem>>, %arg5: memref<1x8x8x8xbf16, #tpu.memory_space<vmem>>) attributes {dimension_semantics = [#tpu.dimension_semantics<parallel>, #tpu.dimension_semantics<parallel>], iteration_bounds = array<i64: 2, 1>, scalar_prefetch = 0 : i64, scratch_operands = 0 : i64, tpu.core_type = #tpu.core_type<tc>, window_params = [{transform_indices = @transform_0, window_bounds = array<i64: 1, 10, 10, 8>}, {pipeline_mode = #tpu.pipeline_mode<synchronous>, transform_indices = @transform_1, window_bounds = array<i64: 9, 8, 8>}, {pipeline_mode = #tpu.pipeline_mode<synchronous>, transform_indices = @transform_2, window_bounds = array<i64: 1, 8>}, {transform_indices = @transform_3, window_bounds = array<i64: 1, 8, 8, 8>}]} {
    %c8_i32 = arith.constant 8 : i32
    %0 = arith.muli %arg1, %c8_i32 : i32
    %c0 = arith.constant 0 : index
    %c0_0 = arith.constant 0 : index
    %1 = vector.load %arg4[%c0, %c0_0] : memref<1x8xf32, #tpu.memory_space<vmem>>, vector<1x8xf32>
    %2 = vector.shape_cast %1 : vector<1x8xf32> to vector<1x8xf32>
    %3 = vector.broadcast %2 : vector<1x8xf32> to vector<8x8xf32>
    %c0_i32 = arith.constant 0 : i32
    %c8_i32_1 = arith.constant 8 : i32
    %4 = arith.addi %c0_i32, %c8_i32_1 : i32
    %c1_i32 = arith.constant 1 : i32
    scf.for %arg6 = %c0_i32 to %4 step %c1_i32  : i32 {
      %5 = arith.addi %0, %arg6 : i32
      %c0_i32_3 = arith.constant 0 : i32
      %6 = arith.addi %5, %c0_i32_3 : i32
      %c0_4 = arith.constant 0 : index
      %7 = arith.index_cast %6 : i32 to index
      %c0_5 = arith.constant 0 : index
      %c0_6 = arith.constant 0 : index
      %8 = vector.load %arg2[%c0_4, %7, %c0_5, %c0_6] : memref<1x10x10x8xbf16, #tpu.memory_space<vmem>>, vector<1x1x8x8xbf16>
      %9 = vector.shape_cast %8 : vector<1x1x8x8xbf16> to vector<8x8xbf16>
      %c0_7 = arith.constant 0 : index
      %c0_8 = arith.constant 0 : index
      %c0_9 = arith.constant 0 : index
      %10 = vector.load %arg3[%c0_7, %c0_8, %c0_9] : memref<9x8x8xbf16, #tpu.memory_space<vmem>>, vector<1x8x8xbf16>
      %11 = vector.shape_cast %10 : vector<1x8x8xbf16> to vector<8x8xbf16>
      %cst = arith.constant dense<0.000000e+00> : vector<8x8xf32>
      %12 = tpu.matmul %9, %11, %cst {dimension_numbers = #tpu.dot_dimension_numbers<[1], [0], [0], [1], [0, 0, 1, 1], [], []>} : vector<8x8xbf16>, vector<8x8xbf16>, vector<8x8xf32> -> vector<8x8xf32>
      %13 = arith.addf %3, %12 : vector<8x8xf32>
      %14 = arith.addi %0, %arg6 : i32
      %c0_i32_10 = arith.constant 0 : i32
      %15 = arith.addi %14, %c0_i32_10 : i32
      %c0_11 = arith.constant 0 : index
      %16 = arith.index_cast %15 : i32 to index
      %c1 = arith.constant 1 : index
      %c0_12 = arith.constant 0 : index
      %17 = vector.load %arg2[%c0_11, %16, %c1, %c0_12] : memref<1x10x10x8xbf16, #tpu.memory_space<vmem>>, vector<1x1x8x8xbf16>
      %18 = vector.shape_cast %17 : vector<1x1x8x8xbf16> to vector<8x8xbf16>
      %c1_13 = arith.constant 1 : index
      %c0_14 = arith.constant 0 : index
      %c0_15 = arith.constant 0 : index
      %19 = vector.load %arg3[%c1_13, %c0_14, %c0_15] : memref<9x8x8xbf16, #tpu.memory_space<vmem>>, vector<1x8x8xbf16>
      %20 = vector.shape_cast %19 : vector<1x8x8xbf16> to vector<8x8xbf16>
      %cst_16 = arith.constant dense<0.000000e+00> : vector<8x8xf32>
      %21 = tpu.matmul %18, %20, %cst_16 {dimension_numbers = #tpu.dot_dimension_numbers<[1], [0], [0], [1], [0, 0, 1, 1], [], []>} : vector<8x8xbf16>, vector<8x8xbf16>, vector<8x8xf32> -> vector<8x8xf32>
      %22 = arith.addf %13, %21 : vector<8x8xf32>
      %23 = arith.addi %0, %arg6 : i32
      %c0_i32_17 = arith.constant 0 : i32
      %24 = arith.addi %23, %c0_i32_17 : i32
      %c0_18 = arith.constant 0 : index
      %25 = arith.index_cast %24 : i32 to index
      %c2 = arith.constant 2 : index
      %c0_19 = arith.constant 0 : index
      %26 = vector.load %arg2[%c0_18, %25, %c2, %c0_19] : memref<1x10x10x8xbf16, #tpu.memory_space<vmem>>, vector<1x1x8x8xbf16>
      %27 = vector.shape_cast %26 : vector<1x1x8x8xbf16> to vector<8x8xbf16>
      %c2_20 = arith.constant 2 : index
      %c0_21 = arith.constant 0 : index
      %c0_22 = arith.constant 0 : index
      %28 = vector.load %arg3[%c2_20, %c0_21, %c0_22] : memref<9x8x8xbf16, #tpu.memory_space<vmem>>, vector<1x8x8xbf16>
      %29 = vector.shape_cast %28 : vector<1x8x8xbf16> to vector<8x8xbf16>
      %cst_23 = arith.constant dense<0.000000e+00> : vector<8x8xf32>
      %30 = tpu.matmul %27, %29, %cst_23 {dimension_numbers = #tpu.dot_dimension_numbers<[1], [0], [0], [1], [0, 0, 1, 1], [], []>} : vector<8x8xbf16>, vector<8x8xbf16>, vector<8x8xf32> -> vector<8x8xf32>
      %31 = arith.addf %22, %30 : vector<8x8xf32>
      %32 = arith.addi %0, %arg6 : i32
      %c1_i32_24 = arith.constant 1 : i32
      %33 = arith.addi %32, %c1_i32_24 : i32
      %c0_25 = arith.constant 0 : index
      %34 = arith.index_cast %33 : i32 to index
      %c0_26 = arith.constant 0 : index
      %c0_27 = arith.constant 0 : index
      %35 = vector.load %arg2[%c0_25, %34, %c0_26, %c0_27] : memref<1x10x10x8xbf16, #tpu.memory_space<vmem>>, vector<1x1x8x8xbf16>
      %36 = vector.shape_cast %35 : vector<1x1x8x8xbf16> to vector<8x8xbf16>
      %c3 = arith.constant 3 : index
      %c0_28 = arith.constant 0 : index
      %c0_29 = arith.constant 0 : index
      %37 = vector.load %arg3[%c3, %c0_28, %c0_29] : memref<9x8x8xbf16, #tpu.memory_space<vmem>>, vector<1x8x8xbf16>
      %38 = vector.shape_cast %37 : vector<1x8x8xbf16> to vector<8x8xbf16>
      %cst_30 = arith.constant dense<0.000000e+00> : vector<8x8xf32>
      %39 = tpu.matmul %36, %38, %cst_30 {dimension_numbers = #tpu.dot_dimension_numbers<[1], [0], [0], [1], [0, 0, 1, 1], [], []>} : vector<8x8xbf16>, vector<8x8xbf16>, vector<8x8xf32> -> vector<8x8xf32>
      %40 = arith.addf %31, %39 : vector<8x8xf32>
      %41 = arith.addi %0, %arg6 : i32
      %c1_i32_31 = arith.constant 1 : i32
      %42 = arith.addi %41, %c1_i32_31 : i32
      %c0_32 = arith.constant 0 : index
      %43 = arith.index_cast %42 : i32 to index
      %c1_33 = arith.constant 1 : index
      %c0_34 = arith.constant 0 : index
      %44 = vector.load %arg2[%c0_32, %43, %c1_33, %c0_34] : memref<1x10x10x8xbf16, #tpu.memory_space<vmem>>, vector<1x1x8x8xbf16>
      %45 = vector.shape_cast %44 : vector<1x1x8x8xbf16> to vector<8x8xbf16>
      %c4 = arith.constant 4 : index
      %c0_35 = arith.constant 0 : index
      %c0_36 = arith.constant 0 : index
      %46 = vector.load %arg3[%c4, %c0_35, %c0_36] : memref<9x8x8xbf16, #tpu.memory_space<vmem>>, vector<1x8x8xbf16>
      %47 = vector.shape_cast %46 : vector<1x8x8xbf16> to vector<8x8xbf16>
      %cst_37 = arith.constant dense<0.000000e+00> : vector<8x8xf32>
      %48 = tpu.matmul %45, %47, %cst_37 {dimension_numbers = #tpu.dot_dimension_numbers<[1], [0], [0], [1], [0, 0, 1, 1], [], []>} : vector<8x8xbf16>, vector<8x8xbf16>, vector<8x8xf32> -> vector<8x8xf32>
      %49 = arith.addf %40, %48 : vector<8x8xf32>
      %50 = arith.addi %0, %arg6 : i32
      %c1_i32_38 = arith.constant 1 : i32
      %51 = arith.addi %50, %c1_i32_38 : i32
      %c0_39 = arith.constant 0 : index
      %52 = arith.index_cast %51 : i32 to index
      %c2_40 = arith.constant 2 : index
      %c0_41 = arith.constant 0 : index
      %53 = vector.load %arg2[%c0_39, %52, %c2_40, %c0_41] : memref<1x10x10x8xbf16, #tpu.memory_space<vmem>>, vector<1x1x8x8xbf16>
      %54 = vector.shape_cast %53 : vector<1x1x8x8xbf16> to vector<8x8xbf16>
      %c5 = arith.constant 5 : index
      %c0_42 = arith.constant 0 : index
      %c0_43 = arith.constant 0 : index
      %55 = vector.load %arg3[%c5, %c0_42, %c0_43] : memref<9x8x8xbf16, #tpu.memory_space<vmem>>, vector<1x8x8xbf16>
      %56 = vector.shape_cast %55 : vector<1x8x8xbf16> to vector<8x8xbf16>
      %cst_44 = arith.constant dense<0.000000e+00> : vector<8x8xf32>
      %57 = tpu.matmul %54, %56, %cst_44 {dimension_numbers = #tpu.dot_dimension_numbers<[1], [0], [0], [1], [0, 0, 1, 1], [], []>} : vector<8x8xbf16>, vector<8x8xbf16>, vector<8x8xf32> -> vector<8x8xf32>
      %58 = arith.addf %49, %57 : vector<8x8xf32>
      %59 = arith.addi %0, %arg6 : i32
      %c2_i32 = arith.constant 2 : i32
      %60 = arith.addi %59, %c2_i32 : i32
      %c0_45 = arith.constant 0 : index
      %61 = arith.index_cast %60 : i32 to index
      %c0_46 = arith.constant 0 : index
      %c0_47 = arith.constant 0 : index
      %62 = vector.load %arg2[%c0_45, %61, %c0_46, %c0_47] : memref<1x10x10x8xbf16, #tpu.memory_space<vmem>>, vector<1x1x8x8xbf16>
      %63 = vector.shape_cast %62 : vector<1x1x8x8xbf16> to vector<8x8xbf16>
      %c6 = arith.constant 6 : index
      %c0_48 = arith.constant 0 : index
      %c0_49 = arith.constant 0 : index
      %64 = vector.load %arg3[%c6, %c0_48, %c0_49] : memref<9x8x8xbf16, #tpu.memory_space<vmem>>, vector<1x8x8xbf16>
      %65 = vector.shape_cast %64 : vector<1x8x8xbf16> to vector<8x8xbf16>
      %cst_50 = arith.constant dense<0.000000e+00> : vector<8x8xf32>
      %66 = tpu.matmul %63, %65, %cst_50 {dimension_numbers = #tpu.dot_dimension_numbers<[1], [0], [0], [1], [0, 0, 1, 1], [], []>} : vector<8x8xbf16>, vector<8x8xbf16>, vector<8x8xf32> -> vector<8x8xf32>
      %67 = arith.addf %58, %66 : vector<8x8xf32>
      %68 = arith.addi %0, %arg6 : i32
      %c2_i32_51 = arith.constant 2 : i32
      %69 = arith.addi %68, %c2_i32_51 : i32
      %c0_52 = arith.constant 0 : index
      %70 = arith.index_cast %69 : i32 to index
      %c1_53 = arith.constant 1 : index
      %c0_54 = arith.constant 0 : index
      %71 = vector.load %arg2[%c0_52, %70, %c1_53, %c0_54] : memref<1x10x10x8xbf16, #tpu.memory_space<vmem>>, vector<1x1x8x8xbf16>
      %72 = vector.shape_cast %71 : vector<1x1x8x8xbf16> to vector<8x8xbf16>
      %c7 = arith.constant 7 : index
      %c0_55 = arith.constant 0 : index
      %c0_56 = arith.constant 0 : index
      %73 = vector.load %arg3[%c7, %c0_55, %c0_56] : memref<9x8x8xbf16, #tpu.memory_space<vmem>>, vector<1x8x8xbf16>
      %74 = vector.shape_cast %73 : vector<1x8x8xbf16> to vector<8x8xbf16>
      %cst_57 = arith.constant dense<0.000000e+00> : vector<8x8xf32>
      %75 = tpu.matmul %72, %74, %cst_57 {dimension_numbers = #tpu.dot_dimension_numbers<[1], [0], [0], [1], [0, 0, 1, 1], [], []>} : vector<8x8xbf16>, vector<8x8xbf16>, vector<8x8xf32> -> vector<8x8xf32>
      %76 = arith.addf %67, %75 : vector<8x8xf32>
      %77 = arith.addi %0, %arg6 : i32
      %c2_i32_58 = arith.constant 2 : i32
      %78 = arith.addi %77, %c2_i32_58 : i32
      %c0_59 = arith.constant 0 : index
      %79 = arith.index_cast %78 : i32 to index
      %c2_60 = arith.constant 2 : index
      %c0_61 = arith.constant 0 : index
      %80 = vector.load %arg2[%c0_59, %79, %c2_60, %c0_61] : memref<1x10x10x8xbf16, #tpu.memory_space<vmem>>, vector<1x1x8x8xbf16>
      %81 = vector.shape_cast %80 : vector<1x1x8x8xbf16> to vector<8x8xbf16>
      %c8 = arith.constant 8 : index
      %c0_62 = arith.constant 0 : index
      %c0_63 = arith.constant 0 : index
      %82 = vector.load %arg3[%c8, %c0_62, %c0_63] : memref<9x8x8xbf16, #tpu.memory_space<vmem>>, vector<1x8x8xbf16>
      %83 = vector.shape_cast %82 : vector<1x8x8xbf16> to vector<8x8xbf16>
      %cst_64 = arith.constant dense<0.000000e+00> : vector<8x8xf32>
      %84 = tpu.matmul %81, %83, %cst_64 {dimension_numbers = #tpu.dot_dimension_numbers<[1], [0], [0], [1], [0, 0, 1, 1], [], []>} : vector<8x8xbf16>, vector<8x8xbf16>, vector<8x8xf32> -> vector<8x8xf32>
      %85 = arith.addf %76, %84 : vector<8x8xf32>
      %cst_65 = arith.constant 5.000000e-01 : f32
      %86 = vector.broadcast %cst_65 : f32 to vector<8x8xf32>
      %87 = arith.mulf %86, %85 : vector<8x8xf32>
      %cst_66 = arith.constant 4.471500e-02 : f32
      %88 = vector.broadcast %cst_66 : f32 to vector<8x8xf32>
      %89 = arith.mulf %88, %85 : vector<8x8xf32>
      %90 = arith.mulf %89, %85 : vector<8x8xf32>
      %91 = arith.mulf %90, %85 : vector<8x8xf32>
      %92 = arith.addf %85, %91 : vector<8x8xf32>
      %cst_67 = arith.constant 0.797884583 : f32
      %93 = vector.broadcast %cst_67 : f32 to vector<8x8xf32>
      %94 = arith.mulf %93, %92 : vector<8x8xf32>
      %95 = math.tanh %94 : vector<8x8xf32>
      %cst_68 = arith.constant 1.000000e+00 : f32
      %96 = vector.broadcast %cst_68 : f32 to vector<8x8xf32>
      %97 = arith.addf %96, %95 : vector<8x8xf32>
      %98 = arith.mulf %87, %97 : vector<8x8xf32>
      %99 = arith.truncf %98 : vector<8x8xf32> to vector<8x8xbf16>
      %c0_69 = arith.constant 0 : index
      %100 = arith.index_cast %arg6 : i32 to index
      %c0_70 = arith.constant 0 : index
      %c0_71 = arith.constant 0 : index
      %101 = vector.load %arg5[%c0_69, %100, %c0_70, %c0_71] : memref<1x8x8x8xbf16, #tpu.memory_space<vmem>>, vector<1x1x8x8xbf16>
      %102 = vector.shape_cast %101 : vector<1x1x8x8xbf16> to vector<8x8xbf16>
      %103 = vector.shape_cast %99 : vector<8x8xbf16> to vector<1x1x8x8xbf16>
      tpu.vector_store %arg5[%c0_69, %100, %c0_70, %c0_71], %103 {strides = array<i32>} : memref<1x8x8x8xbf16, #tpu.memory_space<vmem>>, vector<1x1x8x8xbf16>,
    }
    %c8_i32_2 = arith.constant 8 : i32
    return
  }
  func.func @transform_0(%arg0: i32, %arg1: i32) -> (i32, i32, i32, i32) {
    %c0_i32 = arith.constant 0 : i32
    %c0_i32_0 = arith.constant 0 : i32
    %c0_i32_1 = arith.constant 0 : i32
    %c0_i32_2 = arith.constant 0 : i32
    return %arg0, %c0_i32, %c0_i32_0, %c0_i32_1 : i32, i32, i32, i32
  }
  func.func @transform_1(%arg0: i32, %arg1: i32) -> (i32, i32, i32) {
    %c0_i32 = arith.constant 0 : i32
    %c0_i32_0 = arith.constant 0 : i32
    %c0_i32_1 = arith.constant 0 : i32
    %c0_i32_2 = arith.constant 0 : i32
    return %c0_i32, %c0_i32_0, %c0_i32_1 : i32, i32, i32
  }
  func.func @transform_2(%arg0: i32, %arg1: i32) -> (i32, i32) {
    %c0_i32 = arith.constant 0 : i32
    %c0_i32_0 = arith.constant 0 : i32
    %c0_i32_1 = arith.constant 0 : i32
    return %c0_i32, %c0_i32_0 : i32, i32
  }
  func.func @transform_3(%arg0: i32, %arg1: i32) -> (i32, i32, i32, i32) {
    %c0_i32 = arith.constant 0 : i32
    %c0_i32_0 = arith.constant 0 : i32
    %c0_i32_1 = arith.constant 0 : i32
    return %arg0, %arg1, %c0_i32, %c0_i32_0 : i32, i32, i32, i32
  }
}

module attributes {stable_mosaic.version = 11 : i64} {
  func.func @_conv_kernel(%arg0: i32, %arg1: i32, %arg2: memref<1x5x5x32xbf16, #tpu.memory_space<vmem>>, %arg3: memref<4x32x16xbf16, #tpu.memory_space<vmem>>, %arg4: memref<1x16xf32, #tpu.memory_space<vmem>>, %arg5: memref<1x4x4x16xbf16, #tpu.memory_space<vmem>>) attributes {dimension_semantics = [#tpu.dimension_semantics<parallel>, #tpu.dimension_semantics<parallel>], iteration_bounds = array<i64: 2, 1>, scalar_prefetch = 0 : i64, scratch_operands = 0 : i64, tpu.core_type = #tpu.core_type<tc>, window_params = [{transform_indices = @transform_0, window_bounds = array<i64: 1, 5, 5, 32>}, {pipeline_mode = #tpu.pipeline_mode<synchronous>, transform_indices = @transform_1, window_bounds = array<i64: 4, 32, 16>}, {pipeline_mode = #tpu.pipeline_mode<synchronous>, transform_indices = @transform_2, window_bounds = array<i64: 1, 16>}, {transform_indices = @transform_3, window_bounds = array<i64: 1, 4, 4, 16>}]} {
    %c4_i32 = arith.constant 4 : i32
    %0 = arith.muli %arg1, %c4_i32 : i32
    %c0 = arith.constant 0 : index
    %c0_0 = arith.constant 0 : index
    %1 = vector.load %arg4[%c0, %c0_0] : memref<1x16xf32, #tpu.memory_space<vmem>>, vector<1x16xf32>
    %2 = vector.shape_cast %1 : vector<1x16xf32> to vector<1x16xf32>
    %3 = vector.broadcast %2 : vector<1x16xf32> to vector<4x16xf32>
    %c0_i32 = arith.constant 0 : i32
    %c4_i32_1 = arith.constant 4 : i32
    %4 = arith.addi %c0_i32, %c4_i32_1 : i32
    %c1_i32 = arith.constant 1 : i32
    scf.for %arg6 = %c0_i32 to %4 step %c1_i32  : i32 {
      %5 = arith.addi %0, %arg6 : i32
      %c0_i32_3 = arith.constant 0 : i32
      %6 = arith.addi %5, %c0_i32_3 : i32
      %c0_4 = arith.constant 0 : index
      %7 = arith.index_cast %6 : i32 to index
      %c0_5 = arith.constant 0 : index
      %c0_6 = arith.constant 0 : index
      %8 = vector.load %arg2[%c0_4, %7, %c0_5, %c0_6] : memref<1x5x5x32xbf16, #tpu.memory_space<vmem>>, vector<1x1x4x32xbf16>
      %9 = vector.shape_cast %8 : vector<1x1x4x32xbf16> to vector<4x32xbf16>
      %c0_7 = arith.constant 0 : index
      %c0_8 = arith.constant 0 : index
      %c0_9 = arith.constant 0 : index
      %10 = vector.load %arg3[%c0_7, %c0_8, %c0_9] : memref<4x32x16xbf16, #tpu.memory_space<vmem>>, vector<1x32x16xbf16>
      %11 = vector.shape_cast %10 : vector<1x32x16xbf16> to vector<32x16xbf16>
      %cst = arith.constant dense<0.000000e+00> : vector<4x16xf32>
      %12 = tpu.matmul %9, %11, %cst {dimension_numbers = #tpu.dot_dimension_numbers<[1], [0], [0], [1], [0, 0, 1, 1], [], []>} : vector<4x32xbf16>, vector<32x16xbf16>, vector<4x16xf32> -> vector<4x16xf32>
      %13 = arith.addf %3, %12 : vector<4x16xf32>
      %14 = arith.addi %0, %arg6 : i32
      %c0_i32_10 = arith.constant 0 : i32
      %15 = arith.addi %14, %c0_i32_10 : i32
      %c0_11 = arith.constant 0 : index
      %16 = arith.index_cast %15 : i32 to index
      %c1 = arith.constant 1 : index
      %c0_12 = arith.constant 0 : index
      %17 = vector.load %arg2[%c0_11, %16, %c1, %c0_12] : memref<1x5x5x32xbf16, #tpu.memory_space<vmem>>, vector<1x1x4x32xbf16>
      %18 = vector.shape_cast %17 : vector<1x1x4x32xbf16> to vector<4x32xbf16>
      %c1_13 = arith.constant 1 : index
      %c0_14 = arith.constant 0 : index
      %c0_15 = arith.constant 0 : index
      %19 = vector.load %arg3[%c1_13, %c0_14, %c0_15] : memref<4x32x16xbf16, #tpu.memory_space<vmem>>, vector<1x32x16xbf16>
      %20 = vector.shape_cast %19 : vector<1x32x16xbf16> to vector<32x16xbf16>
      %cst_16 = arith.constant dense<0.000000e+00> : vector<4x16xf32>
      %21 = tpu.matmul %18, %20, %cst_16 {dimension_numbers = #tpu.dot_dimension_numbers<[1], [0], [0], [1], [0, 0, 1, 1], [], []>} : vector<4x32xbf16>, vector<32x16xbf16>, vector<4x16xf32> -> vector<4x16xf32>
      %22 = arith.addf %13, %21 : vector<4x16xf32>
      %23 = arith.addi %0, %arg6 : i32
      %c1_i32_17 = arith.constant 1 : i32
      %24 = arith.addi %23, %c1_i32_17 : i32
      %c0_18 = arith.constant 0 : index
      %25 = arith.index_cast %24 : i32 to index
      %c0_19 = arith.constant 0 : index
      %c0_20 = arith.constant 0 : index
      %26 = vector.load %arg2[%c0_18, %25, %c0_19, %c0_20] : memref<1x5x5x32xbf16, #tpu.memory_space<vmem>>, vector<1x1x4x32xbf16>
      %27 = vector.shape_cast %26 : vector<1x1x4x32xbf16> to vector<4x32xbf16>
      %c2 = arith.constant 2 : index
      %c0_21 = arith.constant 0 : index
      %c0_22 = arith.constant 0 : index
      %28 = vector.load %arg3[%c2, %c0_21, %c0_22] : memref<4x32x16xbf16, #tpu.memory_space<vmem>>, vector<1x32x16xbf16>
      %29 = vector.shape_cast %28 : vector<1x32x16xbf16> to vector<32x16xbf16>
      %cst_23 = arith.constant dense<0.000000e+00> : vector<4x16xf32>
      %30 = tpu.matmul %27, %29, %cst_23 {dimension_numbers = #tpu.dot_dimension_numbers<[1], [0], [0], [1], [0, 0, 1, 1], [], []>} : vector<4x32xbf16>, vector<32x16xbf16>, vector<4x16xf32> -> vector<4x16xf32>
      %31 = arith.addf %22, %30 : vector<4x16xf32>
      %32 = arith.addi %0, %arg6 : i32
      %c1_i32_24 = arith.constant 1 : i32
      %33 = arith.addi %32, %c1_i32_24 : i32
      %c0_25 = arith.constant 0 : index
      %34 = arith.index_cast %33 : i32 to index
      %c1_26 = arith.constant 1 : index
      %c0_27 = arith.constant 0 : index
      %35 = vector.load %arg2[%c0_25, %34, %c1_26, %c0_27] : memref<1x5x5x32xbf16, #tpu.memory_space<vmem>>, vector<1x1x4x32xbf16>
      %36 = vector.shape_cast %35 : vector<1x1x4x32xbf16> to vector<4x32xbf16>
      %c3 = arith.constant 3 : index
      %c0_28 = arith.constant 0 : index
      %c0_29 = arith.constant 0 : index
      %37 = vector.load %arg3[%c3, %c0_28, %c0_29] : memref<4x32x16xbf16, #tpu.memory_space<vmem>>, vector<1x32x16xbf16>
      %38 = vector.shape_cast %37 : vector<1x32x16xbf16> to vector<32x16xbf16>
      %cst_30 = arith.constant dense<0.000000e+00> : vector<4x16xf32>
      %39 = tpu.matmul %36, %38, %cst_30 {dimension_numbers = #tpu.dot_dimension_numbers<[1], [0], [0], [1], [0, 0, 1, 1], [], []>} : vector<4x32xbf16>, vector<32x16xbf16>, vector<4x16xf32> -> vector<4x16xf32>
      %40 = arith.addf %31, %39 : vector<4x16xf32>
      %cst_31 = arith.constant 5.000000e-01 : f32
      %41 = vector.broadcast %cst_31 : f32 to vector<4x16xf32>
      %42 = arith.mulf %41, %40 : vector<4x16xf32>
      %cst_32 = arith.constant 4.471500e-02 : f32
      %43 = vector.broadcast %cst_32 : f32 to vector<4x16xf32>
      %44 = arith.mulf %43, %40 : vector<4x16xf32>
      %45 = arith.mulf %44, %40 : vector<4x16xf32>
      %46 = arith.mulf %45, %40 : vector<4x16xf32>
      %47 = arith.addf %40, %46 : vector<4x16xf32>
      %cst_33 = arith.constant 0.797884583 : f32
      %48 = vector.broadcast %cst_33 : f32 to vector<4x16xf32>
      %49 = arith.mulf %48, %47 : vector<4x16xf32>
      %50 = math.tanh %49 : vector<4x16xf32>
      %cst_34 = arith.constant 1.000000e+00 : f32
      %51 = vector.broadcast %cst_34 : f32 to vector<4x16xf32>
      %52 = arith.addf %51, %50 : vector<4x16xf32>
      %53 = arith.mulf %42, %52 : vector<4x16xf32>
      %54 = arith.truncf %53 : vector<4x16xf32> to vector<4x16xbf16>
      %c0_35 = arith.constant 0 : index
      %55 = arith.index_cast %arg6 : i32 to index
      %c0_36 = arith.constant 0 : index
      %c0_37 = arith.constant 0 : index
      %56 = vector.load %arg5[%c0_35, %55, %c0_36, %c0_37] : memref<1x4x4x16xbf16, #tpu.memory_space<vmem>>, vector<1x1x4x16xbf16>
      %57 = vector.shape_cast %56 : vector<1x1x4x16xbf16> to vector<4x16xbf16>
      %58 = vector.shape_cast %54 : vector<4x16xbf16> to vector<1x1x4x16xbf16>
      tpu.vector_store %arg5[%c0_35, %55, %c0_36, %c0_37], %58 {strides = array<i32>} : memref<1x4x4x16xbf16, #tpu.memory_space<vmem>>, vector<1x1x4x16xbf16>,
    }
    %c4_i32_2 = arith.constant 4 : i32
    return
  }
  func.func @transform_0(%arg0: i32, %arg1: i32) -> (i32, i32, i32, i32) {
    %c0_i32 = arith.constant 0 : i32
    %c0_i32_0 = arith.constant 0 : i32
    %c0_i32_1 = arith.constant 0 : i32
    %c0_i32_2 = arith.constant 0 : i32
    return %arg0, %c0_i32, %c0_i32_0, %c0_i32_1 : i32, i32, i32, i32
  }
  func.func @transform_1(%arg0: i32, %arg1: i32) -> (i32, i32, i32) {
    %c0_i32 = arith.constant 0 : i32
    %c0_i32_0 = arith.constant 0 : i32
    %c0_i32_1 = arith.constant 0 : i32
    %c0_i32_2 = arith.constant 0 : i32
    return %c0_i32, %c0_i32_0, %c0_i32_1 : i32, i32, i32
  }
  func.func @transform_2(%arg0: i32, %arg1: i32) -> (i32, i32) {
    %c0_i32 = arith.constant 0 : i32
    %c0_i32_0 = arith.constant 0 : i32
    %c0_i32_1 = arith.constant 0 : i32
    return %c0_i32, %c0_i32_0 : i32, i32
  }
  func.func @transform_3(%arg0: i32, %arg1: i32) -> (i32, i32, i32, i32) {
    %c0_i32 = arith.constant 0 : i32
    %c0_i32_0 = arith.constant 0 : i32
    %c0_i32_1 = arith.constant 0 : i32
    return %arg0, %arg1, %c0_i32, %c0_i32_0 : i32, i32, i32, i32
  }
}

module attributes {stable_mosaic.version = 11 : i64} {
  func.func @_conv_kernel(%arg0: i32, %arg1: i32, %arg2: memref<1x6x6x16xbf16, #tpu.memory_space<vmem>>, %arg3: memref<9x16x16xbf16, #tpu.memory_space<vmem>>, %arg4: memref<1x16xf32, #tpu.memory_space<vmem>>, %arg5: memref<1x4x4x16xbf16, #tpu.memory_space<vmem>>) attributes {dimension_semantics = [#tpu.dimension_semantics<parallel>, #tpu.dimension_semantics<parallel>], iteration_bounds = array<i64: 2, 1>, scalar_prefetch = 0 : i64, scratch_operands = 0 : i64, tpu.core_type = #tpu.core_type<tc>, window_params = [{transform_indices = @transform_0, window_bounds = array<i64: 1, 6, 6, 16>}, {pipeline_mode = #tpu.pipeline_mode<synchronous>, transform_indices = @transform_1, window_bounds = array<i64: 9, 16, 16>}, {pipeline_mode = #tpu.pipeline_mode<synchronous>, transform_indices = @transform_2, window_bounds = array<i64: 1, 16>}, {transform_indices = @transform_3, window_bounds = array<i64: 1, 4, 4, 16>}]} {
    %c4_i32 = arith.constant 4 : i32
    %0 = arith.muli %arg1, %c4_i32 : i32
    %c0 = arith.constant 0 : index
    %c0_0 = arith.constant 0 : index
    %1 = vector.load %arg4[%c0, %c0_0] : memref<1x16xf32, #tpu.memory_space<vmem>>, vector<1x16xf32>
    %2 = vector.shape_cast %1 : vector<1x16xf32> to vector<1x16xf32>
    %3 = vector.broadcast %2 : vector<1x16xf32> to vector<4x16xf32>
    %c0_i32 = arith.constant 0 : i32
    %c4_i32_1 = arith.constant 4 : i32
    %4 = arith.addi %c0_i32, %c4_i32_1 : i32
    %c1_i32 = arith.constant 1 : i32
    scf.for %arg6 = %c0_i32 to %4 step %c1_i32  : i32 {
      %5 = arith.addi %0, %arg6 : i32
      %c0_i32_3 = arith.constant 0 : i32
      %6 = arith.addi %5, %c0_i32_3 : i32
      %c0_4 = arith.constant 0 : index
      %7 = arith.index_cast %6 : i32 to index
      %c0_5 = arith.constant 0 : index
      %c0_6 = arith.constant 0 : index
      %8 = vector.load %arg2[%c0_4, %7, %c0_5, %c0_6] : memref<1x6x6x16xbf16, #tpu.memory_space<vmem>>, vector<1x1x4x16xbf16>
      %9 = vector.shape_cast %8 : vector<1x1x4x16xbf16> to vector<4x16xbf16>
      %c0_7 = arith.constant 0 : index
      %c0_8 = arith.constant 0 : index
      %c0_9 = arith.constant 0 : index
      %10 = vector.load %arg3[%c0_7, %c0_8, %c0_9] : memref<9x16x16xbf16, #tpu.memory_space<vmem>>, vector<1x16x16xbf16>
      %11 = vector.shape_cast %10 : vector<1x16x16xbf16> to vector<16x16xbf16>
      %cst = arith.constant dense<0.000000e+00> : vector<4x16xf32>
      %12 = tpu.matmul %9, %11, %cst {dimension_numbers = #tpu.dot_dimension_numbers<[1], [0], [0], [1], [0, 0, 1, 1], [], []>} : vector<4x16xbf16>, vector<16x16xbf16>, vector<4x16xf32> -> vector<4x16xf32>
      %13 = arith.addf %3, %12 : vector<4x16xf32>
      %14 = arith.addi %0, %arg6 : i32
      %c0_i32_10 = arith.constant 0 : i32
      %15 = arith.addi %14, %c0_i32_10 : i32
      %c0_11 = arith.constant 0 : index
      %16 = arith.index_cast %15 : i32 to index
      %c1 = arith.constant 1 : index
      %c0_12 = arith.constant 0 : index
      %17 = vector.load %arg2[%c0_11, %16, %c1, %c0_12] : memref<1x6x6x16xbf16, #tpu.memory_space<vmem>>, vector<1x1x4x16xbf16>
      %18 = vector.shape_cast %17 : vector<1x1x4x16xbf16> to vector<4x16xbf16>
      %c1_13 = arith.constant 1 : index
      %c0_14 = arith.constant 0 : index
      %c0_15 = arith.constant 0 : index
      %19 = vector.load %arg3[%c1_13, %c0_14, %c0_15] : memref<9x16x16xbf16, #tpu.memory_space<vmem>>, vector<1x16x16xbf16>
      %20 = vector.shape_cast %19 : vector<1x16x16xbf16> to vector<16x16xbf16>
      %cst_16 = arith.constant dense<0.000000e+00> : vector<4x16xf32>
      %21 = tpu.matmul %18, %20, %cst_16 {dimension_numbers = #tpu.dot_dimension_numbers<[1], [0], [0], [1], [0, 0, 1, 1], [], []>} : vector<4x16xbf16>, vector<16x16xbf16>, vector<4x16xf32> -> vector<4x16xf32>
      %22 = arith.addf %13, %21 : vector<4x16xf32>
      %23 = arith.addi %0, %arg6 : i32
      %c0_i32_17 = arith.constant 0 : i32
      %24 = arith.addi %23, %c0_i32_17 : i32
      %c0_18 = arith.constant 0 : index
      %25 = arith.index_cast %24 : i32 to index
      %c2 = arith.constant 2 : index
      %c0_19 = arith.constant 0 : index
      %26 = vector.load %arg2[%c0_18, %25, %c2, %c0_19] : memref<1x6x6x16xbf16, #tpu.memory_space<vmem>>, vector<1x1x4x16xbf16>
      %27 = vector.shape_cast %26 : vector<1x1x4x16xbf16> to vector<4x16xbf16>
      %c2_20 = arith.constant 2 : index
      %c0_21 = arith.constant 0 : index
      %c0_22 = arith.constant 0 : index
      %28 = vector.load %arg3[%c2_20, %c0_21, %c0_22] : memref<9x16x16xbf16, #tpu.memory_space<vmem>>, vector<1x16x16xbf16>
      %29 = vector.shape_cast %28 : vector<1x16x16xbf16> to vector<16x16xbf16>
      %cst_23 = arith.constant dense<0.000000e+00> : vector<4x16xf32>
      %30 = tpu.matmul %27, %29, %cst_23 {dimension_numbers = #tpu.dot_dimension_numbers<[1], [0], [0], [1], [0, 0, 1, 1], [], []>} : vector<4x16xbf16>, vector<16x16xbf16>, vector<4x16xf32> -> vector<4x16xf32>
      %31 = arith.addf %22, %30 : vector<4x16xf32>
      %32 = arith.addi %0, %arg6 : i32
      %c1_i32_24 = arith.constant 1 : i32
      %33 = arith.addi %32, %c1_i32_24 : i32
      %c0_25 = arith.constant 0 : index
      %34 = arith.index_cast %33 : i32 to index
      %c0_26 = arith.constant 0 : index
      %c0_27 = arith.constant 0 : index
      %35 = vector.load %arg2[%c0_25, %34, %c0_26, %c0_27] : memref<1x6x6x16xbf16, #tpu.memory_space<vmem>>, vector<1x1x4x16xbf16>
      %36 = vector.shape_cast %35 : vector<1x1x4x16xbf16> to vector<4x16xbf16>
      %c3 = arith.constant 3 : index
      %c0_28 = arith.constant 0 : index
      %c0_29 = arith.constant 0 : index
      %37 = vector.load %arg3[%c3, %c0_28, %c0_29] : memref<9x16x16xbf16, #tpu.memory_space<vmem>>, vector<1x16x16xbf16>
      %38 = vector.shape_cast %37 : vector<1x16x16xbf16> to vector<16x16xbf16>
      %cst_30 = arith.constant dense<0.000000e+00> : vector<4x16xf32>
      %39 = tpu.matmul %36, %38, %cst_30 {dimension_numbers = #tpu.dot_dimension_numbers<[1], [0], [0], [1], [0, 0, 1, 1], [], []>} : vector<4x16xbf16>, vector<16x16xbf16>, vector<4x16xf32> -> vector<4x16xf32>
      %40 = arith.addf %31, %39 : vector<4x16xf32>
      %41 = arith.addi %0, %arg6 : i32
      %c1_i32_31 = arith.constant 1 : i32
      %42 = arith.addi %41, %c1_i32_31 : i32
      %c0_32 = arith.constant 0 : index
      %43 = arith.index_cast %42 : i32 to index
      %c1_33 = arith.constant 1 : index
      %c0_34 = arith.constant 0 : index
      %44 = vector.load %arg2[%c0_32, %43, %c1_33, %c0_34] : memref<1x6x6x16xbf16, #tpu.memory_space<vmem>>, vector<1x1x4x16xbf16>
      %45 = vector.shape_cast %44 : vector<1x1x4x16xbf16> to vector<4x16xbf16>
      %c4 = arith.constant 4 : index
      %c0_35 = arith.constant 0 : index
      %c0_36 = arith.constant 0 : index
      %46 = vector.load %arg3[%c4, %c0_35, %c0_36] : memref<9x16x16xbf16, #tpu.memory_space<vmem>>, vector<1x16x16xbf16>
      %47 = vector.shape_cast %46 : vector<1x16x16xbf16> to vector<16x16xbf16>
      %cst_37 = arith.constant dense<0.000000e+00> : vector<4x16xf32>
      %48 = tpu.matmul %45, %47, %cst_37 {dimension_numbers = #tpu.dot_dimension_numbers<[1], [0], [0], [1], [0, 0, 1, 1], [], []>} : vector<4x16xbf16>, vector<16x16xbf16>, vector<4x16xf32> -> vector<4x16xf32>
      %49 = arith.addf %40, %48 : vector<4x16xf32>
      %50 = arith.addi %0, %arg6 : i32
      %c1_i32_38 = arith.constant 1 : i32
      %51 = arith.addi %50, %c1_i32_38 : i32
      %c0_39 = arith.constant 0 : index
      %52 = arith.index_cast %51 : i32 to index
      %c2_40 = arith.constant 2 : index
      %c0_41 = arith.constant 0 : index
      %53 = vector.load %arg2[%c0_39, %52, %c2_40, %c0_41] : memref<1x6x6x16xbf16, #tpu.memory_space<vmem>>, vector<1x1x4x16xbf16>
      %54 = vector.shape_cast %53 : vector<1x1x4x16xbf16> to vector<4x16xbf16>
      %c5 = arith.constant 5 : index
      %c0_42 = arith.constant 0 : index
      %c0_43 = arith.constant 0 : index
      %55 = vector.load %arg3[%c5, %c0_42, %c0_43] : memref<9x16x16xbf16, #tpu.memory_space<vmem>>, vector<1x16x16xbf16>
      %56 = vector.shape_cast %55 : vector<1x16x16xbf16> to vector<16x16xbf16>
      %cst_44 = arith.constant dense<0.000000e+00> : vector<4x16xf32>
      %57 = tpu.matmul %54, %56, %cst_44 {dimension_numbers = #tpu.dot_dimension_numbers<[1], [0], [0], [1], [0, 0, 1, 1], [], []>} : vector<4x16xbf16>, vector<16x16xbf16>, vector<4x16xf32> -> vector<4x16xf32>
      %58 = arith.addf %49, %57 : vector<4x16xf32>
      %59 = arith.addi %0, %arg6 : i32
      %c2_i32 = arith.constant 2 : i32
      %60 = arith.addi %59, %c2_i32 : i32
      %c0_45 = arith.constant 0 : index
      %61 = arith.index_cast %60 : i32 to index
      %c0_46 = arith.constant 0 : index
      %c0_47 = arith.constant 0 : index
      %62 = vector.load %arg2[%c0_45, %61, %c0_46, %c0_47] : memref<1x6x6x16xbf16, #tpu.memory_space<vmem>>, vector<1x1x4x16xbf16>
      %63 = vector.shape_cast %62 : vector<1x1x4x16xbf16> to vector<4x16xbf16>
      %c6 = arith.constant 6 : index
      %c0_48 = arith.constant 0 : index
      %c0_49 = arith.constant 0 : index
      %64 = vector.load %arg3[%c6, %c0_48, %c0_49] : memref<9x16x16xbf16, #tpu.memory_space<vmem>>, vector<1x16x16xbf16>
      %65 = vector.shape_cast %64 : vector<1x16x16xbf16> to vector<16x16xbf16>
      %cst_50 = arith.constant dense<0.000000e+00> : vector<4x16xf32>
      %66 = tpu.matmul %63, %65, %cst_50 {dimension_numbers = #tpu.dot_dimension_numbers<[1], [0], [0], [1], [0, 0, 1, 1], [], []>} : vector<4x16xbf16>, vector<16x16xbf16>, vector<4x16xf32> -> vector<4x16xf32>
      %67 = arith.addf %58, %66 : vector<4x16xf32>
      %68 = arith.addi %0, %arg6 : i32
      %c2_i32_51 = arith.constant 2 : i32
      %69 = arith.addi %68, %c2_i32_51 : i32
      %c0_52 = arith.constant 0 : index
      %70 = arith.index_cast %69 : i32 to index
      %c1_53 = arith.constant 1 : index
      %c0_54 = arith.constant 0 : index
      %71 = vector.load %arg2[%c0_52, %70, %c1_53, %c0_54] : memref<1x6x6x16xbf16, #tpu.memory_space<vmem>>, vector<1x1x4x16xbf16>
      %72 = vector.shape_cast %71 : vector<1x1x4x16xbf16> to vector<4x16xbf16>
      %c7 = arith.constant 7 : index
      %c0_55 = arith.constant 0 : index
      %c0_56 = arith.constant 0 : index
      %73 = vector.load %arg3[%c7, %c0_55, %c0_56] : memref<9x16x16xbf16, #tpu.memory_space<vmem>>, vector<1x16x16xbf16>
      %74 = vector.shape_cast %73 : vector<1x16x16xbf16> to vector<16x16xbf16>
      %cst_57 = arith.constant dense<0.000000e+00> : vector<4x16xf32>
      %75 = tpu.matmul %72, %74, %cst_57 {dimension_numbers = #tpu.dot_dimension_numbers<[1], [0], [0], [1], [0, 0, 1, 1], [], []>} : vector<4x16xbf16>, vector<16x16xbf16>, vector<4x16xf32> -> vector<4x16xf32>
      %76 = arith.addf %67, %75 : vector<4x16xf32>
      %77 = arith.addi %0, %arg6 : i32
      %c2_i32_58 = arith.constant 2 : i32
      %78 = arith.addi %77, %c2_i32_58 : i32
      %c0_59 = arith.constant 0 : index
      %79 = arith.index_cast %78 : i32 to index
      %c2_60 = arith.constant 2 : index
      %c0_61 = arith.constant 0 : index
      %80 = vector.load %arg2[%c0_59, %79, %c2_60, %c0_61] : memref<1x6x6x16xbf16, #tpu.memory_space<vmem>>, vector<1x1x4x16xbf16>
      %81 = vector.shape_cast %80 : vector<1x1x4x16xbf16> to vector<4x16xbf16>
      %c8 = arith.constant 8 : index
      %c0_62 = arith.constant 0 : index
      %c0_63 = arith.constant 0 : index
      %82 = vector.load %arg3[%c8, %c0_62, %c0_63] : memref<9x16x16xbf16, #tpu.memory_space<vmem>>, vector<1x16x16xbf16>
      %83 = vector.shape_cast %82 : vector<1x16x16xbf16> to vector<16x16xbf16>
      %cst_64 = arith.constant dense<0.000000e+00> : vector<4x16xf32>
      %84 = tpu.matmul %81, %83, %cst_64 {dimension_numbers = #tpu.dot_dimension_numbers<[1], [0], [0], [1], [0, 0, 1, 1], [], []>} : vector<4x16xbf16>, vector<16x16xbf16>, vector<4x16xf32> -> vector<4x16xf32>
      %85 = arith.addf %76, %84 : vector<4x16xf32>
      %cst_65 = arith.constant 5.000000e-01 : f32
      %86 = vector.broadcast %cst_65 : f32 to vector<4x16xf32>
      %87 = arith.mulf %86, %85 : vector<4x16xf32>
      %cst_66 = arith.constant 4.471500e-02 : f32
      %88 = vector.broadcast %cst_66 : f32 to vector<4x16xf32>
      %89 = arith.mulf %88, %85 : vector<4x16xf32>
      %90 = arith.mulf %89, %85 : vector<4x16xf32>
      %91 = arith.mulf %90, %85 : vector<4x16xf32>
      %92 = arith.addf %85, %91 : vector<4x16xf32>
      %cst_67 = arith.constant 0.797884583 : f32
      %93 = vector.broadcast %cst_67 : f32 to vector<4x16xf32>
      %94 = arith.mulf %93, %92 : vector<4x16xf32>
      %95 = math.tanh %94 : vector<4x16xf32>
      %cst_68 = arith.constant 1.000000e+00 : f32
      %96 = vector.broadcast %cst_68 : f32 to vector<4x16xf32>
      %97 = arith.addf %96, %95 : vector<4x16xf32>
      %98 = arith.mulf %87, %97 : vector<4x16xf32>
      %99 = arith.truncf %98 : vector<4x16xf32> to vector<4x16xbf16>
      %c0_69 = arith.constant 0 : index
      %100 = arith.index_cast %arg6 : i32 to index
      %c0_70 = arith.constant 0 : index
      %c0_71 = arith.constant 0 : index
      %101 = vector.load %arg5[%c0_69, %100, %c0_70, %c0_71] : memref<1x4x4x16xbf16, #tpu.memory_space<vmem>>, vector<1x1x4x16xbf16>
      %102 = vector.shape_cast %101 : vector<1x1x4x16xbf16> to vector<4x16xbf16>
      %103 = vector.shape_cast %99 : vector<4x16xbf16> to vector<1x1x4x16xbf16>
      tpu.vector_store %arg5[%c0_69, %100, %c0_70, %c0_71], %103 {strides = array<i32>} : memref<1x4x4x16xbf16, #tpu.memory_space<vmem>>, vector<1x1x4x16xbf16>,
    }
    %c4_i32_2 = arith.constant 4 : i32
    return
  }
  func.func @transform_0(%arg0: i32, %arg1: i32) -> (i32, i32, i32, i32) {
    %c0_i32 = arith.constant 0 : i32
    %c0_i32_0 = arith.constant 0 : i32
    %c0_i32_1 = arith.constant 0 : i32
    %c0_i32_2 = arith.constant 0 : i32
    return %arg0, %c0_i32, %c0_i32_0, %c0_i32_1 : i32, i32, i32, i32
  }
  func.func @transform_1(%arg0: i32, %arg1: i32) -> (i32, i32, i32) {
    %c0_i32 = arith.constant 0 : i32
    %c0_i32_0 = arith.constant 0 : i32
    %c0_i32_1 = arith.constant 0 : i32
    %c0_i32_2 = arith.constant 0 : i32
    return %c0_i32, %c0_i32_0, %c0_i32_1 : i32, i32, i32
  }
  func.func @transform_2(%arg0: i32, %arg1: i32) -> (i32, i32) {
    %c0_i32 = arith.constant 0 : i32
    %c0_i32_0 = arith.constant 0 : i32
    %c0_i32_1 = arith.constant 0 : i32
    return %c0_i32, %c0_i32_0 : i32, i32
  }
  func.func @transform_3(%arg0: i32, %arg1: i32) -> (i32, i32, i32, i32) {
    %c0_i32 = arith.constant 0 : i32
    %c0_i32_0 = arith.constant 0 : i32
    %c0_i32_1 = arith.constant 0 : i32
    return %arg0, %arg1, %c0_i32, %c0_i32_0 : i32, i32, i32, i32
  }
}

module attributes {stable_mosaic.version = 11 : i64} {
  func.func @_conv_kernel(%arg0: i32, %arg1: i32, %arg2: memref<1x4x4x32xbf16, #tpu.memory_space<vmem>>, %arg3: memref<9x32x32xbf16, #tpu.memory_space<vmem>>, %arg4: memref<1x32xf32, #tpu.memory_space<vmem>>, %arg5: memref<1x2x2x32xbf16, #tpu.memory_space<vmem>>) attributes {dimension_semantics = [#tpu.dimension_semantics<parallel>, #tpu.dimension_semantics<parallel>], iteration_bounds = array<i64: 2, 1>, scalar_prefetch = 0 : i64, scratch_operands = 0 : i64, tpu.core_type = #tpu.core_type<tc>, window_params = [{transform_indices = @transform_0, window_bounds = array<i64: 1, 4, 4, 32>}, {pipeline_mode = #tpu.pipeline_mode<synchronous>, transform_indices = @transform_1, window_bounds = array<i64: 9, 32, 32>}, {pipeline_mode = #tpu.pipeline_mode<synchronous>, transform_indices = @transform_2, window_bounds = array<i64: 1, 32>}, {transform_indices = @transform_3, window_bounds = array<i64: 1, 2, 2, 32>}]} {
    %c2_i32 = arith.constant 2 : i32
    %0 = arith.muli %arg1, %c2_i32 : i32
    %c0 = arith.constant 0 : index
    %c0_0 = arith.constant 0 : index
    %1 = vector.load %arg4[%c0, %c0_0] : memref<1x32xf32, #tpu.memory_space<vmem>>, vector<1x32xf32>
    %2 = vector.shape_cast %1 : vector<1x32xf32> to vector<1x32xf32>
    %3 = vector.broadcast %2 : vector<1x32xf32> to vector<2x32xf32>
    %c0_i32 = arith.constant 0 : i32
    %c2_i32_1 = arith.constant 2 : i32
    %4 = arith.addi %c0_i32, %c2_i32_1 : i32
    %c1_i32 = arith.constant 1 : i32
    scf.for %arg6 = %c0_i32 to %4 step %c1_i32  : i32 {
      %5 = arith.addi %0, %arg6 : i32
      %c0_i32_3 = arith.constant 0 : i32
      %6 = arith.addi %5, %c0_i32_3 : i32
      %c0_4 = arith.constant 0 : index
      %7 = arith.index_cast %6 : i32 to index
      %c0_5 = arith.constant 0 : index
      %c0_6 = arith.constant 0 : index
      %8 = vector.load %arg2[%c0_4, %7, %c0_5, %c0_6] : memref<1x4x4x32xbf16, #tpu.memory_space<vmem>>, vector<1x1x2x32xbf16>
      %9 = vector.shape_cast %8 : vector<1x1x2x32xbf16> to vector<2x32xbf16>
      %c0_7 = arith.constant 0 : index
      %c0_8 = arith.constant 0 : index
      %c0_9 = arith.constant 0 : index
      %10 = vector.load %arg3[%c0_7, %c0_8, %c0_9] : memref<9x32x32xbf16, #tpu.memory_space<vmem>>, vector<1x32x32xbf16>
      %11 = vector.shape_cast %10 : vector<1x32x32xbf16> to vector<32x32xbf16>
      %cst = arith.constant dense<0.000000e+00> : vector<2x32xf32>
      %12 = tpu.matmul %9, %11, %cst {dimension_numbers = #tpu.dot_dimension_numbers<[1], [0], [0], [1], [0, 0, 1, 1], [], []>} : vector<2x32xbf16>, vector<32x32xbf16>, vector<2x32xf32> -> vector<2x32xf32>
      %13 = arith.addf %3, %12 : vector<2x32xf32>
      %14 = arith.addi %0, %arg6 : i32
      %c0_i32_10 = arith.constant 0 : i32
      %15 = arith.addi %14, %c0_i32_10 : i32
      %c0_11 = arith.constant 0 : index
      %16 = arith.index_cast %15 : i32 to index
      %c1 = arith.constant 1 : index
      %c0_12 = arith.constant 0 : index
      %17 = vector.load %arg2[%c0_11, %16, %c1, %c0_12] : memref<1x4x4x32xbf16, #tpu.memory_space<vmem>>, vector<1x1x2x32xbf16>
      %18 = vector.shape_cast %17 : vector<1x1x2x32xbf16> to vector<2x32xbf16>
      %c1_13 = arith.constant 1 : index
      %c0_14 = arith.constant 0 : index
      %c0_15 = arith.constant 0 : index
      %19 = vector.load %arg3[%c1_13, %c0_14, %c0_15] : memref<9x32x32xbf16, #tpu.memory_space<vmem>>, vector<1x32x32xbf16>
      %20 = vector.shape_cast %19 : vector<1x32x32xbf16> to vector<32x32xbf16>
      %cst_16 = arith.constant dense<0.000000e+00> : vector<2x32xf32>
      %21 = tpu.matmul %18, %20, %cst_16 {dimension_numbers = #tpu.dot_dimension_numbers<[1], [0], [0], [1], [0, 0, 1, 1], [], []>} : vector<2x32xbf16>, vector<32x32xbf16>, vector<2x32xf32> -> vector<2x32xf32>
      %22 = arith.addf %13, %21 : vector<2x32xf32>
      %23 = arith.addi %0, %arg6 : i32
      %c0_i32_17 = arith.constant 0 : i32
      %24 = arith.addi %23, %c0_i32_17 : i32
      %c0_18 = arith.constant 0 : index
      %25 = arith.index_cast %24 : i32 to index
      %c2 = arith.constant 2 : index
      %c0_19 = arith.constant 0 : index
      %26 = vector.load %arg2[%c0_18, %25, %c2, %c0_19] : memref<1x4x4x32xbf16, #tpu.memory_space<vmem>>, vector<1x1x2x32xbf16>
      %27 = vector.shape_cast %26 : vector<1x1x2x32xbf16> to vector<2x32xbf16>
      %c2_20 = arith.constant 2 : index
      %c0_21 = arith.constant 0 : index
      %c0_22 = arith.constant 0 : index
      %28 = vector.load %arg3[%c2_20, %c0_21, %c0_22] : memref<9x32x32xbf16, #tpu.memory_space<vmem>>, vector<1x32x32xbf16>
      %29 = vector.shape_cast %28 : vector<1x32x32xbf16> to vector<32x32xbf16>
      %cst_23 = arith.constant dense<0.000000e+00> : vector<2x32xf32>
      %30 = tpu.matmul %27, %29, %cst_23 {dimension_numbers = #tpu.dot_dimension_numbers<[1], [0], [0], [1], [0, 0, 1, 1], [], []>} : vector<2x32xbf16>, vector<32x32xbf16>, vector<2x32xf32> -> vector<2x32xf32>
      %31 = arith.addf %22, %30 : vector<2x32xf32>
      %32 = arith.addi %0, %arg6 : i32
      %c1_i32_24 = arith.constant 1 : i32
      %33 = arith.addi %32, %c1_i32_24 : i32
      %c0_25 = arith.constant 0 : index
      %34 = arith.index_cast %33 : i32 to index
      %c0_26 = arith.constant 0 : index
      %c0_27 = arith.constant 0 : index
      %35 = vector.load %arg2[%c0_25, %34, %c0_26, %c0_27] : memref<1x4x4x32xbf16, #tpu.memory_space<vmem>>, vector<1x1x2x32xbf16>
      %36 = vector.shape_cast %35 : vector<1x1x2x32xbf16> to vector<2x32xbf16>
      %c3 = arith.constant 3 : index
      %c0_28 = arith.constant 0 : index
      %c0_29 = arith.constant 0 : index
      %37 = vector.load %arg3[%c3, %c0_28, %c0_29] : memref<9x32x32xbf16, #tpu.memory_space<vmem>>, vector<1x32x32xbf16>
      %38 = vector.shape_cast %37 : vector<1x32x32xbf16> to vector<32x32xbf16>
      %cst_30 = arith.constant dense<0.000000e+00> : vector<2x32xf32>
      %39 = tpu.matmul %36, %38, %cst_30 {dimension_numbers = #tpu.dot_dimension_numbers<[1], [0], [0], [1], [0, 0, 1, 1], [], []>} : vector<2x32xbf16>, vector<32x32xbf16>, vector<2x32xf32> -> vector<2x32xf32>
      %40 = arith.addf %31, %39 : vector<2x32xf32>
      %41 = arith.addi %0, %arg6 : i32
      %c1_i32_31 = arith.constant 1 : i32
      %42 = arith.addi %41, %c1_i32_31 : i32
      %c0_32 = arith.constant 0 : index
      %43 = arith.index_cast %42 : i32 to index
      %c1_33 = arith.constant 1 : index
      %c0_34 = arith.constant 0 : index
      %44 = vector.load %arg2[%c0_32, %43, %c1_33, %c0_34] : memref<1x4x4x32xbf16, #tpu.memory_space<vmem>>, vector<1x1x2x32xbf16>
      %45 = vector.shape_cast %44 : vector<1x1x2x32xbf16> to vector<2x32xbf16>
      %c4 = arith.constant 4 : index
      %c0_35 = arith.constant 0 : index
      %c0_36 = arith.constant 0 : index
      %46 = vector.load %arg3[%c4, %c0_35, %c0_36] : memref<9x32x32xbf16, #tpu.memory_space<vmem>>, vector<1x32x32xbf16>
      %47 = vector.shape_cast %46 : vector<1x32x32xbf16> to vector<32x32xbf16>
      %cst_37 = arith.constant dense<0.000000e+00> : vector<2x32xf32>
      %48 = tpu.matmul %45, %47, %cst_37 {dimension_numbers = #tpu.dot_dimension_numbers<[1], [0], [0], [1], [0, 0, 1, 1], [], []>} : vector<2x32xbf16>, vector<32x32xbf16>, vector<2x32xf32> -> vector<2x32xf32>
      %49 = arith.addf %40, %48 : vector<2x32xf32>
      %50 = arith.addi %0, %arg6 : i32
      %c1_i32_38 = arith.constant 1 : i32
      %51 = arith.addi %50, %c1_i32_38 : i32
      %c0_39 = arith.constant 0 : index
      %52 = arith.index_cast %51 : i32 to index
      %c2_40 = arith.constant 2 : index
      %c0_41 = arith.constant 0 : index
      %53 = vector.load %arg2[%c0_39, %52, %c2_40, %c0_41] : memref<1x4x4x32xbf16, #tpu.memory_space<vmem>>, vector<1x1x2x32xbf16>
      %54 = vector.shape_cast %53 : vector<1x1x2x32xbf16> to vector<2x32xbf16>
      %c5 = arith.constant 5 : index
      %c0_42 = arith.constant 0 : index
      %c0_43 = arith.constant 0 : index
      %55 = vector.load %arg3[%c5, %c0_42, %c0_43] : memref<9x32x32xbf16, #tpu.memory_space<vmem>>, vector<1x32x32xbf16>
      %56 = vector.shape_cast %55 : vector<1x32x32xbf16> to vector<32x32xbf16>
      %cst_44 = arith.constant dense<0.000000e+00> : vector<2x32xf32>
      %57 = tpu.matmul %54, %56, %cst_44 {dimension_numbers = #tpu.dot_dimension_numbers<[1], [0], [0], [1], [0, 0, 1, 1], [], []>} : vector<2x32xbf16>, vector<32x32xbf16>, vector<2x32xf32> -> vector<2x32xf32>
      %58 = arith.addf %49, %57 : vector<2x32xf32>
      %59 = arith.addi %0, %arg6 : i32
      %c2_i32_45 = arith.constant 2 : i32
      %60 = arith.addi %59, %c2_i32_45 : i32
      %c0_46 = arith.constant 0 : index
      %61 = arith.index_cast %60 : i32 to index
      %c0_47 = arith.constant 0 : index
      %c0_48 = arith.constant 0 : index
      %62 = vector.load %arg2[%c0_46, %61, %c0_47, %c0_48] : memref<1x4x4x32xbf16, #tpu.memory_space<vmem>>, vector<1x1x2x32xbf16>
      %63 = vector.shape_cast %62 : vector<1x1x2x32xbf16> to vector<2x32xbf16>
      %c6 = arith.constant 6 : index
      %c0_49 = arith.constant 0 : index
      %c0_50 = arith.constant 0 : index
      %64 = vector.load %arg3[%c6, %c0_49, %c0_50] : memref<9x32x32xbf16, #tpu.memory_space<vmem>>, vector<1x32x32xbf16>
      %65 = vector.shape_cast %64 : vector<1x32x32xbf16> to vector<32x32xbf16>
      %cst_51 = arith.constant dense<0.000000e+00> : vector<2x32xf32>
      %66 = tpu.matmul %63, %65, %cst_51 {dimension_numbers = #tpu.dot_dimension_numbers<[1], [0], [0], [1], [0, 0, 1, 1], [], []>} : vector<2x32xbf16>, vector<32x32xbf16>, vector<2x32xf32> -> vector<2x32xf32>
      %67 = arith.addf %58, %66 : vector<2x32xf32>
      %68 = arith.addi %0, %arg6 : i32
      %c2_i32_52 = arith.constant 2 : i32
      %69 = arith.addi %68, %c2_i32_52 : i32
      %c0_53 = arith.constant 0 : index
      %70 = arith.index_cast %69 : i32 to index
      %c1_54 = arith.constant 1 : index
      %c0_55 = arith.constant 0 : index
      %71 = vector.load %arg2[%c0_53, %70, %c1_54, %c0_55] : memref<1x4x4x32xbf16, #tpu.memory_space<vmem>>, vector<1x1x2x32xbf16>
      %72 = vector.shape_cast %71 : vector<1x1x2x32xbf16> to vector<2x32xbf16>
      %c7 = arith.constant 7 : index
      %c0_56 = arith.constant 0 : index
      %c0_57 = arith.constant 0 : index
      %73 = vector.load %arg3[%c7, %c0_56, %c0_57] : memref<9x32x32xbf16, #tpu.memory_space<vmem>>, vector<1x32x32xbf16>
      %74 = vector.shape_cast %73 : vector<1x32x32xbf16> to vector<32x32xbf16>
      %cst_58 = arith.constant dense<0.000000e+00> : vector<2x32xf32>
      %75 = tpu.matmul %72, %74, %cst_58 {dimension_numbers = #tpu.dot_dimension_numbers<[1], [0], [0], [1], [0, 0, 1, 1], [], []>} : vector<2x32xbf16>, vector<32x32xbf16>, vector<2x32xf32> -> vector<2x32xf32>
      %76 = arith.addf %67, %75 : vector<2x32xf32>
      %77 = arith.addi %0, %arg6 : i32
      %c2_i32_59 = arith.constant 2 : i32
      %78 = arith.addi %77, %c2_i32_59 : i32
      %c0_60 = arith.constant 0 : index
      %79 = arith.index_cast %78 : i32 to index
      %c2_61 = arith.constant 2 : index
      %c0_62 = arith.constant 0 : index
      %80 = vector.load %arg2[%c0_60, %79, %c2_61, %c0_62] : memref<1x4x4x32xbf16, #tpu.memory_space<vmem>>, vector<1x1x2x32xbf16>
      %81 = vector.shape_cast %80 : vector<1x1x2x32xbf16> to vector<2x32xbf16>
      %c8 = arith.constant 8 : index
      %c0_63 = arith.constant 0 : index
      %c0_64 = arith.constant 0 : index
      %82 = vector.load %arg3[%c8, %c0_63, %c0_64] : memref<9x32x32xbf16, #tpu.memory_space<vmem>>, vector<1x32x32xbf16>
      %83 = vector.shape_cast %82 : vector<1x32x32xbf16> to vector<32x32xbf16>
      %cst_65 = arith.constant dense<0.000000e+00> : vector<2x32xf32>
      %84 = tpu.matmul %81, %83, %cst_65 {dimension_numbers = #tpu.dot_dimension_numbers<[1], [0], [0], [1], [0, 0, 1, 1], [], []>} : vector<2x32xbf16>, vector<32x32xbf16>, vector<2x32xf32> -> vector<2x32xf32>
      %85 = arith.addf %76, %84 : vector<2x32xf32>
      %cst_66 = arith.constant 5.000000e-01 : f32
      %86 = vector.broadcast %cst_66 : f32 to vector<2x32xf32>
      %87 = arith.mulf %86, %85 : vector<2x32xf32>
      %cst_67 = arith.constant 4.471500e-02 : f32
      %88 = vector.broadcast %cst_67 : f32 to vector<2x32xf32>
      %89 = arith.mulf %88, %85 : vector<2x32xf32>
      %90 = arith.mulf %89, %85 : vector<2x32xf32>
      %91 = arith.mulf %90, %85 : vector<2x32xf32>
      %92 = arith.addf %85, %91 : vector<2x32xf32>
      %cst_68 = arith.constant 0.797884583 : f32
      %93 = vector.broadcast %cst_68 : f32 to vector<2x32xf32>
      %94 = arith.mulf %93, %92 : vector<2x32xf32>
      %95 = math.tanh %94 : vector<2x32xf32>
      %cst_69 = arith.constant 1.000000e+00 : f32
      %96 = vector.broadcast %cst_69 : f32 to vector<2x32xf32>
      %97 = arith.addf %96, %95 : vector<2x32xf32>
      %98 = arith.mulf %87, %97 : vector<2x32xf32>
      %99 = arith.truncf %98 : vector<2x32xf32> to vector<2x32xbf16>
      %c0_70 = arith.constant 0 : index
      %100 = arith.index_cast %arg6 : i32 to index
      %c0_71 = arith.constant 0 : index
      %c0_72 = arith.constant 0 : index
      %101 = vector.load %arg5[%c0_70, %100, %c0_71, %c0_72] : memref<1x2x2x32xbf16, #tpu.memory_space<vmem>>, vector<1x1x2x32xbf16>
      %102 = vector.shape_cast %101 : vector<1x1x2x32xbf16> to vector<2x32xbf16>
      %103 = vector.shape_cast %99 : vector<2x32xbf16> to vector<1x1x2x32xbf16>
      tpu.vector_store %arg5[%c0_70, %100, %c0_71, %c0_72], %103 {strides = array<i32>} : memref<1x2x2x32xbf16, #tpu.memory_space<vmem>>, vector<1x1x2x32xbf16>,
    }
    %c2_i32_2 = arith.constant 2 : i32
    return
  }
  func.func @transform_0(%arg0: i32, %arg1: i32) -> (i32, i32, i32, i32) {
    %c0_i32 = arith.constant 0 : i32
    %c0_i32_0 = arith.constant 0 : i32
    %c0_i32_1 = arith.constant 0 : i32
    %c0_i32_2 = arith.constant 0 : i32
    return %arg0, %c0_i32, %c0_i32_0, %c0_i32_1 : i32, i32, i32, i32
  }
  func.func @transform_1(%arg0: i32, %arg1: i32) -> (i32, i32, i32) {
    %c0_i32 = arith.constant 0 : i32
    %c0_i32_0 = arith.constant 0 : i32
    %c0_i32_1 = arith.constant 0 : i32
    %c0_i32_2 = arith.constant 0 : i32
    return %c0_i32, %c0_i32_0, %c0_i32_1 : i32, i32, i32
  }
  func.func @transform_2(%arg0: i32, %arg1: i32) -> (i32, i32) {
    %c0_i32 = arith.constant 0 : i32
    %c0_i32_0 = arith.constant 0 : i32
    %c0_i32_1 = arith.constant 0 : i32
    return %c0_i32, %c0_i32_0 : i32, i32
  }
  func.func @transform_3(%arg0: i32, %arg1: i32) -> (i32, i32, i32, i32) {
    %c0_i32 = arith.constant 0 : i32
    %c0_i32_0 = arith.constant 0 : i32
    %c0_i32_1 = arith.constant 0 : i32
    return %arg0, %arg1, %c0_i32, %c0_i32_0 : i32, i32, i32, i32
  }
}

module attributes {stable_mosaic.version = 11 : i64} {
  func.func @_conv_kernel(%arg0: i32, %arg1: i32, %arg2: memref<1x3x3x64xbf16, #tpu.memory_space<vmem>>, %arg3: memref<4x64x32xbf16, #tpu.memory_space<vmem>>, %arg4: memref<1x32xf32, #tpu.memory_space<vmem>>, %arg5: memref<1x2x2x32xbf16, #tpu.memory_space<vmem>>) attributes {dimension_semantics = [#tpu.dimension_semantics<parallel>, #tpu.dimension_semantics<parallel>], iteration_bounds = array<i64: 2, 1>, scalar_prefetch = 0 : i64, scratch_operands = 0 : i64, tpu.core_type = #tpu.core_type<tc>, window_params = [{transform_indices = @transform_0, window_bounds = array<i64: 1, 3, 3, 64>}, {pipeline_mode = #tpu.pipeline_mode<synchronous>, transform_indices = @transform_1, window_bounds = array<i64: 4, 64, 32>}, {pipeline_mode = #tpu.pipeline_mode<synchronous>, transform_indices = @transform_2, window_bounds = array<i64: 1, 32>}, {transform_indices = @transform_3, window_bounds = array<i64: 1, 2, 2, 32>}]} {
    %c2_i32 = arith.constant 2 : i32
    %0 = arith.muli %arg1, %c2_i32 : i32
    %c0 = arith.constant 0 : index
    %c0_0 = arith.constant 0 : index
    %1 = vector.load %arg4[%c0, %c0_0] : memref<1x32xf32, #tpu.memory_space<vmem>>, vector<1x32xf32>
    %2 = vector.shape_cast %1 : vector<1x32xf32> to vector<1x32xf32>
    %3 = vector.broadcast %2 : vector<1x32xf32> to vector<2x32xf32>
    %c0_i32 = arith.constant 0 : i32
    %c2_i32_1 = arith.constant 2 : i32
    %4 = arith.addi %c0_i32, %c2_i32_1 : i32
    %c1_i32 = arith.constant 1 : i32
    scf.for %arg6 = %c0_i32 to %4 step %c1_i32  : i32 {
      %5 = arith.addi %0, %arg6 : i32
      %c0_i32_3 = arith.constant 0 : i32
      %6 = arith.addi %5, %c0_i32_3 : i32
      %c0_4 = arith.constant 0 : index
      %7 = arith.index_cast %6 : i32 to index
      %c0_5 = arith.constant 0 : index
      %c0_6 = arith.constant 0 : index
      %8 = vector.load %arg2[%c0_4, %7, %c0_5, %c0_6] : memref<1x3x3x64xbf16, #tpu.memory_space<vmem>>, vector<1x1x2x64xbf16>
      %9 = vector.shape_cast %8 : vector<1x1x2x64xbf16> to vector<2x64xbf16>
      %c0_7 = arith.constant 0 : index
      %c0_8 = arith.constant 0 : index
      %c0_9 = arith.constant 0 : index
      %10 = vector.load %arg3[%c0_7, %c0_8, %c0_9] : memref<4x64x32xbf16, #tpu.memory_space<vmem>>, vector<1x64x32xbf16>
      %11 = vector.shape_cast %10 : vector<1x64x32xbf16> to vector<64x32xbf16>
      %cst = arith.constant dense<0.000000e+00> : vector<2x32xf32>
      %12 = tpu.matmul %9, %11, %cst {dimension_numbers = #tpu.dot_dimension_numbers<[1], [0], [0], [1], [0, 0, 1, 1], [], []>} : vector<2x64xbf16>, vector<64x32xbf16>, vector<2x32xf32> -> vector<2x32xf32>
      %13 = arith.addf %3, %12 : vector<2x32xf32>
      %14 = arith.addi %0, %arg6 : i32
      %c0_i32_10 = arith.constant 0 : i32
      %15 = arith.addi %14, %c0_i32_10 : i32
      %c0_11 = arith.constant 0 : index
      %16 = arith.index_cast %15 : i32 to index
      %c1 = arith.constant 1 : index
      %c0_12 = arith.constant 0 : index
      %17 = vector.load %arg2[%c0_11, %16, %c1, %c0_12] : memref<1x3x3x64xbf16, #tpu.memory_space<vmem>>, vector<1x1x2x64xbf16>
      %18 = vector.shape_cast %17 : vector<1x1x2x64xbf16> to vector<2x64xbf16>
      %c1_13 = arith.constant 1 : index
      %c0_14 = arith.constant 0 : index
      %c0_15 = arith.constant 0 : index
      %19 = vector.load %arg3[%c1_13, %c0_14, %c0_15] : memref<4x64x32xbf16, #tpu.memory_space<vmem>>, vector<1x64x32xbf16>
      %20 = vector.shape_cast %19 : vector<1x64x32xbf16> to vector<64x32xbf16>
      %cst_16 = arith.constant dense<0.000000e+00> : vector<2x32xf32>
      %21 = tpu.matmul %18, %20, %cst_16 {dimension_numbers = #tpu.dot_dimension_numbers<[1], [0], [0], [1], [0, 0, 1, 1], [], []>} : vector<2x64xbf16>, vector<64x32xbf16>, vector<2x32xf32> -> vector<2x32xf32>
      %22 = arith.addf %13, %21 : vector<2x32xf32>
      %23 = arith.addi %0, %arg6 : i32
      %c1_i32_17 = arith.constant 1 : i32
      %24 = arith.addi %23, %c1_i32_17 : i32
      %c0_18 = arith.constant 0 : index
      %25 = arith.index_cast %24 : i32 to index
      %c0_19 = arith.constant 0 : index
      %c0_20 = arith.constant 0 : index
      %26 = vector.load %arg2[%c0_18, %25, %c0_19, %c0_20] : memref<1x3x3x64xbf16, #tpu.memory_space<vmem>>, vector<1x1x2x64xbf16>
      %27 = vector.shape_cast %26 : vector<1x1x2x64xbf16> to vector<2x64xbf16>
      %c2 = arith.constant 2 : index
      %c0_21 = arith.constant 0 : index
      %c0_22 = arith.constant 0 : index
      %28 = vector.load %arg3[%c2, %c0_21, %c0_22] : memref<4x64x32xbf16, #tpu.memory_space<vmem>>, vector<1x64x32xbf16>
      %29 = vector.shape_cast %28 : vector<1x64x32xbf16> to vector<64x32xbf16>
      %cst_23 = arith.constant dense<0.000000e+00> : vector<2x32xf32>
      %30 = tpu.matmul %27, %29, %cst_23 {dimension_numbers = #tpu.dot_dimension_numbers<[1], [0], [0], [1], [0, 0, 1, 1], [], []>} : vector<2x64xbf16>, vector<64x32xbf16>, vector<2x32xf32> -> vector<2x32xf32>
      %31 = arith.addf %22, %30 : vector<2x32xf32>
      %32 = arith.addi %0, %arg6 : i32
      %c1_i32_24 = arith.constant 1 : i32
      %33 = arith.addi %32, %c1_i32_24 : i32
      %c0_25 = arith.constant 0 : index
      %34 = arith.index_cast %33 : i32 to index
      %c1_26 = arith.constant 1 : index
      %c0_27 = arith.constant 0 : index
      %35 = vector.load %arg2[%c0_25, %34, %c1_26, %c0_27] : memref<1x3x3x64xbf16, #tpu.memory_space<vmem>>, vector<1x1x2x64xbf16>
      %36 = vector.shape_cast %35 : vector<1x1x2x64xbf16> to vector<2x64xbf16>
      %c3 = arith.constant 3 : index
      %c0_28 = arith.constant 0 : index
      %c0_29 = arith.constant 0 : index
      %37 = vector.load %arg3[%c3, %c0_28, %c0_29] : memref<4x64x32xbf16, #tpu.memory_space<vmem>>, vector<1x64x32xbf16>
      %38 = vector.shape_cast %37 : vector<1x64x32xbf16> to vector<64x32xbf16>
      %cst_30 = arith.constant dense<0.000000e+00> : vector<2x32xf32>
      %39 = tpu.matmul %36, %38, %cst_30 {dimension_numbers = #tpu.dot_dimension_numbers<[1], [0], [0], [1], [0, 0, 1, 1], [], []>} : vector<2x64xbf16>, vector<64x32xbf16>, vector<2x32xf32> -> vector<2x32xf32>
      %40 = arith.addf %31, %39 : vector<2x32xf32>
      %cst_31 = arith.constant 5.000000e-01 : f32
      %41 = vector.broadcast %cst_31 : f32 to vector<2x32xf32>
      %42 = arith.mulf %41, %40 : vector<2x32xf32>
      %cst_32 = arith.constant 4.471500e-02 : f32
      %43 = vector.broadcast %cst_32 : f32 to vector<2x32xf32>
      %44 = arith.mulf %43, %40 : vector<2x32xf32>
      %45 = arith.mulf %44, %40 : vector<2x32xf32>
      %46 = arith.mulf %45, %40 : vector<2x32xf32>
      %47 = arith.addf %40, %46 : vector<2x32xf32>
      %cst_33 = arith.constant 0.797884583 : f32
      %48 = vector.broadcast %cst_33 : f32 to vector<2x32xf32>
      %49 = arith.mulf %48, %47 : vector<2x32xf32>
      %50 = math.tanh %49 : vector<2x32xf32>
      %cst_34 = arith.constant 1.000000e+00 : f32
      %51 = vector.broadcast %cst_34 : f32 to vector<2x32xf32>
      %52 = arith.addf %51, %50 : vector<2x32xf32>
      %53 = arith.mulf %42, %52 : vector<2x32xf32>
      %54 = arith.truncf %53 : vector<2x32xf32> to vector<2x32xbf16>
      %c0_35 = arith.constant 0 : index
      %55 = arith.index_cast %arg6 : i32 to index
      %c0_36 = arith.constant 0 : index
      %c0_37 = arith.constant 0 : index
      %56 = vector.load %arg5[%c0_35, %55, %c0_36, %c0_37] : memref<1x2x2x32xbf16, #tpu.memory_space<vmem>>, vector<1x1x2x32xbf16>
      %57 = vector.shape_cast %56 : vector<1x1x2x32xbf16> to vector<2x32xbf16>
      %58 = vector.shape_cast %54 : vector<2x32xbf16> to vector<1x1x2x32xbf16>
      tpu.vector_store %arg5[%c0_35, %55, %c0_36, %c0_37], %58 {strides = array<i32>} : memref<1x2x2x32xbf16, #tpu.memory_space<vmem>>, vector<1x1x2x32xbf16>,
    }
    %c2_i32_2 = arith.constant 2 : i32
    return
  }
  func.func @transform_0(%arg0: i32, %arg1: i32) -> (i32, i32, i32, i32) {
    %c0_i32 = arith.constant 0 : i32
    %c0_i32_0 = arith.constant 0 : i32
    %c0_i32_1 = arith.constant 0 : i32
    %c0_i32_2 = arith.constant 0 : i32
    return %arg0, %c0_i32, %c0_i32_0, %c0_i32_1 : i32, i32, i32, i32
  }
  func.func @transform_1(%arg0: i32, %arg1: i32) -> (i32, i32, i32) {
    %c0_i32 = arith.constant 0 : i32
    %c0_i32_0 = arith.constant 0 : i32
    %c0_i32_1 = arith.constant 0 : i32
    %c0_i32_2 = arith.constant 0 : i32
    return %c0_i32, %c0_i32_0, %c0_i32_1 : i32, i32, i32
  }
  func.func @transform_2(%arg0: i32, %arg1: i32) -> (i32, i32) {
    %c0_i32 = arith.constant 0 : i32
    %c0_i32_0 = arith.constant 0 : i32
    %c0_i32_1 = arith.constant 0 : i32
    return %c0_i32, %c0_i32_0 : i32, i32
  }
  func.func @transform_3(%arg0: i32, %arg1: i32) -> (i32, i32, i32, i32) {
    %c0_i32 = arith.constant 0 : i32
    %c0_i32_0 = arith.constant 0 : i32
    %c0_i32_1 = arith.constant 0 : i32
    return %arg0, %arg1, %c0_i32, %c0_i32_0 : i32, i32, i32, i32
  }
}

module attributes {stable_mosaic.version = 11 : i64} {
  func.func @_conv_kernel(%arg0: i32, %arg1: i32, %arg2: memref<1x2x2x128xbf16, #tpu.memory_space<vmem>>, %arg3: memref<4x128x64xbf16, #tpu.memory_space<vmem>>, %arg4: memref<1x64xf32, #tpu.memory_space<vmem>>, %arg5: memref<1x1x1x64xbf16, #tpu.memory_space<vmem>>) attributes {dimension_semantics = [#tpu.dimension_semantics<parallel>, #tpu.dimension_semantics<parallel>], iteration_bounds = array<i64: 2, 1>, scalar_prefetch = 0 : i64, scratch_operands = 0 : i64, tpu.core_type = #tpu.core_type<tc>, window_params = [{transform_indices = @transform_0, window_bounds = array<i64: 1, 2, 2, 128>}, {pipeline_mode = #tpu.pipeline_mode<synchronous>, transform_indices = @transform_1, window_bounds = array<i64: 4, 128, 64>}, {pipeline_mode = #tpu.pipeline_mode<synchronous>, transform_indices = @transform_2, window_bounds = array<i64: 1, 64>}, {transform_indices = @transform_3, window_bounds = array<i64: 1, 1, 1, 64>}]} {
    %c1_i32 = arith.constant 1 : i32
    %0 = arith.muli %arg1, %c1_i32 : i32
    %c0 = arith.constant 0 : index
    %c0_0 = arith.constant 0 : index
    %1 = vector.load %arg4[%c0, %c0_0] : memref<1x64xf32, #tpu.memory_space<vmem>>, vector<1x64xf32>
    %c0_i32 = arith.constant 0 : i32
    %2 = arith.addi %0, %c0_i32 : i32
    %c0_i32_1 = arith.constant 0 : i32
    %3 = arith.addi %2, %c0_i32_1 : i32
    %c0_2 = arith.constant 0 : index
    %4 = arith.index_cast %3 : i32 to index
    %c0_3 = arith.constant 0 : index
    %c0_4 = arith.constant 0 : index
    %5 = vector.load %arg2[%c0_2, %4, %c0_3, %c0_4] : memref<1x2x2x128xbf16, #tpu.memory_space<vmem>>, vector<1x1x1x128xbf16>
    %6 = vector.shape_cast %5 : vector<1x1x1x128xbf16> to vector<1x128xbf16>
    %c0_5 = arith.constant 0 : index
    %c0_6 = arith.constant 0 : index
    %c0_7 = arith.constant 0 : index
    %7 = vector.load %arg3[%c0_5, %c0_6, %c0_7] : memref<4x128x64xbf16, #tpu.memory_space<vmem>>, vector<1x128x64xbf16>
    %8 = vector.shape_cast %7 : vector<1x128x64xbf16> to vector<128x64xbf16>
    %cst = arith.constant dense<0.000000e+00> : vector<1x64xf32>
    %9 = tpu.matmul %6, %8, %cst {dimension_numbers = #tpu.dot_dimension_numbers<[1], [0], [0], [1], [0, 0, 1, 1], [], []>} : vector<1x128xbf16>, vector<128x64xbf16>, vector<1x64xf32> -> vector<1x64xf32>
    %10 = arith.addf %1, %9 : vector<1x64xf32>
    %11 = arith.addi %0, %c0_i32 : i32
    %c0_i32_8 = arith.constant 0 : i32
    %12 = arith.addi %11, %c0_i32_8 : i32
    %c0_9 = arith.constant 0 : index
    %13 = arith.index_cast %12 : i32 to index
    %c1 = arith.constant 1 : index
    %c0_10 = arith.constant 0 : index
    %14 = vector.load %arg2[%c0_9, %13, %c1, %c0_10] : memref<1x2x2x128xbf16, #tpu.memory_space<vmem>>, vector<1x1x1x128xbf16>
    %15 = vector.shape_cast %14 : vector<1x1x1x128xbf16> to vector<1x128xbf16>
    %c1_11 = arith.constant 1 : index
    %c0_12 = arith.constant 0 : index
    %c0_13 = arith.constant 0 : index
    %16 = vector.load %arg3[%c1_11, %c0_12, %c0_13] : memref<4x128x64xbf16, #tpu.memory_space<vmem>>, vector<1x128x64xbf16>
    %17 = vector.shape_cast %16 : vector<1x128x64xbf16> to vector<128x64xbf16>
    %cst_14 = arith.constant dense<0.000000e+00> : vector<1x64xf32>
    %18 = tpu.matmul %15, %17, %cst_14 {dimension_numbers = #tpu.dot_dimension_numbers<[1], [0], [0], [1], [0, 0, 1, 1], [], []>} : vector<1x128xbf16>, vector<128x64xbf16>, vector<1x64xf32> -> vector<1x64xf32>
    %19 = arith.addf %10, %18 : vector<1x64xf32>
    %20 = arith.addi %0, %c0_i32 : i32
    %c1_i32_15 = arith.constant 1 : i32
    %21 = arith.addi %20, %c1_i32_15 : i32
    %c0_16 = arith.constant 0 : index
    %22 = arith.index_cast %21 : i32 to index
    %c0_17 = arith.constant 0 : index
    %c0_18 = arith.constant 0 : index
    %23 = vector.load %arg2[%c0_16, %22, %c0_17, %c0_18] : memref<1x2x2x128xbf16, #tpu.memory_space<vmem>>, vector<1x1x1x128xbf16>
    %24 = vector.shape_cast %23 : vector<1x1x1x128xbf16> to vector<1x128xbf16>
    %c2 = arith.constant 2 : index
    %c0_19 = arith.constant 0 : index
    %c0_20 = arith.constant 0 : index
    %25 = vector.load %arg3[%c2, %c0_19, %c0_20] : memref<4x128x64xbf16, #tpu.memory_space<vmem>>, vector<1x128x64xbf16>
    %26 = vector.shape_cast %25 : vector<1x128x64xbf16> to vector<128x64xbf16>
    %cst_21 = arith.constant dense<0.000000e+00> : vector<1x64xf32>
    %27 = tpu.matmul %24, %26, %cst_21 {dimension_numbers = #tpu.dot_dimension_numbers<[1], [0], [0], [1], [0, 0, 1, 1], [], []>} : vector<1x128xbf16>, vector<128x64xbf16>, vector<1x64xf32> -> vector<1x64xf32>
    %28 = arith.addf %19, %27 : vector<1x64xf32>
    %29 = arith.addi %0, %c0_i32 : i32
    %c1_i32_22 = arith.constant 1 : i32
    %30 = arith.addi %29, %c1_i32_22 : i32
    %c0_23 = arith.constant 0 : index
    %31 = arith.index_cast %30 : i32 to index
    %c1_24 = arith.constant 1 : index
    %c0_25 = arith.constant 0 : index
    %32 = vector.load %arg2[%c0_23, %31, %c1_24, %c0_25] : memref<1x2x2x128xbf16, #tpu.memory_space<vmem>>, vector<1x1x1x128xbf16>
    %33 = vector.shape_cast %32 : vector<1x1x1x128xbf16> to vector<1x128xbf16>
    %c3 = arith.constant 3 : index
    %c0_26 = arith.constant 0 : index
    %c0_27 = arith.constant 0 : index
    %34 = vector.load %arg3[%c3, %c0_26, %c0_27] : memref<4x128x64xbf16, #tpu.memory_space<vmem>>, vector<1x128x64xbf16>
    %35 = vector.shape_cast %34 : vector<1x128x64xbf16> to vector<128x64xbf16>
    %cst_28 = arith.constant dense<0.000000e+00> : vector<1x64xf32>
    %36 = tpu.matmul %33, %35, %cst_28 {dimension_numbers = #tpu.dot_dimension_numbers<[1], [0], [0], [1], [0, 0, 1, 1], [], []>} : vector<1x128xbf16>, vector<128x64xbf16>, vector<1x64xf32> -> vector<1x64xf32>
    %37 = arith.addf %28, %36 : vector<1x64xf32>
    %cst_29 = arith.constant 5.000000e-01 : f32
    %38 = vector.broadcast %cst_29 : f32 to vector<1x64xf32>
    %39 = arith.mulf %38, %37 : vector<1x64xf32>
    %cst_30 = arith.constant 4.471500e-02 : f32
    %40 = vector.broadcast %cst_30 : f32 to vector<1x64xf32>
    %41 = arith.mulf %40, %37 : vector<1x64xf32>
    %42 = arith.mulf %41, %37 : vector<1x64xf32>
    %43 = arith.mulf %42, %37 : vector<1x64xf32>
    %44 = arith.addf %37, %43 : vector<1x64xf32>
    %cst_31 = arith.constant 0.797884583 : f32
    %45 = vector.broadcast %cst_31 : f32 to vector<1x64xf32>
    %46 = arith.mulf %45, %44 : vector<1x64xf32>
    %47 = math.tanh %46 : vector<1x64xf32>
    %cst_32 = arith.constant 1.000000e+00 : f32
    %48 = vector.broadcast %cst_32 : f32 to vector<1x64xf32>
    %49 = arith.addf %48, %47 : vector<1x64xf32>
    %50 = arith.mulf %39, %49 : vector<1x64xf32>
    %51 = arith.truncf %50 : vector<1x64xf32> to vector<1x64xbf16>
    %c0_33 = arith.constant 0 : index
    %52 = arith.index_cast %c0_i32 : i32 to index
    %c0_34 = arith.constant 0 : index
    %c0_35 = arith.constant 0 : index
    %53 = vector.load %arg5[%c0_33, %52, %c0_34, %c0_35] : memref<1x1x1x64xbf16, #tpu.memory_space<vmem>>, vector<1x1x1x64xbf16>
    %54 = vector.shape_cast %53 : vector<1x1x1x64xbf16> to vector<1x64xbf16>
    %55 = vector.shape_cast %51 : vector<1x64xbf16> to vector<1x1x1x64xbf16>
    tpu.vector_store %arg5[%c0_33, %52, %c0_34, %c0_35], %55 {strides = array<i32>} : memref<1x1x1x64xbf16, #tpu.memory_space<vmem>>, vector<1x1x1x64xbf16>,
    %c1_i32_36 = arith.constant 1 : i32
    return
  }
  func.func @transform_0(%arg0: i32, %arg1: i32) -> (i32, i32, i32, i32) {
    %c0_i32 = arith.constant 0 : i32
    %c0_i32_0 = arith.constant 0 : i32
    %c0_i32_1 = arith.constant 0 : i32
    %c0_i32_2 = arith.constant 0 : i32
    return %arg0, %c0_i32, %c0_i32_0, %c0_i32_1 : i32, i32, i32, i32
  }
  func.func @transform_1(%arg0: i32, %arg1: i32) -> (i32, i32, i32) {
    %c0_i32 = arith.constant 0 : i32
    %c0_i32_0 = arith.constant 0 : i32
    %c0_i32_1 = arith.constant 0 : i32
    %c0_i32_2 = arith.constant 0 : i32
    return %c0_i32, %c0_i32_0, %c0_i32_1 : i32, i32, i32
  }
  func.func @transform_2(%arg0: i32, %arg1: i32) -> (i32, i32) {
    %c0_i32 = arith.constant 0 : i32
    %c0_i32_0 = arith.constant 0 : i32
    %c0_i32_1 = arith.constant 0 : i32
    return %c0_i32, %c0_i32_0 : i32, i32
  }
  func.func @transform_3(%arg0: i32, %arg1: i32) -> (i32, i32, i32, i32) {
    %c0_i32 = arith.constant 0 : i32
    %c0_i32_0 = arith.constant 0 : i32
    %c0_i32_1 = arith.constant 0 : i32
    return %arg0, %arg1, %c0_i32, %c0_i32_0 : i32, i32, i32, i32
  }
}

module attributes {stable_mosaic.version = 11 : i64} {
  func.func @_conv_kernel(%arg0: i32, %arg1: i32, %arg2: memref<1x4x4x16xbf16, #tpu.memory_space<vmem>>, %arg3: memref<9x16x32xbf16, #tpu.memory_space<vmem>>, %arg4: memref<1x32xf32, #tpu.memory_space<vmem>>, %arg5: memref<1x2x2x32xbf16, #tpu.memory_space<vmem>>) attributes {dimension_semantics = [#tpu.dimension_semantics<parallel>, #tpu.dimension_semantics<parallel>], iteration_bounds = array<i64: 2, 1>, scalar_prefetch = 0 : i64, scratch_operands = 0 : i64, tpu.core_type = #tpu.core_type<tc>, window_params = [{transform_indices = @transform_0, window_bounds = array<i64: 1, 4, 4, 16>}, {pipeline_mode = #tpu.pipeline_mode<synchronous>, transform_indices = @transform_1, window_bounds = array<i64: 9, 16, 32>}, {pipeline_mode = #tpu.pipeline_mode<synchronous>, transform_indices = @transform_2, window_bounds = array<i64: 1, 32>}, {transform_indices = @transform_3, window_bounds = array<i64: 1, 2, 2, 32>}]} {
    %c2_i32 = arith.constant 2 : i32
    %0 = arith.muli %arg1, %c2_i32 : i32
    %c0 = arith.constant 0 : index
    %c0_0 = arith.constant 0 : index
    %1 = vector.load %arg4[%c0, %c0_0] : memref<1x32xf32, #tpu.memory_space<vmem>>, vector<1x32xf32>
    %2 = vector.shape_cast %1 : vector<1x32xf32> to vector<1x32xf32>
    %3 = vector.broadcast %2 : vector<1x32xf32> to vector<2x32xf32>
    %c0_i32 = arith.constant 0 : i32
    %c2_i32_1 = arith.constant 2 : i32
    %4 = arith.addi %c0_i32, %c2_i32_1 : i32
    %c1_i32 = arith.constant 1 : i32
    scf.for %arg6 = %c0_i32 to %4 step %c1_i32  : i32 {
      %5 = arith.addi %0, %arg6 : i32
      %c0_i32_3 = arith.constant 0 : i32
      %6 = arith.addi %5, %c0_i32_3 : i32
      %c0_4 = arith.constant 0 : index
      %7 = arith.index_cast %6 : i32 to index
      %c0_5 = arith.constant 0 : index
      %c0_6 = arith.constant 0 : index
      %8 = vector.load %arg2[%c0_4, %7, %c0_5, %c0_6] : memref<1x4x4x16xbf16, #tpu.memory_space<vmem>>, vector<1x1x2x16xbf16>
      %9 = vector.shape_cast %8 : vector<1x1x2x16xbf16> to vector<2x16xbf16>
      %c0_7 = arith.constant 0 : index
      %c0_8 = arith.constant 0 : index
      %c0_9 = arith.constant 0 : index
      %10 = vector.load %arg3[%c0_7, %c0_8, %c0_9] : memref<9x16x32xbf16, #tpu.memory_space<vmem>>, vector<1x16x32xbf16>
      %11 = vector.shape_cast %10 : vector<1x16x32xbf16> to vector<16x32xbf16>
      %cst = arith.constant dense<0.000000e+00> : vector<2x32xf32>
      %12 = tpu.matmul %9, %11, %cst {dimension_numbers = #tpu.dot_dimension_numbers<[1], [0], [0], [1], [0, 0, 1, 1], [], []>} : vector<2x16xbf16>, vector<16x32xbf16>, vector<2x32xf32> -> vector<2x32xf32>
      %13 = arith.addf %3, %12 : vector<2x32xf32>
      %14 = arith.addi %0, %arg6 : i32
      %c0_i32_10 = arith.constant 0 : i32
      %15 = arith.addi %14, %c0_i32_10 : i32
      %c0_11 = arith.constant 0 : index
      %16 = arith.index_cast %15 : i32 to index
      %c1 = arith.constant 1 : index
      %c0_12 = arith.constant 0 : index
      %17 = vector.load %arg2[%c0_11, %16, %c1, %c0_12] : memref<1x4x4x16xbf16, #tpu.memory_space<vmem>>, vector<1x1x2x16xbf16>
      %18 = vector.shape_cast %17 : vector<1x1x2x16xbf16> to vector<2x16xbf16>
      %c1_13 = arith.constant 1 : index
      %c0_14 = arith.constant 0 : index
      %c0_15 = arith.constant 0 : index
      %19 = vector.load %arg3[%c1_13, %c0_14, %c0_15] : memref<9x16x32xbf16, #tpu.memory_space<vmem>>, vector<1x16x32xbf16>
      %20 = vector.shape_cast %19 : vector<1x16x32xbf16> to vector<16x32xbf16>
      %cst_16 = arith.constant dense<0.000000e+00> : vector<2x32xf32>
      %21 = tpu.matmul %18, %20, %cst_16 {dimension_numbers = #tpu.dot_dimension_numbers<[1], [0], [0], [1], [0, 0, 1, 1], [], []>} : vector<2x16xbf16>, vector<16x32xbf16>, vector<2x32xf32> -> vector<2x32xf32>
      %22 = arith.addf %13, %21 : vector<2x32xf32>
      %23 = arith.addi %0, %arg6 : i32
      %c0_i32_17 = arith.constant 0 : i32
      %24 = arith.addi %23, %c0_i32_17 : i32
      %c0_18 = arith.constant 0 : index
      %25 = arith.index_cast %24 : i32 to index
      %c2 = arith.constant 2 : index
      %c0_19 = arith.constant 0 : index
      %26 = vector.load %arg2[%c0_18, %25, %c2, %c0_19] : memref<1x4x4x16xbf16, #tpu.memory_space<vmem>>, vector<1x1x2x16xbf16>
      %27 = vector.shape_cast %26 : vector<1x1x2x16xbf16> to vector<2x16xbf16>
      %c2_20 = arith.constant 2 : index
      %c0_21 = arith.constant 0 : index
      %c0_22 = arith.constant 0 : index
      %28 = vector.load %arg3[%c2_20, %c0_21, %c0_22] : memref<9x16x32xbf16, #tpu.memory_space<vmem>>, vector<1x16x32xbf16>
      %29 = vector.shape_cast %28 : vector<1x16x32xbf16> to vector<16x32xbf16>
      %cst_23 = arith.constant dense<0.000000e+00> : vector<2x32xf32>
      %30 = tpu.matmul %27, %29, %cst_23 {dimension_numbers = #tpu.dot_dimension_numbers<[1], [0], [0], [1], [0, 0, 1, 1], [], []>} : vector<2x16xbf16>, vector<16x32xbf16>, vector<2x32xf32> -> vector<2x32xf32>
      %31 = arith.addf %22, %30 : vector<2x32xf32>
      %32 = arith.addi %0, %arg6 : i32
      %c1_i32_24 = arith.constant 1 : i32
      %33 = arith.addi %32, %c1_i32_24 : i32
      %c0_25 = arith.constant 0 : index
      %34 = arith.index_cast %33 : i32 to index
      %c0_26 = arith.constant 0 : index
      %c0_27 = arith.constant 0 : index
      %35 = vector.load %arg2[%c0_25, %34, %c0_26, %c0_27] : memref<1x4x4x16xbf16, #tpu.memory_space<vmem>>, vector<1x1x2x16xbf16>
      %36 = vector.shape_cast %35 : vector<1x1x2x16xbf16> to vector<2x16xbf16>
      %c3 = arith.constant 3 : index
      %c0_28 = arith.constant 0 : index
      %c0_29 = arith.constant 0 : index
      %37 = vector.load %arg3[%c3, %c0_28, %c0_29] : memref<9x16x32xbf16, #tpu.memory_space<vmem>>, vector<1x16x32xbf16>
      %38 = vector.shape_cast %37 : vector<1x16x32xbf16> to vector<16x32xbf16>
      %cst_30 = arith.constant dense<0.000000e+00> : vector<2x32xf32>
      %39 = tpu.matmul %36, %38, %cst_30 {dimension_numbers = #tpu.dot_dimension_numbers<[1], [0], [0], [1], [0, 0, 1, 1], [], []>} : vector<2x16xbf16>, vector<16x32xbf16>, vector<2x32xf32> -> vector<2x32xf32>
      %40 = arith.addf %31, %39 : vector<2x32xf32>
      %41 = arith.addi %0, %arg6 : i32
      %c1_i32_31 = arith.constant 1 : i32
      %42 = arith.addi %41, %c1_i32_31 : i32
      %c0_32 = arith.constant 0 : index
      %43 = arith.index_cast %42 : i32 to index
      %c1_33 = arith.constant 1 : index
      %c0_34 = arith.constant 0 : index
      %44 = vector.load %arg2[%c0_32, %43, %c1_33, %c0_34] : memref<1x4x4x16xbf16, #tpu.memory_space<vmem>>, vector<1x1x2x16xbf16>
      %45 = vector.shape_cast %44 : vector<1x1x2x16xbf16> to vector<2x16xbf16>
      %c4 = arith.constant 4 : index
      %c0_35 = arith.constant 0 : index
      %c0_36 = arith.constant 0 : index
      %46 = vector.load %arg3[%c4, %c0_35, %c0_36] : memref<9x16x32xbf16, #tpu.memory_space<vmem>>, vector<1x16x32xbf16>
      %47 = vector.shape_cast %46 : vector<1x16x32xbf16> to vector<16x32xbf16>
      %cst_37 = arith.constant dense<0.000000e+00> : vector<2x32xf32>
      %48 = tpu.matmul %45, %47, %cst_37 {dimension_numbers = #tpu.dot_dimension_numbers<[1], [0], [0], [1], [0, 0, 1, 1], [], []>} : vector<2x16xbf16>, vector<16x32xbf16>, vector<2x32xf32> -> vector<2x32xf32>
      %49 = arith.addf %40, %48 : vector<2x32xf32>
      %50 = arith.addi %0, %arg6 : i32
      %c1_i32_38 = arith.constant 1 : i32
      %51 = arith.addi %50, %c1_i32_38 : i32
      %c0_39 = arith.constant 0 : index
      %52 = arith.index_cast %51 : i32 to index
      %c2_40 = arith.constant 2 : index
      %c0_41 = arith.constant 0 : index
      %53 = vector.load %arg2[%c0_39, %52, %c2_40, %c0_41] : memref<1x4x4x16xbf16, #tpu.memory_space<vmem>>, vector<1x1x2x16xbf16>
      %54 = vector.shape_cast %53 : vector<1x1x2x16xbf16> to vector<2x16xbf16>
      %c5 = arith.constant 5 : index
      %c0_42 = arith.constant 0 : index
      %c0_43 = arith.constant 0 : index
      %55 = vector.load %arg3[%c5, %c0_42, %c0_43] : memref<9x16x32xbf16, #tpu.memory_space<vmem>>, vector<1x16x32xbf16>
      %56 = vector.shape_cast %55 : vector<1x16x32xbf16> to vector<16x32xbf16>
      %cst_44 = arith.constant dense<0.000000e+00> : vector<2x32xf32>
      %57 = tpu.matmul %54, %56, %cst_44 {dimension_numbers = #tpu.dot_dimension_numbers<[1], [0], [0], [1], [0, 0, 1, 1], [], []>} : vector<2x16xbf16>, vector<16x32xbf16>, vector<2x32xf32> -> vector<2x32xf32>
      %58 = arith.addf %49, %57 : vector<2x32xf32>
      %59 = arith.addi %0, %arg6 : i32
      %c2_i32_45 = arith.constant 2 : i32
      %60 = arith.addi %59, %c2_i32_45 : i32
      %c0_46 = arith.constant 0 : index
      %61 = arith.index_cast %60 : i32 to index
      %c0_47 = arith.constant 0 : index
      %c0_48 = arith.constant 0 : index
      %62 = vector.load %arg2[%c0_46, %61, %c0_47, %c0_48] : memref<1x4x4x16xbf16, #tpu.memory_space<vmem>>, vector<1x1x2x16xbf16>
      %63 = vector.shape_cast %62 : vector<1x1x2x16xbf16> to vector<2x16xbf16>
      %c6 = arith.constant 6 : index
      %c0_49 = arith.constant 0 : index
      %c0_50 = arith.constant 0 : index
      %64 = vector.load %arg3[%c6, %c0_49, %c0_50] : memref<9x16x32xbf16, #tpu.memory_space<vmem>>, vector<1x16x32xbf16>
      %65 = vector.shape_cast %64 : vector<1x16x32xbf16> to vector<16x32xbf16>
      %cst_51 = arith.constant dense<0.000000e+00> : vector<2x32xf32>
      %66 = tpu.matmul %63, %65, %cst_51 {dimension_numbers = #tpu.dot_dimension_numbers<[1], [0], [0], [1], [0, 0, 1, 1], [], []>} : vector<2x16xbf16>, vector<16x32xbf16>, vector<2x32xf32> -> vector<2x32xf32>
      %67 = arith.addf %58, %66 : vector<2x32xf32>
      %68 = arith.addi %0, %arg6 : i32
      %c2_i32_52 = arith.constant 2 : i32
      %69 = arith.addi %68, %c2_i32_52 : i32
      %c0_53 = arith.constant 0 : index
      %70 = arith.index_cast %69 : i32 to index
      %c1_54 = arith.constant 1 : index
      %c0_55 = arith.constant 0 : index
      %71 = vector.load %arg2[%c0_53, %70, %c1_54, %c0_55] : memref<1x4x4x16xbf16, #tpu.memory_space<vmem>>, vector<1x1x2x16xbf16>
      %72 = vector.shape_cast %71 : vector<1x1x2x16xbf16> to vector<2x16xbf16>
      %c7 = arith.constant 7 : index
      %c0_56 = arith.constant 0 : index
      %c0_57 = arith.constant 0 : index
      %73 = vector.load %arg3[%c7, %c0_56, %c0_57] : memref<9x16x32xbf16, #tpu.memory_space<vmem>>, vector<1x16x32xbf16>
      %74 = vector.shape_cast %73 : vector<1x16x32xbf16> to vector<16x32xbf16>
      %cst_58 = arith.constant dense<0.000000e+00> : vector<2x32xf32>
      %75 = tpu.matmul %72, %74, %cst_58 {dimension_numbers = #tpu.dot_dimension_numbers<[1], [0], [0], [1], [0, 0, 1, 1], [], []>} : vector<2x16xbf16>, vector<16x32xbf16>, vector<2x32xf32> -> vector<2x32xf32>
      %76 = arith.addf %67, %75 : vector<2x32xf32>
      %77 = arith.addi %0, %arg6 : i32
      %c2_i32_59 = arith.constant 2 : i32
      %78 = arith.addi %77, %c2_i32_59 : i32
      %c0_60 = arith.constant 0 : index
      %79 = arith.index_cast %78 : i32 to index
      %c2_61 = arith.constant 2 : index
      %c0_62 = arith.constant 0 : index
      %80 = vector.load %arg2[%c0_60, %79, %c2_61, %c0_62] : memref<1x4x4x16xbf16, #tpu.memory_space<vmem>>, vector<1x1x2x16xbf16>
      %81 = vector.shape_cast %80 : vector<1x1x2x16xbf16> to vector<2x16xbf16>
      %c8 = arith.constant 8 : index
      %c0_63 = arith.constant 0 : index
      %c0_64 = arith.constant 0 : index
      %82 = vector.load %arg3[%c8, %c0_63, %c0_64] : memref<9x16x32xbf16, #tpu.memory_space<vmem>>, vector<1x16x32xbf16>
      %83 = vector.shape_cast %82 : vector<1x16x32xbf16> to vector<16x32xbf16>
      %cst_65 = arith.constant dense<0.000000e+00> : vector<2x32xf32>
      %84 = tpu.matmul %81, %83, %cst_65 {dimension_numbers = #tpu.dot_dimension_numbers<[1], [0], [0], [1], [0, 0, 1, 1], [], []>} : vector<2x16xbf16>, vector<16x32xbf16>, vector<2x32xf32> -> vector<2x32xf32>
      %85 = arith.addf %76, %84 : vector<2x32xf32>
      %cst_66 = arith.constant 5.000000e-01 : f32
      %86 = vector.broadcast %cst_66 : f32 to vector<2x32xf32>
      %87 = arith.mulf %86, %85 : vector<2x32xf32>
      %cst_67 = arith.constant 4.471500e-02 : f32
      %88 = vector.broadcast %cst_67 : f32 to vector<2x32xf32>
      %89 = arith.mulf %88, %85 : vector<2x32xf32>
      %90 = arith.mulf %89, %85 : vector<2x32xf32>
      %91 = arith.mulf %90, %85 : vector<2x32xf32>
      %92 = arith.addf %85, %91 : vector<2x32xf32>
      %cst_68 = arith.constant 0.797884583 : f32
      %93 = vector.broadcast %cst_68 : f32 to vector<2x32xf32>
      %94 = arith.mulf %93, %92 : vector<2x32xf32>
      %95 = math.tanh %94 : vector<2x32xf32>
      %cst_69 = arith.constant 1.000000e+00 : f32
      %96 = vector.broadcast %cst_69 : f32 to vector<2x32xf32>
      %97 = arith.addf %96, %95 : vector<2x32xf32>
      %98 = arith.mulf %87, %97 : vector<2x32xf32>
      %99 = arith.truncf %98 : vector<2x32xf32> to vector<2x32xbf16>
      %c0_70 = arith.constant 0 : index
      %100 = arith.index_cast %arg6 : i32 to index
      %c0_71 = arith.constant 0 : index
      %c0_72 = arith.constant 0 : index
      %101 = vector.load %arg5[%c0_70, %100, %c0_71, %c0_72] : memref<1x2x2x32xbf16, #tpu.memory_space<vmem>>, vector<1x1x2x32xbf16>
      %102 = vector.shape_cast %101 : vector<1x1x2x32xbf16> to vector<2x32xbf16>
      %103 = vector.shape_cast %99 : vector<2x32xbf16> to vector<1x1x2x32xbf16>
      tpu.vector_store %arg5[%c0_70, %100, %c0_71, %c0_72], %103 {strides = array<i32>} : memref<1x2x2x32xbf16, #tpu.memory_space<vmem>>, vector<1x1x2x32xbf16>,
    }
    %c2_i32_2 = arith.constant 2 : i32
    return
  }
  func.func @transform_0(%arg0: i32, %arg1: i32) -> (i32, i32, i32, i32) {
    %c0_i32 = arith.constant 0 : i32
    %c0_i32_0 = arith.constant 0 : i32
    %c0_i32_1 = arith.constant 0 : i32
    %c0_i32_2 = arith.constant 0 : i32
    return %arg0, %c0_i32, %c0_i32_0, %c0_i32_1 : i32, i32, i32, i32
  }
  func.func @transform_1(%arg0: i32, %arg1: i32) -> (i32, i32, i32) {
    %c0_i32 = arith.constant 0 : i32
    %c0_i32_0 = arith.constant 0 : i32
    %c0_i32_1 = arith.constant 0 : i32
    %c0_i32_2 = arith.constant 0 : i32
    return %c0_i32, %c0_i32_0, %c0_i32_1 : i32, i32, i32
  }
  func.func @transform_2(%arg0: i32, %arg1: i32) -> (i32, i32) {
    %c0_i32 = arith.constant 0 : i32
    %c0_i32_0 = arith.constant 0 : i32
    %c0_i32_1 = arith.constant 0 : i32
    return %c0_i32, %c0_i32_0 : i32, i32
  }
  func.func @transform_3(%arg0: i32, %arg1: i32) -> (i32, i32, i32, i32) {
    %c0_i32 = arith.constant 0 : i32
    %c0_i32_0 = arith.constant 0 : i32
    %c0_i32_1 = arith.constant 0 : i32
    return %arg0, %arg1, %c0_i32, %c0_i32_0 : i32, i32, i32, i32
  }
}

module attributes {stable_mosaic.version = 11 : i64} {
  func.func @_conv_kernel(%arg0: i32, %arg1: i32, %arg2: memref<1x6x6x8xbf16, #tpu.memory_space<vmem>>, %arg3: memref<9x8x16xbf16, #tpu.memory_space<vmem>>, %arg4: memref<1x16xf32, #tpu.memory_space<vmem>>, %arg5: memref<1x4x4x16xbf16, #tpu.memory_space<vmem>>) attributes {dimension_semantics = [#tpu.dimension_semantics<parallel>, #tpu.dimension_semantics<parallel>], iteration_bounds = array<i64: 2, 1>, scalar_prefetch = 0 : i64, scratch_operands = 0 : i64, tpu.core_type = #tpu.core_type<tc>, window_params = [{transform_indices = @transform_0, window_bounds = array<i64: 1, 6, 6, 8>}, {pipeline_mode = #tpu.pipeline_mode<synchronous>, transform_indices = @transform_1, window_bounds = array<i64: 9, 8, 16>}, {pipeline_mode = #tpu.pipeline_mode<synchronous>, transform_indices = @transform_2, window_bounds = array<i64: 1, 16>}, {transform_indices = @transform_3, window_bounds = array<i64: 1, 4, 4, 16>}]} {
    %c4_i32 = arith.constant 4 : i32
    %0 = arith.muli %arg1, %c4_i32 : i32
    %c0 = arith.constant 0 : index
    %c0_0 = arith.constant 0 : index
    %1 = vector.load %arg4[%c0, %c0_0] : memref<1x16xf32, #tpu.memory_space<vmem>>, vector<1x16xf32>
    %2 = vector.shape_cast %1 : vector<1x16xf32> to vector<1x16xf32>
    %3 = vector.broadcast %2 : vector<1x16xf32> to vector<4x16xf32>
    %c0_i32 = arith.constant 0 : i32
    %c4_i32_1 = arith.constant 4 : i32
    %4 = arith.addi %c0_i32, %c4_i32_1 : i32
    %c1_i32 = arith.constant 1 : i32
    scf.for %arg6 = %c0_i32 to %4 step %c1_i32  : i32 {
      %5 = arith.addi %0, %arg6 : i32
      %c0_i32_3 = arith.constant 0 : i32
      %6 = arith.addi %5, %c0_i32_3 : i32
      %c0_4 = arith.constant 0 : index
      %7 = arith.index_cast %6 : i32 to index
      %c0_5 = arith.constant 0 : index
      %c0_6 = arith.constant 0 : index
      %8 = vector.load %arg2[%c0_4, %7, %c0_5, %c0_6] : memref<1x6x6x8xbf16, #tpu.memory_space<vmem>>, vector<1x1x4x8xbf16>
      %9 = vector.shape_cast %8 : vector<1x1x4x8xbf16> to vector<4x8xbf16>
      %c0_7 = arith.constant 0 : index
      %c0_8 = arith.constant 0 : index
      %c0_9 = arith.constant 0 : index
      %10 = vector.load %arg3[%c0_7, %c0_8, %c0_9] : memref<9x8x16xbf16, #tpu.memory_space<vmem>>, vector<1x8x16xbf16>
      %11 = vector.shape_cast %10 : vector<1x8x16xbf16> to vector<8x16xbf16>
      %cst = arith.constant dense<0.000000e+00> : vector<4x16xf32>
      %12 = tpu.matmul %9, %11, %cst {dimension_numbers = #tpu.dot_dimension_numbers<[1], [0], [0], [1], [0, 0, 1, 1], [], []>} : vector<4x8xbf16>, vector<8x16xbf16>, vector<4x16xf32> -> vector<4x16xf32>
      %13 = arith.addf %3, %12 : vector<4x16xf32>
      %14 = arith.addi %0, %arg6 : i32
      %c0_i32_10 = arith.constant 0 : i32
      %15 = arith.addi %14, %c0_i32_10 : i32
      %c0_11 = arith.constant 0 : index
      %16 = arith.index_cast %15 : i32 to index
      %c1 = arith.constant 1 : index
      %c0_12 = arith.constant 0 : index
      %17 = vector.load %arg2[%c0_11, %16, %c1, %c0_12] : memref<1x6x6x8xbf16, #tpu.memory_space<vmem>>, vector<1x1x4x8xbf16>
      %18 = vector.shape_cast %17 : vector<1x1x4x8xbf16> to vector<4x8xbf16>
      %c1_13 = arith.constant 1 : index
      %c0_14 = arith.constant 0 : index
      %c0_15 = arith.constant 0 : index
      %19 = vector.load %arg3[%c1_13, %c0_14, %c0_15] : memref<9x8x16xbf16, #tpu.memory_space<vmem>>, vector<1x8x16xbf16>
      %20 = vector.shape_cast %19 : vector<1x8x16xbf16> to vector<8x16xbf16>
      %cst_16 = arith.constant dense<0.000000e+00> : vector<4x16xf32>
      %21 = tpu.matmul %18, %20, %cst_16 {dimension_numbers = #tpu.dot_dimension_numbers<[1], [0], [0], [1], [0, 0, 1, 1], [], []>} : vector<4x8xbf16>, vector<8x16xbf16>, vector<4x16xf32> -> vector<4x16xf32>
      %22 = arith.addf %13, %21 : vector<4x16xf32>
      %23 = arith.addi %0, %arg6 : i32
      %c0_i32_17 = arith.constant 0 : i32
      %24 = arith.addi %23, %c0_i32_17 : i32
      %c0_18 = arith.constant 0 : index
      %25 = arith.index_cast %24 : i32 to index
      %c2 = arith.constant 2 : index
      %c0_19 = arith.constant 0 : index
      %26 = vector.load %arg2[%c0_18, %25, %c2, %c0_19] : memref<1x6x6x8xbf16, #tpu.memory_space<vmem>>, vector<1x1x4x8xbf16>
      %27 = vector.shape_cast %26 : vector<1x1x4x8xbf16> to vector<4x8xbf16>
      %c2_20 = arith.constant 2 : index
      %c0_21 = arith.constant 0 : index
      %c0_22 = arith.constant 0 : index
      %28 = vector.load %arg3[%c2_20, %c0_21, %c0_22] : memref<9x8x16xbf16, #tpu.memory_space<vmem>>, vector<1x8x16xbf16>
      %29 = vector.shape_cast %28 : vector<1x8x16xbf16> to vector<8x16xbf16>
      %cst_23 = arith.constant dense<0.000000e+00> : vector<4x16xf32>
      %30 = tpu.matmul %27, %29, %cst_23 {dimension_numbers = #tpu.dot_dimension_numbers<[1], [0], [0], [1], [0, 0, 1, 1], [], []>} : vector<4x8xbf16>, vector<8x16xbf16>, vector<4x16xf32> -> vector<4x16xf32>
      %31 = arith.addf %22, %30 : vector<4x16xf32>
      %32 = arith.addi %0, %arg6 : i32
      %c1_i32_24 = arith.constant 1 : i32
      %33 = arith.addi %32, %c1_i32_24 : i32
      %c0_25 = arith.constant 0 : index
      %34 = arith.index_cast %33 : i32 to index
      %c0_26 = arith.constant 0 : index
      %c0_27 = arith.constant 0 : index
      %35 = vector.load %arg2[%c0_25, %34, %c0_26, %c0_27] : memref<1x6x6x8xbf16, #tpu.memory_space<vmem>>, vector<1x1x4x8xbf16>
      %36 = vector.shape_cast %35 : vector<1x1x4x8xbf16> to vector<4x8xbf16>
      %c3 = arith.constant 3 : index
      %c0_28 = arith.constant 0 : index
      %c0_29 = arith.constant 0 : index
      %37 = vector.load %arg3[%c3, %c0_28, %c0_29] : memref<9x8x16xbf16, #tpu.memory_space<vmem>>, vector<1x8x16xbf16>
      %38 = vector.shape_cast %37 : vector<1x8x16xbf16> to vector<8x16xbf16>
      %cst_30 = arith.constant dense<0.000000e+00> : vector<4x16xf32>
      %39 = tpu.matmul %36, %38, %cst_30 {dimension_numbers = #tpu.dot_dimension_numbers<[1], [0], [0], [1], [0, 0, 1, 1], [], []>} : vector<4x8xbf16>, vector<8x16xbf16>, vector<4x16xf32> -> vector<4x16xf32>
      %40 = arith.addf %31, %39 : vector<4x16xf32>
      %41 = arith.addi %0, %arg6 : i32
      %c1_i32_31 = arith.constant 1 : i32
      %42 = arith.addi %41, %c1_i32_31 : i32
      %c0_32 = arith.constant 0 : index
      %43 = arith.index_cast %42 : i32 to index
      %c1_33 = arith.constant 1 : index
      %c0_34 = arith.constant 0 : index
      %44 = vector.load %arg2[%c0_32, %43, %c1_33, %c0_34] : memref<1x6x6x8xbf16, #tpu.memory_space<vmem>>, vector<1x1x4x8xbf16>
      %45 = vector.shape_cast %44 : vector<1x1x4x8xbf16> to vector<4x8xbf16>
      %c4 = arith.constant 4 : index
      %c0_35 = arith.constant 0 : index
      %c0_36 = arith.constant 0 : index
      %46 = vector.load %arg3[%c4, %c0_35, %c0_36] : memref<9x8x16xbf16, #tpu.memory_space<vmem>>, vector<1x8x16xbf16>
      %47 = vector.shape_cast %46 : vector<1x8x16xbf16> to vector<8x16xbf16>
      %cst_37 = arith.constant dense<0.000000e+00> : vector<4x16xf32>
      %48 = tpu.matmul %45, %47, %cst_37 {dimension_numbers = #tpu.dot_dimension_numbers<[1], [0], [0], [1], [0, 0, 1, 1], [], []>} : vector<4x8xbf16>, vector<8x16xbf16>, vector<4x16xf32> -> vector<4x16xf32>
      %49 = arith.addf %40, %48 : vector<4x16xf32>
      %50 = arith.addi %0, %arg6 : i32
      %c1_i32_38 = arith.constant 1 : i32
      %51 = arith.addi %50, %c1_i32_38 : i32
      %c0_39 = arith.constant 0 : index
      %52 = arith.index_cast %51 : i32 to index
      %c2_40 = arith.constant 2 : index
      %c0_41 = arith.constant 0 : index
      %53 = vector.load %arg2[%c0_39, %52, %c2_40, %c0_41] : memref<1x6x6x8xbf16, #tpu.memory_space<vmem>>, vector<1x1x4x8xbf16>
      %54 = vector.shape_cast %53 : vector<1x1x4x8xbf16> to vector<4x8xbf16>
      %c5 = arith.constant 5 : index
      %c0_42 = arith.constant 0 : index
      %c0_43 = arith.constant 0 : index
      %55 = vector.load %arg3[%c5, %c0_42, %c0_43] : memref<9x8x16xbf16, #tpu.memory_space<vmem>>, vector<1x8x16xbf16>
      %56 = vector.shape_cast %55 : vector<1x8x16xbf16> to vector<8x16xbf16>
      %cst_44 = arith.constant dense<0.000000e+00> : vector<4x16xf32>
      %57 = tpu.matmul %54, %56, %cst_44 {dimension_numbers = #tpu.dot_dimension_numbers<[1], [0], [0], [1], [0, 0, 1, 1], [], []>} : vector<4x8xbf16>, vector<8x16xbf16>, vector<4x16xf32> -> vector<4x16xf32>
      %58 = arith.addf %49, %57 : vector<4x16xf32>
      %59 = arith.addi %0, %arg6 : i32
      %c2_i32 = arith.constant 2 : i32
      %60 = arith.addi %59, %c2_i32 : i32
      %c0_45 = arith.constant 0 : index
      %61 = arith.index_cast %60 : i32 to index
      %c0_46 = arith.constant 0 : index
      %c0_47 = arith.constant 0 : index
      %62 = vector.load %arg2[%c0_45, %61, %c0_46, %c0_47] : memref<1x6x6x8xbf16, #tpu.memory_space<vmem>>, vector<1x1x4x8xbf16>
      %63 = vector.shape_cast %62 : vector<1x1x4x8xbf16> to vector<4x8xbf16>
      %c6 = arith.constant 6 : index
      %c0_48 = arith.constant 0 : index
      %c0_49 = arith.constant 0 : index
      %64 = vector.load %arg3[%c6, %c0_48, %c0_49] : memref<9x8x16xbf16, #tpu.memory_space<vmem>>, vector<1x8x16xbf16>
      %65 = vector.shape_cast %64 : vector<1x8x16xbf16> to vector<8x16xbf16>
      %cst_50 = arith.constant dense<0.000000e+00> : vector<4x16xf32>
      %66 = tpu.matmul %63, %65, %cst_50 {dimension_numbers = #tpu.dot_dimension_numbers<[1], [0], [0], [1], [0, 0, 1, 1], [], []>} : vector<4x8xbf16>, vector<8x16xbf16>, vector<4x16xf32> -> vector<4x16xf32>
      %67 = arith.addf %58, %66 : vector<4x16xf32>
      %68 = arith.addi %0, %arg6 : i32
      %c2_i32_51 = arith.constant 2 : i32
      %69 = arith.addi %68, %c2_i32_51 : i32
      %c0_52 = arith.constant 0 : index
      %70 = arith.index_cast %69 : i32 to index
      %c1_53 = arith.constant 1 : index
      %c0_54 = arith.constant 0 : index
      %71 = vector.load %arg2[%c0_52, %70, %c1_53, %c0_54] : memref<1x6x6x8xbf16, #tpu.memory_space<vmem>>, vector<1x1x4x8xbf16>
      %72 = vector.shape_cast %71 : vector<1x1x4x8xbf16> to vector<4x8xbf16>
      %c7 = arith.constant 7 : index
      %c0_55 = arith.constant 0 : index
      %c0_56 = arith.constant 0 : index
      %73 = vector.load %arg3[%c7, %c0_55, %c0_56] : memref<9x8x16xbf16, #tpu.memory_space<vmem>>, vector<1x8x16xbf16>
      %74 = vector.shape_cast %73 : vector<1x8x16xbf16> to vector<8x16xbf16>
      %cst_57 = arith.constant dense<0.000000e+00> : vector<4x16xf32>
      %75 = tpu.matmul %72, %74, %cst_57 {dimension_numbers = #tpu.dot_dimension_numbers<[1], [0], [0], [1], [0, 0, 1, 1], [], []>} : vector<4x8xbf16>, vector<8x16xbf16>, vector<4x16xf32> -> vector<4x16xf32>
      %76 = arith.addf %67, %75 : vector<4x16xf32>
      %77 = arith.addi %0, %arg6 : i32
      %c2_i32_58 = arith.constant 2 : i32
      %78 = arith.addi %77, %c2_i32_58 : i32
      %c0_59 = arith.constant 0 : index
      %79 = arith.index_cast %78 : i32 to index
      %c2_60 = arith.constant 2 : index
      %c0_61 = arith.constant 0 : index
      %80 = vector.load %arg2[%c0_59, %79, %c2_60, %c0_61] : memref<1x6x6x8xbf16, #tpu.memory_space<vmem>>, vector<1x1x4x8xbf16>
      %81 = vector.shape_cast %80 : vector<1x1x4x8xbf16> to vector<4x8xbf16>
      %c8 = arith.constant 8 : index
      %c0_62 = arith.constant 0 : index
      %c0_63 = arith.constant 0 : index
      %82 = vector.load %arg3[%c8, %c0_62, %c0_63] : memref<9x8x16xbf16, #tpu.memory_space<vmem>>, vector<1x8x16xbf16>
      %83 = vector.shape_cast %82 : vector<1x8x16xbf16> to vector<8x16xbf16>
      %cst_64 = arith.constant dense<0.000000e+00> : vector<4x16xf32>
      %84 = tpu.matmul %81, %83, %cst_64 {dimension_numbers = #tpu.dot_dimension_numbers<[1], [0], [0], [1], [0, 0, 1, 1], [], []>} : vector<4x8xbf16>, vector<8x16xbf16>, vector<4x16xf32> -> vector<4x16xf32>
      %85 = arith.addf %76, %84 : vector<4x16xf32>
      %cst_65 = arith.constant 5.000000e-01 : f32
      %86 = vector.broadcast %cst_65 : f32 to vector<4x16xf32>
      %87 = arith.mulf %86, %85 : vector<4x16xf32>
      %cst_66 = arith.constant 4.471500e-02 : f32
      %88 = vector.broadcast %cst_66 : f32 to vector<4x16xf32>
      %89 = arith.mulf %88, %85 : vector<4x16xf32>
      %90 = arith.mulf %89, %85 : vector<4x16xf32>
      %91 = arith.mulf %90, %85 : vector<4x16xf32>
      %92 = arith.addf %85, %91 : vector<4x16xf32>
      %cst_67 = arith.constant 0.797884583 : f32
      %93 = vector.broadcast %cst_67 : f32 to vector<4x16xf32>
      %94 = arith.mulf %93, %92 : vector<4x16xf32>
      %95 = math.tanh %94 : vector<4x16xf32>
      %cst_68 = arith.constant 1.000000e+00 : f32
      %96 = vector.broadcast %cst_68 : f32 to vector<4x16xf32>
      %97 = arith.addf %96, %95 : vector<4x16xf32>
      %98 = arith.mulf %87, %97 : vector<4x16xf32>
      %99 = arith.truncf %98 : vector<4x16xf32> to vector<4x16xbf16>
      %c0_69 = arith.constant 0 : index
      %100 = arith.index_cast %arg6 : i32 to index
      %c0_70 = arith.constant 0 : index
      %c0_71 = arith.constant 0 : index
      %101 = vector.load %arg5[%c0_69, %100, %c0_70, %c0_71] : memref<1x4x4x16xbf16, #tpu.memory_space<vmem>>, vector<1x1x4x16xbf16>
      %102 = vector.shape_cast %101 : vector<1x1x4x16xbf16> to vector<4x16xbf16>
      %103 = vector.shape_cast %99 : vector<4x16xbf16> to vector<1x1x4x16xbf16>
      tpu.vector_store %arg5[%c0_69, %100, %c0_70, %c0_71], %103 {strides = array<i32>} : memref<1x4x4x16xbf16, #tpu.memory_space<vmem>>, vector<1x1x4x16xbf16>,
    }
    %c4_i32_2 = arith.constant 4 : i32
    return
  }
  func.func @transform_0(%arg0: i32, %arg1: i32) -> (i32, i32, i32, i32) {
    %c0_i32 = arith.constant 0 : i32
    %c0_i32_0 = arith.constant 0 : i32
    %c0_i32_1 = arith.constant 0 : i32
    %c0_i32_2 = arith.constant 0 : i32
    return %arg0, %c0_i32, %c0_i32_0, %c0_i32_1 : i32, i32, i32, i32
  }
  func.func @transform_1(%arg0: i32, %arg1: i32) -> (i32, i32, i32) {
    %c0_i32 = arith.constant 0 : i32
    %c0_i32_0 = arith.constant 0 : i32
    %c0_i32_1 = arith.constant 0 : i32
    %c0_i32_2 = arith.constant 0 : i32
    return %c0_i32, %c0_i32_0, %c0_i32_1 : i32, i32, i32
  }
  func.func @transform_2(%arg0: i32, %arg1: i32) -> (i32, i32) {
    %c0_i32 = arith.constant 0 : i32
    %c0_i32_0 = arith.constant 0 : i32
    %c0_i32_1 = arith.constant 0 : i32
    return %c0_i32, %c0_i32_0 : i32, i32
  }
  func.func @transform_3(%arg0: i32, %arg1: i32) -> (i32, i32, i32, i32) {
    %c0_i32 = arith.constant 0 : i32
    %c0_i32_0 = arith.constant 0 : i32
    %c0_i32_1 = arith.constant 0 : i32
    return %arg0, %arg1, %c0_i32, %c0_i32_0 : i32, i32, i32, i32
  }
}

module attributes {stable_mosaic.version = 11 : i64} {
  func.func @_conv_kernel(%arg0: i32, %arg1: i32, %arg2: memref<1x10x10x4xbf16, #tpu.memory_space<vmem>>, %arg3: memref<9x4x8xbf16, #tpu.memory_space<vmem>>, %arg4: memref<1x8xf32, #tpu.memory_space<vmem>>, %arg5: memref<1x8x8x8xbf16, #tpu.memory_space<vmem>>) attributes {dimension_semantics = [#tpu.dimension_semantics<parallel>, #tpu.dimension_semantics<parallel>], iteration_bounds = array<i64: 2, 1>, scalar_prefetch = 0 : i64, scratch_operands = 0 : i64, tpu.core_type = #tpu.core_type<tc>, window_params = [{transform_indices = @transform_0, window_bounds = array<i64: 1, 10, 10, 4>}, {pipeline_mode = #tpu.pipeline_mode<synchronous>, transform_indices = @transform_1, window_bounds = array<i64: 9, 4, 8>}, {pipeline_mode = #tpu.pipeline_mode<synchronous>, transform_indices = @transform_2, window_bounds = array<i64: 1, 8>}, {transform_indices = @transform_3, window_bounds = array<i64: 1, 8, 8, 8>}]} {
    %c8_i32 = arith.constant 8 : i32
    %0 = arith.muli %arg1, %c8_i32 : i32
    %c0 = arith.constant 0 : index
    %c0_0 = arith.constant 0 : index
    %1 = vector.load %arg4[%c0, %c0_0] : memref<1x8xf32, #tpu.memory_space<vmem>>, vector<1x8xf32>
    %2 = vector.shape_cast %1 : vector<1x8xf32> to vector<1x8xf32>
    %3 = vector.broadcast %2 : vector<1x8xf32> to vector<8x8xf32>
    %c0_i32 = arith.constant 0 : i32
    %c8_i32_1 = arith.constant 8 : i32
    %4 = arith.addi %c0_i32, %c8_i32_1 : i32
    %c1_i32 = arith.constant 1 : i32
    scf.for %arg6 = %c0_i32 to %4 step %c1_i32  : i32 {
      %5 = arith.addi %0, %arg6 : i32
      %c0_i32_3 = arith.constant 0 : i32
      %6 = arith.addi %5, %c0_i32_3 : i32
      %c0_4 = arith.constant 0 : index
      %7 = arith.index_cast %6 : i32 to index
      %c0_5 = arith.constant 0 : index
      %c0_6 = arith.constant 0 : index
      %8 = vector.load %arg2[%c0_4, %7, %c0_5, %c0_6] : memref<1x10x10x4xbf16, #tpu.memory_space<vmem>>, vector<1x1x8x4xbf16>
      %9 = vector.shape_cast %8 : vector<1x1x8x4xbf16> to vector<8x4xbf16>
      %c0_7 = arith.constant 0 : index
      %c0_8 = arith.constant 0 : index
      %c0_9 = arith.constant 0 : index
      %10 = vector.load %arg3[%c0_7, %c0_8, %c0_9] : memref<9x4x8xbf16, #tpu.memory_space<vmem>>, vector<1x4x8xbf16>
      %11 = vector.shape_cast %10 : vector<1x4x8xbf16> to vector<4x8xbf16>
      %cst = arith.constant dense<0.000000e+00> : vector<8x8xf32>
      %12 = tpu.matmul %9, %11, %cst {dimension_numbers = #tpu.dot_dimension_numbers<[1], [0], [0], [1], [0, 0, 1, 1], [], []>} : vector<8x4xbf16>, vector<4x8xbf16>, vector<8x8xf32> -> vector<8x8xf32>
      %13 = arith.addf %3, %12 : vector<8x8xf32>
      %14 = arith.addi %0, %arg6 : i32
      %c0_i32_10 = arith.constant 0 : i32
      %15 = arith.addi %14, %c0_i32_10 : i32
      %c0_11 = arith.constant 0 : index
      %16 = arith.index_cast %15 : i32 to index
      %c1 = arith.constant 1 : index
      %c0_12 = arith.constant 0 : index
      %17 = vector.load %arg2[%c0_11, %16, %c1, %c0_12] : memref<1x10x10x4xbf16, #tpu.memory_space<vmem>>, vector<1x1x8x4xbf16>
      %18 = vector.shape_cast %17 : vector<1x1x8x4xbf16> to vector<8x4xbf16>
      %c1_13 = arith.constant 1 : index
      %c0_14 = arith.constant 0 : index
      %c0_15 = arith.constant 0 : index
      %19 = vector.load %arg3[%c1_13, %c0_14, %c0_15] : memref<9x4x8xbf16, #tpu.memory_space<vmem>>, vector<1x4x8xbf16>
      %20 = vector.shape_cast %19 : vector<1x4x8xbf16> to vector<4x8xbf16>
      %cst_16 = arith.constant dense<0.000000e+00> : vector<8x8xf32>
      %21 = tpu.matmul %18, %20, %cst_16 {dimension_numbers = #tpu.dot_dimension_numbers<[1], [0], [0], [1], [0, 0, 1, 1], [], []>} : vector<8x4xbf16>, vector<4x8xbf16>, vector<8x8xf32> -> vector<8x8xf32>
      %22 = arith.addf %13, %21 : vector<8x8xf32>
      %23 = arith.addi %0, %arg6 : i32
      %c0_i32_17 = arith.constant 0 : i32
      %24 = arith.addi %23, %c0_i32_17 : i32
      %c0_18 = arith.constant 0 : index
      %25 = arith.index_cast %24 : i32 to index
      %c2 = arith.constant 2 : index
      %c0_19 = arith.constant 0 : index
      %26 = vector.load %arg2[%c0_18, %25, %c2, %c0_19] : memref<1x10x10x4xbf16, #tpu.memory_space<vmem>>, vector<1x1x8x4xbf16>
      %27 = vector.shape_cast %26 : vector<1x1x8x4xbf16> to vector<8x4xbf16>
      %c2_20 = arith.constant 2 : index
      %c0_21 = arith.constant 0 : index
      %c0_22 = arith.constant 0 : index
      %28 = vector.load %arg3[%c2_20, %c0_21, %c0_22] : memref<9x4x8xbf16, #tpu.memory_space<vmem>>, vector<1x4x8xbf16>
      %29 = vector.shape_cast %28 : vector<1x4x8xbf16> to vector<4x8xbf16>
      %cst_23 = arith.constant dense<0.000000e+00> : vector<8x8xf32>
      %30 = tpu.matmul %27, %29, %cst_23 {dimension_numbers = #tpu.dot_dimension_numbers<[1], [0], [0], [1], [0, 0, 1, 1], [], []>} : vector<8x4xbf16>, vector<4x8xbf16>, vector<8x8xf32> -> vector<8x8xf32>
      %31 = arith.addf %22, %30 : vector<8x8xf32>
      %32 = arith.addi %0, %arg6 : i32
      %c1_i32_24 = arith.constant 1 : i32
      %33 = arith.addi %32, %c1_i32_24 : i32
      %c0_25 = arith.constant 0 : index
      %34 = arith.index_cast %33 : i32 to index
      %c0_26 = arith.constant 0 : index
      %c0_27 = arith.constant 0 : index
      %35 = vector.load %arg2[%c0_25, %34, %c0_26, %c0_27] : memref<1x10x10x4xbf16, #tpu.memory_space<vmem>>, vector<1x1x8x4xbf16>
      %36 = vector.shape_cast %35 : vector<1x1x8x4xbf16> to vector<8x4xbf16>
      %c3 = arith.constant 3 : index
      %c0_28 = arith.constant 0 : index
      %c0_29 = arith.constant 0 : index
      %37 = vector.load %arg3[%c3, %c0_28, %c0_29] : memref<9x4x8xbf16, #tpu.memory_space<vmem>>, vector<1x4x8xbf16>
      %38 = vector.shape_cast %37 : vector<1x4x8xbf16> to vector<4x8xbf16>
      %cst_30 = arith.constant dense<0.000000e+00> : vector<8x8xf32>
      %39 = tpu.matmul %36, %38, %cst_30 {dimension_numbers = #tpu.dot_dimension_numbers<[1], [0], [0], [1], [0, 0, 1, 1], [], []>} : vector<8x4xbf16>, vector<4x8xbf16>, vector<8x8xf32> -> vector<8x8xf32>
      %40 = arith.addf %31, %39 : vector<8x8xf32>
      %41 = arith.addi %0, %arg6 : i32
      %c1_i32_31 = arith.constant 1 : i32
      %42 = arith.addi %41, %c1_i32_31 : i32
      %c0_32 = arith.constant 0 : index
      %43 = arith.index_cast %42 : i32 to index
      %c1_33 = arith.constant 1 : index
      %c0_34 = arith.constant 0 : index
      %44 = vector.load %arg2[%c0_32, %43, %c1_33, %c0_34] : memref<1x10x10x4xbf16, #tpu.memory_space<vmem>>, vector<1x1x8x4xbf16>
      %45 = vector.shape_cast %44 : vector<1x1x8x4xbf16> to vector<8x4xbf16>
      %c4 = arith.constant 4 : index
      %c0_35 = arith.constant 0 : index
      %c0_36 = arith.constant 0 : index
      %46 = vector.load %arg3[%c4, %c0_35, %c0_36] : memref<9x4x8xbf16, #tpu.memory_space<vmem>>, vector<1x4x8xbf16>
      %47 = vector.shape_cast %46 : vector<1x4x8xbf16> to vector<4x8xbf16>
      %cst_37 = arith.constant dense<0.000000e+00> : vector<8x8xf32>
      %48 = tpu.matmul %45, %47, %cst_37 {dimension_numbers = #tpu.dot_dimension_numbers<[1], [0], [0], [1], [0, 0, 1, 1], [], []>} : vector<8x4xbf16>, vector<4x8xbf16>, vector<8x8xf32> -> vector<8x8xf32>
      %49 = arith.addf %40, %48 : vector<8x8xf32>
      %50 = arith.addi %0, %arg6 : i32
      %c1_i32_38 = arith.constant 1 : i32
      %51 = arith.addi %50, %c1_i32_38 : i32
      %c0_39 = arith.constant 0 : index
      %52 = arith.index_cast %51 : i32 to index
      %c2_40 = arith.constant 2 : index
      %c0_41 = arith.constant 0 : index
      %53 = vector.load %arg2[%c0_39, %52, %c2_40, %c0_41] : memref<1x10x10x4xbf16, #tpu.memory_space<vmem>>, vector<1x1x8x4xbf16>
      %54 = vector.shape_cast %53 : vector<1x1x8x4xbf16> to vector<8x4xbf16>
      %c5 = arith.constant 5 : index
      %c0_42 = arith.constant 0 : index
      %c0_43 = arith.constant 0 : index
      %55 = vector.load %arg3[%c5, %c0_42, %c0_43] : memref<9x4x8xbf16, #tpu.memory_space<vmem>>, vector<1x4x8xbf16>
      %56 = vector.shape_cast %55 : vector<1x4x8xbf16> to vector<4x8xbf16>
      %cst_44 = arith.constant dense<0.000000e+00> : vector<8x8xf32>
      %57 = tpu.matmul %54, %56, %cst_44 {dimension_numbers = #tpu.dot_dimension_numbers<[1], [0], [0], [1], [0, 0, 1, 1], [], []>} : vector<8x4xbf16>, vector<4x8xbf16>, vector<8x8xf32> -> vector<8x8xf32>
      %58 = arith.addf %49, %57 : vector<8x8xf32>
      %59 = arith.addi %0, %arg6 : i32
      %c2_i32 = arith.constant 2 : i32
      %60 = arith.addi %59, %c2_i32 : i32
      %c0_45 = arith.constant 0 : index
      %61 = arith.index_cast %60 : i32 to index
      %c0_46 = arith.constant 0 : index
      %c0_47 = arith.constant 0 : index
      %62 = vector.load %arg2[%c0_45, %61, %c0_46, %c0_47] : memref<1x10x10x4xbf16, #tpu.memory_space<vmem>>, vector<1x1x8x4xbf16>
      %63 = vector.shape_cast %62 : vector<1x1x8x4xbf16> to vector<8x4xbf16>
      %c6 = arith.constant 6 : index
      %c0_48 = arith.constant 0 : index
      %c0_49 = arith.constant 0 : index
      %64 = vector.load %arg3[%c6, %c0_48, %c0_49] : memref<9x4x8xbf16, #tpu.memory_space<vmem>>, vector<1x4x8xbf16>
      %65 = vector.shape_cast %64 : vector<1x4x8xbf16> to vector<4x8xbf16>
      %cst_50 = arith.constant dense<0.000000e+00> : vector<8x8xf32>
      %66 = tpu.matmul %63, %65, %cst_50 {dimension_numbers = #tpu.dot_dimension_numbers<[1], [0], [0], [1], [0, 0, 1, 1], [], []>} : vector<8x4xbf16>, vector<4x8xbf16>, vector<8x8xf32> -> vector<8x8xf32>
      %67 = arith.addf %58, %66 : vector<8x8xf32>
      %68 = arith.addi %0, %arg6 : i32
      %c2_i32_51 = arith.constant 2 : i32
      %69 = arith.addi %68, %c2_i32_51 : i32
      %c0_52 = arith.constant 0 : index
      %70 = arith.index_cast %69 : i32 to index
      %c1_53 = arith.constant 1 : index
      %c0_54 = arith.constant 0 : index
      %71 = vector.load %arg2[%c0_52, %70, %c1_53, %c0_54] : memref<1x10x10x4xbf16, #tpu.memory_space<vmem>>, vector<1x1x8x4xbf16>
      %72 = vector.shape_cast %71 : vector<1x1x8x4xbf16> to vector<8x4xbf16>
      %c7 = arith.constant 7 : index
      %c0_55 = arith.constant 0 : index
      %c0_56 = arith.constant 0 : index
      %73 = vector.load %arg3[%c7, %c0_55, %c0_56] : memref<9x4x8xbf16, #tpu.memory_space<vmem>>, vector<1x4x8xbf16>
      %74 = vector.shape_cast %73 : vector<1x4x8xbf16> to vector<4x8xbf16>
      %cst_57 = arith.constant dense<0.000000e+00> : vector<8x8xf32>
      %75 = tpu.matmul %72, %74, %cst_57 {dimension_numbers = #tpu.dot_dimension_numbers<[1], [0], [0], [1], [0, 0, 1, 1], [], []>} : vector<8x4xbf16>, vector<4x8xbf16>, vector<8x8xf32> -> vector<8x8xf32>
      %76 = arith.addf %67, %75 : vector<8x8xf32>
      %77 = arith.addi %0, %arg6 : i32
      %c2_i32_58 = arith.constant 2 : i32
      %78 = arith.addi %77, %c2_i32_58 : i32
      %c0_59 = arith.constant 0 : index
      %79 = arith.index_cast %78 : i32 to index
      %c2_60 = arith.constant 2 : index
      %c0_61 = arith.constant 0 : index
      %80 = vector.load %arg2[%c0_59, %79, %c2_60, %c0_61] : memref<1x10x10x4xbf16, #tpu.memory_space<vmem>>, vector<1x1x8x4xbf16>
      %81 = vector.shape_cast %80 : vector<1x1x8x4xbf16> to vector<8x4xbf16>
      %c8 = arith.constant 8 : index
      %c0_62 = arith.constant 0 : index
      %c0_63 = arith.constant 0 : index
      %82 = vector.load %arg3[%c8, %c0_62, %c0_63] : memref<9x4x8xbf16, #tpu.memory_space<vmem>>, vector<1x4x8xbf16>
      %83 = vector.shape_cast %82 : vector<1x4x8xbf16> to vector<4x8xbf16>
      %cst_64 = arith.constant dense<0.000000e+00> : vector<8x8xf32>
      %84 = tpu.matmul %81, %83, %cst_64 {dimension_numbers = #tpu.dot_dimension_numbers<[1], [0], [0], [1], [0, 0, 1, 1], [], []>} : vector<8x4xbf16>, vector<4x8xbf16>, vector<8x8xf32> -> vector<8x8xf32>
      %85 = arith.addf %76, %84 : vector<8x8xf32>
      %cst_65 = arith.constant 5.000000e-01 : f32
      %86 = vector.broadcast %cst_65 : f32 to vector<8x8xf32>
      %87 = arith.mulf %86, %85 : vector<8x8xf32>
      %cst_66 = arith.constant 4.471500e-02 : f32
      %88 = vector.broadcast %cst_66 : f32 to vector<8x8xf32>
      %89 = arith.mulf %88, %85 : vector<8x8xf32>
      %90 = arith.mulf %89, %85 : vector<8x8xf32>
      %91 = arith.mulf %90, %85 : vector<8x8xf32>
      %92 = arith.addf %85, %91 : vector<8x8xf32>
      %cst_67 = arith.constant 0.797884583 : f32
      %93 = vector.broadcast %cst_67 : f32 to vector<8x8xf32>
      %94 = arith.mulf %93, %92 : vector<8x8xf32>
      %95 = math.tanh %94 : vector<8x8xf32>
      %cst_68 = arith.constant 1.000000e+00 : f32
      %96 = vector.broadcast %cst_68 : f32 to vector<8x8xf32>
      %97 = arith.addf %96, %95 : vector<8x8xf32>
      %98 = arith.mulf %87, %97 : vector<8x8xf32>
      %99 = arith.truncf %98 : vector<8x8xf32> to vector<8x8xbf16>
      %c0_69 = arith.constant 0 : index
      %100 = arith.index_cast %arg6 : i32 to index
      %c0_70 = arith.constant 0 : index
      %c0_71 = arith.constant 0 : index
      %101 = vector.load %arg5[%c0_69, %100, %c0_70, %c0_71] : memref<1x8x8x8xbf16, #tpu.memory_space<vmem>>, vector<1x1x8x8xbf16>
      %102 = vector.shape_cast %101 : vector<1x1x8x8xbf16> to vector<8x8xbf16>
      %103 = vector.shape_cast %99 : vector<8x8xbf16> to vector<1x1x8x8xbf16>
      tpu.vector_store %arg5[%c0_69, %100, %c0_70, %c0_71], %103 {strides = array<i32>} : memref<1x8x8x8xbf16, #tpu.memory_space<vmem>>, vector<1x1x8x8xbf16>,
    }
    %c8_i32_2 = arith.constant 8 : i32
    return
  }
  func.func @transform_0(%arg0: i32, %arg1: i32) -> (i32, i32, i32, i32) {
    %c0_i32 = arith.constant 0 : i32
    %c0_i32_0 = arith.constant 0 : i32
    %c0_i32_1 = arith.constant 0 : i32
    %c0_i32_2 = arith.constant 0 : i32
    return %arg0, %c0_i32, %c0_i32_0, %c0_i32_1 : i32, i32, i32, i32
  }
  func.func @transform_1(%arg0: i32, %arg1: i32) -> (i32, i32, i32) {
    %c0_i32 = arith.constant 0 : i32
    %c0_i32_0 = arith.constant 0 : i32
    %c0_i32_1 = arith.constant 0 : i32
    %c0_i32_2 = arith.constant 0 : i32
    return %c0_i32, %c0_i32_0, %c0_i32_1 : i32, i32, i32
  }
  func.func @transform_2(%arg0: i32, %arg1: i32) -> (i32, i32) {
    %c0_i32 = arith.constant 0 : i32
    %c0_i32_0 = arith.constant 0 : i32
    %c0_i32_1 = arith.constant 0 : i32
    return %c0_i32, %c0_i32_0 : i32, i32
  }
  func.func @transform_3(%arg0: i32, %arg1: i32) -> (i32, i32, i32, i32) {
    %c0_i32 = arith.constant 0 : i32
    %c0_i32_0 = arith.constant 0 : i32
    %c0_i32_1 = arith.constant 0 : i32
    return %arg0, %arg1, %c0_i32, %c0_i32_0 : i32, i32, i32, i32
  }
}

module attributes {stable_mosaic.version = 11 : i64} {
  func.func @_conv_kernel(%arg0: i32, %arg1: i32, %arg2: memref<1x18x18x2xbf16, #tpu.memory_space<vmem>>, %arg3: memref<9x2x2xbf16, #tpu.memory_space<vmem>>, %arg4: memref<1x2xf32, #tpu.memory_space<vmem>>, %arg5: memref<1x16x16x2xbf16, #tpu.memory_space<vmem>>) attributes {dimension_semantics = [#tpu.dimension_semantics<parallel>, #tpu.dimension_semantics<parallel>], iteration_bounds = array<i64: 2, 1>, scalar_prefetch = 0 : i64, scratch_operands = 0 : i64, tpu.core_type = #tpu.core_type<tc>, window_params = [{transform_indices = @transform_0, window_bounds = array<i64: 1, 18, 18, 2>}, {pipeline_mode = #tpu.pipeline_mode<synchronous>, transform_indices = @transform_1, window_bounds = array<i64: 9, 2, 2>}, {pipeline_mode = #tpu.pipeline_mode<synchronous>, transform_indices = @transform_2, window_bounds = array<i64: 1, 2>}, {transform_indices = @transform_3, window_bounds = array<i64: 1, 16, 16, 2>}]} {
    %c16_i32 = arith.constant 16 : i32
    %0 = arith.muli %arg1, %c16_i32 : i32
    %c0 = arith.constant 0 : index
    %c0_0 = arith.constant 0 : index
    %1 = vector.load %arg4[%c0, %c0_0] : memref<1x2xf32, #tpu.memory_space<vmem>>, vector<1x2xf32>
    %2 = vector.shape_cast %1 : vector<1x2xf32> to vector<1x2xf32>
    %3 = vector.broadcast %2 : vector<1x2xf32> to vector<16x2xf32>
    %c0_i32 = arith.constant 0 : i32
    %c16_i32_1 = arith.constant 16 : i32
    %4 = arith.addi %c0_i32, %c16_i32_1 : i32
    %c1_i32 = arith.constant 1 : i32
    scf.for %arg6 = %c0_i32 to %4 step %c1_i32  : i32 {
      %5 = arith.addi %0, %arg6 : i32
      %c0_i32_3 = arith.constant 0 : i32
      %6 = arith.addi %5, %c0_i32_3 : i32
      %c0_4 = arith.constant 0 : index
      %7 = arith.index_cast %6 : i32 to index
      %c0_5 = arith.constant 0 : index
      %c0_6 = arith.constant 0 : index
      %8 = vector.load %arg2[%c0_4, %7, %c0_5, %c0_6] : memref<1x18x18x2xbf16, #tpu.memory_space<vmem>>, vector<1x1x16x2xbf16>
      %9 = vector.shape_cast %8 : vector<1x1x16x2xbf16> to vector<16x2xbf16>
      %c0_7 = arith.constant 0 : index
      %c0_8 = arith.constant 0 : index
      %c0_9 = arith.constant 0 : index
      %10 = vector.load %arg3[%c0_7, %c0_8, %c0_9] : memref<9x2x2xbf16, #tpu.memory_space<vmem>>, vector<1x2x2xbf16>
      %11 = vector.shape_cast %10 : vector<1x2x2xbf16> to vector<2x2xbf16>
      %cst = arith.constant dense<0.000000e+00> : vector<16x2xf32>
      %12 = tpu.matmul %9, %11, %cst {dimension_numbers = #tpu.dot_dimension_numbers<[1], [0], [0], [1], [0, 0, 1, 1], [], []>} : vector<16x2xbf16>, vector<2x2xbf16>, vector<16x2xf32> -> vector<16x2xf32>
      %13 = arith.addf %3, %12 : vector<16x2xf32>
      %14 = arith.addi %0, %arg6 : i32
      %c0_i32_10 = arith.constant 0 : i32
      %15 = arith.addi %14, %c0_i32_10 : i32
      %c0_11 = arith.constant 0 : index
      %16 = arith.index_cast %15 : i32 to index
      %c1 = arith.constant 1 : index
      %c0_12 = arith.constant 0 : index
      %17 = vector.load %arg2[%c0_11, %16, %c1, %c0_12] : memref<1x18x18x2xbf16, #tpu.memory_space<vmem>>, vector<1x1x16x2xbf16>
      %18 = vector.shape_cast %17 : vector<1x1x16x2xbf16> to vector<16x2xbf16>
      %c1_13 = arith.constant 1 : index
      %c0_14 = arith.constant 0 : index
      %c0_15 = arith.constant 0 : index
      %19 = vector.load %arg3[%c1_13, %c0_14, %c0_15] : memref<9x2x2xbf16, #tpu.memory_space<vmem>>, vector<1x2x2xbf16>
      %20 = vector.shape_cast %19 : vector<1x2x2xbf16> to vector<2x2xbf16>
      %cst_16 = arith.constant dense<0.000000e+00> : vector<16x2xf32>
      %21 = tpu.matmul %18, %20, %cst_16 {dimension_numbers = #tpu.dot_dimension_numbers<[1], [0], [0], [1], [0, 0, 1, 1], [], []>} : vector<16x2xbf16>, vector<2x2xbf16>, vector<16x2xf32> -> vector<16x2xf32>
      %22 = arith.addf %13, %21 : vector<16x2xf32>
      %23 = arith.addi %0, %arg6 : i32
      %c0_i32_17 = arith.constant 0 : i32
      %24 = arith.addi %23, %c0_i32_17 : i32
      %c0_18 = arith.constant 0 : index
      %25 = arith.index_cast %24 : i32 to index
      %c2 = arith.constant 2 : index
      %c0_19 = arith.constant 0 : index
      %26 = vector.load %arg2[%c0_18, %25, %c2, %c0_19] : memref<1x18x18x2xbf16, #tpu.memory_space<vmem>>, vector<1x1x16x2xbf16>
      %27 = vector.shape_cast %26 : vector<1x1x16x2xbf16> to vector<16x2xbf16>
      %c2_20 = arith.constant 2 : index
      %c0_21 = arith.constant 0 : index
      %c0_22 = arith.constant 0 : index
      %28 = vector.load %arg3[%c2_20, %c0_21, %c0_22] : memref<9x2x2xbf16, #tpu.memory_space<vmem>>, vector<1x2x2xbf16>
      %29 = vector.shape_cast %28 : vector<1x2x2xbf16> to vector<2x2xbf16>
      %cst_23 = arith.constant dense<0.000000e+00> : vector<16x2xf32>
      %30 = tpu.matmul %27, %29, %cst_23 {dimension_numbers = #tpu.dot_dimension_numbers<[1], [0], [0], [1], [0, 0, 1, 1], [], []>} : vector<16x2xbf16>, vector<2x2xbf16>, vector<16x2xf32> -> vector<16x2xf32>
      %31 = arith.addf %22, %30 : vector<16x2xf32>
      %32 = arith.addi %0, %arg6 : i32
      %c1_i32_24 = arith.constant 1 : i32
      %33 = arith.addi %32, %c1_i32_24 : i32
      %c0_25 = arith.constant 0 : index
      %34 = arith.index_cast %33 : i32 to index
      %c0_26 = arith.constant 0 : index
      %c0_27 = arith.constant 0 : index
      %35 = vector.load %arg2[%c0_25, %34, %c0_26, %c0_27] : memref<1x18x18x2xbf16, #tpu.memory_space<vmem>>, vector<1x1x16x2xbf16>
      %36 = vector.shape_cast %35 : vector<1x1x16x2xbf16> to vector<16x2xbf16>
      %c3 = arith.constant 3 : index
      %c0_28 = arith.constant 0 : index
      %c0_29 = arith.constant 0 : index
      %37 = vector.load %arg3[%c3, %c0_28, %c0_29] : memref<9x2x2xbf16, #tpu.memory_space<vmem>>, vector<1x2x2xbf16>
      %38 = vector.shape_cast %37 : vector<1x2x2xbf16> to vector<2x2xbf16>
      %cst_30 = arith.constant dense<0.000000e+00> : vector<16x2xf32>
      %39 = tpu.matmul %36, %38, %cst_30 {dimension_numbers = #tpu.dot_dimension_numbers<[1], [0], [0], [1], [0, 0, 1, 1], [], []>} : vector<16x2xbf16>, vector<2x2xbf16>, vector<16x2xf32> -> vector<16x2xf32>
      %40 = arith.addf %31, %39 : vector<16x2xf32>
      %41 = arith.addi %0, %arg6 : i32
      %c1_i32_31 = arith.constant 1 : i32
      %42 = arith.addi %41, %c1_i32_31 : i32
      %c0_32 = arith.constant 0 : index
      %43 = arith.index_cast %42 : i32 to index
      %c1_33 = arith.constant 1 : index
      %c0_34 = arith.constant 0 : index
      %44 = vector.load %arg2[%c0_32, %43, %c1_33, %c0_34] : memref<1x18x18x2xbf16, #tpu.memory_space<vmem>>, vector<1x1x16x2xbf16>
      %45 = vector.shape_cast %44 : vector<1x1x16x2xbf16> to vector<16x2xbf16>
      %c4 = arith.constant 4 : index
      %c0_35 = arith.constant 0 : index
      %c0_36 = arith.constant 0 : index
      %46 = vector.load %arg3[%c4, %c0_35, %c0_36] : memref<9x2x2xbf16, #tpu.memory_space<vmem>>, vector<1x2x2xbf16>
      %47 = vector.shape_cast %46 : vector<1x2x2xbf16> to vector<2x2xbf16>
      %cst_37 = arith.constant dense<0.000000e+00> : vector<16x2xf32>
      %48 = tpu.matmul %45, %47, %cst_37 {dimension_numbers = #tpu.dot_dimension_numbers<[1], [0], [0], [1], [0, 0, 1, 1], [], []>} : vector<16x2xbf16>, vector<2x2xbf16>, vector<16x2xf32> -> vector<16x2xf32>
      %49 = arith.addf %40, %48 : vector<16x2xf32>
      %50 = arith.addi %0, %arg6 : i32
      %c1_i32_38 = arith.constant 1 : i32
      %51 = arith.addi %50, %c1_i32_38 : i32
      %c0_39 = arith.constant 0 : index
      %52 = arith.index_cast %51 : i32 to index
      %c2_40 = arith.constant 2 : index
      %c0_41 = arith.constant 0 : index
      %53 = vector.load %arg2[%c0_39, %52, %c2_40, %c0_41] : memref<1x18x18x2xbf16, #tpu.memory_space<vmem>>, vector<1x1x16x2xbf16>
      %54 = vector.shape_cast %53 : vector<1x1x16x2xbf16> to vector<16x2xbf16>
      %c5 = arith.constant 5 : index
      %c0_42 = arith.constant 0 : index
      %c0_43 = arith.constant 0 : index
      %55 = vector.load %arg3[%c5, %c0_42, %c0_43] : memref<9x2x2xbf16, #tpu.memory_space<vmem>>, vector<1x2x2xbf16>
      %56 = vector.shape_cast %55 : vector<1x2x2xbf16> to vector<2x2xbf16>
      %cst_44 = arith.constant dense<0.000000e+00> : vector<16x2xf32>
      %57 = tpu.matmul %54, %56, %cst_44 {dimension_numbers = #tpu.dot_dimension_numbers<[1], [0], [0], [1], [0, 0, 1, 1], [], []>} : vector<16x2xbf16>, vector<2x2xbf16>, vector<16x2xf32> -> vector<16x2xf32>
      %58 = arith.addf %49, %57 : vector<16x2xf32>
      %59 = arith.addi %0, %arg6 : i32
      %c2_i32 = arith.constant 2 : i32
      %60 = arith.addi %59, %c2_i32 : i32
      %c0_45 = arith.constant 0 : index
      %61 = arith.index_cast %60 : i32 to index
      %c0_46 = arith.constant 0 : index
      %c0_47 = arith.constant 0 : index
      %62 = vector.load %arg2[%c0_45, %61, %c0_46, %c0_47] : memref<1x18x18x2xbf16, #tpu.memory_space<vmem>>, vector<1x1x16x2xbf16>
      %63 = vector.shape_cast %62 : vector<1x1x16x2xbf16> to vector<16x2xbf16>
      %c6 = arith.constant 6 : index
      %c0_48 = arith.constant 0 : index
      %c0_49 = arith.constant 0 : index
      %64 = vector.load %arg3[%c6, %c0_48, %c0_49] : memref<9x2x2xbf16, #tpu.memory_space<vmem>>, vector<1x2x2xbf16>
      %65 = vector.shape_cast %64 : vector<1x2x2xbf16> to vector<2x2xbf16>
      %cst_50 = arith.constant dense<0.000000e+00> : vector<16x2xf32>
      %66 = tpu.matmul %63, %65, %cst_50 {dimension_numbers = #tpu.dot_dimension_numbers<[1], [0], [0], [1], [0, 0, 1, 1], [], []>} : vector<16x2xbf16>, vector<2x2xbf16>, vector<16x2xf32> -> vector<16x2xf32>
      %67 = arith.addf %58, %66 : vector<16x2xf32>
      %68 = arith.addi %0, %arg6 : i32
      %c2_i32_51 = arith.constant 2 : i32
      %69 = arith.addi %68, %c2_i32_51 : i32
      %c0_52 = arith.constant 0 : index
      %70 = arith.index_cast %69 : i32 to index
      %c1_53 = arith.constant 1 : index
      %c0_54 = arith.constant 0 : index
      %71 = vector.load %arg2[%c0_52, %70, %c1_53, %c0_54] : memref<1x18x18x2xbf16, #tpu.memory_space<vmem>>, vector<1x1x16x2xbf16>
      %72 = vector.shape_cast %71 : vector<1x1x16x2xbf16> to vector<16x2xbf16>
      %c7 = arith.constant 7 : index
      %c0_55 = arith.constant 0 : index
      %c0_56 = arith.constant 0 : index
      %73 = vector.load %arg3[%c7, %c0_55, %c0_56] : memref<9x2x2xbf16, #tpu.memory_space<vmem>>, vector<1x2x2xbf16>
      %74 = vector.shape_cast %73 : vector<1x2x2xbf16> to vector<2x2xbf16>
      %cst_57 = arith.constant dense<0.000000e+00> : vector<16x2xf32>
      %75 = tpu.matmul %72, %74, %cst_57 {dimension_numbers = #tpu.dot_dimension_numbers<[1], [0], [0], [1], [0, 0, 1, 1], [], []>} : vector<16x2xbf16>, vector<2x2xbf16>, vector<16x2xf32> -> vector<16x2xf32>
      %76 = arith.addf %67, %75 : vector<16x2xf32>
      %77 = arith.addi %0, %arg6 : i32
      %c2_i32_58 = arith.constant 2 : i32
      %78 = arith.addi %77, %c2_i32_58 : i32
      %c0_59 = arith.constant 0 : index
      %79 = arith.index_cast %78 : i32 to index
      %c2_60 = arith.constant 2 : index
      %c0_61 = arith.constant 0 : index
      %80 = vector.load %arg2[%c0_59, %79, %c2_60, %c0_61] : memref<1x18x18x2xbf16, #tpu.memory_space<vmem>>, vector<1x1x16x2xbf16>
      %81 = vector.shape_cast %80 : vector<1x1x16x2xbf16> to vector<16x2xbf16>
      %c8 = arith.constant 8 : index
      %c0_62 = arith.constant 0 : index
      %c0_63 = arith.constant 0 : index
      %82 = vector.load %arg3[%c8, %c0_62, %c0_63] : memref<9x2x2xbf16, #tpu.memory_space<vmem>>, vector<1x2x2xbf16>
      %83 = vector.shape_cast %82 : vector<1x2x2xbf16> to vector<2x2xbf16>
      %cst_64 = arith.constant dense<0.000000e+00> : vector<16x2xf32>
      %84 = tpu.matmul %81, %83, %cst_64 {dimension_numbers = #tpu.dot_dimension_numbers<[1], [0], [0], [1], [0, 0, 1, 1], [], []>} : vector<16x2xbf16>, vector<2x2xbf16>, vector<16x2xf32> -> vector<16x2xf32>
      %85 = arith.addf %76, %84 : vector<16x2xf32>
      %cst_65 = arith.constant 5.000000e-01 : f32
      %86 = vector.broadcast %cst_65 : f32 to vector<16x2xf32>
      %87 = arith.mulf %86, %85 : vector<16x2xf32>
      %cst_66 = arith.constant 4.471500e-02 : f32
      %88 = vector.broadcast %cst_66 : f32 to vector<16x2xf32>
      %89 = arith.mulf %88, %85 : vector<16x2xf32>
      %90 = arith.mulf %89, %85 : vector<16x2xf32>
      %91 = arith.mulf %90, %85 : vector<16x2xf32>
      %92 = arith.addf %85, %91 : vector<16x2xf32>
      %cst_67 = arith.constant 0.797884583 : f32
      %93 = vector.broadcast %cst_67 : f32 to vector<16x2xf32>
      %94 = arith.mulf %93, %92 : vector<16x2xf32>
      %95 = math.tanh %94 : vector<16x2xf32>
      %cst_68 = arith.constant 1.000000e+00 : f32
      %96 = vector.broadcast %cst_68 : f32 to vector<16x2xf32>
      %97 = arith.addf %96, %95 : vector<16x2xf32>
      %98 = arith.mulf %87, %97 : vector<16x2xf32>
      %99 = arith.truncf %98 : vector<16x2xf32> to vector<16x2xbf16>
      %c0_69 = arith.constant 0 : index
      %100 = arith.index_cast %arg6 : i32 to index
      %c0_70 = arith.constant 0 : index
      %c0_71 = arith.constant 0 : index
      %101 = vector.load %arg5[%c0_69, %100, %c0_70, %c0_71] : memref<1x16x16x2xbf16, #tpu.memory_space<vmem>>, vector<1x1x16x2xbf16>
      %102 = vector.shape_cast %101 : vector<1x1x16x2xbf16> to vector<16x2xbf16>
      %103 = vector.shape_cast %99 : vector<16x2xbf16> to vector<1x1x16x2xbf16>
      tpu.vector_store %arg5[%c0_69, %100, %c0_70, %c0_71], %103 {strides = array<i32>} : memref<1x16x16x2xbf16, #tpu.memory_space<vmem>>, vector<1x1x16x2xbf16>,
    }
    %c16_i32_2 = arith.constant 16 : i32
    return
  }
  func.func @transform_0(%arg0: i32, %arg1: i32) -> (i32, i32, i32, i32) {
    %c0_i32 = arith.constant 0 : i32
    %c0_i32_0 = arith.constant 0 : i32
    %c0_i32_1 = arith.constant 0 : i32
    %c0_i32_2 = arith.constant 0 : i32
    return %arg0, %c0_i32, %c0_i32_0, %c0_i32_1 : i32, i32, i32, i32
  }
  func.func @transform_1(%arg0: i32, %arg1: i32) -> (i32, i32, i32) {
    %c0_i32 = arith.constant 0 : i32
    %c0_i32_0 = arith.constant 0 : i32
    %c0_i32_1 = arith.constant 0 : i32
    %c0_i32_2 = arith.constant 0 : i32
    return %c0_i32, %c0_i32_0, %c0_i32_1 : i32, i32, i32
  }
  func.func @transform_2(%arg0: i32, %arg1: i32) -> (i32, i32) {
    %c0_i32 = arith.constant 0 : i32
    %c0_i32_0 = arith.constant 0 : i32
    %c0_i32_1 = arith.constant 0 : i32
    return %c0_i32, %c0_i32_0 : i32, i32
  }
  func.func @transform_3(%arg0: i32, %arg1: i32) -> (i32, i32, i32, i32) {
    %c0_i32 = arith.constant 0 : i32
    %c0_i32_0 = arith.constant 0 : i32
    %c0_i32_1 = arith.constant 0 : i32
    return %arg0, %arg1, %c0_i32, %c0_i32_0 : i32, i32, i32, i32
  }
}

module attributes {stable_mosaic.version = 11 : i64} {
  func.func @_conv_kernel(%arg0: i32, %arg1: i32, %arg2: memref<1x22x22x2xbf16, #tpu.memory_space<vmem>>, %arg3: memref<49x2x3xbf16, #tpu.memory_space<vmem>>, %arg4: memref<1x3xf32, #tpu.memory_space<vmem>>, %arg5: memref<1x16x16x3xf32, #tpu.memory_space<vmem>>) attributes {dimension_semantics = [#tpu.dimension_semantics<parallel>, #tpu.dimension_semantics<parallel>], iteration_bounds = array<i64: 2, 1>, scalar_prefetch = 0 : i64, scratch_operands = 0 : i64, tpu.core_type = #tpu.core_type<tc>, window_params = [{transform_indices = @transform_0, window_bounds = array<i64: 1, 22, 22, 2>}, {pipeline_mode = #tpu.pipeline_mode<synchronous>, transform_indices = @transform_1, window_bounds = array<i64: 49, 2, 3>}, {pipeline_mode = #tpu.pipeline_mode<synchronous>, transform_indices = @transform_2, window_bounds = array<i64: 1, 3>}, {transform_indices = @transform_3, window_bounds = array<i64: 1, 16, 16, 3>}]} {
    %c16_i32 = arith.constant 16 : i32
    %0 = arith.muli %arg1, %c16_i32 : i32
    %c0 = arith.constant 0 : index
    %c0_0 = arith.constant 0 : index
    %1 = vector.load %arg4[%c0, %c0_0] : memref<1x3xf32, #tpu.memory_space<vmem>>, vector<1x3xf32>
    %2 = vector.shape_cast %1 : vector<1x3xf32> to vector<1x3xf32>
    %3 = vector.broadcast %2 : vector<1x3xf32> to vector<16x3xf32>
    %c0_i32 = arith.constant 0 : i32
    %c16_i32_1 = arith.constant 16 : i32
    %4 = arith.addi %c0_i32, %c16_i32_1 : i32
    %c1_i32 = arith.constant 1 : i32
    scf.for %arg6 = %c0_i32 to %4 step %c1_i32  : i32 {
      %5 = arith.addi %0, %arg6 : i32
      %c0_i32_3 = arith.constant 0 : i32
      %6 = arith.addi %5, %c0_i32_3 : i32
      %c0_4 = arith.constant 0 : index
      %7 = arith.index_cast %6 : i32 to index
      %c0_5 = arith.constant 0 : index
      %c0_6 = arith.constant 0 : index
      %8 = vector.load %arg2[%c0_4, %7, %c0_5, %c0_6] : memref<1x22x22x2xbf16, #tpu.memory_space<vmem>>, vector<1x1x16x2xbf16>
      %9 = vector.shape_cast %8 : vector<1x1x16x2xbf16> to vector<16x2xbf16>
      %c0_7 = arith.constant 0 : index
      %c0_8 = arith.constant 0 : index
      %c0_9 = arith.constant 0 : index
      %10 = vector.load %arg3[%c0_7, %c0_8, %c0_9] : memref<49x2x3xbf16, #tpu.memory_space<vmem>>, vector<1x2x3xbf16>
      %11 = vector.shape_cast %10 : vector<1x2x3xbf16> to vector<2x3xbf16>
      %cst = arith.constant dense<0.000000e+00> : vector<16x3xf32>
      %12 = tpu.matmul %9, %11, %cst {dimension_numbers = #tpu.dot_dimension_numbers<[1], [0], [0], [1], [0, 0, 1, 1], [], []>} : vector<16x2xbf16>, vector<2x3xbf16>, vector<16x3xf32> -> vector<16x3xf32>
      %13 = arith.addf %3, %12 : vector<16x3xf32>
      %14 = arith.addi %0, %arg6 : i32
      %c0_i32_10 = arith.constant 0 : i32
      %15 = arith.addi %14, %c0_i32_10 : i32
      %c0_11 = arith.constant 0 : index
      %16 = arith.index_cast %15 : i32 to index
      %c1 = arith.constant 1 : index
      %c0_12 = arith.constant 0 : index
      %17 = vector.load %arg2[%c0_11, %16, %c1, %c0_12] : memref<1x22x22x2xbf16, #tpu.memory_space<vmem>>, vector<1x1x16x2xbf16>
      %18 = vector.shape_cast %17 : vector<1x1x16x2xbf16> to vector<16x2xbf16>
      %c1_13 = arith.constant 1 : index
      %c0_14 = arith.constant 0 : index
      %c0_15 = arith.constant 0 : index
      %19 = vector.load %arg3[%c1_13, %c0_14, %c0_15] : memref<49x2x3xbf16, #tpu.memory_space<vmem>>, vector<1x2x3xbf16>
      %20 = vector.shape_cast %19 : vector<1x2x3xbf16> to vector<2x3xbf16>
      %cst_16 = arith.constant dense<0.000000e+00> : vector<16x3xf32>
      %21 = tpu.matmul %18, %20, %cst_16 {dimension_numbers = #tpu.dot_dimension_numbers<[1], [0], [0], [1], [0, 0, 1, 1], [], []>} : vector<16x2xbf16>, vector<2x3xbf16>, vector<16x3xf32> -> vector<16x3xf32>
      %22 = arith.addf %13, %21 : vector<16x3xf32>
      %23 = arith.addi %0, %arg6 : i32
      %c0_i32_17 = arith.constant 0 : i32
      %24 = arith.addi %23, %c0_i32_17 : i32
      %c0_18 = arith.constant 0 : index
      %25 = arith.index_cast %24 : i32 to index
      %c2 = arith.constant 2 : index
      %c0_19 = arith.constant 0 : index
      %26 = vector.load %arg2[%c0_18, %25, %c2, %c0_19] : memref<1x22x22x2xbf16, #tpu.memory_space<vmem>>, vector<1x1x16x2xbf16>
      %27 = vector.shape_cast %26 : vector<1x1x16x2xbf16> to vector<16x2xbf16>
      %c2_20 = arith.constant 2 : index
      %c0_21 = arith.constant 0 : index
      %c0_22 = arith.constant 0 : index
      %28 = vector.load %arg3[%c2_20, %c0_21, %c0_22] : memref<49x2x3xbf16, #tpu.memory_space<vmem>>, vector<1x2x3xbf16>
      %29 = vector.shape_cast %28 : vector<1x2x3xbf16> to vector<2x3xbf16>
      %cst_23 = arith.constant dense<0.000000e+00> : vector<16x3xf32>
      %30 = tpu.matmul %27, %29, %cst_23 {dimension_numbers = #tpu.dot_dimension_numbers<[1], [0], [0], [1], [0, 0, 1, 1], [], []>} : vector<16x2xbf16>, vector<2x3xbf16>, vector<16x3xf32> -> vector<16x3xf32>
      %31 = arith.addf %22, %30 : vector<16x3xf32>
      %32 = arith.addi %0, %arg6 : i32
      %c0_i32_24 = arith.constant 0 : i32
      %33 = arith.addi %32, %c0_i32_24 : i32
      %c0_25 = arith.constant 0 : index
      %34 = arith.index_cast %33 : i32 to index
      %c3 = arith.constant 3 : index
      %c0_26 = arith.constant 0 : index
      %35 = vector.load %arg2[%c0_25, %34, %c3, %c0_26] : memref<1x22x22x2xbf16, #tpu.memory_space<vmem>>, vector<1x1x16x2xbf16>
      %36 = vector.shape_cast %35 : vector<1x1x16x2xbf16> to vector<16x2xbf16>
      %c3_27 = arith.constant 3 : index
      %c0_28 = arith.constant 0 : index
      %c0_29 = arith.constant 0 : index
      %37 = vector.load %arg3[%c3_27, %c0_28, %c0_29] : memref<49x2x3xbf16, #tpu.memory_space<vmem>>, vector<1x2x3xbf16>
      %38 = vector.shape_cast %37 : vector<1x2x3xbf16> to vector<2x3xbf16>
      %cst_30 = arith.constant dense<0.000000e+00> : vector<16x3xf32>
      %39 = tpu.matmul %36, %38, %cst_30 {dimension_numbers = #tpu.dot_dimension_numbers<[1], [0], [0], [1], [0, 0, 1, 1], [], []>} : vector<16x2xbf16>, vector<2x3xbf16>, vector<16x3xf32> -> vector<16x3xf32>
      %40 = arith.addf %31, %39 : vector<16x3xf32>
      %41 = arith.addi %0, %arg6 : i32
      %c0_i32_31 = arith.constant 0 : i32
      %42 = arith.addi %41, %c0_i32_31 : i32
      %c0_32 = arith.constant 0 : index
      %43 = arith.index_cast %42 : i32 to index
      %c4 = arith.constant 4 : index
      %c0_33 = arith.constant 0 : index
      %44 = vector.load %arg2[%c0_32, %43, %c4, %c0_33] : memref<1x22x22x2xbf16, #tpu.memory_space<vmem>>, vector<1x1x16x2xbf16>
      %45 = vector.shape_cast %44 : vector<1x1x16x2xbf16> to vector<16x2xbf16>
      %c4_34 = arith.constant 4 : index
      %c0_35 = arith.constant 0 : index
      %c0_36 = arith.constant 0 : index
      %46 = vector.load %arg3[%c4_34, %c0_35, %c0_36] : memref<49x2x3xbf16, #tpu.memory_space<vmem>>, vector<1x2x3xbf16>
      %47 = vector.shape_cast %46 : vector<1x2x3xbf16> to vector<2x3xbf16>
      %cst_37 = arith.constant dense<0.000000e+00> : vector<16x3xf32>
      %48 = tpu.matmul %45, %47, %cst_37 {dimension_numbers = #tpu.dot_dimension_numbers<[1], [0], [0], [1], [0, 0, 1, 1], [], []>} : vector<16x2xbf16>, vector<2x3xbf16>, vector<16x3xf32> -> vector<16x3xf32>
      %49 = arith.addf %40, %48 : vector<16x3xf32>
      %50 = arith.addi %0, %arg6 : i32
      %c0_i32_38 = arith.constant 0 : i32
      %51 = arith.addi %50, %c0_i32_38 : i32
      %c0_39 = arith.constant 0 : index
      %52 = arith.index_cast %51 : i32 to index
      %c5 = arith.constant 5 : index
      %c0_40 = arith.constant 0 : index
      %53 = vector.load %arg2[%c0_39, %52, %c5, %c0_40] : memref<1x22x22x2xbf16, #tpu.memory_space<vmem>>, vector<1x1x16x2xbf16>
      %54 = vector.shape_cast %53 : vector<1x1x16x2xbf16> to vector<16x2xbf16>
      %c5_41 = arith.constant 5 : index
      %c0_42 = arith.constant 0 : index
      %c0_43 = arith.constant 0 : index
      %55 = vector.load %arg3[%c5_41, %c0_42, %c0_43] : memref<49x2x3xbf16, #tpu.memory_space<vmem>>, vector<1x2x3xbf16>
      %56 = vector.shape_cast %55 : vector<1x2x3xbf16> to vector<2x3xbf16>
      %cst_44 = arith.constant dense<0.000000e+00> : vector<16x3xf32>
      %57 = tpu.matmul %54, %56, %cst_44 {dimension_numbers = #tpu.dot_dimension_numbers<[1], [0], [0], [1], [0, 0, 1, 1], [], []>} : vector<16x2xbf16>, vector<2x3xbf16>, vector<16x3xf32> -> vector<16x3xf32>
      %58 = arith.addf %49, %57 : vector<16x3xf32>
      %59 = arith.addi %0, %arg6 : i32
      %c0_i32_45 = arith.constant 0 : i32
      %60 = arith.addi %59, %c0_i32_45 : i32
      %c0_46 = arith.constant 0 : index
      %61 = arith.index_cast %60 : i32 to index
      %c6 = arith.constant 6 : index
      %c0_47 = arith.constant 0 : index
      %62 = vector.load %arg2[%c0_46, %61, %c6, %c0_47] : memref<1x22x22x2xbf16, #tpu.memory_space<vmem>>, vector<1x1x16x2xbf16>
      %63 = vector.shape_cast %62 : vector<1x1x16x2xbf16> to vector<16x2xbf16>
      %c6_48 = arith.constant 6 : index
      %c0_49 = arith.constant 0 : index
      %c0_50 = arith.constant 0 : index
      %64 = vector.load %arg3[%c6_48, %c0_49, %c0_50] : memref<49x2x3xbf16, #tpu.memory_space<vmem>>, vector<1x2x3xbf16>
      %65 = vector.shape_cast %64 : vector<1x2x3xbf16> to vector<2x3xbf16>
      %cst_51 = arith.constant dense<0.000000e+00> : vector<16x3xf32>
      %66 = tpu.matmul %63, %65, %cst_51 {dimension_numbers = #tpu.dot_dimension_numbers<[1], [0], [0], [1], [0, 0, 1, 1], [], []>} : vector<16x2xbf16>, vector<2x3xbf16>, vector<16x3xf32> -> vector<16x3xf32>
      %67 = arith.addf %58, %66 : vector<16x3xf32>
      %68 = arith.addi %0, %arg6 : i32
      %c1_i32_52 = arith.constant 1 : i32
      %69 = arith.addi %68, %c1_i32_52 : i32
      %c0_53 = arith.constant 0 : index
      %70 = arith.index_cast %69 : i32 to index
      %c0_54 = arith.constant 0 : index
      %c0_55 = arith.constant 0 : index
      %71 = vector.load %arg2[%c0_53, %70, %c0_54, %c0_55] : memref<1x22x22x2xbf16, #tpu.memory_space<vmem>>, vector<1x1x16x2xbf16>
      %72 = vector.shape_cast %71 : vector<1x1x16x2xbf16> to vector<16x2xbf16>
      %c7 = arith.constant 7 : index
      %c0_56 = arith.constant 0 : index
      %c0_57 = arith.constant 0 : index
      %73 = vector.load %arg3[%c7, %c0_56, %c0_57] : memref<49x2x3xbf16, #tpu.memory_space<vmem>>, vector<1x2x3xbf16>
      %74 = vector.shape_cast %73 : vector<1x2x3xbf16> to vector<2x3xbf16>
      %cst_58 = arith.constant dense<0.000000e+00> : vector<16x3xf32>
      %75 = tpu.matmul %72, %74, %cst_58 {dimension_numbers = #tpu.dot_dimension_numbers<[1], [0], [0], [1], [0, 0, 1, 1], [], []>} : vector<16x2xbf16>, vector<2x3xbf16>, vector<16x3xf32> -> vector<16x3xf32>
      %76 = arith.addf %67, %75 : vector<16x3xf32>
      %77 = arith.addi %0, %arg6 : i32
      %c1_i32_59 = arith.constant 1 : i32
      %78 = arith.addi %77, %c1_i32_59 : i32
      %c0_60 = arith.constant 0 : index
      %79 = arith.index_cast %78 : i32 to index
      %c1_61 = arith.constant 1 : index
      %c0_62 = arith.constant 0 : index
      %80 = vector.load %arg2[%c0_60, %79, %c1_61, %c0_62] : memref<1x22x22x2xbf16, #tpu.memory_space<vmem>>, vector<1x1x16x2xbf16>
      %81 = vector.shape_cast %80 : vector<1x1x16x2xbf16> to vector<16x2xbf16>
      %c8 = arith.constant 8 : index
      %c0_63 = arith.constant 0 : index
      %c0_64 = arith.constant 0 : index
      %82 = vector.load %arg3[%c8, %c0_63, %c0_64] : memref<49x2x3xbf16, #tpu.memory_space<vmem>>, vector<1x2x3xbf16>
      %83 = vector.shape_cast %82 : vector<1x2x3xbf16> to vector<2x3xbf16>
      %cst_65 = arith.constant dense<0.000000e+00> : vector<16x3xf32>
      %84 = tpu.matmul %81, %83, %cst_65 {dimension_numbers = #tpu.dot_dimension_numbers<[1], [0], [0], [1], [0, 0, 1, 1], [], []>} : vector<16x2xbf16>, vector<2x3xbf16>, vector<16x3xf32> -> vector<16x3xf32>
      %85 = arith.addf %76, %84 : vector<16x3xf32>
      %86 = arith.addi %0, %arg6 : i32
      %c1_i32_66 = arith.constant 1 : i32
      %87 = arith.addi %86, %c1_i32_66 : i32
      %c0_67 = arith.constant 0 : index
      %88 = arith.index_cast %87 : i32 to index
      %c2_68 = arith.constant 2 : index
      %c0_69 = arith.constant 0 : index
      %89 = vector.load %arg2[%c0_67, %88, %c2_68, %c0_69] : memref<1x22x22x2xbf16, #tpu.memory_space<vmem>>, vector<1x1x16x2xbf16>
      %90 = vector.shape_cast %89 : vector<1x1x16x2xbf16> to vector<16x2xbf16>
      %c9 = arith.constant 9 : index
      %c0_70 = arith.constant 0 : index
      %c0_71 = arith.constant 0 : index
      %91 = vector.load %arg3[%c9, %c0_70, %c0_71] : memref<49x2x3xbf16, #tpu.memory_space<vmem>>, vector<1x2x3xbf16>
      %92 = vector.shape_cast %91 : vector<1x2x3xbf16> to vector<2x3xbf16>
      %cst_72 = arith.constant dense<0.000000e+00> : vector<16x3xf32>
      %93 = tpu.matmul %90, %92, %cst_72 {dimension_numbers = #tpu.dot_dimension_numbers<[1], [0], [0], [1], [0, 0, 1, 1], [], []>} : vector<16x2xbf16>, vector<2x3xbf16>, vector<16x3xf32> -> vector<16x3xf32>
      %94 = arith.addf %85, %93 : vector<16x3xf32>
      %95 = arith.addi %0, %arg6 : i32
      %c1_i32_73 = arith.constant 1 : i32
      %96 = arith.addi %95, %c1_i32_73 : i32
      %c0_74 = arith.constant 0 : index
      %97 = arith.index_cast %96 : i32 to index
      %c3_75 = arith.constant 3 : index
      %c0_76 = arith.constant 0 : index
      %98 = vector.load %arg2[%c0_74, %97, %c3_75, %c0_76] : memref<1x22x22x2xbf16, #tpu.memory_space<vmem>>, vector<1x1x16x2xbf16>
      %99 = vector.shape_cast %98 : vector<1x1x16x2xbf16> to vector<16x2xbf16>
      %c10 = arith.constant 10 : index
      %c0_77 = arith.constant 0 : index
      %c0_78 = arith.constant 0 : index
      %100 = vector.load %arg3[%c10, %c0_77, %c0_78] : memref<49x2x3xbf16, #tpu.memory_space<vmem>>, vector<1x2x3xbf16>
      %101 = vector.shape_cast %100 : vector<1x2x3xbf16> to vector<2x3xbf16>
      %cst_79 = arith.constant dense<0.000000e+00> : vector<16x3xf32>
      %102 = tpu.matmul %99, %101, %cst_79 {dimension_numbers = #tpu.dot_dimension_numbers<[1], [0], [0], [1], [0, 0, 1, 1], [], []>} : vector<16x2xbf16>, vector<2x3xbf16>, vector<16x3xf32> -> vector<16x3xf32>
      %103 = arith.addf %94, %102 : vector<16x3xf32>
      %104 = arith.addi %0, %arg6 : i32
      %c1_i32_80 = arith.constant 1 : i32
      %105 = arith.addi %104, %c1_i32_80 : i32
      %c0_81 = arith.constant 0 : index
      %106 = arith.index_cast %105 : i32 to index
      %c4_82 = arith.constant 4 : index
      %c0_83 = arith.constant 0 : index
      %107 = vector.load %arg2[%c0_81, %106, %c4_82, %c0_83] : memref<1x22x22x2xbf16, #tpu.memory_space<vmem>>, vector<1x1x16x2xbf16>
      %108 = vector.shape_cast %107 : vector<1x1x16x2xbf16> to vector<16x2xbf16>
      %c11 = arith.constant 11 : index
      %c0_84 = arith.constant 0 : index
      %c0_85 = arith.constant 0 : index
      %109 = vector.load %arg3[%c11, %c0_84, %c0_85] : memref<49x2x3xbf16, #tpu.memory_space<vmem>>, vector<1x2x3xbf16>
      %110 = vector.shape_cast %109 : vector<1x2x3xbf16> to vector<2x3xbf16>
      %cst_86 = arith.constant dense<0.000000e+00> : vector<16x3xf32>
      %111 = tpu.matmul %108, %110, %cst_86 {dimension_numbers = #tpu.dot_dimension_numbers<[1], [0], [0], [1], [0, 0, 1, 1], [], []>} : vector<16x2xbf16>, vector<2x3xbf16>, vector<16x3xf32> -> vector<16x3xf32>
      %112 = arith.addf %103, %111 : vector<16x3xf32>
      %113 = arith.addi %0, %arg6 : i32
      %c1_i32_87 = arith.constant 1 : i32
      %114 = arith.addi %113, %c1_i32_87 : i32
      %c0_88 = arith.constant 0 : index
      %115 = arith.index_cast %114 : i32 to index
      %c5_89 = arith.constant 5 : index
      %c0_90 = arith.constant 0 : index
      %116 = vector.load %arg2[%c0_88, %115, %c5_89, %c0_90] : memref<1x22x22x2xbf16, #tpu.memory_space<vmem>>, vector<1x1x16x2xbf16>
      %117 = vector.shape_cast %116 : vector<1x1x16x2xbf16> to vector<16x2xbf16>
      %c12 = arith.constant 12 : index
      %c0_91 = arith.constant 0 : index
      %c0_92 = arith.constant 0 : index
      %118 = vector.load %arg3[%c12, %c0_91, %c0_92] : memref<49x2x3xbf16, #tpu.memory_space<vmem>>, vector<1x2x3xbf16>
      %119 = vector.shape_cast %118 : vector<1x2x3xbf16> to vector<2x3xbf16>
      %cst_93 = arith.constant dense<0.000000e+00> : vector<16x3xf32>
      %120 = tpu.matmul %117, %119, %cst_93 {dimension_numbers = #tpu.dot_dimension_numbers<[1], [0], [0], [1], [0, 0, 1, 1], [], []>} : vector<16x2xbf16>, vector<2x3xbf16>, vector<16x3xf32> -> vector<16x3xf32>
      %121 = arith.addf %112, %120 : vector<16x3xf32>
      %122 = arith.addi %0, %arg6 : i32
      %c1_i32_94 = arith.constant 1 : i32
      %123 = arith.addi %122, %c1_i32_94 : i32
      %c0_95 = arith.constant 0 : index
      %124 = arith.index_cast %123 : i32 to index
      %c6_96 = arith.constant 6 : index
      %c0_97 = arith.constant 0 : index
      %125 = vector.load %arg2[%c0_95, %124, %c6_96, %c0_97] : memref<1x22x22x2xbf16, #tpu.memory_space<vmem>>, vector<1x1x16x2xbf16>
      %126 = vector.shape_cast %125 : vector<1x1x16x2xbf16> to vector<16x2xbf16>
      %c13 = arith.constant 13 : index
      %c0_98 = arith.constant 0 : index
      %c0_99 = arith.constant 0 : index
      %127 = vector.load %arg3[%c13, %c0_98, %c0_99] : memref<49x2x3xbf16, #tpu.memory_space<vmem>>, vector<1x2x3xbf16>
      %128 = vector.shape_cast %127 : vector<1x2x3xbf16> to vector<2x3xbf16>
      %cst_100 = arith.constant dense<0.000000e+00> : vector<16x3xf32>
      %129 = tpu.matmul %126, %128, %cst_100 {dimension_numbers = #tpu.dot_dimension_numbers<[1], [0], [0], [1], [0, 0, 1, 1], [], []>} : vector<16x2xbf16>, vector<2x3xbf16>, vector<16x3xf32> -> vector<16x3xf32>
      %130 = arith.addf %121, %129 : vector<16x3xf32>
      %131 = arith.addi %0, %arg6 : i32
      %c2_i32 = arith.constant 2 : i32
      %132 = arith.addi %131, %c2_i32 : i32
      %c0_101 = arith.constant 0 : index
      %133 = arith.index_cast %132 : i32 to index
      %c0_102 = arith.constant 0 : index
      %c0_103 = arith.constant 0 : index
      %134 = vector.load %arg2[%c0_101, %133, %c0_102, %c0_103] : memref<1x22x22x2xbf16, #tpu.memory_space<vmem>>, vector<1x1x16x2xbf16>
      %135 = vector.shape_cast %134 : vector<1x1x16x2xbf16> to vector<16x2xbf16>
      %c14 = arith.constant 14 : index
      %c0_104 = arith.constant 0 : index
      %c0_105 = arith.constant 0 : index
      %136 = vector.load %arg3[%c14, %c0_104, %c0_105] : memref<49x2x3xbf16, #tpu.memory_space<vmem>>, vector<1x2x3xbf16>
      %137 = vector.shape_cast %136 : vector<1x2x3xbf16> to vector<2x3xbf16>
      %cst_106 = arith.constant dense<0.000000e+00> : vector<16x3xf32>
      %138 = tpu.matmul %135, %137, %cst_106 {dimension_numbers = #tpu.dot_dimension_numbers<[1], [0], [0], [1], [0, 0, 1, 1], [], []>} : vector<16x2xbf16>, vector<2x3xbf16>, vector<16x3xf32> -> vector<16x3xf32>
      %139 = arith.addf %130, %138 : vector<16x3xf32>
      %140 = arith.addi %0, %arg6 : i32
      %c2_i32_107 = arith.constant 2 : i32
      %141 = arith.addi %140, %c2_i32_107 : i32
      %c0_108 = arith.constant 0 : index
      %142 = arith.index_cast %141 : i32 to index
      %c1_109 = arith.constant 1 : index
      %c0_110 = arith.constant 0 : index
      %143 = vector.load %arg2[%c0_108, %142, %c1_109, %c0_110] : memref<1x22x22x2xbf16, #tpu.memory_space<vmem>>, vector<1x1x16x2xbf16>
      %144 = vector.shape_cast %143 : vector<1x1x16x2xbf16> to vector<16x2xbf16>
      %c15 = arith.constant 15 : index
      %c0_111 = arith.constant 0 : index
      %c0_112 = arith.constant 0 : index
      %145 = vector.load %arg3[%c15, %c0_111, %c0_112] : memref<49x2x3xbf16, #tpu.memory_space<vmem>>, vector<1x2x3xbf16>
      %146 = vector.shape_cast %145 : vector<1x2x3xbf16> to vector<2x3xbf16>
      %cst_113 = arith.constant dense<0.000000e+00> : vector<16x3xf32>
      %147 = tpu.matmul %144, %146, %cst_113 {dimension_numbers = #tpu.dot_dimension_numbers<[1], [0], [0], [1], [0, 0, 1, 1], [], []>} : vector<16x2xbf16>, vector<2x3xbf16>, vector<16x3xf32> -> vector<16x3xf32>
      %148 = arith.addf %139, %147 : vector<16x3xf32>
      %149 = arith.addi %0, %arg6 : i32
      %c2_i32_114 = arith.constant 2 : i32
      %150 = arith.addi %149, %c2_i32_114 : i32
      %c0_115 = arith.constant 0 : index
      %151 = arith.index_cast %150 : i32 to index
      %c2_116 = arith.constant 2 : index
      %c0_117 = arith.constant 0 : index
      %152 = vector.load %arg2[%c0_115, %151, %c2_116, %c0_117] : memref<1x22x22x2xbf16, #tpu.memory_space<vmem>>, vector<1x1x16x2xbf16>
      %153 = vector.shape_cast %152 : vector<1x1x16x2xbf16> to vector<16x2xbf16>
      %c16 = arith.constant 16 : index
      %c0_118 = arith.constant 0 : index
      %c0_119 = arith.constant 0 : index
      %154 = vector.load %arg3[%c16, %c0_118, %c0_119] : memref<49x2x3xbf16, #tpu.memory_space<vmem>>, vector<1x2x3xbf16>
      %155 = vector.shape_cast %154 : vector<1x2x3xbf16> to vector<2x3xbf16>
      %cst_120 = arith.constant dense<0.000000e+00> : vector<16x3xf32>
      %156 = tpu.matmul %153, %155, %cst_120 {dimension_numbers = #tpu.dot_dimension_numbers<[1], [0], [0], [1], [0, 0, 1, 1], [], []>} : vector<16x2xbf16>, vector<2x3xbf16>, vector<16x3xf32> -> vector<16x3xf32>
      %157 = arith.addf %148, %156 : vector<16x3xf32>
      %158 = arith.addi %0, %arg6 : i32
      %c2_i32_121 = arith.constant 2 : i32
      %159 = arith.addi %158, %c2_i32_121 : i32
      %c0_122 = arith.constant 0 : index
      %160 = arith.index_cast %159 : i32 to index
      %c3_123 = arith.constant 3 : index
      %c0_124 = arith.constant 0 : index
      %161 = vector.load %arg2[%c0_122, %160, %c3_123, %c0_124] : memref<1x22x22x2xbf16, #tpu.memory_space<vmem>>, vector<1x1x16x2xbf16>
      %162 = vector.shape_cast %161 : vector<1x1x16x2xbf16> to vector<16x2xbf16>
      %c17 = arith.constant 17 : index
      %c0_125 = arith.constant 0 : index
      %c0_126 = arith.constant 0 : index
      %163 = vector.load %arg3[%c17, %c0_125, %c0_126] : memref<49x2x3xbf16, #tpu.memory_space<vmem>>, vector<1x2x3xbf16>
      %164 = vector.shape_cast %163 : vector<1x2x3xbf16> to vector<2x3xbf16>
      %cst_127 = arith.constant dense<0.000000e+00> : vector<16x3xf32>
      %165 = tpu.matmul %162, %164, %cst_127 {dimension_numbers = #tpu.dot_dimension_numbers<[1], [0], [0], [1], [0, 0, 1, 1], [], []>} : vector<16x2xbf16>, vector<2x3xbf16>, vector<16x3xf32> -> vector<16x3xf32>
      %166 = arith.addf %157, %165 : vector<16x3xf32>
      %167 = arith.addi %0, %arg6 : i32
      %c2_i32_128 = arith.constant 2 : i32
      %168 = arith.addi %167, %c2_i32_128 : i32
      %c0_129 = arith.constant 0 : index
      %169 = arith.index_cast %168 : i32 to index
      %c4_130 = arith.constant 4 : index
      %c0_131 = arith.constant 0 : index
      %170 = vector.load %arg2[%c0_129, %169, %c4_130, %c0_131] : memref<1x22x22x2xbf16, #tpu.memory_space<vmem>>, vector<1x1x16x2xbf16>
      %171 = vector.shape_cast %170 : vector<1x1x16x2xbf16> to vector<16x2xbf16>
      %c18 = arith.constant 18 : index
      %c0_132 = arith.constant 0 : index
      %c0_133 = arith.constant 0 : index
      %172 = vector.load %arg3[%c18, %c0_132, %c0_133] : memref<49x2x3xbf16, #tpu.memory_space<vmem>>, vector<1x2x3xbf16>
      %173 = vector.shape_cast %172 : vector<1x2x3xbf16> to vector<2x3xbf16>
      %cst_134 = arith.constant dense<0.000000e+00> : vector<16x3xf32>
      %174 = tpu.matmul %171, %173, %cst_134 {dimension_numbers = #tpu.dot_dimension_numbers<[1], [0], [0], [1], [0, 0, 1, 1], [], []>} : vector<16x2xbf16>, vector<2x3xbf16>, vector<16x3xf32> -> vector<16x3xf32>
      %175 = arith.addf %166, %174 : vector<16x3xf32>
      %176 = arith.addi %0, %arg6 : i32
      %c2_i32_135 = arith.constant 2 : i32
      %177 = arith.addi %176, %c2_i32_135 : i32
      %c0_136 = arith.constant 0 : index
      %178 = arith.index_cast %177 : i32 to index
      %c5_137 = arith.constant 5 : index
      %c0_138 = arith.constant 0 : index
      %179 = vector.load %arg2[%c0_136, %178, %c5_137, %c0_138] : memref<1x22x22x2xbf16, #tpu.memory_space<vmem>>, vector<1x1x16x2xbf16>
      %180 = vector.shape_cast %179 : vector<1x1x16x2xbf16> to vector<16x2xbf16>
      %c19 = arith.constant 19 : index
      %c0_139 = arith.constant 0 : index
      %c0_140 = arith.constant 0 : index
      %181 = vector.load %arg3[%c19, %c0_139, %c0_140] : memref<49x2x3xbf16, #tpu.memory_space<vmem>>, vector<1x2x3xbf16>
      %182 = vector.shape_cast %181 : vector<1x2x3xbf16> to vector<2x3xbf16>
      %cst_141 = arith.constant dense<0.000000e+00> : vector<16x3xf32>
      %183 = tpu.matmul %180, %182, %cst_141 {dimension_numbers = #tpu.dot_dimension_numbers<[1], [0], [0], [1], [0, 0, 1, 1], [], []>} : vector<16x2xbf16>, vector<2x3xbf16>, vector<16x3xf32> -> vector<16x3xf32>
      %184 = arith.addf %175, %183 : vector<16x3xf32>
      %185 = arith.addi %0, %arg6 : i32
      %c2_i32_142 = arith.constant 2 : i32
      %186 = arith.addi %185, %c2_i32_142 : i32
      %c0_143 = arith.constant 0 : index
      %187 = arith.index_cast %186 : i32 to index
      %c6_144 = arith.constant 6 : index
      %c0_145 = arith.constant 0 : index
      %188 = vector.load %arg2[%c0_143, %187, %c6_144, %c0_145] : memref<1x22x22x2xbf16, #tpu.memory_space<vmem>>, vector<1x1x16x2xbf16>
      %189 = vector.shape_cast %188 : vector<1x1x16x2xbf16> to vector<16x2xbf16>
      %c20 = arith.constant 20 : index
      %c0_146 = arith.constant 0 : index
      %c0_147 = arith.constant 0 : index
      %190 = vector.load %arg3[%c20, %c0_146, %c0_147] : memref<49x2x3xbf16, #tpu.memory_space<vmem>>, vector<1x2x3xbf16>
      %191 = vector.shape_cast %190 : vector<1x2x3xbf16> to vector<2x3xbf16>
      %cst_148 = arith.constant dense<0.000000e+00> : vector<16x3xf32>
      %192 = tpu.matmul %189, %191, %cst_148 {dimension_numbers = #tpu.dot_dimension_numbers<[1], [0], [0], [1], [0, 0, 1, 1], [], []>} : vector<16x2xbf16>, vector<2x3xbf16>, vector<16x3xf32> -> vector<16x3xf32>
      %193 = arith.addf %184, %192 : vector<16x3xf32>
      %194 = arith.addi %0, %arg6 : i32
      %c3_i32 = arith.constant 3 : i32
      %195 = arith.addi %194, %c3_i32 : i32
      %c0_149 = arith.constant 0 : index
      %196 = arith.index_cast %195 : i32 to index
      %c0_150 = arith.constant 0 : index
      %c0_151 = arith.constant 0 : index
      %197 = vector.load %arg2[%c0_149, %196, %c0_150, %c0_151] : memref<1x22x22x2xbf16, #tpu.memory_space<vmem>>, vector<1x1x16x2xbf16>
      %198 = vector.shape_cast %197 : vector<1x1x16x2xbf16> to vector<16x2xbf16>
      %c21 = arith.constant 21 : index
      %c0_152 = arith.constant 0 : index
      %c0_153 = arith.constant 0 : index
      %199 = vector.load %arg3[%c21, %c0_152, %c0_153] : memref<49x2x3xbf16, #tpu.memory_space<vmem>>, vector<1x2x3xbf16>
      %200 = vector.shape_cast %199 : vector<1x2x3xbf16> to vector<2x3xbf16>
      %cst_154 = arith.constant dense<0.000000e+00> : vector<16x3xf32>
      %201 = tpu.matmul %198, %200, %cst_154 {dimension_numbers = #tpu.dot_dimension_numbers<[1], [0], [0], [1], [0, 0, 1, 1], [], []>} : vector<16x2xbf16>, vector<2x3xbf16>, vector<16x3xf32> -> vector<16x3xf32>
      %202 = arith.addf %193, %201 : vector<16x3xf32>
      %203 = arith.addi %0, %arg6 : i32
      %c3_i32_155 = arith.constant 3 : i32
      %204 = arith.addi %203, %c3_i32_155 : i32
      %c0_156 = arith.constant 0 : index
      %205 = arith.index_cast %204 : i32 to index
      %c1_157 = arith.constant 1 : index
      %c0_158 = arith.constant 0 : index
      %206 = vector.load %arg2[%c0_156, %205, %c1_157, %c0_158] : memref<1x22x22x2xbf16, #tpu.memory_space<vmem>>, vector<1x1x16x2xbf16>
      %207 = vector.shape_cast %206 : vector<1x1x16x2xbf16> to vector<16x2xbf16>
      %c22 = arith.constant 22 : index
      %c0_159 = arith.constant 0 : index
      %c0_160 = arith.constant 0 : index
      %208 = vector.load %arg3[%c22, %c0_159, %c0_160] : memref<49x2x3xbf16, #tpu.memory_space<vmem>>, vector<1x2x3xbf16>
      %209 = vector.shape_cast %208 : vector<1x2x3xbf16> to vector<2x3xbf16>
      %cst_161 = arith.constant dense<0.000000e+00> : vector<16x3xf32>
      %210 = tpu.matmul %207, %209, %cst_161 {dimension_numbers = #tpu.dot_dimension_numbers<[1], [0], [0], [1], [0, 0, 1, 1], [], []>} : vector<16x2xbf16>, vector<2x3xbf16>, vector<16x3xf32> -> vector<16x3xf32>
      %211 = arith.addf %202, %210 : vector<16x3xf32>
      %212 = arith.addi %0, %arg6 : i32
      %c3_i32_162 = arith.constant 3 : i32
      %213 = arith.addi %212, %c3_i32_162 : i32
      %c0_163 = arith.constant 0 : index
      %214 = arith.index_cast %213 : i32 to index
      %c2_164 = arith.constant 2 : index
      %c0_165 = arith.constant 0 : index
      %215 = vector.load %arg2[%c0_163, %214, %c2_164, %c0_165] : memref<1x22x22x2xbf16, #tpu.memory_space<vmem>>, vector<1x1x16x2xbf16>
      %216 = vector.shape_cast %215 : vector<1x1x16x2xbf16> to vector<16x2xbf16>
      %c23 = arith.constant 23 : index
      %c0_166 = arith.constant 0 : index
      %c0_167 = arith.constant 0 : index
      %217 = vector.load %arg3[%c23, %c0_166, %c0_167] : memref<49x2x3xbf16, #tpu.memory_space<vmem>>, vector<1x2x3xbf16>
      %218 = vector.shape_cast %217 : vector<1x2x3xbf16> to vector<2x3xbf16>
      %cst_168 = arith.constant dense<0.000000e+00> : vector<16x3xf32>
      %219 = tpu.matmul %216, %218, %cst_168 {dimension_numbers = #tpu.dot_dimension_numbers<[1], [0], [0], [1], [0, 0, 1, 1], [], []>} : vector<16x2xbf16>, vector<2x3xbf16>, vector<16x3xf32> -> vector<16x3xf32>
      %220 = arith.addf %211, %219 : vector<16x3xf32>
      %221 = arith.addi %0, %arg6 : i32
      %c3_i32_169 = arith.constant 3 : i32
      %222 = arith.addi %221, %c3_i32_169 : i32
      %c0_170 = arith.constant 0 : index
      %223 = arith.index_cast %222 : i32 to index
      %c3_171 = arith.constant 3 : index
      %c0_172 = arith.constant 0 : index
      %224 = vector.load %arg2[%c0_170, %223, %c3_171, %c0_172] : memref<1x22x22x2xbf16, #tpu.memory_space<vmem>>, vector<1x1x16x2xbf16>
      %225 = vector.shape_cast %224 : vector<1x1x16x2xbf16> to vector<16x2xbf16>
      %c24 = arith.constant 24 : index
      %c0_173 = arith.constant 0 : index
      %c0_174 = arith.constant 0 : index
      %226 = vector.load %arg3[%c24, %c0_173, %c0_174] : memref<49x2x3xbf16, #tpu.memory_space<vmem>>, vector<1x2x3xbf16>
      %227 = vector.shape_cast %226 : vector<1x2x3xbf16> to vector<2x3xbf16>
      %cst_175 = arith.constant dense<0.000000e+00> : vector<16x3xf32>
      %228 = tpu.matmul %225, %227, %cst_175 {dimension_numbers = #tpu.dot_dimension_numbers<[1], [0], [0], [1], [0, 0, 1, 1], [], []>} : vector<16x2xbf16>, vector<2x3xbf16>, vector<16x3xf32> -> vector<16x3xf32>
      %229 = arith.addf %220, %228 : vector<16x3xf32>
      %230 = arith.addi %0, %arg6 : i32
      %c3_i32_176 = arith.constant 3 : i32
      %231 = arith.addi %230, %c3_i32_176 : i32
      %c0_177 = arith.constant 0 : index
      %232 = arith.index_cast %231 : i32 to index
      %c4_178 = arith.constant 4 : index
      %c0_179 = arith.constant 0 : index
      %233 = vector.load %arg2[%c0_177, %232, %c4_178, %c0_179] : memref<1x22x22x2xbf16, #tpu.memory_space<vmem>>, vector<1x1x16x2xbf16>
      %234 = vector.shape_cast %233 : vector<1x1x16x2xbf16> to vector<16x2xbf16>
      %c25 = arith.constant 25 : index
      %c0_180 = arith.constant 0 : index
      %c0_181 = arith.constant 0 : index
      %235 = vector.load %arg3[%c25, %c0_180, %c0_181] : memref<49x2x3xbf16, #tpu.memory_space<vmem>>, vector<1x2x3xbf16>
      %236 = vector.shape_cast %235 : vector<1x2x3xbf16> to vector<2x3xbf16>
      %cst_182 = arith.constant dense<0.000000e+00> : vector<16x3xf32>
      %237 = tpu.matmul %234, %236, %cst_182 {dimension_numbers = #tpu.dot_dimension_numbers<[1], [0], [0], [1], [0, 0, 1, 1], [], []>} : vector<16x2xbf16>, vector<2x3xbf16>, vector<16x3xf32> -> vector<16x3xf32>
      %238 = arith.addf %229, %237 : vector<16x3xf32>
      %239 = arith.addi %0, %arg6 : i32
      %c3_i32_183 = arith.constant 3 : i32
      %240 = arith.addi %239, %c3_i32_183 : i32
      %c0_184 = arith.constant 0 : index
      %241 = arith.index_cast %240 : i32 to index
      %c5_185 = arith.constant 5 : index
      %c0_186 = arith.constant 0 : index
      %242 = vector.load %arg2[%c0_184, %241, %c5_185, %c0_186] : memref<1x22x22x2xbf16, #tpu.memory_space<vmem>>, vector<1x1x16x2xbf16>
      %243 = vector.shape_cast %242 : vector<1x1x16x2xbf16> to vector<16x2xbf16>
      %c26 = arith.constant 26 : index
      %c0_187 = arith.constant 0 : index
      %c0_188 = arith.constant 0 : index
      %244 = vector.load %arg3[%c26, %c0_187, %c0_188] : memref<49x2x3xbf16, #tpu.memory_space<vmem>>, vector<1x2x3xbf16>
      %245 = vector.shape_cast %244 : vector<1x2x3xbf16> to vector<2x3xbf16>
      %cst_189 = arith.constant dense<0.000000e+00> : vector<16x3xf32>
      %246 = tpu.matmul %243, %245, %cst_189 {dimension_numbers = #tpu.dot_dimension_numbers<[1], [0], [0], [1], [0, 0, 1, 1], [], []>} : vector<16x2xbf16>, vector<2x3xbf16>, vector<16x3xf32> -> vector<16x3xf32>
      %247 = arith.addf %238, %246 : vector<16x3xf32>
      %248 = arith.addi %0, %arg6 : i32
      %c3_i32_190 = arith.constant 3 : i32
      %249 = arith.addi %248, %c3_i32_190 : i32
      %c0_191 = arith.constant 0 : index
      %250 = arith.index_cast %249 : i32 to index
      %c6_192 = arith.constant 6 : index
      %c0_193 = arith.constant 0 : index
      %251 = vector.load %arg2[%c0_191, %250, %c6_192, %c0_193] : memref<1x22x22x2xbf16, #tpu.memory_space<vmem>>, vector<1x1x16x2xbf16>
      %252 = vector.shape_cast %251 : vector<1x1x16x2xbf16> to vector<16x2xbf16>
      %c27 = arith.constant 27 : index
      %c0_194 = arith.constant 0 : index
      %c0_195 = arith.constant 0 : index
      %253 = vector.load %arg3[%c27, %c0_194, %c0_195] : memref<49x2x3xbf16, #tpu.memory_space<vmem>>, vector<1x2x3xbf16>
      %254 = vector.shape_cast %253 : vector<1x2x3xbf16> to vector<2x3xbf16>
      %cst_196 = arith.constant dense<0.000000e+00> : vector<16x3xf32>
      %255 = tpu.matmul %252, %254, %cst_196 {dimension_numbers = #tpu.dot_dimension_numbers<[1], [0], [0], [1], [0, 0, 1, 1], [], []>} : vector<16x2xbf16>, vector<2x3xbf16>, vector<16x3xf32> -> vector<16x3xf32>
      %256 = arith.addf %247, %255 : vector<16x3xf32>
      %257 = arith.addi %0, %arg6 : i32
      %c4_i32 = arith.constant 4 : i32
      %258 = arith.addi %257, %c4_i32 : i32
      %c0_197 = arith.constant 0 : index
      %259 = arith.index_cast %258 : i32 to index
      %c0_198 = arith.constant 0 : index
      %c0_199 = arith.constant 0 : index
      %260 = vector.load %arg2[%c0_197, %259, %c0_198, %c0_199] : memref<1x22x22x2xbf16, #tpu.memory_space<vmem>>, vector<1x1x16x2xbf16>
      %261 = vector.shape_cast %260 : vector<1x1x16x2xbf16> to vector<16x2xbf16>
      %c28 = arith.constant 28 : index
      %c0_200 = arith.constant 0 : index
      %c0_201 = arith.constant 0 : index
      %262 = vector.load %arg3[%c28, %c0_200, %c0_201] : memref<49x2x3xbf16, #tpu.memory_space<vmem>>, vector<1x2x3xbf16>
      %263 = vector.shape_cast %262 : vector<1x2x3xbf16> to vector<2x3xbf16>
      %cst_202 = arith.constant dense<0.000000e+00> : vector<16x3xf32>
      %264 = tpu.matmul %261, %263, %cst_202 {dimension_numbers = #tpu.dot_dimension_numbers<[1], [0], [0], [1], [0, 0, 1, 1], [], []>} : vector<16x2xbf16>, vector<2x3xbf16>, vector<16x3xf32> -> vector<16x3xf32>
      %265 = arith.addf %256, %264 : vector<16x3xf32>
      %266 = arith.addi %0, %arg6 : i32
      %c4_i32_203 = arith.constant 4 : i32
      %267 = arith.addi %266, %c4_i32_203 : i32
      %c0_204 = arith.constant 0 : index
      %268 = arith.index_cast %267 : i32 to index
      %c1_205 = arith.constant 1 : index
      %c0_206 = arith.constant 0 : index
      %269 = vector.load %arg2[%c0_204, %268, %c1_205, %c0_206] : memref<1x22x22x2xbf16, #tpu.memory_space<vmem>>, vector<1x1x16x2xbf16>
      %270 = vector.shape_cast %269 : vector<1x1x16x2xbf16> to vector<16x2xbf16>
      %c29 = arith.constant 29 : index
      %c0_207 = arith.constant 0 : index
      %c0_208 = arith.constant 0 : index
      %271 = vector.load %arg3[%c29, %c0_207, %c0_208] : memref<49x2x3xbf16, #tpu.memory_space<vmem>>, vector<1x2x3xbf16>
      %272 = vector.shape_cast %271 : vector<1x2x3xbf16> to vector<2x3xbf16>
      %cst_209 = arith.constant dense<0.000000e+00> : vector<16x3xf32>
      %273 = tpu.matmul %270, %272, %cst_209 {dimension_numbers = #tpu.dot_dimension_numbers<[1], [0], [0], [1], [0, 0, 1, 1], [], []>} : vector<16x2xbf16>, vector<2x3xbf16>, vector<16x3xf32> -> vector<16x3xf32>
      %274 = arith.addf %265, %273 : vector<16x3xf32>
      %275 = arith.addi %0, %arg6 : i32
      %c4_i32_210 = arith.constant 4 : i32
      %276 = arith.addi %275, %c4_i32_210 : i32
      %c0_211 = arith.constant 0 : index
      %277 = arith.index_cast %276 : i32 to index
      %c2_212 = arith.constant 2 : index
      %c0_213 = arith.constant 0 : index
      %278 = vector.load %arg2[%c0_211, %277, %c2_212, %c0_213] : memref<1x22x22x2xbf16, #tpu.memory_space<vmem>>, vector<1x1x16x2xbf16>
      %279 = vector.shape_cast %278 : vector<1x1x16x2xbf16> to vector<16x2xbf16>
      %c30 = arith.constant 30 : index
      %c0_214 = arith.constant 0 : index
      %c0_215 = arith.constant 0 : index
      %280 = vector.load %arg3[%c30, %c0_214, %c0_215] : memref<49x2x3xbf16, #tpu.memory_space<vmem>>, vector<1x2x3xbf16>
      %281 = vector.shape_cast %280 : vector<1x2x3xbf16> to vector<2x3xbf16>
      %cst_216 = arith.constant dense<0.000000e+00> : vector<16x3xf32>
      %282 = tpu.matmul %279, %281, %cst_216 {dimension_numbers = #tpu.dot_dimension_numbers<[1], [0], [0], [1], [0, 0, 1, 1], [], []>} : vector<16x2xbf16>, vector<2x3xbf16>, vector<16x3xf32> -> vector<16x3xf32>
      %283 = arith.addf %274, %282 : vector<16x3xf32>
      %284 = arith.addi %0, %arg6 : i32
      %c4_i32_217 = arith.constant 4 : i32
      %285 = arith.addi %284, %c4_i32_217 : i32
      %c0_218 = arith.constant 0 : index
      %286 = arith.index_cast %285 : i32 to index
      %c3_219 = arith.constant 3 : index
      %c0_220 = arith.constant 0 : index
      %287 = vector.load %arg2[%c0_218, %286, %c3_219, %c0_220] : memref<1x22x22x2xbf16, #tpu.memory_space<vmem>>, vector<1x1x16x2xbf16>
      %288 = vector.shape_cast %287 : vector<1x1x16x2xbf16> to vector<16x2xbf16>
      %c31 = arith.constant 31 : index
      %c0_221 = arith.constant 0 : index
      %c0_222 = arith.constant 0 : index
      %289 = vector.load %arg3[%c31, %c0_221, %c0_222] : memref<49x2x3xbf16, #tpu.memory_space<vmem>>, vector<1x2x3xbf16>
      %290 = vector.shape_cast %289 : vector<1x2x3xbf16> to vector<2x3xbf16>
      %cst_223 = arith.constant dense<0.000000e+00> : vector<16x3xf32>
      %291 = tpu.matmul %288, %290, %cst_223 {dimension_numbers = #tpu.dot_dimension_numbers<[1], [0], [0], [1], [0, 0, 1, 1], [], []>} : vector<16x2xbf16>, vector<2x3xbf16>, vector<16x3xf32> -> vector<16x3xf32>
      %292 = arith.addf %283, %291 : vector<16x3xf32>
      %293 = arith.addi %0, %arg6 : i32
      %c4_i32_224 = arith.constant 4 : i32
      %294 = arith.addi %293, %c4_i32_224 : i32
      %c0_225 = arith.constant 0 : index
      %295 = arith.index_cast %294 : i32 to index
      %c4_226 = arith.constant 4 : index
      %c0_227 = arith.constant 0 : index
      %296 = vector.load %arg2[%c0_225, %295, %c4_226, %c0_227] : memref<1x22x22x2xbf16, #tpu.memory_space<vmem>>, vector<1x1x16x2xbf16>
      %297 = vector.shape_cast %296 : vector<1x1x16x2xbf16> to vector<16x2xbf16>
      %c32 = arith.constant 32 : index
      %c0_228 = arith.constant 0 : index
      %c0_229 = arith.constant 0 : index
      %298 = vector.load %arg3[%c32, %c0_228, %c0_229] : memref<49x2x3xbf16, #tpu.memory_space<vmem>>, vector<1x2x3xbf16>
      %299 = vector.shape_cast %298 : vector<1x2x3xbf16> to vector<2x3xbf16>
      %cst_230 = arith.constant dense<0.000000e+00> : vector<16x3xf32>
      %300 = tpu.matmul %297, %299, %cst_230 {dimension_numbers = #tpu.dot_dimension_numbers<[1], [0], [0], [1], [0, 0, 1, 1], [], []>} : vector<16x2xbf16>, vector<2x3xbf16>, vector<16x3xf32> -> vector<16x3xf32>
      %301 = arith.addf %292, %300 : vector<16x3xf32>
      %302 = arith.addi %0, %arg6 : i32
      %c4_i32_231 = arith.constant 4 : i32
      %303 = arith.addi %302, %c4_i32_231 : i32
      %c0_232 = arith.constant 0 : index
      %304 = arith.index_cast %303 : i32 to index
      %c5_233 = arith.constant 5 : index
      %c0_234 = arith.constant 0 : index
      %305 = vector.load %arg2[%c0_232, %304, %c5_233, %c0_234] : memref<1x22x22x2xbf16, #tpu.memory_space<vmem>>, vector<1x1x16x2xbf16>
      %306 = vector.shape_cast %305 : vector<1x1x16x2xbf16> to vector<16x2xbf16>
      %c33 = arith.constant 33 : index
      %c0_235 = arith.constant 0 : index
      %c0_236 = arith.constant 0 : index
      %307 = vector.load %arg3[%c33, %c0_235, %c0_236] : memref<49x2x3xbf16, #tpu.memory_space<vmem>>, vector<1x2x3xbf16>
      %308 = vector.shape_cast %307 : vector<1x2x3xbf16> to vector<2x3xbf16>
      %cst_237 = arith.constant dense<0.000000e+00> : vector<16x3xf32>
      %309 = tpu.matmul %306, %308, %cst_237 {dimension_numbers = #tpu.dot_dimension_numbers<[1], [0], [0], [1], [0, 0, 1, 1], [], []>} : vector<16x2xbf16>, vector<2x3xbf16>, vector<16x3xf32> -> vector<16x3xf32>
      %310 = arith.addf %301, %309 : vector<16x3xf32>
      %311 = arith.addi %0, %arg6 : i32
      %c4_i32_238 = arith.constant 4 : i32
      %312 = arith.addi %311, %c4_i32_238 : i32
      %c0_239 = arith.constant 0 : index
      %313 = arith.index_cast %312 : i32 to index
      %c6_240 = arith.constant 6 : index
      %c0_241 = arith.constant 0 : index
      %314 = vector.load %arg2[%c0_239, %313, %c6_240, %c0_241] : memref<1x22x22x2xbf16, #tpu.memory_space<vmem>>, vector<1x1x16x2xbf16>
      %315 = vector.shape_cast %314 : vector<1x1x16x2xbf16> to vector<16x2xbf16>
      %c34 = arith.constant 34 : index
      %c0_242 = arith.constant 0 : index
      %c0_243 = arith.constant 0 : index
      %316 = vector.load %arg3[%c34, %c0_242, %c0_243] : memref<49x2x3xbf16, #tpu.memory_space<vmem>>, vector<1x2x3xbf16>
      %317 = vector.shape_cast %316 : vector<1x2x3xbf16> to vector<2x3xbf16>
      %cst_244 = arith.constant dense<0.000000e+00> : vector<16x3xf32>
      %318 = tpu.matmul %315, %317, %cst_244 {dimension_numbers = #tpu.dot_dimension_numbers<[1], [0], [0], [1], [0, 0, 1, 1], [], []>} : vector<16x2xbf16>, vector<2x3xbf16>, vector<16x3xf32> -> vector<16x3xf32>
      %319 = arith.addf %310, %318 : vector<16x3xf32>
      %320 = arith.addi %0, %arg6 : i32
      %c5_i32 = arith.constant 5 : i32
      %321 = arith.addi %320, %c5_i32 : i32
      %c0_245 = arith.constant 0 : index
      %322 = arith.index_cast %321 : i32 to index
      %c0_246 = arith.constant 0 : index
      %c0_247 = arith.constant 0 : index
      %323 = vector.load %arg2[%c0_245, %322, %c0_246, %c0_247] : memref<1x22x22x2xbf16, #tpu.memory_space<vmem>>, vector<1x1x16x2xbf16>
      %324 = vector.shape_cast %323 : vector<1x1x16x2xbf16> to vector<16x2xbf16>
      %c35 = arith.constant 35 : index
      %c0_248 = arith.constant 0 : index
      %c0_249 = arith.constant 0 : index
      %325 = vector.load %arg3[%c35, %c0_248, %c0_249] : memref<49x2x3xbf16, #tpu.memory_space<vmem>>, vector<1x2x3xbf16>
      %326 = vector.shape_cast %325 : vector<1x2x3xbf16> to vector<2x3xbf16>
      %cst_250 = arith.constant dense<0.000000e+00> : vector<16x3xf32>
      %327 = tpu.matmul %324, %326, %cst_250 {dimension_numbers = #tpu.dot_dimension_numbers<[1], [0], [0], [1], [0, 0, 1, 1], [], []>} : vector<16x2xbf16>, vector<2x3xbf16>, vector<16x3xf32> -> vector<16x3xf32>
      %328 = arith.addf %319, %327 : vector<16x3xf32>
      %329 = arith.addi %0, %arg6 : i32
      %c5_i32_251 = arith.constant 5 : i32
      %330 = arith.addi %329, %c5_i32_251 : i32
      %c0_252 = arith.constant 0 : index
      %331 = arith.index_cast %330 : i32 to index
      %c1_253 = arith.constant 1 : index
      %c0_254 = arith.constant 0 : index
      %332 = vector.load %arg2[%c0_252, %331, %c1_253, %c0_254] : memref<1x22x22x2xbf16, #tpu.memory_space<vmem>>, vector<1x1x16x2xbf16>
      %333 = vector.shape_cast %332 : vector<1x1x16x2xbf16> to vector<16x2xbf16>
      %c36 = arith.constant 36 : index
      %c0_255 = arith.constant 0 : index
      %c0_256 = arith.constant 0 : index
      %334 = vector.load %arg3[%c36, %c0_255, %c0_256] : memref<49x2x3xbf16, #tpu.memory_space<vmem>>, vector<1x2x3xbf16>
      %335 = vector.shape_cast %334 : vector<1x2x3xbf16> to vector<2x3xbf16>
      %cst_257 = arith.constant dense<0.000000e+00> : vector<16x3xf32>
      %336 = tpu.matmul %333, %335, %cst_257 {dimension_numbers = #tpu.dot_dimension_numbers<[1], [0], [0], [1], [0, 0, 1, 1], [], []>} : vector<16x2xbf16>, vector<2x3xbf16>, vector<16x3xf32> -> vector<16x3xf32>
      %337 = arith.addf %328, %336 : vector<16x3xf32>
      %338 = arith.addi %0, %arg6 : i32
      %c5_i32_258 = arith.constant 5 : i32
      %339 = arith.addi %338, %c5_i32_258 : i32
      %c0_259 = arith.constant 0 : index
      %340 = arith.index_cast %339 : i32 to index
      %c2_260 = arith.constant 2 : index
      %c0_261 = arith.constant 0 : index
      %341 = vector.load %arg2[%c0_259, %340, %c2_260, %c0_261] : memref<1x22x22x2xbf16, #tpu.memory_space<vmem>>, vector<1x1x16x2xbf16>
      %342 = vector.shape_cast %341 : vector<1x1x16x2xbf16> to vector<16x2xbf16>
      %c37 = arith.constant 37 : index
      %c0_262 = arith.constant 0 : index
      %c0_263 = arith.constant 0 : index
      %343 = vector.load %arg3[%c37, %c0_262, %c0_263] : memref<49x2x3xbf16, #tpu.memory_space<vmem>>, vector<1x2x3xbf16>
      %344 = vector.shape_cast %343 : vector<1x2x3xbf16> to vector<2x3xbf16>
      %cst_264 = arith.constant dense<0.000000e+00> : vector<16x3xf32>
      %345 = tpu.matmul %342, %344, %cst_264 {dimension_numbers = #tpu.dot_dimension_numbers<[1], [0], [0], [1], [0, 0, 1, 1], [], []>} : vector<16x2xbf16>, vector<2x3xbf16>, vector<16x3xf32> -> vector<16x3xf32>
      %346 = arith.addf %337, %345 : vector<16x3xf32>
      %347 = arith.addi %0, %arg6 : i32
      %c5_i32_265 = arith.constant 5 : i32
      %348 = arith.addi %347, %c5_i32_265 : i32
      %c0_266 = arith.constant 0 : index
      %349 = arith.index_cast %348 : i32 to index
      %c3_267 = arith.constant 3 : index
      %c0_268 = arith.constant 0 : index
      %350 = vector.load %arg2[%c0_266, %349, %c3_267, %c0_268] : memref<1x22x22x2xbf16, #tpu.memory_space<vmem>>, vector<1x1x16x2xbf16>
      %351 = vector.shape_cast %350 : vector<1x1x16x2xbf16> to vector<16x2xbf16>
      %c38 = arith.constant 38 : index
      %c0_269 = arith.constant 0 : index
      %c0_270 = arith.constant 0 : index
      %352 = vector.load %arg3[%c38, %c0_269, %c0_270] : memref<49x2x3xbf16, #tpu.memory_space<vmem>>, vector<1x2x3xbf16>
      %353 = vector.shape_cast %352 : vector<1x2x3xbf16> to vector<2x3xbf16>
      %cst_271 = arith.constant dense<0.000000e+00> : vector<16x3xf32>
      %354 = tpu.matmul %351, %353, %cst_271 {dimension_numbers = #tpu.dot_dimension_numbers<[1], [0], [0], [1], [0, 0, 1, 1], [], []>} : vector<16x2xbf16>, vector<2x3xbf16>, vector<16x3xf32> -> vector<16x3xf32>
      %355 = arith.addf %346, %354 : vector<16x3xf32>
      %356 = arith.addi %0, %arg6 : i32
      %c5_i32_272 = arith.constant 5 : i32
      %357 = arith.addi %356, %c5_i32_272 : i32
      %c0_273 = arith.constant 0 : index
      %358 = arith.index_cast %357 : i32 to index
      %c4_274 = arith.constant 4 : index
      %c0_275 = arith.constant 0 : index
      %359 = vector.load %arg2[%c0_273, %358, %c4_274, %c0_275] : memref<1x22x22x2xbf16, #tpu.memory_space<vmem>>, vector<1x1x16x2xbf16>
      %360 = vector.shape_cast %359 : vector<1x1x16x2xbf16> to vector<16x2xbf16>
      %c39 = arith.constant 39 : index
      %c0_276 = arith.constant 0 : index
      %c0_277 = arith.constant 0 : index
      %361 = vector.load %arg3[%c39, %c0_276, %c0_277] : memref<49x2x3xbf16, #tpu.memory_space<vmem>>, vector<1x2x3xbf16>
      %362 = vector.shape_cast %361 : vector<1x2x3xbf16> to vector<2x3xbf16>
      %cst_278 = arith.constant dense<0.000000e+00> : vector<16x3xf32>
      %363 = tpu.matmul %360, %362, %cst_278 {dimension_numbers = #tpu.dot_dimension_numbers<[1], [0], [0], [1], [0, 0, 1, 1], [], []>} : vector<16x2xbf16>, vector<2x3xbf16>, vector<16x3xf32> -> vector<16x3xf32>
      %364 = arith.addf %355, %363 : vector<16x3xf32>
      %365 = arith.addi %0, %arg6 : i32
      %c5_i32_279 = arith.constant 5 : i32
      %366 = arith.addi %365, %c5_i32_279 : i32
      %c0_280 = arith.constant 0 : index
      %367 = arith.index_cast %366 : i32 to index
      %c5_281 = arith.constant 5 : index
      %c0_282 = arith.constant 0 : index
      %368 = vector.load %arg2[%c0_280, %367, %c5_281, %c0_282] : memref<1x22x22x2xbf16, #tpu.memory_space<vmem>>, vector<1x1x16x2xbf16>
      %369 = vector.shape_cast %368 : vector<1x1x16x2xbf16> to vector<16x2xbf16>
      %c40 = arith.constant 40 : index
      %c0_283 = arith.constant 0 : index
      %c0_284 = arith.constant 0 : index
      %370 = vector.load %arg3[%c40, %c0_283, %c0_284] : memref<49x2x3xbf16, #tpu.memory_space<vmem>>, vector<1x2x3xbf16>
      %371 = vector.shape_cast %370 : vector<1x2x3xbf16> to vector<2x3xbf16>
      %cst_285 = arith.constant dense<0.000000e+00> : vector<16x3xf32>
      %372 = tpu.matmul %369, %371, %cst_285 {dimension_numbers = #tpu.dot_dimension_numbers<[1], [0], [0], [1], [0, 0, 1, 1], [], []>} : vector<16x2xbf16>, vector<2x3xbf16>, vector<16x3xf32> -> vector<16x3xf32>
      %373 = arith.addf %364, %372 : vector<16x3xf32>
      %374 = arith.addi %0, %arg6 : i32
      %c5_i32_286 = arith.constant 5 : i32
      %375 = arith.addi %374, %c5_i32_286 : i32
      %c0_287 = arith.constant 0 : index
      %376 = arith.index_cast %375 : i32 to index
      %c6_288 = arith.constant 6 : index
      %c0_289 = arith.constant 0 : index
      %377 = vector.load %arg2[%c0_287, %376, %c6_288, %c0_289] : memref<1x22x22x2xbf16, #tpu.memory_space<vmem>>, vector<1x1x16x2xbf16>
      %378 = vector.shape_cast %377 : vector<1x1x16x2xbf16> to vector<16x2xbf16>
      %c41 = arith.constant 41 : index
      %c0_290 = arith.constant 0 : index
      %c0_291 = arith.constant 0 : index
      %379 = vector.load %arg3[%c41, %c0_290, %c0_291] : memref<49x2x3xbf16, #tpu.memory_space<vmem>>, vector<1x2x3xbf16>
      %380 = vector.shape_cast %379 : vector<1x2x3xbf16> to vector<2x3xbf16>
      %cst_292 = arith.constant dense<0.000000e+00> : vector<16x3xf32>
      %381 = tpu.matmul %378, %380, %cst_292 {dimension_numbers = #tpu.dot_dimension_numbers<[1], [0], [0], [1], [0, 0, 1, 1], [], []>} : vector<16x2xbf16>, vector<2x3xbf16>, vector<16x3xf32> -> vector<16x3xf32>
      %382 = arith.addf %373, %381 : vector<16x3xf32>
      %383 = arith.addi %0, %arg6 : i32
      %c6_i32 = arith.constant 6 : i32
      %384 = arith.addi %383, %c6_i32 : i32
      %c0_293 = arith.constant 0 : index
      %385 = arith.index_cast %384 : i32 to index
      %c0_294 = arith.constant 0 : index
      %c0_295 = arith.constant 0 : index
      %386 = vector.load %arg2[%c0_293, %385, %c0_294, %c0_295] : memref<1x22x22x2xbf16, #tpu.memory_space<vmem>>, vector<1x1x16x2xbf16>
      %387 = vector.shape_cast %386 : vector<1x1x16x2xbf16> to vector<16x2xbf16>
      %c42 = arith.constant 42 : index
      %c0_296 = arith.constant 0 : index
      %c0_297 = arith.constant 0 : index
      %388 = vector.load %arg3[%c42, %c0_296, %c0_297] : memref<49x2x3xbf16, #tpu.memory_space<vmem>>, vector<1x2x3xbf16>
      %389 = vector.shape_cast %388 : vector<1x2x3xbf16> to vector<2x3xbf16>
      %cst_298 = arith.constant dense<0.000000e+00> : vector<16x3xf32>
      %390 = tpu.matmul %387, %389, %cst_298 {dimension_numbers = #tpu.dot_dimension_numbers<[1], [0], [0], [1], [0, 0, 1, 1], [], []>} : vector<16x2xbf16>, vector<2x3xbf16>, vector<16x3xf32> -> vector<16x3xf32>
      %391 = arith.addf %382, %390 : vector<16x3xf32>
      %392 = arith.addi %0, %arg6 : i32
      %c6_i32_299 = arith.constant 6 : i32
      %393 = arith.addi %392, %c6_i32_299 : i32
      %c0_300 = arith.constant 0 : index
      %394 = arith.index_cast %393 : i32 to index
      %c1_301 = arith.constant 1 : index
      %c0_302 = arith.constant 0 : index
      %395 = vector.load %arg2[%c0_300, %394, %c1_301, %c0_302] : memref<1x22x22x2xbf16, #tpu.memory_space<vmem>>, vector<1x1x16x2xbf16>
      %396 = vector.shape_cast %395 : vector<1x1x16x2xbf16> to vector<16x2xbf16>
      %c43 = arith.constant 43 : index
      %c0_303 = arith.constant 0 : index
      %c0_304 = arith.constant 0 : index
      %397 = vector.load %arg3[%c43, %c0_303, %c0_304] : memref<49x2x3xbf16, #tpu.memory_space<vmem>>, vector<1x2x3xbf16>
      %398 = vector.shape_cast %397 : vector<1x2x3xbf16> to vector<2x3xbf16>
      %cst_305 = arith.constant dense<0.000000e+00> : vector<16x3xf32>
      %399 = tpu.matmul %396, %398, %cst_305 {dimension_numbers = #tpu.dot_dimension_numbers<[1], [0], [0], [1], [0, 0, 1, 1], [], []>} : vector<16x2xbf16>, vector<2x3xbf16>, vector<16x3xf32> -> vector<16x3xf32>
      %400 = arith.addf %391, %399 : vector<16x3xf32>
      %401 = arith.addi %0, %arg6 : i32
      %c6_i32_306 = arith.constant 6 : i32
      %402 = arith.addi %401, %c6_i32_306 : i32
      %c0_307 = arith.constant 0 : index
      %403 = arith.index_cast %402 : i32 to index
      %c2_308 = arith.constant 2 : index
      %c0_309 = arith.constant 0 : index
      %404 = vector.load %arg2[%c0_307, %403, %c2_308, %c0_309] : memref<1x22x22x2xbf16, #tpu.memory_space<vmem>>, vector<1x1x16x2xbf16>
      %405 = vector.shape_cast %404 : vector<1x1x16x2xbf16> to vector<16x2xbf16>
      %c44 = arith.constant 44 : index
      %c0_310 = arith.constant 0 : index
      %c0_311 = arith.constant 0 : index
      %406 = vector.load %arg3[%c44, %c0_310, %c0_311] : memref<49x2x3xbf16, #tpu.memory_space<vmem>>, vector<1x2x3xbf16>
      %407 = vector.shape_cast %406 : vector<1x2x3xbf16> to vector<2x3xbf16>
      %cst_312 = arith.constant dense<0.000000e+00> : vector<16x3xf32>
      %408 = tpu.matmul %405, %407, %cst_312 {dimension_numbers = #tpu.dot_dimension_numbers<[1], [0], [0], [1], [0, 0, 1, 1], [], []>} : vector<16x2xbf16>, vector<2x3xbf16>, vector<16x3xf32> -> vector<16x3xf32>
      %409 = arith.addf %400, %408 : vector<16x3xf32>
      %410 = arith.addi %0, %arg6 : i32
      %c6_i32_313 = arith.constant 6 : i32
      %411 = arith.addi %410, %c6_i32_313 : i32
      %c0_314 = arith.constant 0 : index
      %412 = arith.index_cast %411 : i32 to index
      %c3_315 = arith.constant 3 : index
      %c0_316 = arith.constant 0 : index
      %413 = vector.load %arg2[%c0_314, %412, %c3_315, %c0_316] : memref<1x22x22x2xbf16, #tpu.memory_space<vmem>>, vector<1x1x16x2xbf16>
      %414 = vector.shape_cast %413 : vector<1x1x16x2xbf16> to vector<16x2xbf16>
      %c45 = arith.constant 45 : index
      %c0_317 = arith.constant 0 : index
      %c0_318 = arith.constant 0 : index
      %415 = vector.load %arg3[%c45, %c0_317, %c0_318] : memref<49x2x3xbf16, #tpu.memory_space<vmem>>, vector<1x2x3xbf16>
      %416 = vector.shape_cast %415 : vector<1x2x3xbf16> to vector<2x3xbf16>
      %cst_319 = arith.constant dense<0.000000e+00> : vector<16x3xf32>
      %417 = tpu.matmul %414, %416, %cst_319 {dimension_numbers = #tpu.dot_dimension_numbers<[1], [0], [0], [1], [0, 0, 1, 1], [], []>} : vector<16x2xbf16>, vector<2x3xbf16>, vector<16x3xf32> -> vector<16x3xf32>
      %418 = arith.addf %409, %417 : vector<16x3xf32>
      %419 = arith.addi %0, %arg6 : i32
      %c6_i32_320 = arith.constant 6 : i32
      %420 = arith.addi %419, %c6_i32_320 : i32
      %c0_321 = arith.constant 0 : index
      %421 = arith.index_cast %420 : i32 to index
      %c4_322 = arith.constant 4 : index
      %c0_323 = arith.constant 0 : index
      %422 = vector.load %arg2[%c0_321, %421, %c4_322, %c0_323] : memref<1x22x22x2xbf16, #tpu.memory_space<vmem>>, vector<1x1x16x2xbf16>
      %423 = vector.shape_cast %422 : vector<1x1x16x2xbf16> to vector<16x2xbf16>
      %c46 = arith.constant 46 : index
      %c0_324 = arith.constant 0 : index
      %c0_325 = arith.constant 0 : index
      %424 = vector.load %arg3[%c46, %c0_324, %c0_325] : memref<49x2x3xbf16, #tpu.memory_space<vmem>>, vector<1x2x3xbf16>
      %425 = vector.shape_cast %424 : vector<1x2x3xbf16> to vector<2x3xbf16>
      %cst_326 = arith.constant dense<0.000000e+00> : vector<16x3xf32>
      %426 = tpu.matmul %423, %425, %cst_326 {dimension_numbers = #tpu.dot_dimension_numbers<[1], [0], [0], [1], [0, 0, 1, 1], [], []>} : vector<16x2xbf16>, vector<2x3xbf16>, vector<16x3xf32> -> vector<16x3xf32>
      %427 = arith.addf %418, %426 : vector<16x3xf32>
      %428 = arith.addi %0, %arg6 : i32
      %c6_i32_327 = arith.constant 6 : i32
      %429 = arith.addi %428, %c6_i32_327 : i32
      %c0_328 = arith.constant 0 : index
      %430 = arith.index_cast %429 : i32 to index
      %c5_329 = arith.constant 5 : index
      %c0_330 = arith.constant 0 : index
      %431 = vector.load %arg2[%c0_328, %430, %c5_329, %c0_330] : memref<1x22x22x2xbf16, #tpu.memory_space<vmem>>, vector<1x1x16x2xbf16>
      %432 = vector.shape_cast %431 : vector<1x1x16x2xbf16> to vector<16x2xbf16>
      %c47 = arith.constant 47 : index
      %c0_331 = arith.constant 0 : index
      %c0_332 = arith.constant 0 : index
      %433 = vector.load %arg3[%c47, %c0_331, %c0_332] : memref<49x2x3xbf16, #tpu.memory_space<vmem>>, vector<1x2x3xbf16>
      %434 = vector.shape_cast %433 : vector<1x2x3xbf16> to vector<2x3xbf16>
      %cst_333 = arith.constant dense<0.000000e+00> : vector<16x3xf32>
      %435 = tpu.matmul %432, %434, %cst_333 {dimension_numbers = #tpu.dot_dimension_numbers<[1], [0], [0], [1], [0, 0, 1, 1], [], []>} : vector<16x2xbf16>, vector<2x3xbf16>, vector<16x3xf32> -> vector<16x3xf32>
      %436 = arith.addf %427, %435 : vector<16x3xf32>
      %437 = arith.addi %0, %arg6 : i32
      %c6_i32_334 = arith.constant 6 : i32
      %438 = arith.addi %437, %c6_i32_334 : i32
      %c0_335 = arith.constant 0 : index
      %439 = arith.index_cast %438 : i32 to index
      %c6_336 = arith.constant 6 : index
      %c0_337 = arith.constant 0 : index
      %440 = vector.load %arg2[%c0_335, %439, %c6_336, %c0_337] : memref<1x22x22x2xbf16, #tpu.memory_space<vmem>>, vector<1x1x16x2xbf16>
      %441 = vector.shape_cast %440 : vector<1x1x16x2xbf16> to vector<16x2xbf16>
      %c48 = arith.constant 48 : index
      %c0_338 = arith.constant 0 : index
      %c0_339 = arith.constant 0 : index
      %442 = vector.load %arg3[%c48, %c0_338, %c0_339] : memref<49x2x3xbf16, #tpu.memory_space<vmem>>, vector<1x2x3xbf16>
      %443 = vector.shape_cast %442 : vector<1x2x3xbf16> to vector<2x3xbf16>
      %cst_340 = arith.constant dense<0.000000e+00> : vector<16x3xf32>
      %444 = tpu.matmul %441, %443, %cst_340 {dimension_numbers = #tpu.dot_dimension_numbers<[1], [0], [0], [1], [0, 0, 1, 1], [], []>} : vector<16x2xbf16>, vector<2x3xbf16>, vector<16x3xf32> -> vector<16x3xf32>
      %445 = arith.addf %436, %444 : vector<16x3xf32>
      %c0_341 = arith.constant 0 : index
      %446 = arith.index_cast %arg6 : i32 to index
      %c0_342 = arith.constant 0 : index
      %c0_343 = arith.constant 0 : index
      %447 = vector.load %arg5[%c0_341, %446, %c0_342, %c0_343] : memref<1x16x16x3xf32, #tpu.memory_space<vmem>>, vector<1x1x16x3xf32>
      %448 = vector.shape_cast %447 : vector<1x1x16x3xf32> to vector<16x3xf32>
      %449 = vector.shape_cast %445 : vector<16x3xf32> to vector<1x1x16x3xf32>
      tpu.vector_store %arg5[%c0_341, %446, %c0_342, %c0_343], %449 {strides = array<i32>} : memref<1x16x16x3xf32, #tpu.memory_space<vmem>>, vector<1x1x16x3xf32>,
    }
    %c16_i32_2 = arith.constant 16 : i32
    return
  }
  func.func @transform_0(%arg0: i32, %arg1: i32) -> (i32, i32, i32, i32) {
    %c0_i32 = arith.constant 0 : i32
    %c0_i32_0 = arith.constant 0 : i32
    %c0_i32_1 = arith.constant 0 : i32
    %c0_i32_2 = arith.constant 0 : i32
    return %arg0, %c0_i32, %c0_i32_0, %c0_i32_1 : i32, i32, i32, i32
  }
  func.func @transform_1(%arg0: i32, %arg1: i32) -> (i32, i32, i32) {
    %c0_i32 = arith.constant 0 : i32
    %c0_i32_0 = arith.constant 0 : i32
    %c0_i32_1 = arith.constant 0 : i32
    %c0_i32_2 = arith.constant 0 : i32
    return %c0_i32, %c0_i32_0, %c0_i32_1 : i32, i32, i32
  }
  func.func @transform_2(%arg0: i32, %arg1: i32) -> (i32, i32) {
    %c0_i32 = arith.constant 0 : i32
    %c0_i32_0 = arith.constant 0 : i32
    %c0_i32_1 = arith.constant 0 : i32
    return %c0_i32, %c0_i32_0 : i32, i32
  }
  func.func @transform_3(%arg0: i32, %arg1: i32) -> (i32, i32, i32, i32) {
    %c0_i32 = arith.constant 0 : i32
    %c0_i32_0 = arith.constant 0 : i32
    %c0_i32_1 = arith.constant 0 : i32
    return %arg0, %arg1, %c0_i32, %c0_i32_0 : i32, i32, i32, i32
  }
}

</mosaic_0001>

<bundles_post_ra>
// kernel: tpu_custom_call.1
= control target key start
LH: loop header
LB: loop body
LE: loop exit
PB: predicated region body
PF: predicated region fallthrough
CT: control target
= control target key end

     0   :  { %6 = vsyncpa [#allocation3], 0  ;;  %s127_s0 = inlined_call_operand.hbm [shape: f32[8,128], index: 0, kind: input, shape index: {}]   ;;  %s128_s1 = inlined_call_operand.hbm [shape: f32[8,128], index: 1, kind: output, shape index: {}]  }
   0x1   :  { %7 = vsyncpa [#allocation4], 0  ;;  %s91_s6 = smov [#allocation2]   ;;  %s43_s10 = scalar_lea.hbm %s127_s0, 128 }
   0x2   :  { %s14_s7 = sshll.u32 %s91_s6, 4  ;;  %p44_p0 = scmp.ne.s32.totalorder %s127_s0, %s43_s10  ;;  %s15_s7 = int_to_ptr.vmem [resolvable:$true] %s14_s7 }
   0x3   :  { %p47_p1 = scmp.lt.u32.totalorder %s43_s10, %s127_s0 }
   0x5   :  { %p49_p2 = pnand %p47_p1, %p44_p0 }
   0x7   :  { %52 = shalt.err (!%p49_p2)
}
   0x8   :  { %s53_s15 = scalar_lea.vmem %s15_s7, 128  ;;  %p58_p4 = scmp.lt.s32.totalorder %s15_s7, %s15_s7 }
   0x9   :  { %p54_p3 = scmp.ne.s32.totalorder %s15_s7, %s53_s15  ;;  %p59_p5 = scmp.lt.s32.totalorder %s53_s15, %s53_s15 }
   0xb   :  { %p60_p6 = por %p59_p5, %p58_p4 }
   0xd   :  { %p61_p7 = pnand %p60_p6, %p54_p3 }
   0xf   :  { %64 = shalt.err (!%p61_p7)
}
  0x10   :  { %17 = dma.hbm_to_vmem [thread:$0]  %s127_s0, 128, %s15_s7, [#allocation3]  }
  0x11   :  { %87 = dma.done.wait [#allocation3], 128  }
  0x12   :  { %88 = vsyncadd [#allocation3], 4294967168  ;;  %v21_v0 = vld [vmem:[#allocation2] sm:$0xff]  ;;  %s92_s18 = smov [#allocation5]  }
  0x13   :  { %41 = verf.f32 %v21_v0  ;;  %s30_s19 = sshll.u32 %s92_s18, 4  ;;  %s31_s19 = int_to_ptr.vmem [resolvable:$true] %s30_s19 }
  0x14   :  { %s65_s20 = scalar_lea.vmem %s31_s19, 128  ;;  %p70_p9 = scmp.lt.s32.totalorder %s31_s19, %s31_s19 }
  0x15   :  { %p66_p8 = scmp.ne.s32.totalorder %s31_s19, %s65_s20  ;;  %p71_p10 = scmp.lt.s32.totalorder %s65_s20, %s65_s20 }
  0x17   :  { %p72_p11 = por %p71_p10, %p70_p9 }
  0x19   :  { %p73_p12 = pnand %p72_p11, %p66_p8 }
  0x1d   :  { %v42_v1 = vpop.eup %41 }
  0x1e   :  { %23 = vst [vmem:[#allocation5] sm:$0xff] %v42_v1 }
  0x1f   :  { %76 = shalt.err (!%p73_p12)
}
  0x20   :  { %s77_s0 = scalar_lea.hbm %s128_s1, 128 }
  0x21   :  { %p78_p13 = scmp.ne.s32.totalorder %s128_s1, %s77_s0  ;;  %p81_p0 = scmp.lt.u32.totalorder %s77_s0, %s128_s1 }
  0x23   :  { %p83_p1 = pnand %p81_p0, %p78_p13 }
  0x25   :  { %86 = shalt.err (!%p83_p1)
}
  0x26   :  { %33 = dma.vmem_to_hbm [thread:$0]  %s31_s19, 128, %s128_s1, [#allocation4]  }
  0x27   :  { %89 = dma.done.wait [#allocation4], 128  }
  0x28   :  { %90 = vsyncadd [#allocation4], 4294967168 }
  0x29   :  { %37 = vsyncpa [#allocation3], 1 }
  0x2a   :  { %38 = vsyncpa [#allocation4], 1 }

// kernel: simple_ae_unet_forward.17
= control target key start
LH: loop header
LB: loop body
LE: loop exit
PB: predicated region body
PF: predicated region fallthrough
CT: control target
= control target key end

     0   :  { %s792_s12 = smov 0   ;;  %s794_s13 = smov 0   ;;  %s879_s0 = inlined_call_operand.vmem [shape: bf16[2,5,5,32], index: 0, kind: input, shape index: {}]   ;;  %s880_s1 = inlined_call_operand.vmem [shape: bf16[4,32,16], index: 1, kind: input, shape index: {}]   ;;  %s881_s2 = inlined_call_operand.vmem [shape: f32[1,16], index: 2, kind: input, shape index: {}]   ;;  %s882_s3 = inlined_call_operand.vmem [shape: bf16[2,4,4,16], index: 3, kind: output, shape index: {}]  }
   0x1   :  { %s796_s14 = smov 0  }
   0x2 LB: > { %s25_s15 = sadd.s32 1, %s760_s13  ;;  %p598_p0 = scmp.ge.s32.totalorder %s764_s14, 1  ;;  %s764_s14 = sphi %s796_s14, %s13_s14   ;;  %s760_s13 = sphi %s794_s13, %s884_s13   ;;  %s756_s12 = sphi %s792_s12, %s883_s12  }
   0x3   : > { %p27_p1 = scmp.ge.s32.totalorder %s25_s15, 2  ;;  %p151_p2 = scmp.lt.s32.totalorder %s764_s14, 3 }
   0x5   : > { %s886_s15 = smov (%p27_p1, %s25_s15), 0  ;;  %p152_p3 = pnand %p598_p0, %p151_p2 }
   0x6   : > { %p179_p4 = scmp.lt.s32.totalorder (!%p152_p3), %s756_s12, 1  ;;  %v813_v0 = vld [vmem:[%s881_s2] ss:$0 sm:$0xff] (!%p152_p3)  ;;  %s825_s26 = smov (!%p152_p3), 0  }
   0x7   : > { %155 = sbr.rel (%p152_p3) target bundleno = 283 (0x11b), region = 32 }
   0xe   : > { %s888_s12 = smov (!%p179_p4, %s756_s12), 1 }
   0xf   : > { %s691_s18 = smul.u32 20, %s888_s12  ;;  %s636_s19 = sshll.u32 %s888_s12, 3 }
  0x10   : > { %s818_s22 = scalar_lea.vmem %s882_s3, %s636_s19 }
  0x11   : > { %s823_s25 = scalar_lea.vmem %s879_s0, %s691_s18 }
  0x12 LB: >> { %v726_v1 = vld [vmem:[%s880_s1] sm:$0xff]   ;;  %v770_v2 = vmov 0.0   ;;  %v728_v4 = vld [vmem:[%s880_s1 + $0x8] sm:$0xff]   ;;  %vm771_vm0 = vmmov 0   ;;  %s603_s6 = sshll.u32 %s768_s26, 2  ;;  %vm229_vm1 = vcmask 261120   ;;  %s768_s26 = sphi %s825_s26, %s208_s26  }
  0x13   : >> { %649 = vmatprep.subr.bf16.mxu1 %v770_v2  ;;  %665 = vmatprep.subr.bf16.mxu0 %v770_v2  ;;  %v727_v3 = vld [vmem:[%s880_s1 + $0x20] sm:$0xff]   ;;  %v729_v5 = vld [vmem:[%s880_s1 + $0x28] sm:$0xff]   ;;  %s211_s9 = scalar_lea.vmem %s823_s25, %s603_s6  ;;  %v732_v9 = vld [vmem:[%s880_s1 + $0x10] sm:$0xff]   ;;  %s633_s21 = sshll.u32 %s768_s26, 1  ;;  %vm495_vm2 = vcmask 123904  }
  0x14   : >> { %650 = vmatpush3.bf16.msra.mxu1 %v726_v1  ;;  %653 = vmatprep.mubr.msk.bf16.mxu1 %vm771_vm0, %v770_v2  ;;  %v212_v6 = vld [vmem:[%s211_s9] sm:$0x3]  ;;  %v731_v8 = vld [vmem:[%s211_s9 + $0x4] ss:$0 sps:$4 sm:$0x77]   ;;  %v733_v11 = vld [vmem:[%s880_s1 + $0x30] sm:$0xff]   ;;  %s494_s23 = scalar_lea.vmem %s818_s22, %s633_s21 }
  0x15   : >> { %666 = vmatpush3.bf16.msra.mxu0 %v727_v3  ;;  %651 = vmatprep.subr.bf16.mxu1 %v770_v2  ;;  %v730_v7 = vld [vmem:[%s211_s9] ss:$0 sps:$4 sm:$0x77]   ;;  %v616_v10 = vld [vmem:[%s211_s9 + $0x4] sm:$0x3]  ;;  %v423_v13 = vshll.u32 %v731_v8, 16 }
  0x16   : >> { %667 = vmatprep.subr.bf16.mxu0 %v770_v2  ;;  %669 = vmatprep.mubr.msk.bf16.mxu0 %vm771_vm0, %v770_v2  ;;  %v286_v12 = vshll.u32 %v730_v7, 16  ;;  %v734_v14 = vld [vmem:[%s880_s1 + $0x18] sm:$0xff]   ;;  %v284_v16 = vshrl.u32 %v730_v7, 16  ;;  %v421_v18 = vshrl.u32 %v731_v8, 16  ;;  %s208_s26 = sadd.s32 1, %s768_s26  }
  0x17   : >> { %v735_v15 = vld [vmem:[%s880_s1 + $0x38] sm:$0xff]   ;;  %v425_v19 = vrot.slane %v423_v13, 1  ;;  %p205_p5 = scmp.ge.s32.totalorder %s208_s26, 4  }
  0x18   : >> { %652 = vmatpush3.bf16.msra.mxu1 %v728_v4  ;;  %v288_v17 = vrot.slane %v286_v12, 1 }
  0x19   : >> { %668 = vmatpush3.bf16.msra.mxu0 %v729_v5  ;;  %657 = vmatprep.subr.bf16.mxu1 %v770_v2  ;;  %v426_v21 = vor.u32 %v425_v19, %v421_v18 }
  0x1a   : >> { %673 = vmatprep.subr.bf16.mxu0 %v770_v2  ;;  %v289_v20 = vor.u32 %v288_v17, %v284_v16 }
  0x1b   : >> { %654 = vmatmul.mubr.msk.bf16.vlgmr.msra.gmra.mrb[0].mxu1 %vm229_vm1, %v212_v6 }
  0x1c   : >> { %670 = vmatmul.mubr.msk.bf16.vlgmr.msra.gmra.mrb[0].mxu0 %vm229_vm1, %v616_v10  ;;  %658 = vmatpush3.bf16.msra.mxu1 %v732_v9 }
  0x1d   : >> { %674 = vmatpush3.bf16.msra.mxu0 %v733_v11  ;;  %659 = vmatprep.subr.bf16.mxu1 %v770_v2 }
  0x1e   : >> { %675 = vmatprep.subr.bf16.mxu0 %v770_v2  ;;  %661 = vmatprep.mubr.msk.bf16.mxu1 %vm771_vm0, %v770_v2 }
  0x1f   : >> { %677 = vmatprep.mubr.msk.bf16.mxu0 %vm771_vm0, %v770_v2 }
  0x20   : >> { %660 = vmatpush3.bf16.msra.mxu1 %v734_v14 }
  0x21   : >> { %676 = vmatpush3.bf16.msra.mxu0 %v735_v15 }
  0x27   : >> { %662 = vmatmul.mubr.msk.bf16.vlgmr.msra.gmra.mrb[0].mxu1 %vm229_vm1, %v289_v20 }
  0x28   : >> { %678 = vmatmul.mubr.msk.bf16.vlgmr.msra.gmra.mrb[0].mxu0 %vm229_vm1, %v426_v21 }
  0xfa   : >> { %v339_v22 = vpop.f32.mrb[0].mxu1 }
  0xfb   : >> { %v681_v23 = vadd.f32 %v813_v0, %v339_v22  ;;  %v476_v24 = vpop.f32.mrb[0].mxu0  ;;  %v663_v25 = vpop.f32.mrb[1].mxu1 }
  0xfc   : >> { %v679_v26 = vpop.f32.mrb[1].mxu0  ;;  %v342_v27 = vpop.f32.mrb[2].mxu1 }
  0xfd   : >> { %v682_v28 = vadd.f32 %v681_v23, %v476_v24  ;;  %v479_v29 = vpop.f32.mrb[2].mxu0  ;;  %v664_v30 = vpop.f32.mrb[3].mxu1 }
  0xfe   : >> { %v680_v31 = vpop.f32.mrb[3].mxu0 }
  0xff   : >> { %v484_v32 = vmul.f32 0.044715, %v682_v28  ;;  %v483_v38 = vmul.f32 0.5, %v682_v28 }
 0x101   : >> { %v485_v33 = vmul.f32 %v682_v28, %v484_v32 }
 0x103   : >> { %v486_v34 = vmul.f32 %v682_v28, %v485_v33 }
 0x105   : >> { %v487_v35 = vadd.f32 %v682_v28, %v486_v34 }
 0x107   : >> { %v488_v36 = vmul.f32 0.7978846, %v487_v35 }
 0x109   : >> { %736 = vtanh.f32 %v488_v36 }
 0x113   : >> { %v737_v37 = vpop.eup %736 }
 0x114   : >> { %v490_v39 = vadd.f32 1.0, %v737_v37  ;;  %207 = sbr.rel (!%p205_p5) target bundleno = 18 (0x12), region = 75 }
 0x116   : >> { %v491_v40 = vmul.f32 %v490_v39, %v483_v38 }
 0x118   : >> { %v492_v41 = vpack.c.bf16 %v491_v40, %v491_v40 }
 0x11a   : >> { %496 = vst.msk [vmem:[%s494_s23] sm:$0x3] %vm495_vm2, %v492_v41 }
 0x11b PF: > { %s13_s14 = sadd.s32 1, %s764_s14   ;;  %s883_s12 = smov %s760_s13 }
 0x11c   : > { %p10_p6 = scmp.ge.s32.totalorder %s13_s14, 4   ;;  %s884_s13 = smov %s886_s15 }
 0x11e   :  { %12 = sbr.rel (!%p10_p6) target bundleno = 2 (0x2), region = 86 }

// kernel: simple_ae_unet_forward.16
= control target key start
LH: loop header
LB: loop body
LE: loop exit
PB: predicated region body
PF: predicated region fallthrough
CT: control target
= control target key end

     0   :  { %s1087_s12 = smov 0   ;;  %s1089_s13 = smov 0   ;;  %s1228_s0 = inlined_call_operand.vmem [shape: bf16[2,10,10,8], index: 0, kind: input, shape index: {}]   ;;  %s1229_s1 = inlined_call_operand.vmem [shape: bf16[9,8,8], index: 1, kind: input, shape index: {}]   ;;  %s1230_s2 = inlined_call_operand.vmem [shape: f32[1,8], index: 2, kind: input, shape index: {}]   ;;  %s1231_s3 = inlined_call_operand.vmem [shape: bf16[2,8,8,8], index: 3, kind: output, shape index: {}]  }
   0x1   :  { %s1091_s14 = smov 0  }
   0x2 LB: > { %s25_s15 = sadd.s32 1, %s1055_s13  ;;  %p843_p0 = scmp.ge.s32.totalorder %s1059_s14, 1  ;;  %s1059_s14 = sphi %s1091_s14, %s13_s14   ;;  %s1055_s13 = sphi %s1089_s13, %s1233_s13   ;;  %s1051_s12 = sphi %s1087_s12, %s1232_s12  }
   0x3   : > { %p27_p1 = scmp.ge.s32.totalorder %s25_s15, 2  ;;  %p151_p2 = scmp.lt.s32.totalorder %s1059_s14, 3 }
   0x5   : > { %s1235_s15 = smov (%p27_p1, %s25_s15), 0  ;;  %p152_p3 = pnand %p843_p0, %p151_p2 }
   0x6   : > { %p179_p4 = scmp.lt.s32.totalorder (!%p152_p3), %s1051_s12, 1  ;;  %v1108_v0 = vld [vmem:[%s1230_s2] ss:$0 sm:$0xff] (!%p152_p3)  ;;  %s1120_s26 = smov (!%p152_p3), 0  }
   0x7   : > { %155 = sbr.rel (%p152_p3) target bundleno = 320 (0x140), region = 32 }
   0xe   : > { %s1237_s12 = smov (!%p179_p4, %s1051_s12), 1 }
   0xf   : > { %s990_s18 = smul.u32 80, %s1237_s12  ;;  %s886_s19 = sshll.u32 %s1237_s12, 5 }
  0x10   : > { %s1113_s22 = scalar_lea.vmem %s1231_s3, %s886_s19 }
  0x11   : > { %s1118_s25 = scalar_lea.vmem %s1228_s0, %s990_s18 }
  0x12 LB: >> { %v214_v1 = vld [vmem:[%s1229_s1] sm:$0xf]  ;;  %vm219_vm0 = vcmask 1043456   ;;  %v1065_v2 = vmov 0.0   ;;  %vm1066_vm1 = vmmov 0   ;;  %s887_s4 = sshll.u32 %s1063_s26, 3  ;;  %s1063_s26 = sphi %s1120_s26, %s208_s26  }
  0x13   : >> { %906 = vmatprep.subr.bf16.mxu1 %v1065_v2  ;;  %v221_v3 = vsel %vm219_vm0, %v214_v1, 0  ;;  %908 = vmatprep.mubr.msk.bf16.mxu1 %vm1066_vm1, %v1065_v2  ;;  %v863_v4 = vld [vmem:[%s1229_s1 + $0x10] sm:$0xf]  ;;  %vm215_vm2 = vcmask 64512   ;;  %v851_v6 = vld [vmem:[%s1229_s1 + $0x4] sm:$0xf]  ;;  %s1142_s7 = scalar_lea.vmem %s1118_s25, %s887_s4 }
  0x14   : >> { %907 = vmatpush3.bf16.msra.mxu1 %v221_v3  ;;  %930 = vmatprep.subr.bf16.mxu0 %v1065_v2  ;;  %v455_v5 = vsel %vm219_vm0, %v863_v4, 0  ;;  %v284_v7 = vsel %vm219_vm0, %v851_v6, 0  ;;  %v213_v8 = vld [vmem:[%s1142_s7] sm:$0xf]  ;;  %v861_v9 = vld [vmem:[%s1142_s7 + $0x8] sm:$0xf] }
  0x15   : >> { %931 = vmatpush3.bf16.msra.mxu0 %v455_v5  ;;  %932 = vmatprep.mubr.msk.bf16.mxu0 %vm1066_vm1, %v1065_v2  ;;  %v862_v10 = vld [vmem:[%s1142_s7 + $0xc] sm:$0x1]  ;;  %v264_v12 = vld [vmem:[%s1142_s7] sm:$0xf]  ;;  %v265_v13 = vld [vmem:[%s1142_s7 + $0x4] sm:$0x1] }
  0x16   : >> { %936 = vmatprep.subr.bf16.mxu0 %v1065_v2  ;;  %912 = vmatprep.subr.bf16.mxu1 %v1065_v2  ;;  %v864_v11 = vcombine.low %v861_v9, %v862_v10  ;;  %v852_v14 = vcombine.low %v264_v12, %v265_v13  ;;  %v867_v17 = vld [vmem:[%s1229_s1 + $0x14] sm:$0xf]  ;;  %v854_v24 = vld [vmem:[%s1229_s1 + $0x8] sm:$0xf]  ;;  %v327_v29 = vld [vmem:[%s1142_s7] sm:$0xe] }
  0x17   : >> { %909 = vmatmul.mubr.msk.bf16.vlgmr.msra.gmra.mrb[0].mxu1 %vm215_vm2, %v213_v8  ;;  %v509_v23 = vsel %vm219_vm0, %v867_v17, 0  ;;  %v866_v26 = vld [vmem:[%s1142_s7 + $0x8] sm:$0xe]  ;;  %v338_v27 = vsel %vm219_vm0, %v854_v24, 0  ;;  %v872_v30 = vld [vmem:[%s1229_s1 + $0x18] sm:$0xf]  ;;  %v855_v32 = vcombine.low %v327_v29, %v265_v13 }
  0x18   : >> { %913 = vmatpush3.bf16.msra.mxu1 %v284_v7  ;;  %914 = vmatprep.mubr.msk.bf16.mxu1 %vm1066_vm1, %v1065_v2  ;;  %v445_v15 = vshrl.u32 %v864_v11, 16  ;;  %v447_v16 = vshll.u32 %v864_v11, 16  ;;  %v276_v18 = vshll.u32 %v852_v14, 16  ;;  %v274_v20 = vshrl.u32 %v852_v14, 16  ;;  %v859_v34 = vld [vmem:[%s1229_s1 + $0xc] sm:$0xf] }
  0x19   : >> { %918 = vmatprep.subr.bf16.mxu1 %v1065_v2  ;;  %v868_v28 = vcombine.low %v866_v26, %v862_v10  ;;  %v563_v33 = vsel %vm219_vm0, %v872_v30, 0  ;;  %v333_v35 = vrot.slane %v855_v32, 1  ;;  %v392_v36 = vsel %vm219_vm0, %v859_v34, 0  ;;  %v874_v37 = vld [vmem:[%s1142_s7 + $0x10] sm:$0xf]  ;;  %s883_s24 = sshll.u32 %s1063_s26, 2 }
  0x1a   : >> { %v449_v19 = vrot.slane %v447_v16, 1  ;;  %v278_v21 = vrot.slane %v276_v18, 1  ;;  %v875_v38 = vld [vmem:[%s1142_s7 + $0x14] sm:$0x1]  ;;  %v876_v39 = vld [vmem:[%s1229_s1 + $0x1c] sm:$0xf]  ;;  %s734_s27 = scalar_lea.vmem %s1113_s22, %s883_s24 }
  0x1b   : >> { %v504_v31 = vrot.slane %v868_v28, 1  ;;  %v877_v40 = vcombine.low %v874_v37, %v875_v38  ;;  %v871_v41 = vld [vmem:[%s1142_s7 + $0x10] sm:$0xf]  ;;  %v626_v42 = vsel %vm219_vm0, %v876_v39, 0  ;;  %v858_v44 = vld [vmem:[%s1142_s7 + $0x8] sm:$0xf] }
  0x1c   : >> { %v450_v22 = vor.u32 %v449_v19, %v445_v15  ;;  %v279_v25 = vor.u32 %v278_v21, %v274_v20  ;;  %v880_v47 = vld [vmem:[%s1229_s1 + $0x20] sm:$0xf]  ;;  %v879_v50 = vld [vmem:[%s1142_s7 + $0x10] sm:$0xe]  ;;  %vm735_vm3 = vcmask 60416   ;;  %s208_s26 = sadd.s32 1, %s1063_s26  }
  0x1d   : >> { %v618_v43 = vshll.u32 %v877_v40, 16  ;;  %v616_v45 = vshrl.u32 %v877_v40, 16  ;;  %v680_v49 = vsel %vm219_vm0, %v880_v47, 0  ;;  %v881_v51 = vcombine.low %v879_v50, %v875_v38  ;;  %p205_p5 = scmp.ge.s32.totalorder %s208_s26, 8  }
  0x1e   : >> { %933 = vmatmul.mubr.msk.bf16.vlgmr.msra.gmra.mrb[0].mxu0 %vm215_vm2, %v450_v22 }
  0x1f   : >> { %937 = vmatpush3.bf16.msra.mxu0 %v509_v23  ;;  %938 = vmatprep.mubr.msk.bf16.mxu0 %vm1066_vm1, %v1065_v2  ;;  %v620_v46 = vrot.slane %v618_v43, 1  ;;  %v675_v52 = vrot.slane %v881_v51, 1 }
  0x20   : >> { %942 = vmatprep.subr.bf16.mxu0 %v1065_v2 }
  0x21   : >> { %v621_v48 = vor.u32 %v620_v46, %v616_v45 }
  0x23   : >> { %915 = vmatmul.mubr.msk.bf16.vlgmr.msra.gmra.mrb[0].mxu1 %vm215_vm2, %v279_v25 }
  0x24   : >> { %919 = vmatpush3.bf16.msra.mxu1 %v338_v27  ;;  %920 = vmatprep.mubr.msk.bf16.mxu1 %vm1066_vm1, %v1065_v2 }
  0x25   : >> { %924 = vmatprep.subr.bf16.mxu1 %v1065_v2 }
  0x2a   : >> { %939 = vmatmul.mubr.msk.bf16.vlgmr.msra.gmra.mrb[0].mxu0 %vm215_vm2, %v504_v31 }
  0x2b   : >> { %943 = vmatpush3.bf16.msra.mxu0 %v563_v33  ;;  %944 = vmatprep.mubr.msk.bf16.mxu0 %vm1066_vm1, %v1065_v2 }
  0x2c   : >> { %948 = vmatprep.subr.bf16.mxu0 %v1065_v2 }
  0x2f   : >> { %921 = vmatmul.mubr.msk.bf16.vlgmr.msra.gmra.mrb[0].mxu1 %vm215_vm2, %v333_v35 }
  0x30   : >> { %925 = vmatpush3.bf16.msra.mxu1 %v392_v36  ;;  %926 = vmatprep.mubr.msk.bf16.mxu1 %vm1066_vm1, %v1065_v2 }
  0x36   : >> { %945 = vmatmul.mubr.msk.bf16.vlgmr.msra.gmra.mrb[0].mxu0 %vm215_vm2, %v871_v41 }
  0x37   : >> { %949 = vmatpush3.bf16.msra.mxu0 %v626_v42  ;;  %950 = vmatprep.mubr.msk.bf16.mxu0 %vm1066_vm1, %v1065_v2 }
  0x38   : >> { %954 = vmatprep.subr.bf16.mxu0 %v1065_v2 }
  0x3b   : >> { %927 = vmatmul.mubr.msk.bf16.vlgmr.msra.gmra.mrb[0].mxu1 %vm215_vm2, %v858_v44 }
  0x42   : >> { %951 = vmatmul.mubr.msk.bf16.vlgmr.msra.gmra.mrb[0].mxu0 %vm215_vm2, %v621_v48 }
  0x43   : >> { %955 = vmatpush3.bf16.msra.mxu0 %v680_v49  ;;  %956 = vmatprep.mubr.msk.bf16.mxu0 %vm1066_vm1, %v1065_v2 }
  0x4e   : >> { %957 = vmatmul.mubr.msk.bf16.vlgmr.msra.gmra.mrb[0].mxu0 %vm215_vm2, %v675_v52 }
 0x10e   : >> { %v428_v53 = vpop.f32.mrb[0].mxu1 }
 0x10f   : >> { %v928_v54 = vpop.f32.mrb[1].mxu1  ;;  %v960_v57 = vadd.f32 %v1108_v0, %v428_v53 }
 0x110   : >> { %v431_v55 = vpop.f32.mrb[2].mxu1 }
 0x111   : >> { %v929_v56 = vpop.f32.mrb[3].mxu1 }
 0x121   : >> { %v716_v58 = vpop.f32.mrb[0].mxu0 }
 0x122   : >> { %v961_v59 = vadd.f32 %v960_v57, %v716_v58  ;;  %v958_v60 = vpop.f32.mrb[1].mxu0 }
 0x123   : >> { %v719_v61 = vpop.f32.mrb[2].mxu0 }
 0x124   : >> { %v724_v62 = vmul.f32 0.044715, %v961_v59  ;;  %v959_v63 = vpop.f32.mrb[3].mxu0  ;;  %v723_v6 = vmul.f32 0.5, %v961_v59 }
 0x126   : >> { %v725_v1 = vmul.f32 %v961_v59, %v724_v62 }
 0x128   : >> { %v726_v2 = vmul.f32 %v961_v59, %v725_v1 }
 0x12a   : >> { %v727_v3 = vadd.f32 %v961_v59, %v726_v2 }
 0x12c   : >> { %v728_v4 = vmul.f32 0.7978846, %v727_v3 }
 0x12e   : >> { %1031 = vtanh.f32 %v728_v4 }
 0x138   : >> { %v1032_v5 = vpop.eup %1031 }
 0x139   : >> { %v730_v7 = vadd.f32 1.0, %v1032_v5  ;;  %207 = sbr.rel (!%p205_p5) target bundleno = 18 (0x12), region = 81 }
 0x13b   : >> { %v731_v8 = vmul.f32 %v730_v7, %v723_v6 }
 0x13d   : >> { %v732_v9 = vpack.c.bf16 %v731_v8, %v731_v8 }
 0x13f   : >> { %736 = vst.msk [vmem:[%s734_s27] sm:$0xf] %vm735_vm3, %v732_v9 }
 0x140 PF: > { %s13_s14 = sadd.s32 1, %s1059_s14   ;;  %s1232_s12 = smov %s1055_s13 }
 0x141   : > { %p10_p6 = scmp.ge.s32.totalorder %s13_s14, 4   ;;  %s1233_s13 = smov %s1235_s15 }
 0x143   :  { %12 = sbr.rel (!%p10_p6) target bundleno = 2 (0x2), region = 92 }

// kernel: simple_ae_unet_forward.15
= control target key start
LH: loop header
LB: loop body
LE: loop exit
PB: predicated region body
PF: predicated region fallthrough
CT: control target
= control target key end

     0   :  { %s1768_s12 = smov 0   ;;  %s1770_s13 = smov 0   ;;  %s1973_s0 = inlined_call_operand.vmem [shape: bf16[2,11,11,12], index: 0, kind: input, shape index: {}]   ;;  %s1974_s1 = inlined_call_operand.vmem [shape: bf16[16,12,8], index: 1, kind: input, shape index: {}]   ;;  %s1975_s2 = inlined_call_operand.vmem [shape: f32[1,8], index: 2, kind: input, shape index: {}]   ;;  %s1976_s3 = inlined_call_operand.vmem [shape: bf16[2,8,8,8], index: 3, kind: output, shape index: {}]  }
   0x1   :  { %s1772_s14 = smov 0  }
   0x2 LB: > { %s25_s15 = sadd.s32 1, %s1736_s13  ;;  %p1359_p0 = scmp.ge.s32.totalorder %s1740_s14, 1  ;;  %s1740_s14 = sphi %s1772_s14, %s13_s14   ;;  %s1736_s13 = sphi %s1770_s13, %s1978_s13   ;;  %s1732_s12 = sphi %s1768_s12, %s1977_s12  }
   0x3   : > { %p27_p1 = scmp.ge.s32.totalorder %s25_s15, 2  ;;  %p151_p2 = scmp.lt.s32.totalorder %s1740_s14, 3 }
   0x5   : > { %s1980_s15 = smov (%p27_p1, %s25_s15), 0  ;;  %p152_p3 = pnand %p1359_p0, %p151_p2 }
   0x6   : > { %p179_p4 = scmp.lt.s32.totalorder (!%p152_p3), %s1732_s12, 1  ;;  %v1789_v0 = vld [vmem:[%s1975_s2] ss:$0 sm:$0xff] (!%p152_p3)  ;;  %s1801_s26 = smov (!%p152_p3), 0  }
   0x7   : > { %155 = sbr.rel (%p152_p3) target bundleno = 352 (0x160), region = 32 }
   0xe   : > { %s1982_s12 = smov (!%p179_p4, %s1732_s12), 1 }
   0xf   : > { %s1649_s18 = smul.u32 88, %s1982_s12  ;;  %s1461_s19 = sshll.u32 %s1982_s12, 5 }
  0x10   : > { %s1794_s22 = scalar_lea.vmem %s1976_s3, %s1461_s19 }
  0x11   : > { %s1799_s25 = scalar_lea.vmem %s1973_s0, %s1649_s18 }
  0x12 LB: >> { %vm225_vm0 = vcmask 1045504   ;;  %v1746_v1 = vmov 0.0   ;;  %v1684_v2 = vld [vmem:[%s1974_s1] sm:$0x3f]   ;;  %s1462_s4 = sshll.u32 %s1744_s26, 3  ;;  %vm1747_vm1 = vmmov 0   ;;  %s1744_s26 = sphi %s1801_s26, %s208_s26  }
  0x13   : >> { %1495 = vmatprep.subr.bf16.mxu1 %v1746_v1  ;;  %1543 = vmatprep.subr.bf16.mxu0 %v1746_v1  ;;  %v1685_v3 = vld [vmem:[%s1974_s1 + $0x40] sm:$0x3f]   ;;  %v227_v4 = vsel %vm225_vm0, %v1684_v2, 0  ;;  %s1821_s5 = scalar_lea.vmem %s1799_s25, %s1462_s4  ;;  %vm221_vm2 = vcmask 97280   ;;  %v1686_v8 = vld [vmem:[%s1974_s1 + $0x8] sm:$0x3f]  }
  0x14   : >> { %1497 = vmatprep.mubr.msk.bf16.mxu1 %vm1747_vm1, %v1746_v1  ;;  %1545 = vmatprep.mubr.msk.bf16.mxu0 %vm1747_vm1, %v1746_v1  ;;  %v739_v5 = vsel %vm225_vm0, %v1685_v3, 0  ;;  %v213_v6 = vld [vmem:[%s1821_s5] sm:$0xf]  ;;  %v1409_v7 = vld [vmem:[%s1821_s5 + $0x10] sm:$0xf]  ;;  %v296_v12 = vsel %vm225_vm0, %v1686_v8, 0 }
  0x15   : >> { %1496 = vmatpush3.bf16.msra.mxu1 %v227_v4  ;;  %1544 = vmatpush3.bf16.msra.mxu0 %v739_v5  ;;  %v1687_v9 = vld [vmem:[%s1974_s1 + $0x48] sm:$0x3f]   ;;  %v270_v10 = vld [vmem:[%s1821_s5] sm:$0xf]  ;;  %v271_v11 = vld [vmem:[%s1821_s5 + $0x4] sm:$0x1] }
  0x16   : >> { %1501 = vmatprep.subr.bf16.mxu1 %v1746_v1  ;;  %1549 = vmatprep.subr.bf16.mxu0 %v1746_v1  ;;  %v1370_v13 = vcombine.low %v270_v10, %v271_v11  ;;  %v1414_v14 = vld [vmem:[%s1821_s5 + $0x10] sm:$0xf]  ;;  %v1415_v15 = vld [vmem:[%s1821_s5 + $0x14] sm:$0x1]  ;;  %v808_v16 = vsel %vm225_vm0, %v1687_v9, 0  ;;  %vm1246_vm3 = vcmask 60416  }
  0x17   : >> { %v1418_v17 = vcombine.low %v1414_v14, %v1415_v15  ;;  %v1690_v24 = vld [vmem:[%s1974_s1 + $0x10] sm:$0x3f]   ;;  %v339_v30 = vld [vmem:[%s1821_s5] sm:$0xe]  ;;  %v399_v33 = vld [vmem:[%s1821_s5 + $0x4] sm:$0x3] }
  0x18   : >> { %1498 = vmatmul.mubr.msk.bf16.vlgmr.msra.gmra.mrb[0].mxu1 %vm221_vm2, %v213_v6  ;;  %1546 = vmatmul.mubr.msk.bf16.vlgmr.msra.gmra.mrb[0].mxu0 %vm221_vm2, %v1409_v7  ;;  %v283_v18 = vshll.u32 %v1370_v13, 16  ;;  %v281_v20 = vshrl.u32 %v1370_v13, 16  ;;  %v1691_v25 = vld [vmem:[%s1974_s1 + $0x50] sm:$0x3f]   ;;  %v356_v28 = vsel %vm225_vm0, %v1690_v24, 0  ;;  %v1375_v32 = vcombine.low %v339_v30, %v271_v11 }
  0x19   : >> { %1502 = vmatpush3.bf16.msra.mxu1 %v296_v12  ;;  %1550 = vmatpush3.bf16.msra.mxu0 %v808_v16  ;;  %v795_v19 = vshll.u32 %v1418_v17, 16  ;;  %v793_v22 = vshrl.u32 %v1418_v17, 16  ;;  %v868_v29 = vsel %vm225_vm0, %v1691_v25, 0  ;;  %v1421_v31 = vld [vmem:[%s1821_s5 + $0x10] sm:$0xe]  ;;  %v1380_v39 = vcombine.low %v339_v30, %v399_v33 }
  0x1a   : >> { %1503 = vmatprep.mubr.msk.bf16.mxu1 %vm1747_vm1, %v1746_v1  ;;  %1551 = vmatprep.mubr.msk.bf16.mxu0 %vm1747_vm1, %v1746_v1  ;;  %v285_v21 = vrot.slane %v283_v18, 1  ;;  %v1424_v34 = vcombine.low %v1421_v31, %v1415_v15  ;;  %v1427_v35 = vld [vmem:[%s1821_s5 + $0x14] sm:$0x3]  ;;  %v1696_v36 = vld [vmem:[%s1974_s1 + $0x18] sm:$0x3f]   ;;  %v346_v38 = vrot.slane %v1375_v32, 1 }
  0x1b   : >> { %1507 = vmatprep.subr.bf16.mxu1 %v1746_v1  ;;  %1555 = vmatprep.subr.bf16.mxu0 %v1746_v1  ;;  %v797_v23 = vrot.slane %v795_v19, 1  ;;  %v1697_v37 = vld [vmem:[%s1974_s1 + $0x58] sm:$0x3f]   ;;  %v1430_v41 = vcombine.low %v1421_v31, %v1427_v35  ;;  %v423_v42 = vsel %vm225_vm0, %v1696_v36, 0  ;;  %v407_v44 = vshrl.u32 %v1380_v39, 16 }
  0x1c   : >> { %v286_v26 = vor.u32 %v285_v21, %v281_v20  ;;  %v858_v40 = vrot.slane %v1424_v34, 1  ;;  %v935_v43 = vsel %vm225_vm0, %v1697_v37, 0  ;;  %v410_v45 = vshll.u32 %v1380_v39, 16  ;;  %v1698_v52 = vld [vmem:[%s1974_s1 + $0x20] sm:$0x3f]  }
  0x1d   : >> { %v798_v27 = vor.u32 %v797_v23, %v793_v22  ;;  %v919_v46 = vshrl.u32 %v1430_v41, 16  ;;  %v922_v47 = vshll.u32 %v1430_v41, 16  ;;  %v409_v48 = vrot.slane %v407_v44, 1  ;;  %v1699_v53 = vld [vmem:[%s1974_s1 + $0x60] sm:$0x3f]  }
  0x1e   : >> { %v412_v49 = vrot.slane %v410_v45, 2  ;;  %v483_v56 = vsel %vm225_vm0, %v1698_v52, 0  ;;  %v995_v57 = vsel %vm225_vm0, %v1699_v53, 0  ;;  %v1389_v58 = vld [vmem:[%s1821_s5 + $0x8] sm:$0xf] }
  0x1f   : >> { %v921_v50 = vrot.slane %v919_v46, 1  ;;  %v924_v51 = vrot.slane %v922_v47, 2  ;;  %v1390_v59 = vld [vmem:[%s1821_s5 + $0xc] sm:$0x1]  ;;  %v1439_v61 = vld [vmem:[%s1821_s5 + $0x18] sm:$0xf] }
  0x20   : >> { %v413_v54 = vor.u32 %v412_v49, %v409_v48  ;;  %v1700_v60 = vld [vmem:[%s1974_s1 + $0x28] sm:$0x3f]   ;;  %v1440_v62 = vld [vmem:[%s1821_s5 + $0x1c] sm:$0x1]  ;;  %v1393_v2 = vcombine.low %v1389_v58, %v1390_v59  ;;  %v1434_v5 = vld [vmem:[%s1821_s5 + $0x18] sm:$0xf] }
  0x21   : >> { %v925_v55 = vor.u32 %v924_v51, %v921_v50  ;;  %v1701_v63 = vld [vmem:[%s1974_s1 + $0x68] sm:$0x3f]   ;;  %v1443_v4 = vcombine.low %v1439_v61, %v1440_v62  ;;  %v552_v6 = vsel %vm225_vm0, %v1700_v60, 0  ;;  %v1704_v14 = vld [vmem:[%s1974_s1 + $0x30] sm:$0x3f]  }
  0x22   : >> { %v1384_v3 = vld [vmem:[%s1821_s5 + $0x8] sm:$0xf]  ;;  %v1064_v7 = vsel %vm225_vm0, %v1701_v63, 0  ;;  %v539_v8 = vshll.u32 %v1393_v2, 16  ;;  %v537_v10 = vshrl.u32 %v1393_v2, 16  ;;  %v612_v18 = vsel %vm225_vm0, %v1704_v14, 0 }
  0x23   : >> { %v1051_v9 = vshll.u32 %v1443_v4, 16  ;;  %v1049_v12 = vshrl.u32 %v1443_v4, 16  ;;  %v1705_v15 = vld [vmem:[%s1974_s1 + $0x70] sm:$0x3f]   ;;  %v1396_v20 = vld [vmem:[%s1821_s5 + $0x8] sm:$0xe] }
  0x24   : >> { %1504 = vmatmul.mubr.msk.bf16.vlgmr.msra.gmra.mrb[0].mxu1 %vm221_vm2, %v286_v26  ;;  %1552 = vmatmul.mubr.msk.bf16.vlgmr.msra.gmra.mrb[0].mxu0 %vm221_vm2, %v798_v27  ;;  %v541_v11 = vrot.slane %v539_v8, 1  ;;  %v1124_v19 = vsel %vm225_vm0, %v1705_v15, 0  ;;  %v1446_v21 = vld [vmem:[%s1821_s5 + $0x18] sm:$0xe]  ;;  %v1399_v22 = vcombine.low %v1396_v20, %v1390_v59  ;;  %v1402_v23 = vld [vmem:[%s1821_s5 + $0xc] sm:$0x3] }
  0x25   : >> { %1508 = vmatpush3.bf16.msra.mxu1 %v356_v28  ;;  %1556 = vmatpush3.bf16.msra.mxu0 %v868_v29  ;;  %v1053_v13 = vrot.slane %v1051_v9, 1  ;;  %v1449_v24 = vcombine.low %v1446_v21, %v1440_v62  ;;  %v1452_v25 = vld [vmem:[%s1821_s5 + $0x1c] sm:$0x3]  ;;  %v1405_v29 = vcombine.low %v1396_v20, %v1402_v23  ;;  %s1458_s5 = sshll.u32 %s1744_s26, 2  ;;  %s208_s26 = sadd.s32 1, %s1744_s26  }
  0x26   : >> { %1509 = vmatprep.mubr.msk.bf16.mxu1 %vm1747_vm1, %v1746_v1  ;;  %1557 = vmatprep.mubr.msk.bf16.mxu0 %vm1747_vm1, %v1746_v1  ;;  %v542_v16 = vor.u32 %v541_v11, %v537_v10  ;;  %v1710_v26 = vld [vmem:[%s1974_s1 + $0x38] sm:$0x3f]   ;;  %v602_v28 = vrot.slane %v1399_v22, 1  ;;  %v1455_v31 = vcombine.low %v1446_v21, %v1452_v25  ;;  %s1245_s17 = scalar_lea.vmem %s1794_s22, %s1458_s5  ;;  %p205_p5 = scmp.ge.s32.totalorder %s208_s26, 8  }
  0x27   : >> { %1513 = vmatprep.subr.bf16.mxu1 %v1746_v1  ;;  %1561 = vmatprep.subr.bf16.mxu0 %v1746_v1  ;;  %v1054_v17 = vor.u32 %v1053_v13, %v1049_v12  ;;  %v1711_v27 = vld [vmem:[%s1974_s1 + $0x78] sm:$0x3f]   ;;  %v1114_v30 = vrot.slane %v1449_v24, 1  ;;  %v679_v32 = vsel %vm225_vm0, %v1710_v26, 0  ;;  %v663_v34 = vshrl.u32 %v1405_v29, 16 }
  0x28   : >> { %v1191_v33 = vsel %vm225_vm0, %v1711_v27, 0  ;;  %v666_v35 = vshll.u32 %v1405_v29, 16  ;;  %v1175_v36 = vshrl.u32 %v1455_v31, 16  ;;  %v1178_v37 = vshll.u32 %v1455_v31, 16 }
  0x2a   : >> { %v668_v39 = vrot.slane %v666_v35, 2  ;;  %v1180_v41 = vrot.slane %v1178_v37, 2 }
  0x30   : >> { %1510 = vmatmul.mubr.msk.bf16.vlgmr.msra.gmra.mrb[0].mxu1 %vm221_vm2, %v346_v38  ;;  %1558 = vmatmul.mubr.msk.bf16.vlgmr.msra.gmra.mrb[0].mxu0 %vm221_vm2, %v858_v40  ;;  %v665_v38 = vrot.slane %v663_v34, 1  ;;  %v1177_v40 = vrot.slane %v1175_v36, 1 }
  0x31   : >> { %1514 = vmatpush3.bf16.msra.mxu1 %v423_v42  ;;  %1562 = vmatpush3.bf16.msra.mxu0 %v935_v43 }
  0x32   : >> { %1515 = vmatprep.mubr.msk.bf16.mxu1 %vm1747_vm1, %v1746_v1  ;;  %1563 = vmatprep.mubr.msk.bf16.mxu0 %vm1747_vm1, %v1746_v1  ;;  %v669_v42 = vor.u32 %v668_v39, %v665_v38  ;;  %v1181_v43 = vor.u32 %v1180_v41, %v1177_v40 }
  0x33   : >> { %1519 = vmatprep.subr.bf16.mxu1 %v1746_v1  ;;  %1567 = vmatprep.subr.bf16.mxu0 %v1746_v1 }
  0x3c   : >> { %1516 = vmatmul.mubr.msk.bf16.vlgmr.msra.gmra.mrb[0].mxu1 %vm221_vm2, %v413_v54  ;;  %1564 = vmatmul.mubr.msk.bf16.vlgmr.msra.gmra.mrb[0].mxu0 %vm221_vm2, %v925_v55 }
  0x3d   : >> { %1520 = vmatpush3.bf16.msra.mxu1 %v483_v56  ;;  %1568 = vmatpush3.bf16.msra.mxu0 %v995_v57 }
  0x3e   : >> { %1521 = vmatprep.mubr.msk.bf16.mxu1 %vm1747_vm1, %v1746_v1  ;;  %1569 = vmatprep.mubr.msk.bf16.mxu0 %vm1747_vm1, %v1746_v1 }
  0x3f   : >> { %1525 = vmatprep.subr.bf16.mxu1 %v1746_v1  ;;  %1573 = vmatprep.subr.bf16.mxu0 %v1746_v1 }
  0x48   : >> { %1522 = vmatmul.mubr.msk.bf16.vlgmr.msra.gmra.mrb[0].mxu1 %vm221_vm2, %v1384_v3  ;;  %1570 = vmatmul.mubr.msk.bf16.vlgmr.msra.gmra.mrb[0].mxu0 %vm221_vm2, %v1434_v5 }
  0x49   : >> { %1526 = vmatpush3.bf16.msra.mxu1 %v552_v6  ;;  %1574 = vmatpush3.bf16.msra.mxu0 %v1064_v7 }
  0x4a   : >> { %1527 = vmatprep.mubr.msk.bf16.mxu1 %vm1747_vm1, %v1746_v1  ;;  %1575 = vmatprep.mubr.msk.bf16.mxu0 %vm1747_vm1, %v1746_v1 }
  0x4b   : >> { %1531 = vmatprep.subr.bf16.mxu1 %v1746_v1  ;;  %1579 = vmatprep.subr.bf16.mxu0 %v1746_v1 }
  0x54   : >> { %1528 = vmatmul.mubr.msk.bf16.vlgmr.msra.gmra.mrb[0].mxu1 %vm221_vm2, %v542_v16  ;;  %1576 = vmatmul.mubr.msk.bf16.vlgmr.msra.gmra.mrb[0].mxu0 %vm221_vm2, %v1054_v17 }
  0x55   : >> { %1532 = vmatpush3.bf16.msra.mxu1 %v612_v18  ;;  %1580 = vmatpush3.bf16.msra.mxu0 %v1124_v19 }
  0x56   : >> { %1533 = vmatprep.mubr.msk.bf16.mxu1 %vm1747_vm1, %v1746_v1  ;;  %1581 = vmatprep.mubr.msk.bf16.mxu0 %vm1747_vm1, %v1746_v1 }
  0x57   : >> { %1537 = vmatprep.subr.bf16.mxu1 %v1746_v1  ;;  %1585 = vmatprep.subr.bf16.mxu0 %v1746_v1 }
  0x60   : >> { %1534 = vmatmul.mubr.msk.bf16.vlgmr.msra.gmra.mrb[0].mxu1 %vm221_vm2, %v602_v28  ;;  %1582 = vmatmul.mubr.msk.bf16.vlgmr.msra.gmra.mrb[0].mxu0 %vm221_vm2, %v1114_v30 }
  0x61   : >> { %1538 = vmatpush3.bf16.msra.mxu1 %v679_v32  ;;  %1586 = vmatpush3.bf16.msra.mxu0 %v1191_v33 }
  0x62   : >> { %1539 = vmatprep.mubr.msk.bf16.mxu1 %vm1747_vm1, %v1746_v1  ;;  %1587 = vmatprep.mubr.msk.bf16.mxu0 %vm1747_vm1, %v1746_v1 }
  0x6c   : >> { %1540 = vmatmul.mubr.msk.bf16.vlgmr.msra.gmra.mrb[0].mxu1 %vm221_vm2, %v669_v42  ;;  %1588 = vmatmul.mubr.msk.bf16.vlgmr.msra.gmra.mrb[0].mxu0 %vm221_vm2, %v1181_v43 }
 0x13f   : >> { %v715_v44 = vpop.f32.mrb[0].mxu1  ;;  %v1227_v46 = vpop.f32.mrb[0].mxu0 }
 0x140   : >> { %v1591_v45 = vadd.f32 %v1789_v0, %v715_v44  ;;  %v1541_v47 = vpop.f32.mrb[1].mxu1  ;;  %v1589_v48 = vpop.f32.mrb[1].mxu0 }
 0x141   : >> { %v718_v49 = vpop.f32.mrb[2].mxu1  ;;  %v1230_v50 = vpop.f32.mrb[2].mxu0 }
 0x142   : >> { %v1592_v1 = vadd.f32 %v1591_v45, %v1227_v46  ;;  %v1542_v51 = vpop.f32.mrb[3].mxu1  ;;  %v1590_v52 = vpop.f32.mrb[3].mxu0 }
 0x144   : >> { %v1235_v53 = vmul.f32 0.044715, %v1592_v1  ;;  %v1234_v59 = vmul.f32 0.5, %v1592_v1 }
 0x146   : >> { %v1236_v54 = vmul.f32 %v1592_v1, %v1235_v53 }
 0x148   : >> { %v1237_v55 = vmul.f32 %v1592_v1, %v1236_v54 }
 0x14a   : >> { %v1238_v56 = vadd.f32 %v1592_v1, %v1237_v55 }
 0x14c   : >> { %v1239_v57 = vmul.f32 0.7978846, %v1238_v56 }
 0x14e   : >> { %1712 = vtanh.f32 %v1239_v57 }
 0x158   : >> { %v1713_v58 = vpop.eup %1712 }
 0x159   : >> { %v1241_v60 = vadd.f32 1.0, %v1713_v58  ;;  %207 = sbr.rel (!%p205_p5) target bundleno = 18 (0x12), region = 89 }
 0x15b   : >> { %v1242_v61 = vmul.f32 %v1241_v60, %v1234_v59 }
 0x15d   : >> { %v1243_v62 = vpack.c.bf16 %v1242_v61, %v1242_v61 }
 0x15f   : >> { %1247 = vst.msk [vmem:[%s1245_s17] sm:$0xf] %vm1246_vm3, %v1243_v62 }
 0x160 PF: > { %s13_s14 = sadd.s32 1, %s1740_s14   ;;  %s1977_s12 = smov %s1736_s13 }
 0x161   : > { %p10_p6 = scmp.ge.s32.totalorder %s13_s14, 4   ;;  %s1978_s13 = smov %s1980_s15 }
 0x163   :  { %12 = sbr.rel (!%p10_p6) target bundleno = 2 (0x2), region = 100 }

// kernel: simple_ae_unet_forward.18
= control target key start
LH: loop header
LB: loop body
LE: loop exit
PB: predicated region body
PF: predicated region fallthrough
CT: control target
= control target key end

     0   :  { %s1132_s12 = smov 0   ;;  %s1134_s13 = smov 0   ;;  %s1261_s0 = inlined_call_operand.vmem [shape: bf16[2,6,6,16], index: 0, kind: input, shape index: {}]   ;;  %s1262_s1 = inlined_call_operand.vmem [shape: bf16[9,16,16], index: 1, kind: input, shape index: {}]   ;;  %s1263_s2 = inlined_call_operand.vmem [shape: f32[1,16], index: 2, kind: input, shape index: {}]   ;;  %s1264_s3 = inlined_call_operand.vmem [shape: bf16[2,4,4,16], index: 3, kind: output, shape index: {}]  }
   0x1   :  { %s1136_s14 = smov 0  }
   0x2 LB: > { %s25_s15 = sadd.s32 1, %s1100_s13  ;;  %p866_p0 = scmp.ge.s32.totalorder %s1104_s14, 1  ;;  %s1104_s14 = sphi %s1136_s14, %s13_s14   ;;  %s1100_s13 = sphi %s1134_s13, %s1266_s13   ;;  %s1096_s12 = sphi %s1132_s12, %s1265_s12  }
   0x3   : > { %p27_p1 = scmp.ge.s32.totalorder %s25_s15, 2  ;;  %p151_p2 = scmp.lt.s32.totalorder %s1104_s14, 3 }
   0x5   : > { %s1268_s15 = smov (%p27_p1, %s25_s15), 0  ;;  %p152_p3 = pnand %p866_p0, %p151_p2 }
   0x6   : > { %p179_p4 = scmp.lt.s32.totalorder (!%p152_p3), %s1096_s12, 1  ;;  %v1153_v0 = vld [vmem:[%s1263_s2] ss:$0 sm:$0xff] (!%p152_p3)  ;;  %s1165_s26 = smov (!%p152_p3), 0  }
   0x7   : > { %155 = sbr.rel (%p152_p3) target bundleno = 317 (0x13d), region = 32 }
   0xe   : > { %s1270_s12 = smov (!%p179_p4, %s1096_s12), 1 }
   0xf   : > { %s1026_s18 = smul.u32 24, %s1270_s12  ;;  %s923_s19 = sshll.u32 %s1270_s12, 3 }
  0x10   : > { %s1158_s22 = scalar_lea.vmem %s1264_s3, %s923_s19 }
  0x11   : > { %s1163_s25 = scalar_lea.vmem %s1261_s0, %s1026_s18 }
  0x12 LB: >> { %v1061_v1 = vld [vmem:[%s1262_s1] sm:$0xff]   ;;  %v1110_v2 = vmov 0.0   ;;  %vm221_vm0 = vcmask 130048   ;;  %vm1111_vm1 = vmmov 0   ;;  %s871_s29 = sshll.u32 %s1108_s26, 2  ;;  %v1065_v5 = vld [vmem:[%s1262_s1 + $0x8] sm:$0xff]   ;;  %s1108_s26 = sphi %s1165_s26, %s208_s26  }
  0x13   : >> { %942 = vmatprep.subr.bf16.mxu1 %v1110_v2  ;;  %966 = vmatprep.subr.bf16.mxu0 %v1110_v2  ;;  %v1062_v3 = vld [vmem:[%s1262_s1 + $0x20] sm:$0xff]   ;;  %s1182_s5 = scalar_lea.vmem %s1163_s25, %s871_s29  ;;  %v1064_v13 = vld [vmem:[%s1262_s1 + $0x28] sm:$0xff]   ;;  %v1069_v17 = vld [vmem:[%s1262_s1 + $0x10] sm:$0xff]   ;;  %s920_s24 = sshll.u32 %s1108_s26, 1  ;;  %vm758_vm2 = vcmask 123904  }
  0x14   : >> { %943 = vmatpush3.bf16.msra.mxu1 %v1061_v1  ;;  %944 = vmatprep.mubr.msk.bf16.mxu1 %vm1111_vm1, %v1110_v2  ;;  %v212_v4 = vld [vmem:[%s1182_s5] sm:$0x3]  ;;  %v1063_v6 = vld [vmem:[%s1182_s5 + $0x4] ss:$0 sps:$4 sm:$0x77]   ;;  %v1068_v21 = vld [vmem:[%s1262_s1 + $0x30] sm:$0xff]   ;;  %s757_s27 = scalar_lea.vmem %s1158_s22, %s920_s24 }
  0x15   : >> { %968 = vmatprep.mubr.msk.bf16.mxu0 %vm1111_vm1, %v1110_v2  ;;  %948 = vmatprep.subr.bf16.mxu1 %v1110_v2  ;;  %v1066_v7 = vld [vmem:[%s1182_s5] ss:$0 sps:$4 sm:$0x77]   ;;  %v453_v8 = vshrl.u32 %v1063_v6, 16  ;;  %v455_v9 = vshll.u32 %v1063_v6, 16  ;;  %v1072_v23 = vld [vmem:[%s1262_s1 + $0x18] sm:$0xff]  }
  0x16   : >> { %967 = vmatpush3.bf16.msra.mxu0 %v1062_v3  ;;  %v276_v10 = vshll.u32 %v1066_v7, 16  ;;  %v274_v12 = vshrl.u32 %v1066_v7, 16  ;;  %v1067_v18 = vld [vmem:[%s1182_s5 + $0x4] ss:$0 sps:$4 sm:$0x66]   ;;  %v1071_v26 = vld [vmem:[%s1262_s1 + $0x38] sm:$0xff]  }
  0x17   : >> { %945 = vmatmul.mubr.msk.bf16.vlgmr.msra.gmra.mrb[0].mxu1 %vm221_vm0, %v212_v4  ;;  %972 = vmatprep.subr.bf16.mxu0 %v1110_v2  ;;  %v457_v11 = vrot.slane %v455_v9, 1  ;;  %v516_v19 = vrot.slane %v1067_v18, 1  ;;  %v1070_v20 = vld [vmem:[%s1182_s5] ss:$0 sps:$4 sm:$0x66]   ;;  %s208_s26 = sadd.s32 1, %s1108_s26  }
  0x18   : >> { %949 = vmatpush3.bf16.msra.mxu1 %v1065_v5  ;;  %950 = vmatprep.mubr.msk.bf16.mxu1 %vm1111_vm1, %v1110_v2  ;;  %v278_v14 = vrot.slane %v276_v10, 1  ;;  %v337_v22 = vrot.slane %v1070_v20, 1  ;;  %v1073_v24 = vld [vmem:[%s1182_s5 + $0x8] ss:$0 sps:$4 sm:$0x77]   ;;  %v1074_v32 = vld [vmem:[%s1262_s1 + $0x40] sm:$0xff]  }
  0x19   : >> { %954 = vmatprep.subr.bf16.mxu1 %v1110_v2  ;;  %v458_v15 = vor.u32 %v457_v11, %v453_v8  ;;  %v903_v25 = vld [vmem:[%s1182_s5 + $0x8] sm:$0x3]  ;;  %v634_v27 = vshll.u32 %v1073_v24, 16  ;;  %v885_v28 = vld [vmem:[%s1182_s5 + $0x4] sm:$0x3]  ;;  %v632_v29 = vshrl.u32 %v1073_v24, 16 }
  0x1a   : >> { %v279_v16 = vor.u32 %v278_v14, %v274_v12  ;;  %v1075_v33 = vld [vmem:[%s1182_s5 + $0x8] ss:$0 sps:$4 sm:$0x66]   ;;  %p205_p5 = scmp.ge.s32.totalorder %s208_s26, 4  }
  0x1b   : >> { %969 = vmatmul.mubr.msk.bf16.vlgmr.msra.gmra.mrb[0].mxu0 %vm221_vm0, %v458_v15  ;;  %v636_v30 = vrot.slane %v634_v27, 1  ;;  %v695_v34 = vrot.slane %v1075_v33, 1 }
  0x1c   : >> { %973 = vmatpush3.bf16.msra.mxu0 %v1064_v13  ;;  %974 = vmatprep.mubr.msk.bf16.mxu0 %vm1111_vm1, %v1110_v2 }
  0x1d   : >> { %978 = vmatprep.subr.bf16.mxu0 %v1110_v2  ;;  %v637_v31 = vor.u32 %v636_v30, %v632_v29 }
  0x23   : >> { %951 = vmatmul.mubr.msk.bf16.vlgmr.msra.gmra.mrb[0].mxu1 %vm221_vm0, %v279_v16 }
  0x24   : >> { %955 = vmatpush3.bf16.msra.mxu1 %v1069_v17  ;;  %956 = vmatprep.mubr.msk.bf16.mxu1 %vm1111_vm1, %v1110_v2 }
  0x25   : >> { %960 = vmatprep.subr.bf16.mxu1 %v1110_v2 }
  0x27   : >> { %975 = vmatmul.mubr.msk.bf16.vlgmr.msra.gmra.mrb[0].mxu0 %vm221_vm0, %v516_v19 }
  0x28   : >> { %979 = vmatpush3.bf16.msra.mxu0 %v1068_v21  ;;  %980 = vmatprep.mubr.msk.bf16.mxu0 %vm1111_vm1, %v1110_v2 }
  0x29   : >> { %984 = vmatprep.subr.bf16.mxu0 %v1110_v2 }
  0x2f   : >> { %957 = vmatmul.mubr.msk.bf16.vlgmr.msra.gmra.mrb[0].mxu1 %vm221_vm0, %v337_v22 }
  0x30   : >> { %961 = vmatpush3.bf16.msra.mxu1 %v1072_v23  ;;  %962 = vmatprep.mubr.msk.bf16.mxu1 %vm1111_vm1, %v1110_v2 }
  0x33   : >> { %981 = vmatmul.mubr.msk.bf16.vlgmr.msra.gmra.mrb[0].mxu0 %vm221_vm0, %v903_v25 }
  0x34   : >> { %985 = vmatpush3.bf16.msra.mxu0 %v1071_v26  ;;  %986 = vmatprep.mubr.msk.bf16.mxu0 %vm1111_vm1, %v1110_v2 }
  0x35   : >> { %990 = vmatprep.subr.bf16.mxu0 %v1110_v2 }
  0x3b   : >> { %963 = vmatmul.mubr.msk.bf16.vlgmr.msra.gmra.mrb[0].mxu1 %vm221_vm0, %v885_v28 }
  0x3f   : >> { %987 = vmatmul.mubr.msk.bf16.vlgmr.msra.gmra.mrb[0].mxu0 %vm221_vm0, %v637_v31 }
  0x40   : >> { %991 = vmatpush3.bf16.msra.mxu0 %v1074_v32  ;;  %992 = vmatprep.mubr.msk.bf16.mxu0 %vm1111_vm1, %v1110_v2 }
  0x4b   : >> { %993 = vmatmul.mubr.msk.bf16.vlgmr.msra.gmra.mrb[0].mxu0 %vm221_vm0, %v695_v34 }
 0x10e   : >> { %v438_v35 = vpop.f32.mrb[0].mxu1 }
 0x10f   : >> { %v964_v36 = vpop.f32.mrb[1].mxu1  ;;  %v996_v39 = vadd.f32 %v1153_v0, %v438_v35 }
 0x110   : >> { %v441_v37 = vpop.f32.mrb[2].mxu1 }
 0x111   : >> { %v965_v38 = vpop.f32.mrb[3].mxu1 }
 0x11e   : >> { %v739_v40 = vpop.f32.mrb[0].mxu0 }
 0x11f   : >> { %v997_v41 = vadd.f32 %v996_v39, %v739_v40  ;;  %v994_v42 = vpop.f32.mrb[1].mxu0 }
 0x120   : >> { %v742_v43 = vpop.f32.mrb[2].mxu0 }
 0x121   : >> { %v747_v44 = vmul.f32 0.044715, %v997_v41  ;;  %v995_v45 = vpop.f32.mrb[3].mxu0  ;;  %v746_v51 = vmul.f32 0.5, %v997_v41 }
 0x123   : >> { %v748_v46 = vmul.f32 %v997_v41, %v747_v44 }
 0x125   : >> { %v749_v47 = vmul.f32 %v997_v41, %v748_v46 }
 0x127   : >> { %v750_v48 = vadd.f32 %v997_v41, %v749_v47 }
 0x129   : >> { %v751_v49 = vmul.f32 0.7978846, %v750_v48 }
 0x12b   : >> { %1076 = vtanh.f32 %v751_v49 }
 0x135   : >> { %v1077_v50 = vpop.eup %1076 }
 0x136   : >> { %v753_v52 = vadd.f32 1.0, %v1077_v50  ;;  %207 = sbr.rel (!%p205_p5) target bundleno = 18 (0x12), region = 81 }
 0x138   : >> { %v754_v53 = vmul.f32 %v753_v52, %v746_v51 }
 0x13a   : >> { %v755_v54 = vpack.c.bf16 %v754_v53, %v754_v53 }
 0x13c   : >> { %759 = vst.msk [vmem:[%s757_s27] sm:$0x3] %vm758_vm2, %v755_v54 }
 0x13d PF: > { %s13_s14 = sadd.s32 1, %s1104_s14   ;;  %s1265_s12 = smov %s1100_s13 }
 0x13e   : > { %p10_p6 = scmp.ge.s32.totalorder %s13_s14, 4   ;;  %s1266_s13 = smov %s1268_s15 }
 0x140   :  { %12 = sbr.rel (!%p10_p6) target bundleno = 2 (0x2), region = 92 }

// kernel: simple_ae_unet_forward.19
= control target key start
LH: loop header
LB: loop body
LE: loop exit
PB: predicated region body
PF: predicated region fallthrough
CT: control target
= control target key end

     0   :  { %s903_s12 = smov 0   ;;  %s905_s13 = smov 0   ;;  %s1034_s0 = inlined_call_operand.vmem [shape: bf16[2,3,3,64], index: 0, kind: input, shape index: {}]   ;;  %s1035_s1 = inlined_call_operand.vmem [shape: bf16[4,64,32], index: 1, kind: input, shape index: {}]   ;;  %s1036_s2 = inlined_call_operand.vmem [shape: f32[1,32], index: 2, kind: input, shape index: {}]   ;;  %s1037_s3 = inlined_call_operand.vmem [shape: bf16[2,2,2,32], index: 3, kind: output, shape index: {}]  }
   0x1   :  { %s907_s14 = smov 0  }
   0x2 LB: > { %s25_s15 = sadd.s32 1, %s871_s13  ;;  %p662_p0 = scmp.ge.s32.totalorder %s875_s14, 1  ;;  %s875_s14 = sphi %s907_s14, %s13_s14   ;;  %s871_s13 = sphi %s905_s13, %s1039_s13   ;;  %s867_s12 = sphi %s903_s12, %s1038_s12  }
   0x3   : > { %p27_p1 = scmp.ge.s32.totalorder %s25_s15, 2  ;;  %p151_p2 = scmp.lt.s32.totalorder %s875_s14, 3 }
   0x5   : > { %s1041_s15 = smov (%p27_p1, %s25_s15), 0  ;;  %p152_p3 = pnand %p662_p0, %p151_p2 }
   0x6   : > { %p178_p4 = scmp.lt.s32.totalorder (!%p152_p3), %s867_s12, 1  ;;  %v924_v0 = vld [vmem:[%s1036_s2] ss:$0 sm:$0xff] (!%p152_p3)  ;;  %s936_s26 = smov (!%p152_p3), 0  }
   0x7   : > { %155 = sbr.rel (%p152_p3) target bundleno = 295 (0x127), region = 32 }
   0xe   : > { %s1043_s12 = smov (!%p178_p4, %s867_s12), 1 }
   0xf   : > { %s796_s18 = smul.u32 6, %s1043_s12  ;;  %s664_s19 = sshll.u32 %s1043_s12, 1 }
  0x10   : > { %s929_s22 = scalar_lea.vmem %s1037_s3, %s664_s19 }
  0x11   : > { %s934_s25 = scalar_lea.vmem %s1034_s0, %s796_s18 }
  0x12 LB: >> { %v831_v1 = vld [vmem:[%s1035_s1] sm:$0xff]   ;;  %v881_v2 = vmov 0.0   ;;  %v833_v4 = vld [vmem:[%s1035_s1 + $0x8] sm:$0xff]   ;;  %vm882_vm0 = vmmov 0   ;;  %v835_v6 = vld [vmem:[%s1035_s1 + $0x10] sm:$0xff]   ;;  %s666_s10 = sshll.u32 %s879_s26, 1  ;;  %s879_s26 = sphi %s936_s26, %s206_s26  }
  0x13   : >> { %738 = vmatprep.subr.bf16.mxu1 %v881_v2  ;;  %762 = vmatprep.subr.bf16.mxu0 %v881_v2  ;;  %v832_v3 = vld [vmem:[%s1035_s1 + $0x40] sm:$0xff]   ;;  %v834_v5 = vld [vmem:[%s1035_s1 + $0x48] sm:$0xff]   ;;  %v836_v7 = vld [vmem:[%s1035_s1 + $0x50] sm:$0xff]   ;;  %s209_s16 = scalar_lea.vmem %s934_s25, %s666_s10  ;;  %vm243_vm1 = vcmask 523264   ;;  %vm566_vm2 = vcmask 253952  }
  0x14   : >> { %739 = vmatpush3.bf16.msra.mxu1 %v831_v1  ;;  %746 = vmatprep.mubr.msk.bf16.mxu1 %vm882_vm0, %v881_v2  ;;  %v837_v8 = vld [vmem:[%s1035_s1 + $0x18] sm:$0xff]   ;;  %v210_v10 = vld [vmem:[%s209_s16] sm:$0x1]  ;;  %v687_v12 = vld [vmem:[%s209_s16 + $0x2] sm:$0x1] }
  0x15   : >> { %763 = vmatpush3.bf16.msra.mxu0 %v832_v3  ;;  %740 = vmatprep.subr.bf16.mxu1 %v881_v2  ;;  %v838_v9 = vld [vmem:[%s1035_s1 + $0x58] sm:$0xff]   ;;  %v839_v11 = vld [vmem:[%s1035_s1 + $0x20] sm:$0xff]   ;;  %v841_v15 = vld [vmem:[%s1035_s1 + $0x28] sm:$0xff]  }
  0x16   : >> { %764 = vmatprep.subr.bf16.mxu0 %v881_v2  ;;  %770 = vmatprep.mubr.msk.bf16.mxu0 %vm882_vm0, %v881_v2  ;;  %v840_v13 = vld [vmem:[%s1035_s1 + $0x60] sm:$0xff]   ;;  %v842_v17 = vld [vmem:[%s1035_s1 + $0x68] sm:$0xff]   ;;  %v843_v20 = vld [vmem:[%s1035_s1 + $0x30] sm:$0xff]  }
  0x17   : >> { %v680_v14 = vld.sshfl [vmem:[%s209_s16] sm:$0x3 pattern:$0x76325410]  ;;  %v844_v21 = vld [vmem:[%s1035_s1 + $0x70] sm:$0xff]   ;;  %v845_v26 = vld [vmem:[%s1035_s1 + $0x38] sm:$0xff]  }
  0x18   : >> { %741 = vmatpush3.bf16.msra.mxu1 %v833_v4  ;;  %v710_v16 = vld.sshfl [vmem:[%s209_s16 + $0x2] sm:$0x3 pattern:$0x76325410]  ;;  %v309_v18 = vshll.u32 %v680_v14, 16  ;;  %v307_v22 = vshrl.u32 %v680_v14, 16  ;;  %s565_s16 = scalar_lea.vmem %s929_s22, %s879_s26 }
  0x19   : >> { %765 = vmatpush3.bf16.msra.mxu0 %v834_v5  ;;  %742 = vmatprep.subr.bf16.mxu1 %v881_v2  ;;  %v483_v19 = vshll.u32 %v710_v16, 16  ;;  %v481_v24 = vshrl.u32 %v710_v16, 16  ;;  %v846_v27 = vld [vmem:[%s1035_s1 + $0x78] sm:$0xff]   ;;  %s206_s26 = sadd.s32 1, %s879_s26  }
  0x1a   : >> { %766 = vmatprep.subr.bf16.mxu0 %v881_v2  ;;  %v311_v23 = vrot.slane %v309_v18, 1  ;;  %p203_p5 = scmp.ge.s32.totalorder %s206_s26, 2  }
  0x1b   : >> { %v485_v25 = vrot.slane %v483_v19, 1 }
  0x1c   : >> { %743 = vmatpush3.bf16.msra.mxu1 %v835_v6  ;;  %v312_v28 = vor.u32 %v311_v23, %v307_v22 }
  0x1d   : >> { %767 = vmatpush3.bf16.msra.mxu0 %v836_v7  ;;  %744 = vmatprep.subr.bf16.mxu1 %v881_v2  ;;  %v486_v29 = vor.u32 %v485_v25, %v481_v24 }
  0x1e   : >> { %768 = vmatprep.subr.bf16.mxu0 %v881_v2 }
  0x20   : >> { %745 = vmatpush3.bf16.msra.mxu1 %v837_v8 }
  0x21   : >> { %769 = vmatpush3.bf16.msra.mxu0 %v838_v9  ;;  %750 = vmatprep.subr.bf16.mxu1 %v881_v2 }
  0x22   : >> { %774 = vmatprep.subr.bf16.mxu0 %v881_v2 }
  0x23   : >> { %747 = vmatmul.mubr.msk.bf16.vlgmr.msra.gmra.mrb[0].mxu1 %vm243_vm1, %v210_v10 }
  0x24   : >> { %751 = vmatpush3.bf16.msra.mxu1 %v839_v11  ;;  %771 = vmatmul.mubr.msk.bf16.vlgmr.msra.gmra.mrb[0].mxu0 %vm243_vm1, %v687_v12 }
  0x25   : >> { %775 = vmatpush3.bf16.msra.mxu0 %v840_v13  ;;  %752 = vmatprep.subr.bf16.mxu1 %v881_v2 }
  0x26   : >> { %776 = vmatprep.subr.bf16.mxu0 %v881_v2  ;;  %758 = vmatprep.mubr.msk.bf16.mxu1 %vm882_vm0, %v881_v2 }
  0x27   : >> { %782 = vmatprep.mubr.msk.bf16.mxu0 %vm882_vm0, %v881_v2 }
  0x28   : >> { %753 = vmatpush3.bf16.msra.mxu1 %v841_v15 }
  0x29   : >> { %777 = vmatpush3.bf16.msra.mxu0 %v842_v17  ;;  %754 = vmatprep.subr.bf16.mxu1 %v881_v2 }
  0x2a   : >> { %778 = vmatprep.subr.bf16.mxu0 %v881_v2 }
  0x2c   : >> { %755 = vmatpush3.bf16.msra.mxu1 %v843_v20 }
  0x2d   : >> { %779 = vmatpush3.bf16.msra.mxu0 %v844_v21  ;;  %756 = vmatprep.subr.bf16.mxu1 %v881_v2 }
  0x2e   : >> { %780 = vmatprep.subr.bf16.mxu0 %v881_v2 }
  0x30   : >> { %757 = vmatpush3.bf16.msra.mxu1 %v845_v26 }
  0x31   : >> { %781 = vmatpush3.bf16.msra.mxu0 %v846_v27 }
  0x33   : >> { %759 = vmatmul.mubr.msk.bf16.vlgmr.msra.gmra.mrb[0].mxu1 %vm243_vm1, %v312_v28 }
  0x34   : >> { %783 = vmatmul.mubr.msk.bf16.vlgmr.msra.gmra.mrb[0].mxu0 %vm243_vm1, %v486_v29 }
 0x106   : >> { %v374_v30 = vpop.f32.mrb[0].mxu1 }
 0x107   : >> { %v786_v31 = vadd.f32 %v924_v0, %v374_v30  ;;  %v548_v32 = vpop.f32.mrb[0].mxu0  ;;  %v760_v33 = vpop.f32.mrb[1].mxu1 }
 0x108   : >> { %v784_v34 = vpop.f32.mrb[1].mxu0  ;;  %v377_v35 = vpop.f32.mrb[2].mxu1 }
 0x109   : >> { %v787_v36 = vadd.f32 %v786_v31, %v548_v32  ;;  %v551_v37 = vpop.f32.mrb[2].mxu0  ;;  %v761_v38 = vpop.f32.mrb[3].mxu1 }
 0x10a   : >> { %v785_v39 = vpop.f32.mrb[3].mxu0 }
 0x10b   : >> { %v556_v40 = vmul.f32 0.044715, %v787_v36  ;;  %v555_v46 = vmul.f32 0.5, %v787_v36 }
 0x10d   : >> { %v557_v41 = vmul.f32 %v787_v36, %v556_v40 }
 0x10f   : >> { %v558_v42 = vmul.f32 %v787_v36, %v557_v41 }
 0x111   : >> { %v559_v43 = vadd.f32 %v787_v36, %v558_v42 }
 0x113   : >> { %v560_v44 = vmul.f32 0.7978846, %v559_v43 }
 0x115   : >> { %847 = vtanh.f32 %v560_v44 }
 0x11f   : >> { %v848_v45 = vpop.eup %847 }
 0x120   : >> { %v562_v47 = vadd.f32 1.0, %v848_v45  ;;  %205 = sbr.rel (!%p203_p5) target bundleno = 18 (0x12), region = 75 }
 0x122   : >> { %v563_v48 = vmul.f32 %v562_v47, %v555_v46 }
 0x124   : >> { %v564_v49 = vpack.c.bf16 %v563_v48, %v563_v48 }
 0x126   : >> { %567 = vst.msk [vmem:[%s565_s16] sm:$0x1] %vm566_vm2, %v564_v49 }
 0x127 PF: > { %s13_s14 = sadd.s32 1, %s875_s14   ;;  %s1038_s12 = smov %s871_s13 }
 0x128   : > { %p10_p6 = scmp.ge.s32.totalorder %s13_s14, 4   ;;  %s1039_s13 = smov %s1041_s15 }
 0x12a   :  { %12 = sbr.rel (!%p10_p6) target bundleno = 2 (0x2), region = 86 }

// kernel: simple_ae_unet_forward.20
= control target key start
LH: loop header
LB: loop body
LE: loop exit
PB: predicated region body
PF: predicated region fallthrough
CT: control target
= control target key end

     0   :  { %s1277_s12 = smov 0   ;;  %s1279_s13 = smov 0   ;;  %s1442_s0 = inlined_call_operand.vmem [shape: bf16[2,4,4,32], index: 0, kind: input, shape index: {}]   ;;  %s1443_s1 = inlined_call_operand.vmem [shape: bf16[9,32,32], index: 1, kind: input, shape index: {}]   ;;  %s1444_s2 = inlined_call_operand.vmem [shape: f32[1,32], index: 2, kind: input, shape index: {}]   ;;  %s1445_s3 = inlined_call_operand.vmem [shape: bf16[2,2,2,32], index: 3, kind: output, shape index: {}]  }
   0x1   :  { %s1281_s14 = smov 0  }
   0x2 LB: > { %s25_s15 = sadd.s32 1, %s1245_s13  ;;  %p958_p0 = scmp.ge.s32.totalorder %s1249_s14, 1  ;;  %s1249_s14 = sphi %s1281_s14, %s13_s14   ;;  %s1245_s13 = sphi %s1279_s13, %s1447_s13   ;;  %s1241_s12 = sphi %s1277_s12, %s1446_s12  }
   0x3   : > { %p27_p1 = scmp.ge.s32.totalorder %s25_s15, 2  ;;  %p151_p2 = scmp.lt.s32.totalorder %s1249_s14, 3 }
   0x5   : > { %s1449_s15 = smov (%p27_p1, %s25_s15), 0  ;;  %p152_p3 = pnand %p958_p0, %p151_p2 }
   0x6   : > { %p178_p4 = scmp.lt.s32.totalorder (!%p152_p3), %s1241_s12, 1  ;;  %v1298_v0 = vld [vmem:[%s1444_s2] ss:$0 sm:$0xff] (!%p152_p3)  ;;  %s1310_s26 = smov (!%p152_p3), 0  }
   0x7   : > { %155 = sbr.rel (%p152_p3) target bundleno = 318 (0x13e), region = 32 }
   0xe   : > { %s1451_s12 = smov (!%p178_p4, %s1241_s12), 1 }
   0xf   : > { %s1039_s18 = sshll.u32 %s1451_s12, 3  ;;  %s961_s19 = sshll.u32 %s1451_s12, 1 }
  0x10   : > { %s1303_s22 = scalar_lea.vmem %s1442_s0, %s1039_s18  ;;  %s1308_s25 = scalar_lea.vmem %s1445_s3, %s961_s19 }
  0x11 LB: >> { %v1203_v1 = vld [vmem:[%s1443_s1] sm:$0xff]   ;;  %v1255_v2 = vmov 0.0   ;;  %v1205_v4 = vld [vmem:[%s1443_s1 + $0x8] sm:$0xff]   ;;  %vm1256_vm0 = vmmov 0   ;;  %s963_s6 = sshll.u32 %s1253_s26, 1  ;;  %vm227_vm1 = vcmask 261120   ;;  %s1253_s26 = sphi %s1310_s26, %s206_s26  }
  0x12   : >> { %1067 = vmatprep.subr.bf16.mxu1 %v1255_v2  ;;  %1099 = vmatprep.subr.bf16.mxu0 %v1255_v2  ;;  %v1204_v3 = vld [vmem:[%s1443_s1 + $0x40] sm:$0xff]   ;;  %v1206_v5 = vld [vmem:[%s1443_s1 + $0x48] sm:$0xff]   ;;  %s1334_s9 = scalar_lea.vmem %s1303_s22, %s963_s6  ;;  %v1208_v11 = vld [vmem:[%s1443_s1 + $0x10] sm:$0xff]   ;;  %vm857_vm2 = vcmask 253952  }
  0x13   : >> { %1068 = vmatpush3.bf16.msra.mxu1 %v1203_v1  ;;  %1071 = vmatprep.mubr.msk.bf16.mxu1 %vm1256_vm0, %v1255_v2  ;;  %v997_v6 = vld.sshfl [vmem:[%s1334_s9 + $0x2] sm:$0x3 pattern:$0x76325410]  ;;  %v210_v9 = vld [vmem:[%s1334_s9] sm:$0x1] }
  0x14   : >> { %1100 = vmatpush3.bf16.msra.mxu0 %v1204_v3  ;;  %1069 = vmatprep.subr.bf16.mxu1 %v1255_v2  ;;  %v500_v7 = vshrl.u32 %v997_v6, 16  ;;  %v502_v8 = vshll.u32 %v997_v6, 16  ;;  %v1207_v12 = vld [vmem:[%s1443_s1 + $0x50] sm:$0xff]   ;;  %v1210_v15 = vld [vmem:[%s1443_s1 + $0x18] sm:$0xff]   ;;  %v1212_v22 = vld [vmem:[%s1443_s1 + $0x20] sm:$0xff]  }
  0x15   : >> { %1101 = vmatprep.subr.bf16.mxu0 %v1255_v2  ;;  %1103 = vmatprep.mubr.msk.bf16.mxu0 %vm1256_vm0, %v1255_v2  ;;  %v971_v14 = vld.sshfl [vmem:[%s1334_s9] sm:$0x3 pattern:$0x76325410]  ;;  %v1209_v17 = vld [vmem:[%s1443_s1 + $0x58] sm:$0xff]   ;;  %v1214_v25 = vld [vmem:[%s1443_s1 + $0x28] sm:$0xff]  }
  0x16   : >> { %v504_v10 = vrot.slane %v502_v8, 1  ;;  %v289_v16 = vshll.u32 %v971_v14, 16  ;;  %v287_v18 = vshrl.u32 %v971_v14, 16  ;;  %v1211_v24 = vld [vmem:[%s1443_s1 + $0x60] sm:$0xff]   ;;  %v1213_v26 = vld [vmem:[%s1443_s1 + $0x68] sm:$0xff]   ;;  %v1216_v29 = vld [vmem:[%s1443_s1 + $0x30] sm:$0xff]  }
  0x17   : >> { %1070 = vmatpush3.bf16.msra.mxu1 %v1205_v4  ;;  %v1006_v20 = vld.sshfl [vmem:[%s1334_s9 + $0x2] sm:$0x2 pattern:$0x76325410]  ;;  %v1011_v30 = vld [vmem:[%s1334_s9 + $0x4] sm:$0x1] }
  0x18   : >> { %1102 = vmatpush3.bf16.msra.mxu0 %v1206_v5  ;;  %1075 = vmatprep.subr.bf16.mxu1 %v1255_v2  ;;  %v505_v13 = vor.u32 %v504_v10, %v500_v7  ;;  %v291_v19 = vrot.slane %v289_v16, 1  ;;  %v576_v23 = vrot.slane %v1006_v20, 1  ;;  %v979_v27 = vld.sshfl [vmem:[%s1334_s9] sm:$0x2 pattern:$0x76325410] }
  0x19   : >> { %1107 = vmatprep.subr.bf16.mxu0 %v1255_v2  ;;  %v363_v28 = vrot.slane %v979_v27, 1  ;;  %v1215_v31 = vld [vmem:[%s1443_s1 + $0x70] sm:$0xff]   ;;  %v1024_v32 = vld.sshfl [vmem:[%s1334_s9 + $0x4] sm:$0x3 pattern:$0x76325410] }
  0x1a   : >> { %1072 = vmatmul.mubr.msk.bf16.vlgmr.msra.gmra.mrb[0].mxu1 %vm227_vm1, %v210_v9  ;;  %v292_v21 = vor.u32 %v291_v19, %v287_v18  ;;  %v1218_v33 = vld [vmem:[%s1443_s1 + $0x38] sm:$0xff]   ;;  %v715_v34 = vshll.u32 %v1024_v32, 16  ;;  %v713_v36 = vshrl.u32 %v1024_v32, 16  ;;  %v984_v38 = vld [vmem:[%s1334_s9 + $0x2] sm:$0x1]  ;;  %v1220_v41 = vld [vmem:[%s1443_s1 + $0x88] sm:$0xff]  }
  0x1b   : >> { %1076 = vmatpush3.bf16.msra.mxu1 %v1208_v11  ;;  %1079 = vmatprep.mubr.msk.bf16.mxu1 %vm1256_vm0, %v1255_v2  ;;  %v1217_v35 = vld [vmem:[%s1443_s1 + $0x78] sm:$0xff]   ;;  %v1219_v40 = vld [vmem:[%s1443_s1 + $0x80] sm:$0xff]  }
  0x1c   : >> { %1104 = vmatmul.mubr.msk.bf16.vlgmr.msra.gmra.mrb[0].mxu0 %vm227_vm1, %v505_v13  ;;  %1077 = vmatprep.subr.bf16.mxu1 %v1255_v2  ;;  %v717_v37 = vrot.slane %v715_v34, 1  ;;  %v1033_v42 = vld.sshfl [vmem:[%s1334_s9 + $0x4] sm:$0x2 pattern:$0x76325410]  ;;  %s856_s9 = scalar_lea.vmem %s1308_s25, %s1253_s26  ;;  %s206_s26 = sadd.s32 1, %s1253_s26  }
  0x1d   : >> { %1108 = vmatpush3.bf16.msra.mxu0 %v1207_v12  ;;  %1111 = vmatprep.mubr.msk.bf16.mxu0 %vm1256_vm0, %v1255_v2  ;;  %v789_v43 = vrot.slane %v1033_v42, 1  ;;  %p203_p5 = scmp.ge.s32.totalorder %s206_s26, 2  }
  0x1e   : >> { %1109 = vmatprep.subr.bf16.mxu0 %v1255_v2  ;;  %v718_v39 = vor.u32 %v717_v37, %v713_v36 }
  0x1f   : >> { %1078 = vmatpush3.bf16.msra.mxu1 %v1210_v15 }
  0x20   : >> { %1083 = vmatprep.subr.bf16.mxu1 %v1255_v2 }
  0x21   : >> { %1110 = vmatpush3.bf16.msra.mxu0 %v1209_v17 }
  0x22   : >> { %1115 = vmatprep.subr.bf16.mxu0 %v1255_v2 }
  0x26   : >> { %1080 = vmatmul.mubr.msk.bf16.vlgmr.msra.gmra.mrb[0].mxu1 %vm227_vm1, %v292_v21 }
  0x27   : >> { %1084 = vmatpush3.bf16.msra.mxu1 %v1212_v22  ;;  %1087 = vmatprep.mubr.msk.bf16.mxu1 %vm1256_vm0, %v1255_v2 }
  0x28   : >> { %1112 = vmatmul.mubr.msk.bf16.vlgmr.msra.gmra.mrb[0].mxu0 %vm227_vm1, %v576_v23  ;;  %1085 = vmatprep.subr.bf16.mxu1 %v1255_v2 }
  0x29   : >> { %1116 = vmatpush3.bf16.msra.mxu0 %v1211_v24  ;;  %1119 = vmatprep.mubr.msk.bf16.mxu0 %vm1256_vm0, %v1255_v2 }
  0x2a   : >> { %1117 = vmatprep.subr.bf16.mxu0 %v1255_v2 }
  0x2b   : >> { %1086 = vmatpush3.bf16.msra.mxu1 %v1214_v25 }
  0x2c   : >> { %1091 = vmatprep.subr.bf16.mxu1 %v1255_v2 }
  0x2d   : >> { %1118 = vmatpush3.bf16.msra.mxu0 %v1213_v26 }
  0x2e   : >> { %1123 = vmatprep.subr.bf16.mxu0 %v1255_v2 }
  0x32   : >> { %1088 = vmatmul.mubr.msk.bf16.vlgmr.msra.gmra.mrb[0].mxu1 %vm227_vm1, %v363_v28 }
  0x33   : >> { %1092 = vmatpush3.bf16.msra.mxu1 %v1216_v29  ;;  %1095 = vmatprep.mubr.msk.bf16.mxu1 %vm1256_vm0, %v1255_v2 }
  0x34   : >> { %1120 = vmatmul.mubr.msk.bf16.vlgmr.msra.gmra.mrb[0].mxu0 %vm227_vm1, %v1011_v30  ;;  %1093 = vmatprep.subr.bf16.mxu1 %v1255_v2 }
  0x35   : >> { %1124 = vmatpush3.bf16.msra.mxu0 %v1215_v31  ;;  %1127 = vmatprep.mubr.msk.bf16.mxu0 %vm1256_vm0, %v1255_v2 }
  0x36   : >> { %1125 = vmatprep.subr.bf16.mxu0 %v1255_v2 }
  0x37   : >> { %1094 = vmatpush3.bf16.msra.mxu1 %v1218_v33 }
  0x39   : >> { %1126 = vmatpush3.bf16.msra.mxu0 %v1217_v35 }
  0x3a   : >> { %1131 = vmatprep.subr.bf16.mxu0 %v1255_v2 }
  0x3e   : >> { %1096 = vmatmul.mubr.msk.bf16.vlgmr.msra.gmra.mrb[0].mxu1 %vm227_vm1, %v984_v38 }
  0x40   : >> { %1128 = vmatmul.mubr.msk.bf16.vlgmr.msra.gmra.mrb[0].mxu0 %vm227_vm1, %v718_v39 }
  0x41   : >> { %1132 = vmatpush3.bf16.msra.mxu0 %v1219_v40  ;;  %1135 = vmatprep.mubr.msk.bf16.mxu0 %vm1256_vm0, %v1255_v2 }
  0x42   : >> { %1133 = vmatprep.subr.bf16.mxu0 %v1255_v2 }
  0x45   : >> { %1134 = vmatpush3.bf16.msra.mxu0 %v1220_v41 }
  0x4c   : >> { %1136 = vmatmul.mubr.msk.bf16.vlgmr.msra.gmra.mrb[0].mxu0 %vm227_vm1, %v789_v43 }
 0x111   : >> { %v478_v44 = vpop.f32.mrb[0].mxu1 }
 0x112   : >> { %v1097_v45 = vpop.f32.mrb[1].mxu1  ;;  %v1139_v48 = vadd.f32 %v1298_v0, %v478_v44 }
 0x113   : >> { %v481_v46 = vpop.f32.mrb[2].mxu1 }
 0x114   : >> { %v1098_v47 = vpop.f32.mrb[3].mxu1 }
 0x11f   : >> { %v839_v49 = vpop.f32.mrb[0].mxu0 }
 0x120   : >> { %v1140_v50 = vadd.f32 %v1139_v48, %v839_v49  ;;  %v1137_v51 = vpop.f32.mrb[1].mxu0 }
 0x121   : >> { %v842_v52 = vpop.f32.mrb[2].mxu0 }
 0x122   : >> { %v847_v53 = vmul.f32 0.044715, %v1140_v50  ;;  %v1138_v54 = vpop.f32.mrb[3].mxu0  ;;  %v846_v60 = vmul.f32 0.5, %v1140_v50 }
 0x124   : >> { %v848_v55 = vmul.f32 %v1140_v50, %v847_v53 }
 0x126   : >> { %v849_v56 = vmul.f32 %v1140_v50, %v848_v55 }
 0x128   : >> { %v850_v57 = vadd.f32 %v1140_v50, %v849_v56 }
 0x12a   : >> { %v851_v58 = vmul.f32 0.7978846, %v850_v57 }
 0x12c   : >> { %1221 = vtanh.f32 %v851_v58 }
 0x136   : >> { %v1222_v59 = vpop.eup %1221 }
 0x137   : >> { %v853_v61 = vadd.f32 1.0, %v1222_v59  ;;  %205 = sbr.rel (!%p203_p5) target bundleno = 17 (0x11), region = 81 }
 0x139   : >> { %v854_v62 = vmul.f32 %v853_v61, %v846_v60 }
 0x13b   : >> { %v855_v63 = vpack.c.bf16 %v854_v62, %v854_v62 }
 0x13d   : >> { %858 = vst.msk [vmem:[%s856_s9] sm:$0x1] %vm857_vm2, %v855_v63 }
 0x13e PF: > { %s13_s14 = sadd.s32 1, %s1249_s14   ;;  %s1446_s12 = smov %s1245_s13 }
 0x13f   : > { %p10_p6 = scmp.ge.s32.totalorder %s13_s14, 4   ;;  %s1447_s13 = smov %s1449_s15 }
 0x141   :  { %12 = sbr.rel (!%p10_p6) target bundleno = 2 (0x2), region = 92 }

// kernel: simple_ae_unet_forward.21
= control target key start
LH: loop header
LB: loop body
LE: loop exit
PB: predicated region body
PF: predicated region fallthrough
CT: control target
= control target key end

     0   :  { %s1059_s12 = smov 0   ;;  %s1061_s13 = smov 0   ;;  %s1239_s0 = inlined_call_operand.vmem [shape: bf16[2,2,2,128], index: 0, kind: input, shape index: {}]   ;;  %s1240_s1 = inlined_call_operand.vmem [shape: bf16[4,128,64], index: 1, kind: input, shape index: {}]   ;;  %s1241_s2 = inlined_call_operand.vmem [shape: f32[1,64], index: 2, kind: input, shape index: {}]   ;;  %s1242_s3 = inlined_call_operand.vmem [shape: bf16[2,1,1,64], index: 3, kind: output, shape index: {}]  }
   0x1   :  { %s1063_s14 = smov 0  }
   0x2 LB: > { %s25_s15 = sadd.s32 1, %s1030_s13  ;;  %p740_p0 = scmp.ge.s32.totalorder %s1034_s14, 1  ;;  %s1034_s14 = sphi %s1063_s14, %s13_s14   ;;  %s1030_s13 = sphi %s1061_s13, %s1244_s13   ;;  %s1026_s12 = sphi %s1059_s12, %s1243_s12  }
   0x3   : > { %p27_p1 = scmp.ge.s32.totalorder %s25_s15, 2  ;;  %p150_p2 = scmp.lt.s32.totalorder %s1034_s14, 3 }
   0x5   : > { %s1246_s15 = smov (%p27_p1, %s25_s15), 0  ;;  %p151_p3 = pnand %p740_p0, %p150_p2 }
   0x6   : > { %v978_v0 = vld [vmem:[%s1240_s1] sm:$0xff] (!%p151_p3)   ;;  %v1036_v1 = vmov (!%p151_p3), 0.0   ;;  %v980_v3 = vld [vmem:[%s1240_s1 + $0x8] sm:$0xff] (!%p151_p3)   ;;  %vm1037_vm0 = vmmov (!%p151_p3), 0   ;;  %v982_v5 = vld [vmem:[%s1240_s1 + $0x10] sm:$0xff] (!%p151_p3)   ;;  %p174_p4 = scmp.lt.s32.totalorder (!%p151_p3), %s1026_s12, 1  ;;  %v314_v27 = vlaneseq (!%p151_p3) }
   0x7   : > { %154 = sbr.rel (%p151_p3) target bundleno = 316 (0x13c), region = 32  ;;  %861 = vmatprep.subr.bf16.mxu1 (!%p151_p3), %v1036_v1  ;;  %901 = vmatprep.subr.bf16.mxu0 (!%p151_p3), %v1036_v1  ;;  %v979_v2 = vld [vmem:[%s1240_s1 + $0x80] sm:$0xff] (!%p151_p3)   ;;  %v981_v4 = vld [vmem:[%s1240_s1 + $0x88] sm:$0xff] (!%p151_p3)   ;;  %v983_v6 = vld [vmem:[%s1240_s1 + $0x90] sm:$0xff] (!%p151_p3)   ;;  %v1038_v25 = vmov (!%p151_p3), 1966171168  }
   0x8   : > { %862 = vmatpush3.bf16.msra.mxu1 (!%p151_p3), %v978_v0  ;;  %877 = vmatprep.mubr.msk.bf16.mxu1 (!%p151_p3), %vm1037_vm0, %v1036_v1  ;;  %v984_v7 = vld [vmem:[%s1240_s1 + $0x18] sm:$0xff] (!%p151_p3)   ;;  %v986_v9 = vld [vmem:[%s1240_s1 + $0x20] sm:$0xff] (!%p151_p3)   ;;  %v988_v11 = vld [vmem:[%s1240_s1 + $0x28] sm:$0xff] (!%p151_p3)   ;;  %v312_v26 = vunpack.c.l.s4 (!%p151_p3), %v1038_v25  ;;  %v315_v31 = vshrl.u32 (!%p151_p3), %v314_v27, 7  ;;  %vm662_vm1 = vcmask (!%p151_p3), 516096  }
   0x9   : > { %902 = vmatpush3.bf16.msra.mxu0 (!%p151_p3), %v979_v2  ;;  %863 = vmatprep.subr.bf16.mxu1 (!%p151_p3), %v1036_v1  ;;  %v985_v8 = vld [vmem:[%s1240_s1 + $0x98] sm:$0xff] (!%p151_p3)   ;;  %v987_v10 = vld [vmem:[%s1240_s1 + $0xa0] sm:$0xff] (!%p151_p3)   ;;  %v989_v12 = vld [vmem:[%s1240_s1 + $0xa8] sm:$0xff] (!%p151_p3)   ;;  %vm663_vm2 = vsmask.f32 (!%p151_p3), 256 }
   0xa   : > { %903 = vmatprep.subr.bf16.mxu0 (!%p151_p3), %v1036_v1  ;;  %917 = vmatprep.mubr.msk.bf16.mxu0 (!%p151_p3), %vm1037_vm0, %v1036_v1  ;;  %v990_v13 = vld [vmem:[%s1240_s1 + $0x30] sm:$0xff] (!%p151_p3)   ;;  %v992_v15 = vld [vmem:[%s1240_s1 + $0x38] sm:$0xff] (!%p151_p3)   ;;  %v994_v18 = vld [vmem:[%s1240_s1 + $0x40] sm:$0xff] (!%p151_p3)   ;;  %v313_v30 = vunpack.c.0.s8 (!%p151_p3), %v312_v26 }
   0xb   : > { %v991_v14 = vld [vmem:[%s1240_s1 + $0xb0] sm:$0xff] (!%p151_p3)   ;;  %v993_v16 = vld [vmem:[%s1240_s1 + $0xb8] sm:$0xff] (!%p151_p3)   ;;  %v995_v20 = vld [vmem:[%s1240_s1 + $0xc0] sm:$0xff] (!%p151_p3)  }
   0xc   : > { %864 = vmatpush3.bf16.msra.mxu1 (!%p151_p3), %v980_v3  ;;  %v996_v21 = vld [vmem:[%s1240_s1 + $0x48] sm:$0xff] (!%p151_p3)   ;;  %v998_v23 = vld [vmem:[%s1240_s1 + $0x50] sm:$0xff] (!%p151_p3)   ;;  %v1000_v28 = vld [vmem:[%s1240_s1 + $0x58] sm:$0xff] (!%p151_p3)   ;;  %v316_v34 = vsub.s32 (!%p151_p3), %v313_v30, %v315_v31 }
   0xd   : > { %904 = vmatpush3.bf16.msra.mxu0 (!%p151_p3), %v981_v4  ;;  %865 = vmatprep.subr.bf16.mxu1 (!%p151_p3), %v1036_v1  ;;  %v997_v22 = vld [vmem:[%s1240_s1 + $0xc8] sm:$0xff] (!%p151_p3)   ;;  %v999_v24 = vld [vmem:[%s1240_s1 + $0xd0] sm:$0xff] (!%p151_p3)   ;;  %v1001_v29 = vld [vmem:[%s1240_s1 + $0xd8] sm:$0xff] (!%p151_p3)  }
   0xe   : > { %905 = vmatprep.subr.bf16.mxu0 %v1036_v1  ;;  %s1248_s12 = smov (!%p174_p4, %s1026_s12), 1  ;;  %v1002_v32 = vld [vmem:[%s1240_s1 + $0x60] sm:$0xff]   ;;  %v1004_v35 = vld [vmem:[%s1240_s1 + $0x68] sm:$0xff]   ;;  %v1006_v39 = vld [vmem:[%s1240_s1 + $0x70] sm:$0xff]  }
   0xf   : > { %s741_s19 = sshll.u32 %s1248_s12, 1  ;;  %v1003_v33 = vld [vmem:[%s1240_s1 + $0xe0] sm:$0xff]   ;;  %v1005_v36 = vld [vmem:[%s1240_s1 + $0xe8] sm:$0xff]   ;;  %v1007_v40 = vld [vmem:[%s1240_s1 + $0xf0] sm:$0xff]  }
  0x10   : > { %866 = vmatpush3.bf16.msra.mxu1 %v982_v5  ;;  %s177_s24 = scalar_lea.vmem %s1239_s0, %s741_s19  ;;  %v1008_v43 = vld [vmem:[%s1240_s1 + $0x78] sm:$0xff]   ;;  %v185_v47 = vld [vmem:[%s1241_s2] sm:$0x1]  ;;  %s183_s19 = scalar_lea.vmem %s1242_s3, %s1248_s12  ;;  %vm664_vm3 = vmand %vm662_vm1, %vm663_vm2 }
  0x11   : > { %906 = vmatpush3.bf16.msra.mxu0 %v983_v6  ;;  %867 = vmatprep.subr.bf16.mxu1 %v1036_v1  ;;  %v187_v17 = vld [vmem:[%s177_s24] sm:$0x1]  ;;  %v774_v19 = vld [vmem:[%s177_s24 + $0x1] sm:$0x1]  ;;  %v1009_v44 = vld [vmem:[%s1240_s1 + $0xf8] sm:$0xff]  }
  0x12   : > { %907 = vmatprep.subr.bf16.mxu0 %v1036_v1  ;;  %v317_v37 = vrot.slane %v187_v17, %v316_v34  ;;  %v551_v38 = vrot.slane %v774_v19, %v316_v34  ;;  %v665_v3 = vld [vmem:[%s183_s19] sm:$0x1] }
  0x14   : > { %868 = vmatpush3.bf16.msra.mxu1 %v984_v7  ;;  %v324_v41 = vrot.slane %v317_v37, %v316_v34  ;;  %v558_v42 = vrot.slane %v551_v38, %v316_v34 }
  0x15   : > { %908 = vmatpush3.bf16.msra.mxu0 %v985_v8  ;;  %869 = vmatprep.subr.bf16.mxu1 %v1036_v1 }
  0x16   : > { %909 = vmatprep.subr.bf16.mxu0 %v1036_v1  ;;  %v326_v45 = vshrl.u32 %v324_v41, 16  ;;  %v560_v46 = vshrl.u32 %v558_v42, 16 }
  0x18   : > { %870 = vmatpush3.bf16.msra.mxu1 %v986_v9 }
  0x19   : > { %910 = vmatpush3.bf16.msra.mxu0 %v987_v10  ;;  %871 = vmatprep.subr.bf16.mxu1 %v1036_v1 }
  0x1a   : > { %911 = vmatprep.subr.bf16.mxu0 %v1036_v1 }
  0x1c   : > { %872 = vmatpush3.bf16.msra.mxu1 %v988_v11 }
  0x1d   : > { %912 = vmatpush3.bf16.msra.mxu0 %v989_v12  ;;  %873 = vmatprep.subr.bf16.mxu1 %v1036_v1 }
  0x1e   : > { %913 = vmatprep.subr.bf16.mxu0 %v1036_v1 }
  0x20   : > { %874 = vmatpush3.bf16.msra.mxu1 %v990_v13 }
  0x21   : > { %914 = vmatpush3.bf16.msra.mxu0 %v991_v14  ;;  %875 = vmatprep.subr.bf16.mxu1 %v1036_v1 }
  0x22   : > { %915 = vmatprep.subr.bf16.mxu0 %v1036_v1 }
  0x24   : > { %876 = vmatpush3.bf16.msra.mxu1 %v992_v15 }
  0x25   : > { %916 = vmatpush3.bf16.msra.mxu0 %v993_v16  ;;  %881 = vmatprep.subr.bf16.mxu1 %v1036_v1 }
  0x26   : > { %921 = vmatprep.subr.bf16.mxu0 %v1036_v1 }
  0x27   : > { %878 = vmatmul.mubr.bf16.vlgmr.msra.gmra.mrb[0].mxu1 %v187_v17 }
  0x28   : > { %882 = vmatpush3.bf16.msra.mxu1 %v994_v18  ;;  %918 = vmatmul.mubr.bf16.vlgmr.msra.gmra.mrb[0].mxu0 %v774_v19 }
  0x29   : > { %922 = vmatpush3.bf16.msra.mxu0 %v995_v20  ;;  %883 = vmatprep.subr.bf16.mxu1 %v1036_v1 }
  0x2a   : > { %923 = vmatprep.subr.bf16.mxu0 %v1036_v1  ;;  %897 = vmatprep.mubr.msk.bf16.mxu1 %vm1037_vm0, %v1036_v1 }
  0x2b   : > { %937 = vmatprep.mubr.msk.bf16.mxu0 %vm1037_vm0, %v1036_v1 }
  0x2c   : > { %884 = vmatpush3.bf16.msra.mxu1 %v996_v21 }
  0x2d   : > { %924 = vmatpush3.bf16.msra.mxu0 %v997_v22  ;;  %885 = vmatprep.subr.bf16.mxu1 %v1036_v1 }
  0x2e   : > { %925 = vmatprep.subr.bf16.mxu0 %v1036_v1 }
  0x30   : > { %886 = vmatpush3.bf16.msra.mxu1 %v998_v23 }
  0x31   : > { %926 = vmatpush3.bf16.msra.mxu0 %v999_v24  ;;  %887 = vmatprep.subr.bf16.mxu1 %v1036_v1 }
  0x32   : > { %927 = vmatprep.subr.bf16.mxu0 %v1036_v1 }
  0x34   : > { %888 = vmatpush3.bf16.msra.mxu1 %v1000_v28 }
  0x35   : > { %928 = vmatpush3.bf16.msra.mxu0 %v1001_v29  ;;  %889 = vmatprep.subr.bf16.mxu1 %v1036_v1 }
  0x36   : > { %929 = vmatprep.subr.bf16.mxu0 %v1036_v1 }
  0x38   : > { %890 = vmatpush3.bf16.msra.mxu1 %v1002_v32 }
  0x39   : > { %930 = vmatpush3.bf16.msra.mxu0 %v1003_v33  ;;  %891 = vmatprep.subr.bf16.mxu1 %v1036_v1 }
  0x3a   : > { %931 = vmatprep.subr.bf16.mxu0 %v1036_v1 }
  0x3c   : > { %892 = vmatpush3.bf16.msra.mxu1 %v1004_v35 }
  0x3d   : > { %932 = vmatpush3.bf16.msra.mxu0 %v1005_v36  ;;  %893 = vmatprep.subr.bf16.mxu1 %v1036_v1 }
  0x3e   : > { %933 = vmatprep.subr.bf16.mxu0 %v1036_v1 }
  0x40   : > { %894 = vmatpush3.bf16.msra.mxu1 %v1006_v39 }
  0x41   : > { %934 = vmatpush3.bf16.msra.mxu0 %v1007_v40  ;;  %895 = vmatprep.subr.bf16.mxu1 %v1036_v1 }
  0x42   : > { %935 = vmatprep.subr.bf16.mxu0 %v1036_v1 }
  0x44   : > { %896 = vmatpush3.bf16.msra.mxu1 %v1008_v43 }
  0x45   : > { %936 = vmatpush3.bf16.msra.mxu0 %v1009_v44 }
  0x47   : > { %898 = vmatmul.mubr.bf16.vlgmr.msra.gmra.mrb[0].mxu1 %v326_v45 }
  0x48   : > { %938 = vmatmul.mubr.bf16.vlgmr.msra.gmra.mrb[0].mxu0 %v560_v46 }
 0x11a   : > { %v411_v48 = vpop.f32.mrb[0].mxu1 }
 0x11b   : > { %v941_v49 = vadd.f32 %v411_v48, %v185_v47  ;;  %v645_v50 = vpop.f32.mrb[0].mxu0  ;;  %v899_v51 = vpop.f32.mrb[1].mxu1 }
 0x11c   : > { %v939_v52 = vpop.f32.mrb[1].mxu0  ;;  %v414_v53 = vpop.f32.mrb[2].mxu1 }
 0x11d   : > { %v942_v54 = vadd.f32 %v941_v49, %v645_v50  ;;  %v648_v55 = vpop.f32.mrb[2].mxu0  ;;  %v900_v56 = vpop.f32.mrb[3].mxu1 }
 0x11e   : > { %v940_v57 = vpop.f32.mrb[3].mxu0 }
 0x11f   : > { %v653_v58 = vmul.f32 0.044715, %v942_v54  ;;  %v652_v0 = vmul.f32 0.5, %v942_v54 }
 0x121   : > { %v654_v59 = vmul.f32 %v942_v54, %v653_v58 }
 0x123   : > { %v655_v60 = vmul.f32 %v942_v54, %v654_v59 }
 0x125   : > { %v656_v61 = vadd.f32 %v942_v54, %v655_v60 }
 0x127   : > { %v657_v62 = vmul.f32 0.7978846, %v656_v61 }
 0x129   : > { %1010 = vtanh.f32 %v657_v62 }
 0x133   : > { %v1011_v63 = vpop.eup %1010 }
 0x134   : > { %v659_v1 = vadd.f32 1.0, %v1011_v63 }
 0x136   : > { %v660_v2 = vmul.f32 %v659_v1, %v652_v0 }
 0x138   : > { %v661_v4 = vpack.c.bf16 %v660_v2, %v660_v2 }
 0x13a   : > { %v666_v5 = vsel %vm664_vm3, %v661_v4, %v665_v3 }
 0x13b   : > { %667 = vst [vmem:[%s183_s19] sm:$0x1] %v666_v5 }
 0x13c PF: > { %s13_s14 = sadd.s32 1, %s1034_s14   ;;  %s1243_s12 = smov %s1030_s13 }
 0x13d   : > { %p10_p5 = scmp.ge.s32.totalorder %s13_s14, 4   ;;  %s1244_s13 = smov %s1246_s15 }
 0x13f   :  { %12 = sbr.rel (!%p10_p5) target bundleno = 2 (0x2), region = 67 }

// kernel: simple_ae_unet_forward.22
= control target key start
LH: loop header
LB: loop body
LE: loop exit
PB: predicated region body
PF: predicated region fallthrough
CT: control target
= control target key end

     0   :  { %s1144_s12 = smov 0   ;;  %s1146_s13 = smov 0   ;;  %s1273_s0 = inlined_call_operand.vmem [shape: bf16[2,4,4,16], index: 0, kind: input, shape index: {}]   ;;  %s1274_s1 = inlined_call_operand.vmem [shape: bf16[9,16,32], index: 1, kind: input, shape index: {}]   ;;  %s1275_s2 = inlined_call_operand.vmem [shape: f32[1,32], index: 2, kind: input, shape index: {}]   ;;  %s1276_s3 = inlined_call_operand.vmem [shape: bf16[2,2,2,32], index: 3, kind: output, shape index: {}]  }
   0x1   :  { %s1148_s14 = smov 0  }
   0x2 LB: > { %s25_s15 = sadd.s32 1, %s1112_s13  ;;  %p886_p0 = scmp.ge.s32.totalorder %s1116_s14, 1  ;;  %s1116_s14 = sphi %s1148_s14, %s13_s14   ;;  %s1112_s13 = sphi %s1146_s13, %s1278_s13   ;;  %s1108_s12 = sphi %s1144_s12, %s1277_s12  }
   0x3   : > { %p27_p1 = scmp.ge.s32.totalorder %s25_s15, 2  ;;  %p151_p2 = scmp.lt.s32.totalorder %s1116_s14, 3 }
   0x5   : > { %s1280_s15 = smov (%p27_p1, %s25_s15), 0  ;;  %p152_p3 = pnand %p886_p0, %p151_p2 }
   0x6   : > { %p178_p4 = scmp.lt.s32.totalorder (!%p152_p3), %s1108_s12, 1  ;;  %v1165_v0 = vld [vmem:[%s1275_s2] ss:$0 sm:$0xff] (!%p152_p3)  ;;  %s1177_s26 = smov (!%p152_p3), 0  }
   0x7   : > { %155 = sbr.rel (%p152_p3) target bundleno = 316 (0x13c), region = 32 }
   0xe   : > { %s1282_s12 = smov (!%p178_p4, %s1108_s12), 1 }
   0xf   : > { %s942_s18 = sshll.u32 %s1282_s12, 3  ;;  %s889_s19 = sshll.u32 %s1282_s12, 1 }
  0x10   : > { %s1170_s22 = scalar_lea.vmem %s1273_s0, %s942_s18  ;;  %s1175_s25 = scalar_lea.vmem %s1276_s3, %s889_s19 }
  0x11 LB: >> { %v1079_v1 = vld [vmem:[%s1274_s1] sm:$0xff]   ;;  %v1122_v2 = vmov 0.0   ;;  %vm219_vm0 = vcmask 130048   ;;  %vm1123_vm1 = vmmov 0   ;;  %s891_s29 = sshll.u32 %s1120_s26, 1  ;;  %v1082_v8 = vld [vmem:[%s1274_s1 + $0x8] sm:$0xff]   ;;  %s784_s24 = scalar_lea.vmem %s1175_s25, %s1120_s26  ;;  %s1120_s26 = sphi %s1177_s26, %s206_s26  }
  0x12   : >> { %961 = vmatprep.subr.bf16.mxu1 %v1122_v2  ;;  %985 = vmatprep.subr.bf16.mxu0 %v1122_v2  ;;  %v1080_v3 = vld [vmem:[%s1274_s1 + $0x20] sm:$0xff]   ;;  %s1194_s5 = scalar_lea.vmem %s1170_s22, %s891_s29  ;;  %v1081_v12 = vld [vmem:[%s1274_s1 + $0x28] sm:$0xff]   ;;  %v1084_v17 = vld [vmem:[%s1274_s1 + $0x10] sm:$0xff]   ;;  %vm785_vm2 = vcmask 253952   ;;  %s206_s26 = sadd.s32 1, %s1120_s26  }
  0x13   : >> { %962 = vmatpush3.bf16.msra.mxu1 %v1079_v1  ;;  %963 = vmatprep.mubr.msk.bf16.mxu1 %vm1123_vm1, %v1122_v2  ;;  %v210_v4 = vld [vmem:[%s1194_s5] sm:$0x1]  ;;  %v913_v5 = vld.sshfl [vmem:[%s1194_s5 + $0x2] sm:$0x3 pattern:$0x76325410] }
  0x14   : >> { %987 = vmatprep.mubr.msk.bf16.mxu0 %vm1123_vm1, %v1122_v2  ;;  %967 = vmatprep.subr.bf16.mxu1 %v1122_v2  ;;  %v466_v6 = vshrl.u32 %v913_v5, 16  ;;  %v468_v7 = vshll.u32 %v913_v5, 16  ;;  %v896_v9 = vld.sshfl [vmem:[%s1194_s5] sm:$0x3 pattern:$0x76325410] }
  0x15   : >> { %986 = vmatpush3.bf16.msra.mxu0 %v1080_v3  ;;  %v279_v11 = vshll.u32 %v896_v9, 16  ;;  %v277_v14 = vshrl.u32 %v896_v9, 16  ;;  %v919_v18 = vld.sshfl [vmem:[%s1194_s5 + $0x2] sm:$0x2 pattern:$0x76325410] }
  0x16   : >> { %964 = vmatmul.mubr.msk.bf16.vlgmr.msra.gmra.mrb[0].mxu1 %vm219_vm0, %v210_v4  ;;  %991 = vmatprep.subr.bf16.mxu0 %v1122_v2  ;;  %v470_v10 = vrot.slane %v468_v7, 1  ;;  %v534_v19 = vrot.slane %v919_v18, 1  ;;  %v1083_v20 = vld [vmem:[%s1274_s1 + $0x30] sm:$0xff]   ;;  %v1086_v23 = vld [vmem:[%s1274_s1 + $0x18] sm:$0xff]   ;;  %v923_v24 = vld [vmem:[%s1194_s5 + $0x4] sm:$0x1] }
  0x17   : >> { %969 = vmatprep.mubr.msk.bf16.mxu1 %vm1123_vm1, %v1122_v2  ;;  %968 = vmatpush3.bf16.msra.mxu1 %v1082_v8  ;;  %v281_v15 = vrot.slane %v279_v11, 1  ;;  %v901_v21 = vld.sshfl [vmem:[%s1194_s5] sm:$0x2 pattern:$0x76325410]  ;;  %v1085_v25 = vld [vmem:[%s1274_s1 + $0x38] sm:$0xff]  }
  0x18   : >> { %973 = vmatprep.subr.bf16.mxu1 %v1122_v2  ;;  %v471_v13 = vor.u32 %v470_v10, %v466_v6  ;;  %v345_v22 = vrot.slane %v901_v21, 1  ;;  %v931_v26 = vld.sshfl [vmem:[%s1194_s5 + $0x4] sm:$0x3 pattern:$0x76325410]  ;;  %p203_p5 = scmp.ge.s32.totalorder %s206_s26, 2  }
  0x19   : >> { %v282_v16 = vor.u32 %v281_v15, %v277_v14  ;;  %v657_v27 = vshll.u32 %v931_v26, 16  ;;  %v905_v28 = vld [vmem:[%s1194_s5 + $0x2] sm:$0x1]  ;;  %v655_v29 = vshrl.u32 %v931_v26, 16 }
  0x1a   : >> { %988 = vmatmul.mubr.msk.bf16.vlgmr.msra.gmra.mrb[0].mxu0 %vm219_vm0, %v471_v13  ;;  %v1087_v32 = vld [vmem:[%s1274_s1 + $0x40] sm:$0xff]  }
  0x1b   : >> { %992 = vmatpush3.bf16.msra.mxu0 %v1081_v12  ;;  %993 = vmatprep.mubr.msk.bf16.mxu0 %vm1123_vm1, %v1122_v2  ;;  %v659_v30 = vrot.slane %v657_v27, 1  ;;  %v937_v33 = vld.sshfl [vmem:[%s1194_s5 + $0x4] sm:$0x2 pattern:$0x76325410] }
  0x1c   : >> { %997 = vmatprep.subr.bf16.mxu0 %v1122_v2  ;;  %v723_v34 = vrot.slane %v937_v33, 1 }
  0x1d   : >> { %v660_v31 = vor.u32 %v659_v30, %v655_v29 }
  0x22   : >> { %970 = vmatmul.mubr.msk.bf16.vlgmr.msra.gmra.mrb[0].mxu1 %vm219_vm0, %v282_v16 }
  0x23   : >> { %974 = vmatpush3.bf16.msra.mxu1 %v1084_v17  ;;  %975 = vmatprep.mubr.msk.bf16.mxu1 %vm1123_vm1, %v1122_v2 }
  0x24   : >> { %979 = vmatprep.subr.bf16.mxu1 %v1122_v2 }
  0x26   : >> { %994 = vmatmul.mubr.msk.bf16.vlgmr.msra.gmra.mrb[0].mxu0 %vm219_vm0, %v534_v19 }
  0x27   : >> { %998 = vmatpush3.bf16.msra.mxu0 %v1083_v20  ;;  %999 = vmatprep.mubr.msk.bf16.mxu0 %vm1123_vm1, %v1122_v2 }
  0x28   : >> { %1003 = vmatprep.subr.bf16.mxu0 %v1122_v2 }
  0x2e   : >> { %976 = vmatmul.mubr.msk.bf16.vlgmr.msra.gmra.mrb[0].mxu1 %vm219_vm0, %v345_v22 }
  0x2f   : >> { %980 = vmatpush3.bf16.msra.mxu1 %v1086_v23  ;;  %981 = vmatprep.mubr.msk.bf16.mxu1 %vm1123_vm1, %v1122_v2 }
  0x32   : >> { %1000 = vmatmul.mubr.msk.bf16.vlgmr.msra.gmra.mrb[0].mxu0 %vm219_vm0, %v923_v24 }
  0x33   : >> { %1004 = vmatpush3.bf16.msra.mxu0 %v1085_v25  ;;  %1005 = vmatprep.mubr.msk.bf16.mxu0 %vm1123_vm1, %v1122_v2 }
  0x34   : >> { %1009 = vmatprep.subr.bf16.mxu0 %v1122_v2 }
  0x3a   : >> { %982 = vmatmul.mubr.msk.bf16.vlgmr.msra.gmra.mrb[0].mxu1 %vm219_vm0, %v905_v28 }
  0x3e   : >> { %1006 = vmatmul.mubr.msk.bf16.vlgmr.msra.gmra.mrb[0].mxu0 %vm219_vm0, %v660_v31 }
  0x3f   : >> { %1010 = vmatpush3.bf16.msra.mxu0 %v1087_v32  ;;  %1011 = vmatprep.mubr.msk.bf16.mxu0 %vm1123_vm1, %v1122_v2 }
  0x4a   : >> { %1012 = vmatmul.mubr.msk.bf16.vlgmr.msra.gmra.mrb[0].mxu0 %vm219_vm0, %v723_v34 }
 0x10d   : >> { %v446_v35 = vpop.f32.mrb[0].mxu1 }
 0x10e   : >> { %v983_v36 = vpop.f32.mrb[1].mxu1  ;;  %v1015_v39 = vadd.f32 %v1165_v0, %v446_v35 }
 0x10f   : >> { %v449_v37 = vpop.f32.mrb[2].mxu1 }
 0x110   : >> { %v984_v38 = vpop.f32.mrb[3].mxu1 }
 0x11d   : >> { %v767_v40 = vpop.f32.mrb[0].mxu0 }
 0x11e   : >> { %v1016_v41 = vadd.f32 %v1015_v39, %v767_v40  ;;  %v1013_v42 = vpop.f32.mrb[1].mxu0 }
 0x11f   : >> { %v770_v43 = vpop.f32.mrb[2].mxu0 }
 0x120   : >> { %v775_v44 = vmul.f32 0.044715, %v1016_v41  ;;  %v1014_v45 = vpop.f32.mrb[3].mxu0  ;;  %v774_v51 = vmul.f32 0.5, %v1016_v41 }
 0x122   : >> { %v776_v46 = vmul.f32 %v1016_v41, %v775_v44 }
 0x124   : >> { %v777_v47 = vmul.f32 %v1016_v41, %v776_v46 }
 0x126   : >> { %v778_v48 = vadd.f32 %v1016_v41, %v777_v47 }
 0x128   : >> { %v779_v49 = vmul.f32 0.7978846, %v778_v48 }
 0x12a   : >> { %1088 = vtanh.f32 %v779_v49 }
 0x134   : >> { %v1089_v50 = vpop.eup %1088 }
 0x135   : >> { %v781_v52 = vadd.f32 1.0, %v1089_v50  ;;  %205 = sbr.rel (!%p203_p5) target bundleno = 17 (0x11), region = 81 }
 0x137   : >> { %v782_v53 = vmul.f32 %v781_v52, %v774_v51 }
 0x139   : >> { %v783_v54 = vpack.c.bf16 %v782_v53, %v782_v53 }
 0x13b   : >> { %786 = vst.msk [vmem:[%s784_s24] sm:$0x1] %vm785_vm2, %v783_v54 }
 0x13c PF: > { %s13_s14 = sadd.s32 1, %s1116_s14   ;;  %s1277_s12 = smov %s1112_s13 }
 0x13d   : > { %p10_p6 = scmp.ge.s32.totalorder %s13_s14, 4   ;;  %s1278_s13 = smov %s1280_s15 }
 0x13f   :  { %12 = sbr.rel (!%p10_p6) target bundleno = 2 (0x2), region = 92 }

// kernel: simple_ae_unet_forward.24
= control target key start
LH: loop header
LB: loop body
LE: loop exit
PB: predicated region body
PF: predicated region fallthrough
CT: control target
= control target key end

     0   :  { %s1071_s12 = smov 0   ;;  %s1073_s13 = smov 0   ;;  %s1209_s0 = inlined_call_operand.vmem [shape: bf16[2,6,6,8], index: 0, kind: input, shape index: {}]   ;;  %s1210_s1 = inlined_call_operand.vmem [shape: bf16[9,8,16], index: 1, kind: input, shape index: {}]   ;;  %s1211_s2 = inlined_call_operand.vmem [shape: f32[1,16], index: 2, kind: input, shape index: {}]   ;;  %s1212_s3 = inlined_call_operand.vmem [shape: bf16[2,4,4,16], index: 3, kind: output, shape index: {}]  }
   0x1   :  { %s1075_s14 = smov 0  }
   0x2 LB: > { %s25_s15 = sadd.s32 1, %s1039_s13  ;;  %p831_p0 = scmp.ge.s32.totalorder %s1043_s14, 1  ;;  %s1043_s14 = sphi %s1075_s14, %s13_s14   ;;  %s1039_s13 = sphi %s1073_s13, %s1214_s13   ;;  %s1035_s12 = sphi %s1071_s12, %s1213_s12  }
   0x3   : > { %p27_p1 = scmp.ge.s32.totalorder %s25_s15, 2  ;;  %p151_p2 = scmp.lt.s32.totalorder %s1043_s14, 3 }
   0x5   : > { %s1216_s15 = smov (%p27_p1, %s25_s15), 0  ;;  %p152_p3 = pnand %p831_p0, %p151_p2 }
   0x6   : > { %p179_p4 = scmp.lt.s32.totalorder (!%p152_p3), %s1035_s12, 1  ;;  %v1092_v0 = vld [vmem:[%s1211_s2] ss:$0 sm:$0xff] (!%p152_p3)  ;;  %s1104_s26 = smov (!%p152_p3), 0  }
   0x7   : > { %155 = sbr.rel (%p152_p3) target bundleno = 318 (0x13e), region = 32 }
   0xe   : > { %s1218_s12 = smov (!%p179_p4, %s1035_s12), 1 }
   0xf   : > { %s974_s18 = smul.u32 24, %s1218_s12  ;;  %s871_s19 = sshll.u32 %s1218_s12, 3 }
  0x10   : > { %s1097_s22 = scalar_lea.vmem %s1212_s3, %s871_s19 }
  0x11   : > { %s1102_s25 = scalar_lea.vmem %s1209_s0, %s974_s18 }
  0x12 LB: >> { %v213_v1 = vld [vmem:[%s1210_s1] sm:$0xf]  ;;  %vm218_vm0 = vcmask 1043456   ;;  %v1049_v2 = vmov 0.0   ;;  %vm1050_vm1 = vmmov 0   ;;  %s836_s4 = sshll.u32 %s1047_s26, 2  ;;  %s1047_s26 = sphi %s1104_s26, %s208_s26  }
  0x13   : >> { %890 = vmatprep.subr.bf16.mxu1 %v1049_v2  ;;  %v220_v3 = vsel %vm218_vm0, %v213_v1, 0  ;;  %892 = vmatprep.mubr.msk.bf16.mxu1 %vm1050_vm1, %v1049_v2  ;;  %v849_v4 = vld [vmem:[%s1210_s1 + $0x10] sm:$0xf]  ;;  %vm214_vm2 = vcmask 64512   ;;  %v838_v6 = vld [vmem:[%s1210_s1 + $0x4] sm:$0xf]  ;;  %s1126_s7 = scalar_lea.vmem %s1102_s25, %s836_s4 }
  0x14   : >> { %891 = vmatpush3.bf16.msra.mxu1 %v220_v3  ;;  %914 = vmatprep.subr.bf16.mxu0 %v1049_v2  ;;  %v447_v5 = vsel %vm218_vm0, %v849_v4, 0  ;;  %v280_v7 = vsel %vm218_vm0, %v838_v6, 0  ;;  %v212_v8 = vld [vmem:[%s1126_s7] sm:$0x3]  ;;  %v853_v14 = vld [vmem:[%s1210_s1 + $0x14] sm:$0xf] }
  0x15   : >> { %915 = vmatpush3.bf16.msra.mxu0 %v447_v5  ;;  %916 = vmatprep.mubr.msk.bf16.mxu0 %vm1050_vm1, %v1049_v2  ;;  %v1009_v9 = vld [vmem:[%s1126_s7 + $0x4] ss:$0 sps:$4 sm:$0x77]   ;;  %v1010_v10 = vld [vmem:[%s1126_s7] ss:$0 sps:$4 sm:$0x77]  }
  0x16   : >> { %920 = vmatprep.subr.bf16.mxu0 %v1049_v2  ;;  %896 = vmatprep.subr.bf16.mxu1 %v1049_v2  ;;  %v437_v11 = vshrl.u32 %v1009_v9, 16  ;;  %v439_v12 = vshll.u32 %v1009_v9, 16  ;;  %v272_v13 = vshll.u32 %v1010_v10, 16  ;;  %v270_v16 = vshrl.u32 %v1010_v10, 16  ;;  %v841_v20 = vld [vmem:[%s1210_s1 + $0x8] sm:$0xf] }
  0x17   : >> { %893 = vmatmul.mubr.msk.bf16.vlgmr.msra.gmra.mrb[0].mxu1 %vm214_vm2, %v212_v8  ;;  %v501_v19 = vsel %vm218_vm0, %v853_v14, 0  ;;  %v334_v22 = vsel %vm218_vm0, %v841_v20, 0  ;;  %v1011_v23 = vld [vmem:[%s1126_s7 + $0x4] ss:$0 sps:$4 sm:$0x66]   ;;  %s868_s24 = sshll.u32 %s1047_s26, 1 }
  0x18   : >> { %897 = vmatpush3.bf16.msra.mxu1 %v280_v7  ;;  %898 = vmatprep.mubr.msk.bf16.mxu1 %vm1050_vm1, %v1049_v2  ;;  %v441_v15 = vrot.slane %v439_v12, 1  ;;  %v274_v17 = vrot.slane %v272_v13, 1  ;;  %v858_v24 = vld [vmem:[%s1210_s1 + $0x18] sm:$0xf]  ;;  %v496_v25 = vrot.slane %v1011_v23, 1  ;;  %s722_s27 = scalar_lea.vmem %s1097_s22, %s868_s24  ;;  %vm723_vm3 = vcmask 123904  }
  0x19   : >> { %902 = vmatprep.subr.bf16.mxu1 %v1049_v2  ;;  %v1012_v26 = vld [vmem:[%s1126_s7] ss:$0 sps:$4 sm:$0x66]   ;;  %v554_v27 = vsel %vm218_vm0, %v858_v24, 0  ;;  %v846_v28 = vld [vmem:[%s1210_s1 + $0xc] sm:$0xf] }
  0x1a   : >> { %v442_v18 = vor.u32 %v441_v15, %v437_v11  ;;  %v275_v21 = vor.u32 %v274_v17, %v270_v16  ;;  %v329_v29 = vrot.slane %v1012_v26, 1  ;;  %v387_v30 = vsel %vm218_vm0, %v846_v28, 0  ;;  %v861_v31 = vld [vmem:[%s1210_s1 + $0x1c] sm:$0xf]  ;;  %v857_v33 = vld [vmem:[%s1126_s7 + $0x8] sm:$0x3] }
  0x1b   : >> { %v1013_v32 = vld [vmem:[%s1126_s7 + $0x8] ss:$0 sps:$4 sm:$0x77]   ;;  %v614_v34 = vsel %vm218_vm0, %v861_v31, 0  ;;  %v845_v36 = vld [vmem:[%s1126_s7 + $0x4] sm:$0x3] }
  0x1c   : >> { %917 = vmatmul.mubr.msk.bf16.vlgmr.msra.gmra.mrb[0].mxu0 %vm214_vm2, %v442_v18  ;;  %v606_v35 = vshll.u32 %v1013_v32, 16  ;;  %v604_v37 = vshrl.u32 %v1013_v32, 16  ;;  %v865_v39 = vld [vmem:[%s1210_s1 + $0x20] sm:$0xf]  ;;  %s208_s26 = sadd.s32 1, %s1047_s26  }
  0x1d   : >> { %921 = vmatpush3.bf16.msra.mxu0 %v501_v19  ;;  %922 = vmatprep.mubr.msk.bf16.mxu0 %vm1050_vm1, %v1049_v2  ;;  %v668_v41 = vsel %vm218_vm0, %v865_v39, 0  ;;  %v1014_v42 = vld [vmem:[%s1126_s7 + $0x8] ss:$0 sps:$4 sm:$0x66]   ;;  %p205_p5 = scmp.ge.s32.totalorder %s208_s26, 4  }
  0x1e   : >> { %926 = vmatprep.subr.bf16.mxu0 %v1049_v2  ;;  %v608_v38 = vrot.slane %v606_v35, 1  ;;  %v663_v43 = vrot.slane %v1014_v42, 1 }
  0x20   : >> { %v609_v40 = vor.u32 %v608_v38, %v604_v37 }
  0x23   : >> { %899 = vmatmul.mubr.msk.bf16.vlgmr.msra.gmra.mrb[0].mxu1 %vm214_vm2, %v275_v21 }
  0x24   : >> { %903 = vmatpush3.bf16.msra.mxu1 %v334_v22  ;;  %904 = vmatprep.mubr.msk.bf16.mxu1 %vm1050_vm1, %v1049_v2 }
  0x25   : >> { %908 = vmatprep.subr.bf16.mxu1 %v1049_v2 }
  0x28   : >> { %923 = vmatmul.mubr.msk.bf16.vlgmr.msra.gmra.mrb[0].mxu0 %vm214_vm2, %v496_v25 }
  0x29   : >> { %927 = vmatpush3.bf16.msra.mxu0 %v554_v27  ;;  %928 = vmatprep.mubr.msk.bf16.mxu0 %vm1050_vm1, %v1049_v2 }
  0x2a   : >> { %932 = vmatprep.subr.bf16.mxu0 %v1049_v2 }
  0x2f   : >> { %905 = vmatmul.mubr.msk.bf16.vlgmr.msra.gmra.mrb[0].mxu1 %vm214_vm2, %v329_v29 }
  0x30   : >> { %909 = vmatpush3.bf16.msra.mxu1 %v387_v30  ;;  %910 = vmatprep.mubr.msk.bf16.mxu1 %vm1050_vm1, %v1049_v2 }
  0x34   : >> { %929 = vmatmul.mubr.msk.bf16.vlgmr.msra.gmra.mrb[0].mxu0 %vm214_vm2, %v857_v33 }
  0x35   : >> { %933 = vmatpush3.bf16.msra.mxu0 %v614_v34  ;;  %934 = vmatprep.mubr.msk.bf16.mxu0 %vm1050_vm1, %v1049_v2 }
  0x36   : >> { %938 = vmatprep.subr.bf16.mxu0 %v1049_v2 }
  0x3b   : >> { %911 = vmatmul.mubr.msk.bf16.vlgmr.msra.gmra.mrb[0].mxu1 %vm214_vm2, %v845_v36 }
  0x40   : >> { %935 = vmatmul.mubr.msk.bf16.vlgmr.msra.gmra.mrb[0].mxu0 %vm214_vm2, %v609_v40 }
  0x41   : >> { %939 = vmatpush3.bf16.msra.mxu0 %v668_v41  ;;  %940 = vmatprep.mubr.msk.bf16.mxu0 %vm1050_vm1, %v1049_v2 }
  0x4c   : >> { %941 = vmatmul.mubr.msk.bf16.vlgmr.msra.gmra.mrb[0].mxu0 %vm214_vm2, %v663_v43 }
 0x10e   : >> { %v423_v44 = vpop.f32.mrb[0].mxu1 }
 0x10f   : >> { %v912_v45 = vpop.f32.mrb[1].mxu1  ;;  %v944_v48 = vadd.f32 %v1092_v0, %v423_v44 }
 0x110   : >> { %v426_v46 = vpop.f32.mrb[2].mxu1 }
 0x111   : >> { %v913_v47 = vpop.f32.mrb[3].mxu1 }
 0x11f   : >> { %v704_v49 = vpop.f32.mrb[0].mxu0 }
 0x120   : >> { %v945_v50 = vadd.f32 %v944_v48, %v704_v49  ;;  %v942_v51 = vpop.f32.mrb[1].mxu0 }
 0x121   : >> { %v707_v52 = vpop.f32.mrb[2].mxu0 }
 0x122   : >> { %v712_v53 = vmul.f32 0.044715, %v945_v50  ;;  %v943_v54 = vpop.f32.mrb[3].mxu0  ;;  %v711_v60 = vmul.f32 0.5, %v945_v50 }
 0x124   : >> { %v713_v55 = vmul.f32 %v945_v50, %v712_v53 }
 0x126   : >> { %v714_v56 = vmul.f32 %v945_v50, %v713_v55 }
 0x128   : >> { %v715_v57 = vadd.f32 %v945_v50, %v714_v56 }
 0x12a   : >> { %v716_v58 = vmul.f32 0.7978846, %v715_v57 }
 0x12c   : >> { %1015 = vtanh.f32 %v716_v58 }
 0x136   : >> { %v1016_v59 = vpop.eup %1015 }
 0x137   : >> { %v718_v61 = vadd.f32 1.0, %v1016_v59  ;;  %207 = sbr.rel (!%p205_p5) target bundleno = 18 (0x12), region = 81 }
 0x139   : >> { %v719_v62 = vmul.f32 %v718_v61, %v711_v60 }
 0x13b   : >> { %v720_v63 = vpack.c.bf16 %v719_v62, %v719_v62 }
 0x13d   : >> { %724 = vst.msk [vmem:[%s722_s27] sm:$0x3] %vm723_vm3, %v720_v63 }
 0x13e PF: > { %s13_s14 = sadd.s32 1, %s1043_s14   ;;  %s1213_s12 = smov %s1039_s13 }
 0x13f   : > { %p10_p6 = scmp.ge.s32.totalorder %s13_s14, 4   ;;  %s1214_s13 = smov %s1216_s15 }
 0x141   :  { %12 = sbr.rel (!%p10_p6) target bundleno = 2 (0x2), region = 92 }

// kernel: simple_ae_unet_forward.28
= control target key start
LH: loop header
LB: loop body
LE: loop exit
PB: predicated region body
PF: predicated region fallthrough
CT: control target
= control target key end

     0   :  { %s1207_s12 = smov 0   ;;  %s1209_s13 = smov 0   ;;  %s1358_s0 = inlined_call_operand.vmem [shape: bf16[2,18,18,2], index: 0, kind: input, shape index: {}]   ;;  %s1359_s1 = inlined_call_operand.vmem [shape: bf16[9,2,2], index: 1, kind: input, shape index: {}]   ;;  %s1360_s2 = inlined_call_operand.vmem [shape: f32[1,2], index: 2, kind: input, shape index: {}]   ;;  %s1361_s3 = inlined_call_operand.vmem [shape: bf16[2,16,16,2], index: 3, kind: output, shape index: {}]  }
   0x1   :  { %s1211_s14 = smov 0  }
   0x2 LB: > { %s25_s15 = sadd.s32 1, %s1175_s13  ;;  %p940_p0 = scmp.ge.s32.totalorder %s1179_s14, 1  ;;  %s1179_s14 = sphi %s1211_s14, %s13_s14   ;;  %s1175_s13 = sphi %s1209_s13, %s1363_s13   ;;  %s1171_s12 = sphi %s1207_s12, %s1362_s12  }
   0x3   : > { %p27_p1 = scmp.ge.s32.totalorder %s25_s15, 2  ;;  %p151_p2 = scmp.lt.s32.totalorder %s1179_s14, 3 }
   0x5   : > { %s1365_s15 = smov (%p27_p1, %s25_s15), 0  ;;  %p152_p3 = pnand %p940_p0, %p151_p2 }
   0x6   : > { %p180_p4 = scmp.lt.s32.totalorder (!%p152_p3), %s1171_s12, 1  ;;  %v1228_v0 = vld [vmem:[%s1360_s2] ss:$0 sm:$0xff] (!%p152_p3)  ;;  %s1240_s26 = smov (!%p152_p3), 0  }
   0x7   : > { %155 = sbr.rel (%p152_p3) target bundleno = 323 (0x143), region = 32 }
   0xe   : > { %s1367_s12 = smov (!%p180_p4, %s1171_s12), 1 }
   0xf   : > { %s1102_s18 = smul.u32 216, %s1367_s12  ;;  %s993_s19 = sshll.u32 %s1367_s12, 7 }
  0x10   : > { %s1233_s22 = scalar_lea.vmem %s1361_s3, %s993_s19 }
  0x11   : > { %s1238_s25 = scalar_lea.vmem %s1358_s0, %s1102_s18 }
  0x12 LB: >> { %v217_v1 = vld [vmem:[%s1359_s1] sm:$0x1]  ;;  %vm227_vm0 = vcmask 1040384   ;;  %v1185_v2 = vmov 0.0   ;;  %vm1186_vm1 = vmmov 0   ;;  %s994_s4 = smul.u32 12, %s1183_s26  ;;  %s1183_s26 = sphi %s1240_s26, %s210_s26  }
  0x13   : >> { %1016 = vmatprep.subr.bf16.mxu1 %v1185_v2  ;;  %v229_v3 = vsel %vm227_vm0, %v217_v1, 0  ;;  %1018 = vmatprep.mubr.msk.bf16.mxu1 %vm1186_vm1, %v1185_v2  ;;  %v963_v4 = vld [vmem:[%s1359_s1 + $0x4] sm:$0x1]  ;;  %v948_v6 = vld [vmem:[%s1359_s1 + $0x1] sm:$0x1]  ;;  %vm223_vm2 = vcmask 15360  }
  0x14   : >> { %1017 = vmatpush3.bf16.msra.mxu1 %v229_v3  ;;  %1040 = vmatprep.subr.bf16.mxu0 %v1185_v2  ;;  %v499_v5 = vsel %vm227_vm0, %v963_v4, 0  ;;  %s1264_s7 = scalar_lea.vmem %s1238_s25, %s994_s4  ;;  %v304_v8 = vsel %vm227_vm0, %v948_v6, 0  ;;  %v968_v20 = vld [vmem:[%s1359_s1 + $0x5] sm:$0x1]  ;;  %vm287_vm3 = vsmask.f32 7424 }
  0x15   : >> { %1041 = vmatpush3.bf16.msra.mxu0 %v499_v5  ;;  %1042 = vmatprep.mubr.msk.bf16.mxu0 %vm1186_vm1, %v1185_v2  ;;  %v1137_v7 = vld [vmem:[%s1264_s7] sm:$0xff]   ;;  %v960_v9 = vld [vmem:[%s1264_s7 + $0xc] sm:$0xf]  ;;  %v961_v10 = vld [vmem:[%s1264_s7 + $0x10] sm:$0xf]  ;;  %v557_v29 = vsel %vm227_vm0, %v968_v20, 0 }
  0x16   : >> { %1046 = vmatprep.subr.bf16.mxu0 %v1185_v2  ;;  %1022 = vmatprep.subr.bf16.mxu1 %v1185_v2  ;;  %v964_v11 = vcombine.low %v960_v9, %v961_v10  ;;  %v1139_v12 = vld [vmem:[%s1264_s7 + $0x14] ss:$0 sps:$4 sm:$0x11]   ;;  %v274_v13 = vld [vmem:[%s1264_s7] sm:$0xf]  ;;  %vm355_vm4 = vcmask 1046528  }
  0x17   : >> { %1019 = vmatmul.mubr.msk.bf16.vlgmr.msra.gmra.mrb[0].mxu1 %vm223_vm2, %v1137_v7  ;;  %v275_v14 = vld [vmem:[%s1264_s7 + $0x4] sm:$0xf]  ;;  %v491_v17 = vshll.u32 %v1139_v12, 16  ;;  %v1141_v19 = vld [vmem:[%s1264_s7 + $0x8] ss:$0 sps:$4 sm:$0x11]  }
  0x18   : >> { %1023 = vmatpush3.bf16.msra.mxu1 %v304_v8  ;;  %1024 = vmatprep.mubr.msk.bf16.mxu1 %vm1186_vm1, %v1185_v2  ;;  %v484_v15 = vshrl.u32 %v964_v11, 16  ;;  %v486_v16 = vshll.u32 %v964_v11, 16  ;;  %v949_v18 = vcombine.low %v274_v13, %v275_v14  ;;  %v296_v25 = vshll.u32 %v1141_v19, 16  ;;  %v952_v28 = vld [vmem:[%s1359_s1 + $0x2] sm:$0x1]  ;;  %v1144_v53 = vld [vmem:[%s1264_s7 + $0x18] sm:$0xff]  }
  0x19   : >> { %1028 = vmatprep.subr.bf16.mxu1 %v1185_v2  ;;  %v493_v22 = vrot.slane %v491_v17, 1  ;;  %v967_v31 = vld [vmem:[%s1264_s7 + $0xc] sm:$0xe]  ;;  %v363_v36 = vsel %vm227_vm0, %v952_v28, 0  ;;  %v349_v37 = vld [vmem:[%s1264_s7] sm:$0xe] }
  0x1a   : >> { %v488_v21 = vrot.slane %v486_v16, 1  ;;  %v289_v23 = vshrl.u32 %v949_v18, 16  ;;  %v291_v24 = vshll.u32 %v949_v18, 16  ;;  %v298_v30 = vrot.slane %v296_v25, 1  ;;  %v973_v41 = vld [vmem:[%s1359_s1 + $0x6] sm:$0x1] }
  0x1b   : >> { %v969_v35 = vcombine.low %v967_v31, %v961_v10  ;;  %v953_v38 = vcombine.low %v349_v37, %v275_v14  ;;  %v551_v40 = vrot.slane %v1139_v12, 1  ;;  %v357_v43 = vrot.slane %v1141_v19, 1  ;;  %v957_v46 = vld [vmem:[%s1359_s1 + $0x3] sm:$0x1]  ;;  %v976_v49 = vld [vmem:[%s1264_s7 + $0x18] sm:$0xf] }
  0x1c   : >> { %v489_v26 = vor.u32 %v488_v21, %v484_v15  ;;  %v293_v27 = vrot.slane %v291_v24, 1  ;;  %v619_v45 = vsel %vm227_vm0, %v973_v41, 0  ;;  %v425_v48 = vsel %vm227_vm0, %v957_v46, 0  ;;  %v977_v50 = vld [vmem:[%s1264_s7 + $0x1c] sm:$0xf]  ;;  %v1145_v57 = vld [vmem:[%s1264_s7 + $0xc] sm:$0xff]  }
  0x1d   : >> { %v550_v39 = vrot.slane %v969_v35, 1  ;;  %v356_v42 = vrot.slane %v953_v38, 1  ;;  %v980_v51 = vcombine.low %v976_v49, %v977_v50  ;;  %v979_v52 = vld [vmem:[%s1359_s1 + $0x7] sm:$0x1]  ;;  %v984_v63 = vld [vmem:[%s1359_s1 + $0x8] sm:$0x1] }
  0x1e   : >> { %v494_v32 = vsel %vm287_vm3, %v489_v26, %v493_v22  ;;  %v294_v33 = vor.u32 %v293_v27, %v289_v23  ;;  %v1147_v54 = vld [vmem:[%s1264_s7 + $0x20] ss:$0 sps:$4 sm:$0x11]   ;;  %v693_v56 = vsel %vm227_vm0, %v979_v52, 0  ;;  %v751_v3 = vsel %vm227_vm0, %v984_v63, 0  ;;  %s997_s24 = sshll.u32 %s1183_s26, 3 }
  0x1f   : >> { %1043 = vmatmul.mubr.msk.bf16.vlgmr.msra.gmra.mrb[0].mxu0 %vm223_vm2, %v494_v32  ;;  %v552_v44 = vsel %vm355_vm4, %v550_v39, %v551_v40  ;;  %v358_v47 = vsel %vm355_vm4, %v356_v42, %v357_v43  ;;  %v680_v55 = vshll.u32 %v980_v51, 16  ;;  %v678_v58 = vshrl.u32 %v980_v51, 16  ;;  %v983_v4 = vld [vmem:[%s1264_s7 + $0x18] sm:$0xe]  ;;  %s824_s27 = scalar_lea.vmem %s1233_s22, %s997_s24  ;;  %s210_s26 = sadd.s32 1, %s1183_s26  }
  0x20   : >> { %1047 = vmatpush3.bf16.msra.mxu0 %v557_v29  ;;  %v299_v34 = vsel %vm287_vm3, %v294_v33, %v298_v30  ;;  %1048 = vmatprep.mubr.msk.bf16.mxu0 %vm1186_vm1, %v1185_v2  ;;  %v685_v60 = vshll.u32 %v1147_v54, 16  ;;  %v985_v5 = vcombine.low %v983_v4, %v977_v50  ;;  %v745_v7 = vrot.slane %v1147_v54, 1  ;;  %p207_p5 = scmp.ge.s32.totalorder %s210_s26, 16  }
  0x21   : >> { %1052 = vmatprep.subr.bf16.mxu0 %v1185_v2  ;;  %v682_v59 = vrot.slane %v680_v55, 1  ;;  %vm825_vm5 = vcmask 11264  }
  0x22   : >> { %v687_v62 = vrot.slane %v685_v60, 1  ;;  %v744_v6 = vrot.slane %v985_v5, 1 }
  0x23   : >> { %1025 = vmatmul.mubr.msk.bf16.vlgmr.msra.gmra.mrb[0].mxu1 %vm223_vm2, %v299_v34  ;;  %v683_v61 = vor.u32 %v682_v59, %v678_v58 }
  0x24   : >> { %1029 = vmatpush3.bf16.msra.mxu1 %v363_v36  ;;  %1030 = vmatprep.mubr.msk.bf16.mxu1 %vm1186_vm1, %v1185_v2  ;;  %v746_v8 = vsel %vm355_vm4, %v744_v6, %v745_v7 }
  0x25   : >> { %1034 = vmatprep.subr.bf16.mxu1 %v1185_v2  ;;  %v688_v1 = vsel %vm287_vm3, %v683_v61, %v687_v62 }
  0x2b   : >> { %1049 = vmatmul.mubr.msk.bf16.vlgmr.msra.gmra.mrb[0].mxu0 %vm223_vm2, %v552_v44 }
  0x2c   : >> { %1053 = vmatpush3.bf16.msra.mxu0 %v619_v45  ;;  %1054 = vmatprep.mubr.msk.bf16.mxu0 %vm1186_vm1, %v1185_v2 }
  0x2d   : >> { %1058 = vmatprep.subr.bf16.mxu0 %v1185_v2 }
  0x2f   : >> { %1031 = vmatmul.mubr.msk.bf16.vlgmr.msra.gmra.mrb[0].mxu1 %vm223_vm2, %v358_v47 }
  0x30   : >> { %1035 = vmatpush3.bf16.msra.mxu1 %v425_v48  ;;  %1036 = vmatprep.mubr.msk.bf16.mxu1 %vm1186_vm1, %v1185_v2 }
  0x37   : >> { %1055 = vmatmul.mubr.msk.bf16.vlgmr.msra.gmra.mrb[0].mxu0 %vm223_vm2, %v1144_v53 }
  0x38   : >> { %1059 = vmatpush3.bf16.msra.mxu0 %v693_v56  ;;  %1060 = vmatprep.mubr.msk.bf16.mxu0 %vm1186_vm1, %v1185_v2 }
  0x39   : >> { %1064 = vmatprep.subr.bf16.mxu0 %v1185_v2 }
  0x3b   : >> { %1037 = vmatmul.mubr.msk.bf16.vlgmr.msra.gmra.mrb[0].mxu1 %vm223_vm2, %v1145_v57 }
  0x43   : >> { %1061 = vmatmul.mubr.msk.bf16.vlgmr.msra.gmra.mrb[0].mxu0 %vm223_vm2, %v688_v1 }
  0x44   : >> { %1065 = vmatpush3.bf16.msra.mxu0 %v751_v3  ;;  %1066 = vmatprep.mubr.msk.bf16.mxu0 %vm1186_vm1, %v1185_v2 }
  0x4f   : >> { %1067 = vmatmul.mubr.msk.bf16.vlgmr.msra.gmra.mrb[0].mxu0 %vm223_vm2, %v746_v8 }
 0x10e   : >> { %v461_v9 = vpop.f32.mrb[0].mxu1 }
 0x10f   : >> { %v1038_v10 = vpop.f32.mrb[1].mxu1  ;;  %v1070_v13 = vadd.f32 %v1228_v0, %v461_v9 }
 0x110   : >> { %v464_v11 = vpop.f32.mrb[2].mxu1 }
 0x111   : >> { %v1039_v12 = vpop.f32.mrb[3].mxu1  ;;  %v1072_v15 = vadd.f32 %v1228_v0, %v464_v11 }
 0x122   : >> { %v787_v14 = vpop.f32.mrb[0].mxu0 }
 0x123   : >> { %v1071_v16 = vadd.f32 %v1070_v13, %v787_v14  ;;  %v1068_v17 = vpop.f32.mrb[1].mxu0 }
 0x124   : >> { %v790_v18 = vpop.f32.mrb[2].mxu0 }
 0x125   : >> { %v798_v2 = vmul.f32 0.044715, %v1071_v16  ;;  %v1073_v19 = vadd.f32 %v1072_v15, %v790_v18  ;;  %v1069_v20 = vpop.f32.mrb[3].mxu0  ;;  %v796_v31 = vmul.f32 0.5, %v1071_v16 }
 0x127   : >> { %v800_v21 = vmul.f32 %v1071_v16, %v798_v2  ;;  %v799_v22 = vmul.f32 0.044715, %v1073_v19  ;;  %v797_v35 = vmul.f32 0.5, %v1073_v19 }
 0x129   : >> { %v802_v23 = vmul.f32 %v1071_v16, %v800_v21  ;;  %v801_v24 = vmul.f32 %v1073_v19, %v799_v22 }
 0x12b   : >> { %v804_v25 = vadd.f32 %v1071_v16, %v802_v23  ;;  %v803_v26 = vmul.f32 %v1073_v19, %v801_v24 }
 0x12d   : >> { %v806_v27 = vmul.f32 0.7978846, %v804_v25  ;;  %v805_v28 = vadd.f32 %v1073_v19, %v803_v26 }
 0x12f   : >> { %1149 = vtanh.f32 %v806_v27  ;;  %v807_v29 = vmul.f32 0.7978846, %v805_v28 }
 0x131   : >> { %1151 = vtanh.f32 %v807_v29 }
 0x139   : >> { %v1150_v30 = vpop.eup %1149 }
 0x13a   : >> { %v810_v32 = vadd.f32 1.0, %v1150_v30 }
 0x13b   : >> { %v1152_v33 = vpop.eup %1151 }
 0x13c   : >> { %v812_v34 = vmul.f32 %v810_v32, %v796_v31  ;;  %v811_v36 = vadd.f32 1.0, %v1152_v33  ;;  %209 = sbr.rel (!%p207_p5) target bundleno = 18 (0x12), region = 81 }
 0x13e   : >> { %v995_v37 = vpack.c.bf16 %v812_v34, %v812_v34  ;;  %v813_v38 = vmul.f32 %v811_v36, %v797_v35 }
 0x140   : >> { %826 = vst.msk [vmem:[%s824_s27] sm:$0xf] %vm825_vm5, %v995_v37  ;;  %v996_v39 = vpack.c.bf16 %v813_v38, %v813_v38 }
 0x142   : >> { %827 = vst.msk [vmem:[%s824_s27 + $0x4] sm:$0xf] %vm825_vm5, %v996_v39 }
 0x143 PF: > { %s13_s14 = sadd.s32 1, %s1179_s14   ;;  %s1362_s12 = smov %s1175_s13 }
 0x144   : > { %p10_p6 = scmp.ge.s32.totalorder %s13_s14, 4   ;;  %s1363_s13 = smov %s1365_s15 }
 0x146   :  { %12 = sbr.rel (!%p10_p6) target bundleno = 2 (0x2), region = 92 }

// kernel: simple_ae_unet_forward.26
= control target key start
LH: loop header
LB: loop body
LE: loop exit
PB: predicated region body
PF: predicated region fallthrough
CT: control target
= control target key end

     0   :  { %s1087_s12 = smov 0   ;;  %s1089_s13 = smov 0   ;;  %s1228_s0 = inlined_call_operand.vmem [shape: bf16[2,10,10,4], index: 0, kind: input, shape index: {}]   ;;  %s1229_s1 = inlined_call_operand.vmem [shape: bf16[9,4,8], index: 1, kind: input, shape index: {}]   ;;  %s1230_s2 = inlined_call_operand.vmem [shape: f32[1,8], index: 2, kind: input, shape index: {}]   ;;  %s1231_s3 = inlined_call_operand.vmem [shape: bf16[2,8,8,8], index: 3, kind: output, shape index: {}]  }
   0x1   :  { %s1091_s14 = smov 0  }
   0x2 LB: > { %s25_s15 = sadd.s32 1, %s1055_s13  ;;  %p843_p0 = scmp.ge.s32.totalorder %s1059_s14, 1  ;;  %s1059_s14 = sphi %s1091_s14, %s13_s14   ;;  %s1055_s13 = sphi %s1089_s13, %s1233_s13   ;;  %s1051_s12 = sphi %s1087_s12, %s1232_s12  }
   0x3   : > { %p27_p1 = scmp.ge.s32.totalorder %s25_s15, 2  ;;  %p151_p2 = scmp.lt.s32.totalorder %s1059_s14, 3 }
   0x5   : > { %s1235_s15 = smov (%p27_p1, %s25_s15), 0  ;;  %p152_p3 = pnand %p843_p0, %p151_p2 }
   0x6   : > { %p179_p4 = scmp.lt.s32.totalorder (!%p152_p3), %s1051_s12, 1  ;;  %v1108_v0 = vld [vmem:[%s1230_s2] ss:$0 sm:$0xff] (!%p152_p3)  ;;  %s1120_s26 = smov (!%p152_p3), 0  }
   0x7   : > { %155 = sbr.rel (%p152_p3) target bundleno = 320 (0x140), region = 32 }
   0xe   : > { %s1237_s12 = smov (!%p179_p4, %s1051_s12), 1 }
   0xf   : > { %s990_s18 = smul.u32 80, %s1237_s12  ;;  %s886_s19 = sshll.u32 %s1237_s12, 5 }
  0x10   : > { %s1113_s22 = scalar_lea.vmem %s1231_s3, %s886_s19 }
  0x11   : > { %s1118_s25 = scalar_lea.vmem %s1228_s0, %s990_s18 }
  0x12 LB: >> { %v214_v1 = vld [vmem:[%s1229_s1] sm:$0x3]  ;;  %vm219_vm0 = vcmask 1041408   ;;  %v1065_v2 = vmov 0.0   ;;  %vm1066_vm1 = vmmov 0   ;;  %s887_s4 = sshll.u32 %s1063_s26, 3  ;;  %s1063_s26 = sphi %s1120_s26, %s208_s26  }
  0x13   : >> { %906 = vmatprep.subr.bf16.mxu1 %v1065_v2  ;;  %v221_v3 = vsel %vm219_vm0, %v214_v1, 0  ;;  %908 = vmatprep.mubr.msk.bf16.mxu1 %vm1066_vm1, %v1065_v2  ;;  %v863_v4 = vld [vmem:[%s1229_s1 + $0x8] sm:$0x3]  ;;  %vm215_vm2 = vcmask 31744   ;;  %v851_v6 = vld [vmem:[%s1229_s1 + $0x2] sm:$0x3]  ;;  %s1142_s7 = scalar_lea.vmem %s1118_s25, %s887_s4 }
  0x14   : >> { %907 = vmatpush3.bf16.msra.mxu1 %v221_v3  ;;  %930 = vmatprep.subr.bf16.mxu0 %v1065_v2  ;;  %v455_v5 = vsel %vm219_vm0, %v863_v4, 0  ;;  %v284_v7 = vsel %vm219_vm0, %v851_v6, 0  ;;  %v213_v8 = vld [vmem:[%s1142_s7] sm:$0xf]  ;;  %v861_v9 = vld [vmem:[%s1142_s7 + $0x8] sm:$0xf] }
  0x15   : >> { %931 = vmatpush3.bf16.msra.mxu0 %v455_v5  ;;  %932 = vmatprep.mubr.msk.bf16.mxu0 %vm1066_vm1, %v1065_v2  ;;  %v862_v10 = vld [vmem:[%s1142_s7 + $0xc] sm:$0x1]  ;;  %v264_v12 = vld [vmem:[%s1142_s7] sm:$0xf]  ;;  %v265_v13 = vld [vmem:[%s1142_s7 + $0x4] sm:$0x1] }
  0x16   : >> { %936 = vmatprep.subr.bf16.mxu0 %v1065_v2  ;;  %912 = vmatprep.subr.bf16.mxu1 %v1065_v2  ;;  %v864_v11 = vcombine.low %v861_v9, %v862_v10  ;;  %v852_v14 = vcombine.low %v264_v12, %v265_v13  ;;  %v867_v17 = vld [vmem:[%s1229_s1 + $0xa] sm:$0x3]  ;;  %v854_v24 = vld [vmem:[%s1229_s1 + $0x4] sm:$0x3]  ;;  %v327_v29 = vld [vmem:[%s1142_s7] sm:$0xe] }
  0x17   : >> { %909 = vmatmul.mubr.msk.bf16.vlgmr.msra.gmra.mrb[0].mxu1 %vm215_vm2, %v213_v8  ;;  %v509_v23 = vsel %vm219_vm0, %v867_v17, 0  ;;  %v866_v26 = vld [vmem:[%s1142_s7 + $0x8] sm:$0xe]  ;;  %v338_v27 = vsel %vm219_vm0, %v854_v24, 0  ;;  %v872_v30 = vld [vmem:[%s1229_s1 + $0xc] sm:$0x3]  ;;  %v855_v32 = vcombine.low %v327_v29, %v265_v13 }
  0x18   : >> { %913 = vmatpush3.bf16.msra.mxu1 %v284_v7  ;;  %914 = vmatprep.mubr.msk.bf16.mxu1 %vm1066_vm1, %v1065_v2  ;;  %v445_v15 = vshrl.u32 %v864_v11, 16  ;;  %v447_v16 = vshll.u32 %v864_v11, 16  ;;  %v276_v18 = vshll.u32 %v852_v14, 16  ;;  %v274_v20 = vshrl.u32 %v852_v14, 16  ;;  %v859_v34 = vld [vmem:[%s1229_s1 + $0x6] sm:$0x3] }
  0x19   : >> { %918 = vmatprep.subr.bf16.mxu1 %v1065_v2  ;;  %v868_v28 = vcombine.low %v866_v26, %v862_v10  ;;  %v563_v33 = vsel %vm219_vm0, %v872_v30, 0  ;;  %v333_v35 = vrot.slane %v855_v32, 1  ;;  %v392_v36 = vsel %vm219_vm0, %v859_v34, 0  ;;  %v874_v37 = vld [vmem:[%s1142_s7 + $0x10] sm:$0xf]  ;;  %s883_s24 = sshll.u32 %s1063_s26, 2 }
  0x1a   : >> { %v449_v19 = vrot.slane %v447_v16, 1  ;;  %v278_v21 = vrot.slane %v276_v18, 1  ;;  %v875_v38 = vld [vmem:[%s1142_s7 + $0x14] sm:$0x1]  ;;  %v876_v39 = vld [vmem:[%s1229_s1 + $0xe] sm:$0x3]  ;;  %s734_s27 = scalar_lea.vmem %s1113_s22, %s883_s24 }
  0x1b   : >> { %v504_v31 = vrot.slane %v868_v28, 1  ;;  %v877_v40 = vcombine.low %v874_v37, %v875_v38  ;;  %v871_v41 = vld [vmem:[%s1142_s7 + $0x10] sm:$0xf]  ;;  %v626_v42 = vsel %vm219_vm0, %v876_v39, 0  ;;  %v858_v44 = vld [vmem:[%s1142_s7 + $0x8] sm:$0xf] }
  0x1c   : >> { %v450_v22 = vor.u32 %v449_v19, %v445_v15  ;;  %v279_v25 = vor.u32 %v278_v21, %v274_v20  ;;  %v880_v47 = vld [vmem:[%s1229_s1 + $0x10] sm:$0x3]  ;;  %vm735_vm3 = vcmask 60416   ;;  %s208_s26 = sadd.s32 1, %s1063_s26  }
  0x1d   : >> { %v618_v43 = vshll.u32 %v877_v40, 16  ;;  %v616_v45 = vshrl.u32 %v877_v40, 16  ;;  %v680_v49 = vsel %vm219_vm0, %v880_v47, 0  ;;  %v879_v50 = vld [vmem:[%s1142_s7 + $0x10] sm:$0xe]  ;;  %p205_p5 = scmp.ge.s32.totalorder %s208_s26, 8  }
  0x1e   : >> { %933 = vmatmul.mubr.msk.bf16.vlgmr.msra.gmra.mrb[0].mxu0 %vm215_vm2, %v450_v22  ;;  %v881_v51 = vcombine.low %v879_v50, %v875_v38 }
  0x1f   : >> { %937 = vmatpush3.bf16.msra.mxu0 %v509_v23  ;;  %938 = vmatprep.mubr.msk.bf16.mxu0 %vm1066_vm1, %v1065_v2  ;;  %v620_v46 = vrot.slane %v618_v43, 1 }
  0x20   : >> { %942 = vmatprep.subr.bf16.mxu0 %v1065_v2  ;;  %v675_v52 = vrot.slane %v881_v51, 1 }
  0x21   : >> { %v621_v48 = vor.u32 %v620_v46, %v616_v45 }
  0x23   : >> { %915 = vmatmul.mubr.msk.bf16.vlgmr.msra.gmra.mrb[0].mxu1 %vm215_vm2, %v279_v25 }
  0x24   : >> { %919 = vmatpush3.bf16.msra.mxu1 %v338_v27  ;;  %920 = vmatprep.mubr.msk.bf16.mxu1 %vm1066_vm1, %v1065_v2 }
  0x25   : >> { %924 = vmatprep.subr.bf16.mxu1 %v1065_v2 }
  0x2a   : >> { %939 = vmatmul.mubr.msk.bf16.vlgmr.msra.gmra.mrb[0].mxu0 %vm215_vm2, %v504_v31 }
  0x2b   : >> { %943 = vmatpush3.bf16.msra.mxu0 %v563_v33  ;;  %944 = vmatprep.mubr.msk.bf16.mxu0 %vm1066_vm1, %v1065_v2 }
  0x2c   : >> { %948 = vmatprep.subr.bf16.mxu0 %v1065_v2 }
  0x2f   : >> { %921 = vmatmul.mubr.msk.bf16.vlgmr.msra.gmra.mrb[0].mxu1 %vm215_vm2, %v333_v35 }
  0x30   : >> { %925 = vmatpush3.bf16.msra.mxu1 %v392_v36  ;;  %926 = vmatprep.mubr.msk.bf16.mxu1 %vm1066_vm1, %v1065_v2 }
  0x36   : >> { %945 = vmatmul.mubr.msk.bf16.vlgmr.msra.gmra.mrb[0].mxu0 %vm215_vm2, %v871_v41 }
  0x37   : >> { %949 = vmatpush3.bf16.msra.mxu0 %v626_v42  ;;  %950 = vmatprep.mubr.msk.bf16.mxu0 %vm1066_vm1, %v1065_v2 }
  0x38   : >> { %954 = vmatprep.subr.bf16.mxu0 %v1065_v2 }
  0x3b   : >> { %927 = vmatmul.mubr.msk.bf16.vlgmr.msra.gmra.mrb[0].mxu1 %vm215_vm2, %v858_v44 }
  0x42   : >> { %951 = vmatmul.mubr.msk.bf16.vlgmr.msra.gmra.mrb[0].mxu0 %vm215_vm2, %v621_v48 }
  0x43   : >> { %955 = vmatpush3.bf16.msra.mxu0 %v680_v49  ;;  %956 = vmatprep.mubr.msk.bf16.mxu0 %vm1066_vm1, %v1065_v2 }
  0x4e   : >> { %957 = vmatmul.mubr.msk.bf16.vlgmr.msra.gmra.mrb[0].mxu0 %vm215_vm2, %v675_v52 }
 0x10e   : >> { %v428_v53 = vpop.f32.mrb[0].mxu1 }
 0x10f   : >> { %v928_v54 = vpop.f32.mrb[1].mxu1  ;;  %v960_v57 = vadd.f32 %v1108_v0, %v428_v53 }
 0x110   : >> { %v431_v55 = vpop.f32.mrb[2].mxu1 }
 0x111   : >> { %v929_v56 = vpop.f32.mrb[3].mxu1 }
 0x121   : >> { %v716_v58 = vpop.f32.mrb[0].mxu0 }
 0x122   : >> { %v961_v59 = vadd.f32 %v960_v57, %v716_v58  ;;  %v958_v60 = vpop.f32.mrb[1].mxu0 }
 0x123   : >> { %v719_v61 = vpop.f32.mrb[2].mxu0 }
 0x124   : >> { %v724_v62 = vmul.f32 0.044715, %v961_v59  ;;  %v959_v63 = vpop.f32.mrb[3].mxu0  ;;  %v723_v6 = vmul.f32 0.5, %v961_v59 }
 0x126   : >> { %v725_v1 = vmul.f32 %v961_v59, %v724_v62 }
 0x128   : >> { %v726_v2 = vmul.f32 %v961_v59, %v725_v1 }
 0x12a   : >> { %v727_v3 = vadd.f32 %v961_v59, %v726_v2 }
 0x12c   : >> { %v728_v4 = vmul.f32 0.7978846, %v727_v3 }
 0x12e   : >> { %1031 = vtanh.f32 %v728_v4 }
 0x138   : >> { %v1032_v5 = vpop.eup %1031 }
 0x139   : >> { %v730_v7 = vadd.f32 1.0, %v1032_v5  ;;  %207 = sbr.rel (!%p205_p5) target bundleno = 18 (0x12), region = 81 }
 0x13b   : >> { %v731_v8 = vmul.f32 %v730_v7, %v723_v6 }
 0x13d   : >> { %v732_v9 = vpack.c.bf16 %v731_v8, %v731_v8 }
 0x13f   : >> { %736 = vst.msk [vmem:[%s734_s27] sm:$0xf] %vm735_vm3, %v732_v9 }
 0x140 PF: > { %s13_s14 = sadd.s32 1, %s1059_s14   ;;  %s1232_s12 = smov %s1055_s13 }
 0x141   : > { %p10_p6 = scmp.ge.s32.totalorder %s13_s14, 4   ;;  %s1233_s13 = smov %s1235_s15 }
 0x143   :  { %12 = sbr.rel (!%p10_p6) target bundleno = 2 (0x2), region = 92 }

// kernel: simple_ae_unet_forward.29
= control target key start
LH: loop header
LB: loop body
LE: loop exit
PB: predicated region body
PF: predicated region fallthrough
CT: control target
= control target key end

     0   :  { %s4487_s12 = smov 0   ;;  %s4489_s13 = smov 0   ;;  %s5124_s0 = inlined_call_operand.vmem [shape: bf16[2,22,22,2], index: 0, kind: input, shape index: {}]   ;;  %s5125_s1 = inlined_call_operand.vmem [shape: bf16[49,2,3], index: 1, kind: input, shape index: {}]   ;;  %s5126_s2 = inlined_call_operand.vmem [shape: f32[1,3], index: 2, kind: input, shape index: {}]   ;;  %s5127_s3 = inlined_call_operand.vmem [shape: f32[2,16,16,3], index: 3, kind: output, shape index: {}]  }
   0x1   :  { %s4491_s14 = smov 0  }
   0x2 LB: > { %s25_s15 = sadd.s32 1, %s4455_s13  ;;  %p3533_p0 = scmp.ge.s32.totalorder %s4459_s14, 1  ;;  %s4459_s14 = sphi %s4491_s14, %s13_s14   ;;  %s4455_s13 = sphi %s4489_s13, %s5129_s13   ;;  %s4451_s12 = sphi %s4487_s12, %s5128_s12  }
   0x3   : > { %p27_p1 = scmp.ge.s32.totalorder %s25_s15, 2  ;;  %p151_p2 = scmp.lt.s32.totalorder %s4459_s14, 3 }
   0x5   : > { %s5131_s15 = smov (%p27_p1, %s25_s15), 0  ;;  %p152_p3 = pnand %p3533_p0, %p151_p2 }
   0x6   : > { %p180_p4 = scmp.lt.s32.totalorder (!%p152_p3), %s4451_s12, 1  ;;  %v4508_v0 = vld [vmem:[%s5126_s2] ss:$0 sm:$0xff] (!%p152_p3)  ;;  %s4520_s26 = smov (!%p152_p3), 0  }
   0x7   : > { %155 = sbr.rel (%p152_p3) target bundleno = 537 (0x219), region = 32 }
   0xe   : > { %s5133_s12 = smov (!%p180_p4, %s4451_s12), 1 }
   0xf   : > { %s4341_s18 = smul.u32 264, %s5133_s12  ;;  %s3755_s19 = sshll.u32 %s5133_s12, 8 }
  0x10   : > { %s4513_s22 = scalar_lea.vmem %s5127_s3, %s3755_s19 }
  0x11   : > { %s4518_s25 = scalar_lea.vmem %s5124_s0, %s4341_s18 }
  0x12 LB: >> { %v217_v1 = vld [vmem:[%s5125_s1] sm:$0x1]  ;;  %vm227_vm0 = vcmask 1040384   ;;  %v4465_v2 = vmov 0.0   ;;  %vm4466_vm1 = vmmov 0   ;;  %s3756_s4 = smul.u32 12, %s4463_s26  ;;  %s4463_s26 = sphi %s4520_s26, %s210_s26  }
  0x13   : >> { %3855 = vmatprep.subr.bf16.mxu1 %v4465_v2  ;;  %v229_v3 = vsel %vm227_vm0, %v217_v1, 0  ;;  %3857 = vmatprep.mubr.msk.bf16.mxu1 %vm4466_vm1, %v4465_v2  ;;  %v3641_v4 = vld [vmem:[%s5125_s1 + $0x18] sm:$0x1]  ;;  %v3541_v6 = vld [vmem:[%s5125_s1 + $0x1] sm:$0x1]  ;;  %vm223_vm2 = vcmask 15360  }
  0x14   : >> { %3856 = vmatpush3.bf16.msra.mxu1 %v229_v3  ;;  %3999 = vmatprep.subr.bf16.mxu0 %v4465_v2  ;;  %v1801_v5 = vsel %vm227_vm0, %v3641_v4, 0  ;;  %s4544_s7 = scalar_lea.vmem %s4518_s25, %s3756_s4  ;;  %v304_v8 = vsel %vm227_vm0, %v3541_v6, 0  ;;  %v3645_v19 = vld [vmem:[%s5125_s1 + $0x19] sm:$0x1]  ;;  %vm414_vm3 = vsmask.f32 6400 }
  0x15   : >> { %4000 = vmatpush3.bf16.msra.mxu0 %v1801_v5  ;;  %4001 = vmatprep.mubr.msk.bf16.mxu0 %vm4466_vm1, %v4465_v2  ;;  %v4376_v7 = vld [vmem:[%s4544_s7] sm:$0xff]   ;;  %v4551_v9 = vld [vmem:[%s4544_s7 + $0x28] sm:$0xf]  ;;  %v4378_v12 = vld [vmem:[%s4544_s7 + $0x2c] ss:$0 sps:$4 sm:$0x33]  }
  0x16   : >> { %4005 = vmatprep.subr.bf16.mxu0 %v4465_v2  ;;  %3861 = vmatprep.subr.bf16.mxu1 %v4465_v2  ;;  %v3636_v10 = vld [vmem:[%s4544_s7 + $0x24] sm:$0xe]  ;;  %v274_v13 = vld [vmem:[%s4544_s7] sm:$0xf]  ;;  %v1789_v17 = vshrl.u32 %v4378_v12, 16  ;;  %v1792_v18 = vshll.u32 %v4378_v12, 16 }
  0x17   : >> { %3858 = vmatmul.mubr.msk.bf16.vlgmr.msra.gmra.mrb[0].mxu1 %vm223_vm2, %v4376_v7  ;;  %v4556_v11 = vcombine.low %v3636_v10, %v4551_v9  ;;  %v4563_v14 = vld [vmem:[%s4544_s7 + $0x4] sm:$0xf]  ;;  %v4380_v21 = vld [vmem:[%s4544_s7 + $0x8] ss:$0 sps:$4 sm:$0x11]   ;;  %v1859_v31 = vsel %vm227_vm0, %v3645_v19, 0 }
  0x18   : >> { %3862 = vmatpush3.bf16.msra.mxu1 %v304_v8  ;;  %3863 = vmatprep.mubr.msk.bf16.mxu1 %vm4466_vm1, %v4465_v2  ;;  %v3542_v20 = vcombine.low %v274_v13, %v4563_v14  ;;  %v1791_v24 = vrot.slane %v1789_v17, 1  ;;  %v1794_v25 = vrot.slane %v1792_v18, 2  ;;  %v296_v28 = vshll.u32 %v4380_v21, 16  ;;  %v3545_v32 = vld [vmem:[%s5125_s1 + $0x2] sm:$0x1] }
  0x19   : >> { %v1781_v15 = vshrl.u32 %v4556_v11, 16  ;;  %v1784_v16 = vshll.u32 %v4556_v11, 16  ;;  %3867 = vmatprep.subr.bf16.mxu1 %v4465_v2  ;;  %v3644_v35 = vld [vmem:[%s4544_s7 + $0x24] sm:$0xc]  ;;  %vm287_vm4 = vsmask.f32 7424 }
  0x1a   : >> { %v289_v26 = vshrl.u32 %v3542_v20, 16  ;;  %v291_v27 = vshll.u32 %v3542_v20, 16  ;;  %v1795_v30 = vor.u32 %v1794_v25, %v1791_v24  ;;  %v298_v34 = vrot.slane %v296_v28, 1  ;;  %v349_v40 = vld [vmem:[%s4544_s7] sm:$0xe] }
  0x1b   : >> { %v1783_v22 = vrot.slane %v1781_v15, 1  ;;  %v1786_v23 = vrot.slane %v1784_v16, 2  ;;  %v3646_v38 = vcombine.low %v3644_v35, %v4551_v9  ;;  %v363_v39 = vsel %vm227_vm0, %v3545_v32, 0  ;;  %v4592_v45 = vld [vmem:[%s4544_s7 + $0x2c] ss:$0 sps:$4 sm:$0x77]  }
  0x1c   : >> { %v293_v33 = vrot.slane %v291_v27, 1  ;;  %v3546_v42 = vcombine.low %v349_v40, %v4563_v14  ;;  %v1853_v44 = vrot.slane %v4378_v12, 2  ;;  %vm487_vm5 = vcmask 1045504   ;;  %v3649_v46 = vld [vmem:[%s5125_s1 + $0x1a] sm:$0x1] }
  0x1d   : >> { %v1787_v29 = vor.u32 %v1786_v23, %v1783_v22  ;;  %v1852_v43 = vrot.slane %v3646_v38, 2  ;;  %vm355_vm6 = vcmask 1046528   ;;  %v357_v48 = vrot.slane %v4380_v21, 1  ;;  %v4599_v50 = vld [vmem:[%s4544_s7 + $0x8] ss:$0 sps:$4 sm:$0x33]  }
  0x1e   : >> { %v294_v37 = vor.u32 %v293_v33, %v289_v26  ;;  %v356_v47 = vrot.slane %v3546_v42, 1  ;;  %v1911_v49 = vshrl.u32 %v3646_v38, 16  ;;  %v1914_v52 = vshll.u32 %v3646_v38, 16  ;;  %v3548_v56 = vld [vmem:[%s5125_s1 + $0x3] sm:$0x1] }
  0x1f   : >> { %v1796_v36 = vsel %vm414_vm3, %v1787_v29, %v1795_v30  ;;  %v1854_v51 = vsel %vm487_vm5, %v1852_v43, %v1853_v44  ;;  %v1919_v53 = vshrl.u32 %v4592_v45, 16  ;;  %v1922_v54 = vshll.u32 %v4592_v45, 16  ;;  %v3653_v13 = vld [vmem:[%s5125_s1 + $0x1b] sm:$0x1]  ;;  %v3652_v19 = vld [vmem:[%s4544_s7 + $0x24] sm:$0x8] }
  0x20   : >> { %4002 = vmatmul.mubr.msk.bf16.vlgmr.msra.gmra.mrb[0].mxu0 %vm223_vm2, %v1796_v36  ;;  %v299_v41 = vsel %vm287_vm4, %v294_v37, %v298_v34  ;;  %v1931_v55 = vsel %vm227_vm0, %v3649_v46, 0  ;;  %v416_v57 = vshrl.u32 %v3546_v42, 16  ;;  %v419_v58 = vshll.u32 %v3546_v42, 16  ;;  %v3551_v20 = vld [vmem:[%s5125_s1 + $0x4] sm:$0x1] }
  0x21   : >> { %4006 = vmatpush3.bf16.msra.mxu0 %v1859_v31  ;;  %4007 = vmatprep.mubr.msk.bf16.mxu0 %vm4466_vm1, %v4465_v2  ;;  %v358_v59 = vsel %vm355_vm6, %v356_v47, %v357_v48  ;;  %v1913_v60 = vrot.slane %v1911_v49, 2  ;;  %v424_v61 = vshrl.u32 %v4599_v50, 16  ;;  %v427_v62 = vshll.u32 %v4599_v50, 16  ;;  %v481_v24 = vld [vmem:[%s4544_s7] sm:$0xc]  ;;  %v4387_v48 = vld [vmem:[%s4544_s7 + $0x30] sm:$0xff]  }
  0x22   : >> { %4011 = vmatprep.subr.bf16.mxu0 %v4465_v2  ;;  %v1916_v63 = vrot.slane %v1914_v52, 3  ;;  %v1921_v1 = vrot.slane %v1919_v53, 2  ;;  %v1924_v3 = vrot.slane %v1922_v54, 3  ;;  %v436_v4 = vsel %vm227_vm0, %v3548_v56, 0  ;;  %v3554_v33 = vld [vmem:[%s5125_s1 + $0x5] sm:$0x1] }
  0x23   : >> { %3864 = vmatmul.mubr.msk.bf16.vlgmr.msra.gmra.mrb[0].mxu1 %vm223_vm2, %v299_v41  ;;  %v418_v5 = vrot.slane %v416_v57, 1  ;;  %v421_v6 = vrot.slane %v419_v58, 2  ;;  %v426_v7 = vrot.slane %v424_v61, 1  ;;  %v429_v8 = vrot.slane %v427_v62, 2  ;;  %v3661_v40 = vld [vmem:[%s4544_s7 + $0x30] sm:$0xf] }
  0x24   : >> { %3868 = vmatpush3.bf16.msra.mxu1 %v363_v39  ;;  %3869 = vmatprep.mubr.msk.bf16.mxu1 %vm4466_vm1, %v4465_v2  ;;  %v1917_v10 = vor.u32 %v1916_v63, %v1913_v60  ;;  %v1925_v12 = vor.u32 %v1924_v3, %v1921_v1  ;;  %vm546_vm7 = vsmask.f32 5376  ;;  %v1989_v18 = vsel %vm227_vm0, %v3653_v13, 0  ;;  %v4388_v30 = vld [vmem:[%s4544_s7 + $0x8] ss:$0 sps:$4 sm:$0x77]  }
  0x25   : >> { %3873 = vmatprep.subr.bf16.mxu1 %v4465_v2  ;;  %v422_v15 = vor.u32 %v421_v6, %v418_v5  ;;  %v430_v16 = vor.u32 %v429_v8, %v426_v7  ;;  %v3654_v22 = vcombine.low %v3652_v19, %v4551_v9  ;;  %v495_v23 = vsel %vm227_vm0, %v3551_v20, 0  ;;  %v3658_v9 = vld [vmem:[%s5125_s1 + $0x1c] sm:$0x1]  ;;  %v4661_v41 = vld [vmem:[%s4544_s7 + $0x34] sm:$0xf] }
  0x26   : >> { %v1926_v17 = vsel %vm546_vm7, %v1917_v10, %v1925_v12  ;;  %v3552_v25 = vcombine.low %v481_v24, %v4563_v14  ;;  %v1983_v27 = vrot.slane %v4592_v45, 3  ;;  %vm619_vm8 = vcmask 1044480   ;;  %v3664_v47 = vld [vmem:[%s5125_s1 + $0x1d] sm:$0x1]  ;;  %v3557_v54 = vld [vmem:[%s5125_s1 + $0x6] sm:$0x1] }
  0x27   : >> { %v431_v21 = vsel %vm414_vm3, %v422_v15, %v430_v16  ;;  %v1982_v26 = vrot.slane %v3654_v22, 3  ;;  %v489_v28 = vrot.slane %v4599_v50, 2  ;;  %v2051_v32 = vsel %vm227_vm0, %v3658_v9, 0  ;;  %v613_v58 = vld [vmem:[%s4544_s7] sm:$0x8]  ;;  %v4393_v9 = vld [vmem:[%s4544_s7 + $0xc] sm:$0xff]  }
  0x28   : >> { %v488_v29 = vrot.slane %v3552_v25, 2  ;;  %v548_v34 = vshrl.u32 %v3552_v25, 16  ;;  %v551_v36 = vshll.u32 %v3552_v25, 16  ;;  %v556_v37 = vshrl.u32 %v4388_v30, 16  ;;  %v3669_v1 = vld [vmem:[%s5125_s1 + $0x1e] sm:$0x1] }
  0x29   : >> { %v1984_v31 = vsel %vm619_vm8, %v1982_v26, %v1983_v27  ;;  %v559_v38 = vshll.u32 %v4388_v30, 16  ;;  %v568_v39 = vsel %vm227_vm0, %v3554_v33, 0  ;;  %v3665_v46 = vcombine.low %v3661_v40, %v4661_v41  ;;  %v3562_v7 = vld [vmem:[%s5125_s1 + $0x7] sm:$0x1]  ;;  %v3673_v19 = vld [vmem:[%s5125_s1 + $0x1f] sm:$0x1] }
  0x2a   : >> { %v490_v35 = vsel %vm487_vm5, %v488_v29, %v489_v28  ;;  %v550_v42 = vrot.slane %v548_v34, 2  ;;  %v553_v43 = vrot.slane %v551_v36, 3  ;;  %v558_v44 = vrot.slane %v556_v37, 2  ;;  %v4709_v13 = vld [vmem:[%s4544_s7 + $0x38] ss:$0 sps:$4 sm:$0x33]  }
  0x2b   : >> { %v561_v45 = vrot.slane %v559_v38, 3  ;;  %v2112_v52 = vshll.u32 %v3665_v46, 16  ;;  %v2125_v53 = vsel %vm227_vm0, %v3664_v47, 0  ;;  %v2110_v56 = vshrl.u32 %v3665_v46, 16  ;;  %v3568_v27 = vld [vmem:[%s5125_s1 + $0x8] sm:$0x1] }
  0x2c   : >> { %4008 = vmatmul.mubr.msk.bf16.vlgmr.msra.gmra.mrb[0].mxu0 %vm223_vm2, %v1854_v51  ;;  %v554_v49 = vor.u32 %v553_v43, %v550_v42  ;;  %v4390_v51 = vld [vmem:[%s4544_s7 + $0x38] ss:$0 sps:$4 sm:$0x11]   ;;  %v627_v60 = vsel %vm227_vm0, %v3557_v54, 0  ;;  %v3558_v61 = vcombine.low %v613_v58, %v4563_v14  ;;  %v2183_v6 = vsel %vm227_vm0, %v3669_v1, 0 }
  0x2d   : >> { %4012 = vmatpush3.bf16.msra.mxu0 %v1931_v55  ;;  %4013 = vmatprep.mubr.msk.bf16.mxu0 %vm4466_vm1, %v4465_v2  ;;  %v562_v50 = vor.u32 %v561_v45, %v558_v44  ;;  %v2117_v57 = vshll.u32 %v4390_v51, 16  ;;  %v3668_v14 = vld [vmem:[%s4544_s7 + $0x30] sm:$0xe]  ;;  %v689_v12 = vsel %vm227_vm0, %v3562_v7, 0  ;;  %v2177_v16 = vrot.slane %v4390_v51, 1 }
  0x2e   : >> { %4017 = vmatprep.subr.bf16.mxu0 %v4465_v2  ;;  %v620_v3 = vrot.slane %v3558_v61, 3  ;;  %v3670_v10 = vcombine.low %v3668_v14, %v4661_v41  ;;  %v2243_v24 = vshrl.u32 %v4709_v13, 16  ;;  %v2246_v25 = vshll.u32 %v4709_v13, 16  ;;  %v4396_v29 = vld [vmem:[%s4544_s7 + $0x14] ss:$0 sps:$4 sm:$0x11]  }
  0x2f   : >> { %3870 = vmatmul.mubr.msk.bf16.vlgmr.msra.gmra.mrb[0].mxu1 %vm223_vm2, %v358_v59  ;;  %v563_v55 = vsel %vm546_vm7, %v554_v49, %v562_v50  ;;  %v2114_v59 = vrot.slane %v2112_v52, 1  ;;  %v2119_v63 = vrot.slane %v2117_v57, 1  ;;  %v2255_v26 = vsel %vm227_vm0, %v3673_v19, 0  ;;  %v3677_v40 = vld [vmem:[%s5125_s1 + $0x20] sm:$0x1] }
  0x30   : >> { %3874 = vmatpush3.bf16.msra.mxu1 %v436_v4  ;;  %3875 = vmatprep.mubr.msk.bf16.mxu1 %vm4466_vm1, %v4465_v2  ;;  %v621_v4 = vrot.slane %v4388_v30, 3  ;;  %v2176_v15 = vrot.slane %v3670_v10, 1  ;;  %v2235_v20 = vshrl.u32 %v3670_v10, 16  ;;  %v2248_v33 = vrot.slane %v2246_v25, 2  ;;  %v3676_v46 = vld [vmem:[%s4544_s7 + $0x30] sm:$0xc] }
  0x31   : >> { %3879 = vmatprep.subr.bf16.mxu1 %v4465_v2  ;;  %v2115_v62 = vor.u32 %v2114_v59, %v2110_v56  ;;  %v763_v34 = vsel %vm227_vm0, %v3568_v27, 0  ;;  %v755_v37 = vshll.u32 %v4396_v29, 16  ;;  %v2313_v45 = vsel %vm227_vm0, %v3677_v40, 0  ;;  %v3573_v47 = vld [vmem:[%s5125_s1 + $0x9] sm:$0x1] }
  0x32   : >> { %v622_v8 = vsel %vm619_vm8, %v620_v3, %v621_v4  ;;  %v2178_v22 = vsel %vm355_vm6, %v2176_v15, %v2177_v16  ;;  %v2237_v28 = vrot.slane %v2235_v20, 1  ;;  %v3678_v49 = vcombine.low %v3676_v46, %v4661_v41  ;;  %v3572_v51 = vld [vmem:[%s4544_s7 + $0xc] sm:$0xe]  ;;  %v3681_v56 = vld [vmem:[%s5125_s1 + $0x21] sm:$0x1] }
  0x33   : >> { %v2120_v5 = vsel %vm287_vm4, %v2115_v62, %v2119_v63  ;;  %v757_v43 = vrot.slane %v755_v37, 1  ;;  %v821_v50 = vsel %vm227_vm0, %v3573_v47, 0  ;;  %v2307_v54 = vrot.slane %v4709_v13, 2  ;;  %v3577_v4 = vld [vmem:[%s5125_s1 + $0xa] sm:$0x1] }
  0x34   : >> { %v2365_v57 = vshrl.u32 %v3678_v49, 16  ;;  %v815_v59 = vrot.slane %v4396_v29, 1  ;;  %v2368_v62 = vshll.u32 %v3678_v49, 16  ;;  %v2385_v3 = vsel %vm227_vm0, %v3681_v56, 0  ;;  %v3581_v29 = vld [vmem:[%s5125_s1 + $0xb] sm:$0x1] }
  0x35   : >> { %v893_v16 = vsel %vm227_vm0, %v3577_v4, 0  ;;  %vm3398_vm9 = vcmask 23552  }
  0x38   : >> { %4014 = vmatmul.mubr.msk.bf16.vlgmr.msra.gmra.mrb[0].mxu0 %vm223_vm2, %v1926_v17  ;;  %v3565_v17 = vld [vmem:[%s4544_s7 + $0xc] sm:$0xf] }
  0x39   : >> { %4018 = vmatpush3.bf16.msra.mxu0 %v1989_v18  ;;  %4019 = vmatprep.mubr.msk.bf16.mxu0 %vm4466_vm1, %v4465_v2  ;;  %v4714_v18 = vld [vmem:[%s4544_s7 + $0x10] sm:$0xf] }
  0x3a   : >> { %4023 = vmatprep.subr.bf16.mxu0 %v4465_v2  ;;  %v3574_v52 = vcombine.low %v3572_v51, %v4714_v18  ;;  %v4830_v51 = vld [vmem:[%s4544_s7 + $0x40] sm:$0xf] }
  0x3b   : >> { %3876 = vmatmul.mubr.msk.bf16.vlgmr.msra.gmra.mrb[0].mxu1 %vm223_vm2, %v431_v21  ;;  %v3569_v21 = vcombine.low %v3565_v17, %v4714_v18 }
  0x3c   : >> { %3880 = vmatpush3.bf16.msra.mxu1 %v495_v23  ;;  %3881 = vmatprep.mubr.msk.bf16.mxu1 %vm4466_vm1, %v4465_v2  ;;  %v2238_v23 = vshll.u32 %v3670_v10, 16  ;;  %v814_v58 = vrot.slane %v3574_v52, 1  ;;  %v876_v7 = vshll.u32 %v3574_v52, 16 }
  0x3d   : >> { %3885 = vmatprep.subr.bf16.mxu1 %v4465_v2  ;;  %v750_v30 = vshll.u32 %v3569_v21, 16 }
  0x3e   : >> { %v816_v14 = vsel %vm355_vm6, %v814_v58, %v815_v59  ;;  %v878_v19 = vrot.slane %v876_v7, 2  ;;  %v4403_v58 = vld [vmem:[%s4544_s7 + $0x3c] sm:$0xff]   ;;  %v3588_v7 = vld [vmem:[%s4544_s7 + $0xc] sm:$0x8] }
  0x3f   : >> { %v752_v36 = vrot.slane %v750_v30, 1 }
  0x44   : >> { %4020 = vmatmul.mubr.msk.bf16.vlgmr.msra.gmra.mrb[0].mxu0 %vm223_vm2, %v1984_v31  ;;  %v2240_v31 = vrot.slane %v2238_v23, 2 }
  0x45   : >> { %4024 = vmatpush3.bf16.msra.mxu0 %v2051_v32  ;;  %4025 = vmatprep.mubr.msk.bf16.mxu0 %vm4466_vm1, %v4465_v2  ;;  %v2245_v32 = vrot.slane %v2243_v24, 1  ;;  %v3685_v24 = vld [vmem:[%s5125_s1 + $0x22] sm:$0x1] }
  0x46   : >> { %4029 = vmatprep.subr.bf16.mxu0 %v4465_v2  ;;  %v2241_v38 = vor.u32 %v2240_v31, %v2237_v28  ;;  %v3684_v28 = vld [vmem:[%s4544_s7 + $0x30] sm:$0x8] }
  0x47   : >> { %3882 = vmatmul.mubr.msk.bf16.vlgmr.msra.gmra.mrb[0].mxu1 %vm223_vm2, %v490_v35  ;;  %v748_v35 = vshrl.u32 %v3569_v21, 16  ;;  %v3686_v31 = vcombine.low %v3684_v28, %v4661_v41  ;;  %v3690_v41 = vld [vmem:[%s5125_s1 + $0x23] sm:$0x1]  ;;  %v3705_v28 = vld [vmem:[%s5125_s1 + $0x26] sm:$0x1] }
  0x48   : >> { %3886 = vmatpush3.bf16.msra.mxu1 %v568_v39  ;;  %3887 = vmatprep.mubr.msk.bf16.mxu1 %vm4466_vm1, %v4465_v2  ;;  %v2249_v39 = vor.u32 %v2248_v33, %v2245_v32  ;;  %v951_v32 = vsel %vm227_vm0, %v3581_v29, 0  ;;  %v3580_v33 = vld [vmem:[%s4544_s7 + $0xc] sm:$0xc] }
  0x49   : >> { %3891 = vmatprep.subr.bf16.mxu1 %v4465_v2  ;;  %v753_v42 = vor.u32 %v752_v36, %v748_v35  ;;  %v2436_v35 = vrot.slane %v3686_v31, 3 }
  0x4a   : >> { %v2250_v44 = vsel %vm414_vm3, %v2241_v38, %v2249_v39  ;;  %v4404_v39 = vld [vmem:[%s4544_s7 + $0x14] ss:$0 sps:$4 sm:$0x77]  }
  0x4b   : >> { %v1011_v47 = vshrl.u32 %v4404_v39, 16 }
  0x50   : >> { %4026 = vmatmul.mubr.msk.bf16.vlgmr.msra.gmra.mrb[0].mxu0 %vm223_vm2, %v4387_v48  ;;  %v758_v48 = vsel %vm287_vm4, %v753_v42, %v757_v43  ;;  %v2505_v42 = vsel %vm227_vm0, %v3690_v41, 0  ;;  %v3585_v43 = vld [vmem:[%s5125_s1 + $0xc] sm:$0x1]  ;;  %v4409_v41 = vld [vmem:[%s4544_s7 + $0x18] sm:$0xff]  }
  0x51   : >> { %4030 = vmatpush3.bf16.msra.mxu0 %v2125_v53  ;;  %4031 = vmatprep.mubr.msk.bf16.mxu0 %vm4466_vm1, %v4465_v2  ;;  %v2306_v53 = vrot.slane %v3678_v49, 2  ;;  %v1023_v49 = vsel %vm227_vm0, %v3585_v43, 0 }
  0x52   : >> { %4035 = vmatprep.subr.bf16.mxu0 %v4465_v2 }
  0x53   : >> { %3888 = vmatmul.mubr.msk.bf16.vlgmr.msra.gmra.mrb[0].mxu1 %vm223_vm2, %v563_v55  ;;  %v4761_v55 = vld [vmem:[%s4544_s7 + $0x38] ss:$0 sps:$4 sm:$0x77]   ;;  %v2308_v61 = vsel %vm487_vm5, %v2306_v53, %v2307_v54  ;;  %v1013_v54 = vrot.slane %v1011_v47, 2 }
  0x54   : >> { %3892 = vmatpush3.bf16.msra.mxu1 %v627_v60  ;;  %3893 = vmatprep.mubr.msk.bf16.mxu1 %vm4466_vm1, %v4465_v2  ;;  %v4768_v60 = vld [vmem:[%s4544_s7 + $0x14] ss:$0 sps:$4 sm:$0x33]   ;;  %v2373_v63 = vshrl.u32 %v4761_v55, 16  ;;  %v2376_v1 = vshll.u32 %v4761_v55, 16  ;;  %v2437_v36 = vrot.slane %v4761_v55, 3 }
  0x55   : >> { %3897 = vmatprep.subr.bf16.mxu1 %v4465_v2  ;;  %v884_v10 = vshll.u32 %v4768_v60, 16  ;;  %v945_v38 = vrot.slane %v4768_v60, 2 }
  0x56   : >> { %v2375_v13 = vrot.slane %v2373_v63, 2  ;;  %v2378_v15 = vrot.slane %v2376_v1, 3  ;;  %v2438_v40 = vsel %vm619_vm8, %v2436_v35, %v2437_v36  ;;  %v3589_v1 = vld [vmem:[%s5125_s1 + $0xd] sm:$0x1]  ;;  %v2709_v35 = vsel %vm227_vm0, %v3705_v28, 0 }
  0x57   : >> { %v886_v21 = vrot.slane %v884_v10, 2  ;;  %v3600_v36 = vld [vmem:[%s5125_s1 + $0xf] sm:$0x1] }
  0x58   : >> { %v2379_v23 = vor.u32 %v2378_v15, %v2375_v13  ;;  %v3701_v13 = vld [vmem:[%s5125_s1 + $0x25] sm:$0x1] }
  0x5c   : >> { %4032 = vmatmul.mubr.msk.bf16.vlgmr.msra.gmra.mrb[0].mxu0 %vm223_vm2, %v2120_v5  ;;  %v2367_v5 = vrot.slane %v2365_v57, 2  ;;  %v3696_v57 = vld [vmem:[%s5125_s1 + $0x24] sm:$0x1] }
  0x5d   : >> { %4036 = vmatpush3.bf16.msra.mxu0 %v2183_v6  ;;  %4037 = vmatprep.mubr.msk.bf16.mxu0 %vm4466_vm1, %v4465_v2  ;;  %v873_v6 = vshrl.u32 %v3574_v52, 16  ;;  %v2579_v63 = vsel %vm227_vm0, %v3696_v57, 0  ;;  %v3605_v57 = vld [vmem:[%s5125_s1 + $0x10] sm:$0x1] }
  0x5e   : >> { %4041 = vmatprep.subr.bf16.mxu0 %v4465_v2 }
  0x5f   : >> { %3894 = vmatmul.mubr.msk.bf16.vlgmr.msra.gmra.mrb[0].mxu1 %vm223_vm2, %v622_v8  ;;  %v881_v8 = vshrl.u32 %v4768_v60, 16  ;;  %v875_v17 = vrot.slane %v873_v6, 1 }
  0x60   : >> { %3898 = vmatpush3.bf16.msra.mxu1 %v689_v12  ;;  %3899 = vmatprep.mubr.msk.bf16.mxu1 %vm4466_vm1, %v4465_v2  ;;  %v2370_v12 = vrot.slane %v2368_v62, 3 }
  0x61   : >> { %3903 = vmatprep.subr.bf16.mxu1 %v4465_v2  ;;  %v883_v20 = vrot.slane %v881_v8, 1  ;;  %v879_v25 = vor.u32 %v878_v19, %v875_v17  ;;  %v3590_v8 = vcombine.low %v3588_v7, %v4714_v18  ;;  %v2637_v19 = vsel %vm227_vm0, %v3701_v13, 0  ;;  %v4416_v7 = vld [vmem:[%s4544_s7 + $0x20] ss:$0 sps:$4 sm:$0x33]  }
  0x63   : >> { %v1074_v15 = vrot.slane %v3590_v8, 3 }
  0x68   : >> { %4038 = vmatmul.mubr.msk.bf16.vlgmr.msra.gmra.mrb[0].mxu0 %vm223_vm2, %v2178_v22  ;;  %v2371_v22 = vor.u32 %v2370_v12, %v2367_v5 }
  0x69   : >> { %4042 = vmatpush3.bf16.msra.mxu0 %v2255_v26  ;;  %4043 = vmatprep.mubr.msk.bf16.mxu0 %vm4466_vm1, %v4465_v2  ;;  %v887_v26 = vor.u32 %v886_v21, %v883_v20  ;;  %v3700_v20 = vld [vmem:[%s4544_s7 + $0x3c] sm:$0xe] }
  0x6a   : >> { %4047 = vmatprep.subr.bf16.mxu0 %v4465_v2  ;;  %v2380_v27 = vsel %vm546_vm7, %v2371_v22, %v2379_v23  ;;  %v3702_v22 = vcombine.low %v3700_v20, %v4830_v51 }
  0x6b   : >> { %3900 = vmatmul.mubr.msk.bf16.vlgmr.msra.gmra.mrb[0].mxu1 %vm223_vm2, %v4393_v9  ;;  %v2443_v9 = vsel %vm227_vm0, %v3685_v24, 0  ;;  %v888_v30 = vsel %vm414_vm3, %v879_v25, %v887_v26  ;;  %v4878_v24 = vld [vmem:[%s4544_s7 + $0x44] ss:$0 sps:$4 sm:$0x33]  }
  0x6c   : >> { %3904 = vmatpush3.bf16.msra.mxu1 %v763_v34  ;;  %3905 = vmatprep.mubr.msk.bf16.mxu1 %vm4466_vm1, %v4465_v2  ;;  %v3582_v34 = vcombine.low %v3580_v33, %v4714_v18  ;;  %v3594_v18 = vld [vmem:[%s5125_s1 + $0xe] sm:$0x1]  ;;  %v2630_v25 = vrot.slane %v3702_v22, 1  ;;  %v2689_v29 = vshrl.u32 %v3702_v22, 16  ;;  %v2697_v33 = vshrl.u32 %v4878_v24, 16 }
  0x6d   : >> { %3909 = vmatprep.subr.bf16.mxu1 %v4465_v2  ;;  %v1143_v23 = vsel %vm227_vm0, %v3594_v18, 0 }
  0x6e   : >> { %v944_v37 = vrot.slane %v3582_v34, 2  ;;  %v1006_v46 = vshll.u32 %v3582_v34, 16 }
  0x70   : >> { %v1008_v53 = vrot.slane %v1006_v46, 3 }
  0x74   : >> { %4044 = vmatmul.mubr.msk.bf16.vlgmr.msra.gmra.mrb[0].mxu0 %vm223_vm2, %v2250_v44  ;;  %v1003_v44 = vshrl.u32 %v3582_v34, 16  ;;  %v2700_v34 = vshll.u32 %v4878_v24, 16 }
  0x75   : >> { %4048 = vmatpush3.bf16.msra.mxu0 %v2313_v45  ;;  %4049 = vmatprep.mubr.msk.bf16.mxu0 %vm4466_vm1, %v4465_v2  ;;  %v946_v45 = vsel %vm487_vm5, %v944_v37, %v945_v38  ;;  %v2691_v37 = vrot.slane %v2689_v29, 1  ;;  %v4412_v38 = vld [vmem:[%s4544_s7 + $0x20] ss:$0 sps:$4 sm:$0x11]  }
  0x76   : >> { %4053 = vmatprep.subr.bf16.mxu0 %v4465_v2  ;;  %v1005_v52 = vrot.slane %v1003_v44, 2  ;;  %v2702_v43 = vrot.slane %v2700_v34, 2  ;;  %v1217_v44 = vsel %vm227_vm0, %v3600_v36, 0  ;;  %v1209_v47 = vshll.u32 %v4412_v38, 16 }
  0x77   : >> { %3906 = vmatmul.mubr.msk.bf16.vlgmr.msra.gmra.mrb[0].mxu1 %vm223_vm2, %v758_v48  ;;  %v1014_v48 = vshll.u32 %v4404_v39, 16 }
  0x78   : >> { %3910 = vmatpush3.bf16.msra.mxu1 %v821_v50  ;;  %3911 = vmatprep.mubr.msk.bf16.mxu1 %vm4466_vm1, %v4465_v2  ;;  %v3693_v50 = vld [vmem:[%s4544_s7 + $0x3c] sm:$0xf]  ;;  %v1009_v59 = vor.u32 %v1008_v53, %v1005_v52  ;;  %v1211_v53 = vrot.slane %v1209_v47, 1 }
  0x79   : >> { %3915 = vmatprep.subr.bf16.mxu1 %v4465_v2  ;;  %v1016_v55 = vrot.slane %v1014_v48, 3  ;;  %v3697_v56 = vcombine.low %v3693_v50, %v4830_v51  ;;  %v3709_v50 = vld [vmem:[%s5125_s1 + $0x27] sm:$0x1] }
  0x7b   : >> { %v1017_v60 = vor.u32 %v1016_v55, %v1013_v54  ;;  %v2566_v62 = vshll.u32 %v3697_v56, 16  ;;  %v2564_v4 = vshrl.u32 %v3697_v56, 16  ;;  %v2767_v55 = vsel %vm227_vm0, %v3709_v50, 0  ;;  %v3708_v56 = vld [vmem:[%s4544_s7 + $0x3c] sm:$0xc] }
  0x7d   : >> { %v2568_v5 = vrot.slane %v2566_v62, 1 }
  0x7f   : >> { %v2569_v10 = vor.u32 %v2568_v5, %v2564_v4  ;;  %v3713_v4 = vld [vmem:[%s5125_s1 + $0x28] sm:$0x1] }
  0x80   : >> { %4050 = vmatmul.mubr.msk.bf16.vlgmr.msra.gmra.mrb[0].mxu0 %vm223_vm2, %v2308_v61  ;;  %v4406_v61 = vld [vmem:[%s4544_s7 + $0x44] ss:$0 sps:$4 sm:$0x11]  }
  0x81   : >> { %4054 = vmatpush3.bf16.msra.mxu0 %v2385_v3  ;;  %4055 = vmatprep.mubr.msk.bf16.mxu0 %vm4466_vm1, %v4465_v2  ;;  %v1018_v3 = vsel %vm546_vm7, %v1009_v59, %v1017_v60  ;;  %v2571_v6 = vshll.u32 %v4406_v61, 16  ;;  %v2631_v26 = vrot.slane %v4406_v61, 1  ;;  %v3604_v59 = vld [vmem:[%s4544_s7 + $0x18] sm:$0xe]  ;;  %v3710_v60 = vcombine.low %v3708_v56, %v4830_v51 }
  0x82   : >> { %4059 = vmatprep.subr.bf16.mxu0 %v4465_v2  ;;  %v1275_v61 = vsel %vm227_vm0, %v3605_v57, 0 }
  0x83   : >> { %3912 = vmatmul.mubr.msk.bf16.vlgmr.msra.gmra.mrb[0].mxu1 %vm223_vm2, %v816_v14  ;;  %v1081_v14 = vsel %vm227_vm0, %v3589_v1, 0  ;;  %v2573_v12 = vrot.slane %v2571_v6, 1  ;;  %v2632_v31 = vsel %vm355_vm6, %v2630_v25, %v2631_v26  ;;  %v2761_v1 = vrot.slane %v4878_v24, 2 }
  0x84   : >> { %3916 = vmatpush3.bf16.msra.mxu1 %v893_v16  ;;  %3917 = vmatprep.mubr.msk.bf16.mxu1 %vm4466_vm1, %v4465_v2  ;;  %v1075_v16 = vrot.slane %v4404_v39, 3  ;;  %v1269_v6 = vrot.slane %v4412_v38, 1  ;;  %v3613_v38 = vld [vmem:[%s5125_s1 + $0x12] sm:$0x1] }
  0x85   : >> { %3921 = vmatprep.subr.bf16.mxu1 %v4465_v2  ;;  %v2574_v17 = vsel %vm287_vm4, %v2569_v10, %v2573_v12  ;;  %v2822_v10 = vshll.u32 %v3710_v60, 16 }
  0x86   : >> { %v1076_v21 = vsel %vm619_vm8, %v1074_v15, %v1075_v16  ;;  %v2839_v15 = vsel %vm227_vm0, %v3713_v4, 0  ;;  %v3609_v16 = vld [vmem:[%s5125_s1 + $0x11] sm:$0x1] }
  0x87   : >> { %v1347_v26 = vsel %vm227_vm0, %v3609_v16, 0 }
  0x8c   : >> { %4056 = vmatmul.mubr.msk.bf16.vlgmr.msra.gmra.mrb[0].mxu0 %vm223_vm2, %v2380_v27  ;;  %v3597_v27 = vld [vmem:[%s4544_s7 + $0x18] sm:$0xf] }
  0x8d   : >> { %4060 = vmatpush3.bf16.msra.mxu0 %v2443_v9  ;;  %4061 = vmatprep.mubr.msk.bf16.mxu0 %vm4466_vm1, %v4465_v2  ;;  %v4883_v9 = vld [vmem:[%s4544_s7 + $0x1c] sm:$0xf] }
  0x8e   : >> { %4065 = vmatprep.subr.bf16.mxu0 %v4465_v2  ;;  %v3606_v62 = vcombine.low %v3604_v59, %v4883_v9 }
  0x8f   : >> { %3918 = vmatmul.mubr.msk.bf16.vlgmr.msra.gmra.mrb[0].mxu1 %vm223_vm2, %v888_v30  ;;  %v3601_v30 = vcombine.low %v3597_v27, %v4883_v9 }
  0x90   : >> { %3922 = vmatpush3.bf16.msra.mxu1 %v951_v32  ;;  %3923 = vmatprep.mubr.msk.bf16.mxu1 %vm4466_vm1, %v4465_v2  ;;  %v2692_v32 = vshll.u32 %v3702_v22, 16  ;;  %v1268_v5 = vrot.slane %v3606_v62, 1  ;;  %v1327_v20 = vshrl.u32 %v3606_v62, 16  ;;  %v1330_v18 = vshll.u32 %v3606_v62, 16 }
  0x91   : >> { %3927 = vmatprep.subr.bf16.mxu1 %v4465_v2  ;;  %v1204_v39 = vshll.u32 %v3601_v30, 16  ;;  %v1338_v22 = vshll.u32 %v4416_v7, 16 }
  0x92   : >> { %v1329_v27 = vrot.slane %v1327_v20, 1  ;;  %v1332_v28 = vrot.slane %v1330_v18, 2  ;;  %v3620_v18 = vld [vmem:[%s4544_s7 + $0x18] sm:$0x8] }
  0x93   : >> { %v1206_v46 = vrot.slane %v1204_v39, 1 }
  0x94   : >> { %v1333_v34 = vor.u32 %v1332_v28, %v1329_v27 }
  0x98   : >> { %4062 = vmatmul.mubr.msk.bf16.vlgmr.msra.gmra.mrb[0].mxu0 %vm223_vm2, %v2438_v40  ;;  %v2694_v40 = vrot.slane %v2692_v32, 2 }
  0x99   : >> { %4066 = vmatpush3.bf16.msra.mxu0 %v2505_v42  ;;  %4067 = vmatprep.mubr.msk.bf16.mxu0 %vm4466_vm1, %v4465_v2  ;;  %v2699_v42 = vrot.slane %v2697_v33, 1  ;;  %v3717_v33 = vld [vmem:[%s5125_s1 + $0x29] sm:$0x1] }
  0x9a   : >> { %4071 = vmatprep.subr.bf16.mxu0 %v4465_v2  ;;  %v2695_v48 = vor.u32 %v2694_v40, %v2691_v37  ;;  %v3716_v37 = vld [vmem:[%s4544_s7 + $0x3c] sm:$0x8]  ;;  %v3612_v40 = vld [vmem:[%s4544_s7 + $0x18] sm:$0xc] }
  0x9b   : >> { %3924 = vmatmul.mubr.msk.bf16.vlgmr.msra.gmra.mrb[0].mxu1 %vm223_vm2, %v946_v45  ;;  %v1202_v45 = vshrl.u32 %v3601_v30, 16  ;;  %v1340_v30 = vrot.slane %v1338_v22, 2 }
  0x9c   : >> { %3928 = vmatpush3.bf16.msra.mxu1 %v1023_v49  ;;  %3929 = vmatprep.mubr.msk.bf16.mxu1 %vm4466_vm1, %v4465_v2  ;;  %v2703_v49 = vor.u32 %v2702_v43, %v2699_v42  ;;  %v3718_v42 = vcombine.low %v3716_v37, %v4830_v51  ;;  %v1405_v43 = vsel %vm227_vm0, %v3613_v38, 0  ;;  %v3722_v51 = vld [vmem:[%s5125_s1 + $0x2a] sm:$0x1] }
  0x9d   : >> { %3933 = vmatprep.subr.bf16.mxu1 %v4465_v2  ;;  %v1207_v52 = vor.u32 %v1206_v46, %v1202_v45  ;;  %v4432_v38 = vld [vmem:[%s4544_s7 + $0x28] sm:$0xf] }
  0x9e   : >> { %v2704_v54 = vsel %vm414_vm3, %v2695_v48, %v2703_v49  ;;  %v2890_v45 = vrot.slane %v3718_v42, 3  ;;  %v1399_v48 = vrot.slane %v4416_v7, 2  ;;  %v4420_v49 = vld [vmem:[%s4544_s7 + $0x20] ss:$0 sps:$4 sm:$0x77]  }
  0x9f   : >> { %v1465_v57 = vshrl.u32 %v4420_v49, 16 }
  0xa4   : >> { %4068 = vmatmul.mubr.msk.bf16.vlgmr.msra.gmra.mrb[0].mxu0 %vm223_vm2, %v4403_v58  ;;  %v1212_v58 = vsel %vm287_vm4, %v1207_v52, %v1211_v53  ;;  %v2959_v52 = vsel %vm227_vm0, %v3722_v51, 0  ;;  %v3617_v53 = vld [vmem:[%s5125_s1 + $0x13] sm:$0x1]  ;;  %v4425_v51 = vld [vmem:[%s4544_s7 + $0x24] sm:$0xff]  }
  0xa5   : >> { %4072 = vmatpush3.bf16.msra.mxu0 %v2579_v63  ;;  %4073 = vmatprep.mubr.msk.bf16.mxu0 %vm4466_vm1, %v4465_v2  ;;  %v2760_v63 = vrot.slane %v3710_v60, 2  ;;  %v1477_v59 = vsel %vm227_vm0, %v3617_v53, 0 }
  0xa6   : >> { %4077 = vmatprep.subr.bf16.mxu0 %v4465_v2 }
  0xa7   : >> { %3930 = vmatmul.mubr.msk.bf16.vlgmr.msra.gmra.mrb[0].mxu1 %vm223_vm2, %v1018_v3  ;;  %v4930_v3 = vld [vmem:[%s4544_s7 + $0x44] ss:$0 sps:$4 sm:$0x77]   ;;  %v2762_v8 = vsel %vm487_vm5, %v2760_v63, %v2761_v1  ;;  %v1467_v1 = vrot.slane %v1465_v57, 2 }
  0xa8   : >> { %3934 = vmatpush3.bf16.msra.mxu1 %v1081_v14  ;;  %3935 = vmatprep.mubr.msk.bf16.mxu1 %vm4466_vm1, %v4465_v2  ;;  %v2819_v14 = vshrl.u32 %v3710_v60, 16  ;;  %v2827_v12 = vshrl.u32 %v4930_v3, 16  ;;  %v2830_v13 = vshll.u32 %v4930_v3, 16  ;;  %v2891_v46 = vrot.slane %v4930_v3, 3  ;;  %v3725_v60 = vld [vmem:[%s4544_s7 + $0x48] sm:$0xf] }
  0xa9   : >> { %3939 = vmatprep.subr.bf16.mxu1 %v4465_v2 }
  0xaa   : >> { %v2829_v24 = vrot.slane %v2827_v12, 2  ;;  %v2832_v25 = vrot.slane %v2830_v13, 3  ;;  %v2892_v50 = vsel %vm619_vm8, %v2890_v45, %v2891_v46  ;;  %v3621_v13 = vld [vmem:[%s5125_s1 + $0x14] sm:$0x1]  ;;  %v3632_v46 = vld [vmem:[%s5125_s1 + $0x16] sm:$0x1] }
  0xab   : >> { %v1535_v20 = vsel %vm227_vm0, %v3621_v13, 0  ;;  %v3745_v13 = vld [vmem:[%s5125_s1 + $0x2f] sm:$0x1] }
  0xac   : >> { %v2833_v32 = vor.u32 %v2832_v25, %v2829_v24  ;;  %v3733_v24 = vld [vmem:[%s5125_s1 + $0x2c] sm:$0x1] }
  0xad   : >> { %v3091_v28 = vsel %vm227_vm0, %v3733_v24, 0 }
  0xb0   : >> { %4074 = vmatmul.mubr.msk.bf16.vlgmr.msra.gmra.mrb[0].mxu0 %vm223_vm2, %v2574_v17  ;;  %v1270_v17 = vsel %vm355_vm6, %v1268_v5, %v1269_v6  ;;  %v3728_v5 = vld [vmem:[%s5125_s1 + $0x2b] sm:$0x1] }
  0xb1   : >> { %4078 = vmatpush3.bf16.msra.mxu0 %v2637_v19  ;;  %4079 = vmatprep.mubr.msk.bf16.mxu0 %vm4466_vm1, %v4465_v2  ;;  %v2821_v19 = vrot.slane %v2819_v14, 2  ;;  %v4419_v6 = vld [vmem:[%s4544_s7 + $0x48] sm:$0xff]   ;;  %v3033_v12 = vsel %vm227_vm0, %v3728_v5, 0  ;;  %v3637_v5 = vld [vmem:[%s5125_s1 + $0x17] sm:$0x1] }
  0xb2   : >> { %4083 = vmatprep.subr.bf16.mxu0 %v4465_v2 }
  0xb3   : >> { %3936 = vmatmul.mubr.msk.bf16.vlgmr.msra.gmra.mrb[0].mxu1 %vm223_vm2, %v1076_v21  ;;  %v1335_v21 = vshrl.u32 %v4416_v7, 16 }
  0xb4   : >> { %3940 = vmatpush3.bf16.msra.mxu1 %v1143_v23  ;;  %3941 = vmatprep.mubr.msk.bf16.mxu1 %vm4466_vm1, %v4465_v2  ;;  %v2824_v23 = vrot.slane %v2822_v10, 3 }
  0xb5   : >> { %3945 = vmatprep.subr.bf16.mxu1 %v4465_v2  ;;  %v1337_v29 = vrot.slane %v1335_v21, 1  ;;  %v3622_v21 = vcombine.low %v3620_v18, %v4883_v9 }
  0xb7   : >> { %v1528_v25 = vrot.slane %v3622_v21, 3 }
  0xbc   : >> { %4080 = vmatmul.mubr.msk.bf16.vlgmr.msra.gmra.mrb[0].mxu0 %vm223_vm2, %v2632_v31  ;;  %v2825_v31 = vor.u32 %v2824_v23, %v2821_v19 }
  0xbd   : >> { %4084 = vmatpush3.bf16.msra.mxu0 %v2709_v35  ;;  %4085 = vmatprep.mubr.msk.bf16.mxu0 %vm4466_vm1, %v4465_v2  ;;  %v1341_v35 = vor.u32 %v1340_v30, %v1337_v29  ;;  %v3732_v29 = vld [vmem:[%s4544_s7 + $0x48] sm:$0xe] }
  0xbe   : >> { %4089 = vmatprep.subr.bf16.mxu0 %v4465_v2  ;;  %v2834_v36 = vsel %vm546_vm7, %v2825_v31, %v2833_v32 }
  0xbf   : >> { %3942 = vmatmul.mubr.msk.bf16.vlgmr.msra.gmra.mrb[0].mxu1 %vm223_vm2, %v4409_v41  ;;  %v2897_v41 = vsel %vm227_vm0, %v3717_v33, 0  ;;  %v1342_v39 = vsel %vm414_vm3, %v1333_v34, %v1341_v35  ;;  %v4426_v35 = vld [vmem:[%s4544_s7 + $0x50] ss:$0 sps:$4 sm:$0x33]  }
  0xc0   : >> { %3946 = vmatpush3.bf16.msra.mxu1 %v1217_v44  ;;  %3947 = vmatprep.mubr.msk.bf16.mxu1 %vm4466_vm1, %v4465_v2  ;;  %v3614_v44 = vcombine.low %v3612_v40, %v4883_v9  ;;  %v3626_v9 = vld [vmem:[%s5125_s1 + $0x15] sm:$0x1] }
  0xc1   : >> { %3951 = vmatprep.subr.bf16.mxu1 %v4465_v2  ;;  %v1597_v32 = vsel %vm227_vm0, %v3626_v9, 0 }
  0xc2   : >> { %v1398_v47 = vrot.slane %v3614_v44, 2  ;;  %v1460_v56 = vshll.u32 %v3614_v44, 16 }
  0xc4   : >> { %v1462_v63 = vrot.slane %v1460_v56, 3 }
  0xc8   : >> { %4086 = vmatmul.mubr.msk.bf16.vlgmr.msra.gmra.mrb[0].mxu0 %vm223_vm2, %v2704_v54  ;;  %v1400_v54 = vsel %vm487_vm5, %v1398_v47, %v1399_v48  ;;  %v4428_v48 = vld [vmem:[%s4544_s7 + $0x2c] ss:$0 sps:$4 sm:$0x11]  }
  0xc9   : >> { %4090 = vmatpush3.bf16.msra.mxu0 %v2767_v55  ;;  %4091 = vmatprep.mubr.msk.bf16.mxu0 %vm4466_vm1, %v4465_v2  ;;  %v1457_v55 = vshrl.u32 %v3614_v44, 16  ;;  %v3154_v44 = vshll.u32 %v4426_v35, 16  ;;  %v1663_v57 = vshll.u32 %v4428_v48, 16 }
  0xca   : >> { %4095 = vmatprep.subr.bf16.mxu0 %v4465_v2 }
  0xcb   : >> { %3948 = vmatmul.mubr.msk.bf16.vlgmr.msra.gmra.mrb[0].mxu1 %vm223_vm2, %v1212_v58  ;;  %v1468_v58 = vshll.u32 %v4420_v49, 16  ;;  %v1459_v62 = vrot.slane %v1457_v55, 2  ;;  %v3156_v53 = vrot.slane %v3154_v44, 2 }
  0xcc   : >> { %3952 = vmatpush3.bf16.msra.mxu1 %v1275_v61  ;;  %3953 = vmatprep.mubr.msk.bf16.mxu1 %vm4466_vm1, %v4465_v2  ;;  %v4994_v61 = vld [vmem:[%s4544_s7 + $0x4c] sm:$0xf] }
  0xcd   : >> { %3957 = vmatprep.subr.bf16.mxu1 %v4465_v2  ;;  %v1470_v3 = vrot.slane %v1468_v58, 3  ;;  %v3729_v4 = vcombine.low %v3725_v60, %v4994_v61  ;;  %v1463_v14 = vor.u32 %v1462_v63, %v1459_v62  ;;  %v3734_v31 = vcombine.low %v3732_v29, %v4994_v61  ;;  %v3741_v60 = vld [vmem:[%s5125_s1 + $0x2e] sm:$0x1]  ;;  %v3749_v29 = vld [vmem:[%s5125_s1 + $0x30] sm:$0x1] }
  0xce   : >> { %v1665_v63 = vrot.slane %v1663_v57, 1 }
  0xcf   : >> { %v1471_v7 = vor.u32 %v1470_v3, %v1467_v1  ;;  %v3020_v10 = vshll.u32 %v3729_v4, 16  ;;  %v3018_v16 = vshrl.u32 %v3729_v4, 16  ;;  %v3084_v34 = vrot.slane %v3734_v31, 1  ;;  %v3740_v3 = vld [vmem:[%s4544_s7 + $0x48] sm:$0xc] }
  0xd0   : >> { %v3143_v37 = vshrl.u32 %v3734_v31, 16  ;;  %v3146_v42 = vshll.u32 %v3734_v31, 16  ;;  %v3221_v4 = vsel %vm227_vm0, %v3741_v60, 0  ;;  %v3748_v31 = vld [vmem:[%s4544_s7 + $0x48] sm:$0x8] }
  0xd2   : >> { %v3145_v47 = vrot.slane %v3143_v37, 1 }
  0xd4   : >> { %4092 = vmatmul.mubr.msk.bf16.vlgmr.msra.gmra.mrb[0].mxu0 %vm223_vm2, %v2762_v8  ;;  %v4422_v8 = vld [vmem:[%s4544_s7 + $0x50] ss:$0 sps:$4 sm:$0x11]  }
  0xd5   : >> { %4096 = vmatpush3.bf16.msra.mxu0 %v2839_v15  ;;  %4097 = vmatprep.mubr.msk.bf16.mxu0 %vm4466_vm1, %v4465_v2  ;;  %v1472_v15 = vsel %vm546_vm7, %v1463_v14, %v1471_v7  ;;  %v3025_v19 = vshll.u32 %v4422_v8, 16  ;;  %v3085_v33 = vrot.slane %v4422_v8, 1  ;;  %v3742_v14 = vcombine.low %v3740_v3, %v4994_v61 }
  0xd6   : >> { %4101 = vmatprep.subr.bf16.mxu0 %v4465_v2  ;;  %v1729_v7 = vsel %vm227_vm0, %v3637_v5, 0 }
  0xd7   : >> { %3954 = vmatmul.mubr.msk.bf16.vlgmr.msra.gmra.mrb[0].mxu1 %vm223_vm2, %v1270_v17  ;;  %v3022_v17 = vrot.slane %v3020_v10, 1  ;;  %v3027_v23 = vrot.slane %v3025_v19, 1  ;;  %v3086_v40 = vsel %vm355_vm6, %v3084_v34, %v3085_v33  ;;  %v3214_v8 = vrot.slane %v3742_v14, 2 }
  0xd8   : >> { %3958 = vmatpush3.bf16.msra.mxu1 %v1347_v26  ;;  %3959 = vmatprep.mubr.msk.bf16.mxu1 %vm4466_vm1, %v4465_v2  ;;  %v1529_v26 = vrot.slane %v4420_v49, 3  ;;  %v3215_v10 = vrot.slane %v4426_v35, 2  ;;  %v3273_v19 = vshrl.u32 %v3742_v14, 16 }
  0xd9   : >> { %3963 = vmatprep.subr.bf16.mxu1 %v4465_v2  ;;  %v3023_v22 = vor.u32 %v3022_v17, %v3018_v16  ;;  %v1722_v16 = vrot.slane %v4556_v11, 1  ;;  %v1723_v17 = vrot.slane %v4428_v48, 1 }
  0xda   : >> { %v1530_v30 = vsel %vm619_vm8, %v1528_v25, %v1529_v26  ;;  %v3275_v24 = vrot.slane %v3273_v19, 2 }
  0xdb   : >> { %v3028_v27 = vsel %vm287_vm4, %v3023_v22, %v3027_v23  ;;  %v3293_v22 = vsel %vm227_vm0, %v3745_v13, 0  ;;  %v1724_v23 = vsel %vm355_vm6, %v1722_v16, %v1723_v17 }
  0xe0   : >> { %4098 = vmatmul.mubr.msk.bf16.vlgmr.msra.gmra.mrb[0].mxu0 %vm223_vm2, %v2834_v36  ;;  %v3629_v36 = vld [vmem:[%s4544_s7 + $0x24] sm:$0xf] }
  0xe1   : >> { %4102 = vmatpush3.bf16.msra.mxu0 %v2897_v41  ;;  %4103 = vmatprep.mubr.msk.bf16.mxu0 %vm4466_vm1, %v4465_v2  ;;  %v3737_v41 = vld [vmem:[%s5125_s1 + $0x2d] sm:$0x1] }
  0xe2   : >> { %4107 = vmatprep.subr.bf16.mxu0 %v4465_v2  ;;  %v3163_v45 = vsel %vm227_vm0, %v3737_v41, 0 }
  0xe3   : >> { %3960 = vmatmul.mubr.msk.bf16.vlgmr.msra.gmra.mrb[0].mxu1 %vm223_vm2, %v1342_v39  ;;  %v3633_v39 = vcombine.low %v3629_v36, %v4432_v38 }
  0xe4   : >> { %3964 = vmatpush3.bf16.msra.mxu1 %v1405_v43  ;;  %3965 = vmatprep.mubr.msk.bf16.mxu1 %vm4466_vm1, %v4465_v2  ;;  %v3151_v43 = vshrl.u32 %v4426_v35, 16 }
  0xe5   : >> { %3969 = vmatprep.subr.bf16.mxu1 %v4465_v2  ;;  %v1658_v49 = vshll.u32 %v3633_v39, 16  ;;  %v1656_v55 = vshrl.u32 %v3633_v39, 16 }
  0xe7   : >> { %v1660_v56 = vrot.slane %v1658_v49, 1 }
  0xe9   : >> { %v1661_v62 = vor.u32 %v1660_v56, %v1656_v55 }
  0xec   : >> { %4104 = vmatmul.mubr.msk.bf16.vlgmr.msra.gmra.mrb[0].mxu0 %vm223_vm2, %v2892_v50  ;;  %v3148_v50 = vrot.slane %v3146_v42, 2 }
  0xed   : >> { %4108 = vmatpush3.bf16.msra.mxu0 %v2959_v52  ;;  %4109 = vmatprep.mubr.msk.bf16.mxu0 %vm4466_vm1, %v4465_v2  ;;  %v3153_v52 = vrot.slane %v3151_v43, 1 }
  0xee   : >> { %4113 = vmatprep.subr.bf16.mxu0 %v4465_v2  ;;  %v3149_v58 = vor.u32 %v3148_v50, %v3145_v47 }
  0xef   : >> { %3966 = vmatmul.mubr.msk.bf16.vlgmr.msra.gmra.mrb[0].mxu1 %vm223_vm2, %v1400_v54  ;;  %v1671_v54 = vsel %vm227_vm0, %v3632_v46, 0 }
  0xf0   : >> { %3970 = vmatpush3.bf16.msra.mxu1 %v1477_v59  ;;  %3971 = vmatprep.mubr.msk.bf16.mxu1 %vm4466_vm1, %v4465_v2  ;;  %v3157_v59 = vor.u32 %v3156_v53, %v3153_v52 }
  0xf1   : >> { %3975 = vmatprep.subr.bf16.mxu1 %v4465_v2 }
  0xf2   : >> { %v3158_v1 = vsel %vm414_vm3, %v3149_v58, %v3157_v59 }
  0xf8   : >> { %4110 = vmatmul.mubr.msk.bf16.vlgmr.msra.gmra.mrb[0].mxu0 %vm223_vm2, %v4419_v6  ;;  %v1666_v6 = vsel %vm287_vm4, %v1661_v62, %v1665_v63 }
  0xf9   : >> { %4114 = vmatpush3.bf16.msra.mxu0 %v3033_v12  ;;  %4115 = vmatprep.mubr.msk.bf16.mxu0 %vm4466_vm1, %v4465_v2  ;;  %v4430_v12 = vld [vmem:[%s4544_s7 + $0x50] ss:$0 sps:$4 sm:$0x77]   ;;  %s3752_s7 = sshll.u32 %s4463_s26, 4  ;;  %s210_s26 = sadd.s32 1, %s4463_s26  }
  0xfa   : >> { %4119 = vmatprep.subr.bf16.mxu0 %v4465_v2  ;;  %v3281_v18 = vshrl.u32 %v4430_v12, 16  ;;  %v3284_v21 = vshll.u32 %v4430_v12, 16  ;;  %v3345_v34 = vrot.slane %v4430_v12, 3  ;;  %s3397_s24 = scalar_lea.vmem %s4513_s22, %s3752_s7  ;;  %p207_p5 = scmp.ge.s32.totalorder %s210_s26, 16  }
  0xfb   : >> { %3972 = vmatmul.mubr.msk.bf16.vlgmr.msra.gmra.mrb[0].mxu1 %vm223_vm2, %v1472_v15  ;;  %v3216_v15 = vsel %vm487_vm5, %v3214_v8, %v3215_v10 }
  0xfc   : >> { %3976 = vmatpush3.bf16.msra.mxu1 %v1535_v20  ;;  %3977 = vmatprep.mubr.msk.bf16.mxu1 %vm4466_vm1, %v4465_v2  ;;  %v3276_v20 = vshll.u32 %v3742_v14, 16  ;;  %v3283_v26 = vrot.slane %v3281_v18, 2  ;;  %v3286_v11 = vrot.slane %v3284_v21, 3 }
  0xfd   : >> { %3981 = vmatprep.subr.bf16.mxu1 %v4465_v2 }
  0xfe   : >> { %v3278_v25 = vrot.slane %v3276_v20, 3 }
 0x104   : >> { %4116 = vmatmul.mubr.msk.bf16.vlgmr.msra.gmra.mrb[0].mxu0 %vm223_vm2, %v3028_v27  ;;  %v3279_v27 = vor.u32 %v3278_v25, %v3275_v24 }
 0x105   : >> { %4120 = vmatpush3.bf16.msra.mxu0 %v3091_v28  ;;  %4121 = vmatprep.mubr.msk.bf16.mxu0 %vm4466_vm1, %v4465_v2  ;;  %v3287_v28 = vor.u32 %v3286_v11, %v3283_v26 }
 0x106   : >> { %4125 = vmatprep.subr.bf16.mxu0 %v4465_v2 }
 0x107   : >> { %3978 = vmatmul.mubr.msk.bf16.vlgmr.msra.gmra.mrb[0].mxu1 %vm223_vm2, %v1530_v30  ;;  %v3288_v9 = vsel %vm546_vm7, %v3279_v27, %v3287_v28  ;;  %v3351_v30 = vsel %vm227_vm0, %v3749_v29, 0 }
 0x108   : >> { %3982 = vmatpush3.bf16.msra.mxu1 %v1597_v32  ;;  %3983 = vmatprep.mubr.msk.bf16.mxu1 %vm4466_vm1, %v4465_v2  ;;  %v3750_v32 = vcombine.low %v3748_v31, %v4994_v61 }
 0x109   : >> { %3987 = vmatprep.subr.bf16.mxu1 %v4465_v2 }
 0x10a   : >> { %v3344_v33 = vrot.slane %v3750_v32, 3 }
 0x10c   : >> { %v3346_v35 = vsel %vm619_vm8, %v3344_v33, %v3345_v34 }
 0x110   : >> { %4122 = vmatmul.mubr.msk.bf16.vlgmr.msra.gmra.mrb[0].mxu0 %vm223_vm2, %v3086_v40 }
 0x111   : >> { %4126 = vmatpush3.bf16.msra.mxu0 %v3163_v45  ;;  %4127 = vmatprep.mubr.msk.bf16.mxu0 %vm4466_vm1, %v4465_v2 }
 0x112   : >> { %4131 = vmatprep.subr.bf16.mxu0 %v4465_v2 }
 0x113   : >> { %3984 = vmatmul.mubr.msk.bf16.vlgmr.msra.gmra.mrb[0].mxu1 %vm223_vm2, %v4425_v51 }
 0x114   : >> { %3988 = vmatpush3.bf16.msra.mxu1 %v1671_v54  ;;  %3989 = vmatprep.mubr.msk.bf16.mxu1 %vm4466_vm1, %v4465_v2 }
 0x115   : >> { %3993 = vmatprep.subr.bf16.mxu1 %v4465_v2 }
 0x11c   : >> { %4128 = vmatmul.mubr.msk.bf16.vlgmr.msra.gmra.mrb[0].mxu0 %vm223_vm2, %v3158_v1 }
 0x11d   : >> { %4132 = vmatpush3.bf16.msra.mxu0 %v3221_v4  ;;  %4133 = vmatprep.mubr.msk.bf16.mxu0 %vm4466_vm1, %v4465_v2 }
 0x11e   : >> { %4137 = vmatprep.subr.bf16.mxu0 %v4465_v2 }
 0x11f   : >> { %3990 = vmatmul.mubr.msk.bf16.vlgmr.msra.gmra.mrb[0].mxu1 %vm223_vm2, %v1666_v6 }
 0x120   : >> { %3994 = vmatpush3.bf16.msra.mxu1 %v1729_v7  ;;  %3995 = vmatprep.mubr.msk.bf16.mxu1 %vm4466_vm1, %v4465_v2 }
 0x128   : >> { %4134 = vmatmul.mubr.msk.bf16.vlgmr.msra.gmra.mrb[0].mxu0 %vm223_vm2, %v3216_v15 }
 0x129   : >> { %4138 = vmatpush3.bf16.msra.mxu0 %v3293_v22  ;;  %4139 = vmatprep.mubr.msk.bf16.mxu0 %vm4466_vm1, %v4465_v2 }
 0x12a   : >> { %4143 = vmatprep.subr.bf16.mxu0 %v4465_v2 }
 0x12b   : >> { %3996 = vmatmul.mubr.msk.bf16.vlgmr.msra.gmra.mrb[0].mxu1 %vm223_vm2, %v1724_v23 }
 0x134   : >> { %4140 = vmatmul.mubr.msk.bf16.vlgmr.msra.gmra.mrb[0].mxu0 %vm223_vm2, %v3288_v9 }
 0x135   : >> { %4144 = vmatpush3.bf16.msra.mxu0 %v3351_v30  ;;  %4145 = vmatprep.mubr.msk.bf16.mxu0 %vm4466_vm1, %v4465_v2 }
 0x140   : >> { %4146 = vmatmul.mubr.msk.bf16.vlgmr.msra.gmra.mrb[0].mxu0 %vm223_vm2, %v3346_v35 }
 0x1fe   : >> { %v1765_v36 = vpop.f32.mrb[0].mxu1 }
 0x1ff   : >> { %v3997_v41 = vpop.f32.mrb[1].mxu1  ;;  %v4149_v39 = vadd.f32 %v4508_v0, %v1765_v36 }
 0x200   : >> { %v1768_v37 = vpop.f32.mrb[2].mxu1 }
 0x201   : >> { %v3998_v38 = vpop.f32.mrb[3].mxu1  ;;  %v4151_v2 = vadd.f32 %v4508_v0, %v1768_v37 }
 0x212   : > { %209 = sbr.rel (!%p207_p5) target bundleno = 18 (0x12), region = 125 }
 0x213   : >> { %v3387_v40 = vpop.f32.mrb[0].mxu0 }
 0x214   : >> { %v4150_v42 = vadd.f32 %v4149_v39, %v3387_v40  ;;  %v4147_v61 = vpop.f32.mrb[1].mxu0 }
 0x215   : >> { %v3390_v43 = vpop.f32.mrb[2].mxu0 }
 0x216   : >> { %3399 = vst.msk [vmem:[%s3397_s24] sm:$0xff] %vm3398_vm9, %v4150_v42  ;;  %v4152_v44 = vadd.f32 %v4151_v2, %v3390_v43  ;;  %v4148_v45 = vpop.f32.mrb[3].mxu0 }
 0x218   : >> { %3400 = vst.msk [vmem:[%s3397_s24 + $0x8] sm:$0xff] %vm3398_vm9, %v4152_v44 }
 0x219 PF: > { %s13_s14 = sadd.s32 1, %s4459_s14   ;;  %s5128_s12 = smov %s4455_s13 }
 0x21a   : > { %p10_p6 = scmp.ge.s32.totalorder %s13_s14, 4   ;;  %s5129_s13 = smov %s5131_s15 }
 0x21c   :  { %12 = sbr.rel (!%p10_p6) target bundleno = 2 (0x2), region = 136 }

</bundles_post_ra>
